<compile_context>
chip_gen: v7x
topology: tpu7x:2x2x1
jax: 0.10.0
libtpu: 0.0.40
codegen_flags: <defaults>
</compile_context>

<pallas_src>
import functools

import jax
import jax.numpy as jnp
from jax.experimental import pallas as pl
from jax.experimental.pallas import tpu as pltpu


# ----------------------------------------------------------------------------
# Fused Conv3d(3x3x3, pad=1) + bias + ReLU + MaxPool3d(2, 2) kernel
# ----------------------------------------------------------------------------
def _conv_relu_maxpool_kernel(x_ref, w_ref, b_ref, o_ref, acc0_ref, acc1_ref,
                              *, H, W, Cin, Cout):
    """One grid step = (batch n, pooled depth do, padded-depth tap m in [0,4)).

    x_ref : (H+2, W+2, Cin)   bf16  padded input plane at padded depth 2*do + m
    w_ref : (3, 9*Cin, Cout)  bf16  conv weights; w_ref[kd] row = (kh*3+kw)*Cin + cin
    b_ref : (1, Cout)         f32
    o_ref : (Ho*Wo, Cout)     bf16  pooled output block (row = ho*Wo + wo)
    acc0  : (H*W, Cout) f32 accumulator for conv output depth 2*do
    acc1  : (H*W, Cout) f32 accumulator for conv output depth 2*do + 1
    """
    m = pl.program_id(2)
    HW = H * W

    @pl.when(m == 0)
    def _init():
        acc0_ref[...] = jnp.zeros_like(acc0_ref)
        acc1_ref[...] = jnp.zeros_like(acc1_ref)

    # In-kernel im2col of the 9 in-plane (kh, kw) taps: (H*W, 9*Cin).
    # Built once per streamed plane, reused for both conv depths below.
    parts = []
    for kh in range(3):
        for kw in range(3):
            parts.append(x_ref[kh:kh + H, kw:kw + W, :].reshape(HW, Cin))
    lhs = jnp.concatenate(parts, axis=-1)              # (HW, 9*Cin) bf16

    # Padded plane (2*do + m) is depth tap kd = m of conv output depth 2*do ...
    @pl.when(m < 3)
    def _acc0():
        acc0_ref[...] += jnp.dot(lhs, w_ref[jnp.minimum(m, 2)],
                                 preferred_element_type=jnp.float32)

    # ... and depth tap kd = m - 1 of conv output depth 2*do + 1.
    @pl.when(m > 0)
    def _acc1():
        acc1_ref[...] += jnp.dot(lhs, w_ref[jnp.maximum(m - 1, 0)],
                                 preferred_element_type=jnp.float32)

    @pl.when(m == 3)
    def _epilogue():
        Ho, Wo = H // 2, W // 2
        b = b_ref[...]                                     # (1, Cout) f32
        a0 = jnp.maximum(acc0_ref[...] + b, 0.0)           # conv+ReLU, depth 2*do
        a1 = jnp.maximum(acc1_ref[...] + b, 0.0)           # conv+ReLU, depth 2*do+1
        z = jnp.maximum(a0, a1)                            # max over the depth pair
        z = jnp.max(z.reshape(H * Wo, 2, Cout), axis=1)    # max over W pairs
        z = jnp.max(z.reshape(Ho, 2, Wo, Cout), axis=1)    # max over H pairs
        o_ref[...] = z.reshape(Ho * Wo, Cout).astype(o_ref.dtype)


def conv3d_relu_maxpool(x, w_taps, bias):
    """Fused Conv3d(k=3, pad=1) + ReLU + MaxPool3d(2, stride=2).

    x      : (N, D, H, W, Cin)  bf16, NDHWC, D/H/W even
    w_taps : (3, 9*Cin, Cout)   bf16, [kd, (kh*3+kw)*Cin + cin, cout]
    bias   : (Cout,)            f32
    returns (N, D//2, H//2, W//2, Cout) bf16
    """
    N, D, H, W, Cin = x.shape
    Cout = w_taps.shape[-1]
    # TODO(synk): odd spatial sizes (torch MaxPool3d floor/truncation) are not handled.
    assert D % 2 == 0 and H % 2 == 0 and W % 2 == 0, "MaxPool3d(2,2) needs even dims"
    Do, Ho, Wo = D // 2, H // 2, W // 2

    xp = jnp.pad(x, ((0, 0), (1, 1), (1, 1), (1, 1), (0, 0)))   # conv padding = 1
    b2 = bias.reshape(1, Cout).astype(jnp.float32)

    kernel = functools.partial(_conv_relu_maxpool_kernel,
                               H=H, W=W, Cin=Cin, Cout=Cout)
    flops = 2 * N * D * H * W * 27 * Cin * Cout
    bytes_accessed = (2 * N * Do * 4 * (H + 2) * (W + 2) * Cin   # streamed bf16 planes
                      + 2 * 27 * Cin * Cout                      # resident bf16 weights
                      + 2 * N * Do * Ho * Wo * Cout)             # pooled bf16 output

    out = pl.pallas_call(
        kernel,
        out_shape=jax.ShapeDtypeStruct((N, Do, Ho * Wo, Cout), jnp.bfloat16),
        grid=(N, Do, 4),
        in_specs=[
            # one padded depth plane per step (depth halo handled by the 4-tap axis)
            pl.BlockSpec((None, None, H + 2, W + 2, Cin),
                         lambda n, d, m: (n, 2 * d + m, 0, 0, 0)),
            # full weight tensor stays resident in VMEM (constant block index)
            pl.BlockSpec((3, 9 * Cin, Cout), lambda n, d, m: (0, 0, 0)),
            pl.BlockSpec((1, Cout), lambda n, d, m: (0, 0)),
        ],
        out_specs=pl.BlockSpec((None, None, Ho * Wo, Cout),
                               lambda n, d, m: (n, d, 0, 0)),
        scratch_shapes=[
            pltpu.VMEM((H * W, Cout), jnp.float32),
            pltpu.VMEM((H * W, Cout), jnp.float32),
        ],
        compiler_params=pltpu.CompilerParams(
            dimension_semantics=("parallel", "parallel", "arbitrary"),
            vmem_limit_bytes=32 * 1024 * 1024,   # safe on v5e/v6e/v7x
        ),
        cost_estimate=pl.CostEstimate(flops=flops, transcendentals=0,
                                      bytes_accessed=bytes_accessed),
    )(xp, w_taps, b2)
    return out.reshape(N, Do, Ho, Wo, Cout)


# ----------------------------------------------------------------------------
# Final Linear layer: K-tiled matmul + bias with f32 VMEM accumulator
# ----------------------------------------------------------------------------
def _linear_kernel(x_ref, w_ref, b_ref, o_ref, acc_ref):
    k = pl.program_id(0)

    @pl.when(k == 0)
    def _init():
        acc_ref[...] = jnp.zeros_like(acc_ref)

    acc_ref[...] += jnp.dot(x_ref[...], w_ref[...],
                            preferred_element_type=jnp.float32)

    @pl.when(k == pl.num_programs(0) - 1)
    def _store():
        o_ref[...] = (acc_ref[...] + b_ref[...]).astype(o_ref.dtype)


def linear_bias(x, w, b, *, block_k=512):
    """x:(M,K) bf16, w:(K,Nout) bf16, b:(Nout,) f32 -> (M,Nout) f32."""
    M, K = x.shape
    Nout = w.shape[1]
    Kp = ((K + block_k - 1) // block_k) * block_k
    if Kp != K:                       # zero-pad contraction dim (adds nothing)
        x = jnp.pad(x, ((0, 0), (0, Kp - K)))
        w = jnp.pad(w, ((0, Kp - K), (0, 0)))
    nk = Kp // block_k
    b2 = b.reshape(1, Nout).astype(jnp.float32)
    return pl.pallas_call(
        _linear_kernel,
        out_shape=jax.ShapeDtypeStruct((M, Nout), jnp.float32),
        grid=(nk,),
        in_specs=[
            pl.BlockSpec((M, block_k), lambda k: (0, k)),
            pl.BlockSpec((block_k, Nout), lambda k: (k, 0)),
            pl.BlockSpec((1, Nout), lambda k: (0, 0)),
        ],
        out_specs=pl.BlockSpec((M, Nout), lambda k: (0, 0)),
        scratch_shapes=[pltpu.VMEM((M, Nout), jnp.float32)],
        compiler_params=pltpu.CompilerParams(
            dimension_semantics=("arbitrary",),
            vmem_limit_bytes=32 * 1024 * 1024,
        ),
        cost_estimate=pl.CostEstimate(
            flops=2 * M * Kp * Nout, transcendentals=0,
            bytes_accessed=2 * (M * Kp + Kp * Nout) + 4 * M * Nout),
    )(x, w, b2)


# ----------------------------------------------------------------------------
# Full network forward
# ----------------------------------------------------------------------------
def gnina2017_forward(x_ncdhw, p):
    """x_ncdhw: (N, C, D, H, W) f32 -> logits (N, n_classes) f32."""
    x = jnp.transpose(x_ncdhw, (0, 2, 3, 4, 1)).astype(jnp.bfloat16)   # -> NDHWC
    x = conv3d_relu_maxpool(x, p["conv1_w"], p["conv1_b"])
    x = conv3d_relu_maxpool(x, p["conv2_w"], p["conv2_b"])
    x = conv3d_relu_maxpool(x, p["conv3_w"], p["conv3_b"])
    n = x.shape[0]
    x_flat = x.reshape(n, -1)     # NDHWC flatten; fc_w is pre-permuted to match
    return linear_bias(x_flat, p["fc_w"], p["fc_b"])


# ----------------------------------------------------------------------------
# Deterministic synthetic parameters (PyTorch layouts) + one-time re-layouts
# ----------------------------------------------------------------------------
def init_params(key, input_channels, output_dimension, input_shape):
    """Synthetic params in PyTorch layouts (Conv3d: (Cout,Cin,3,3,3); Linear: (out,in))."""
    s = input_shape // 8
    flat = 128 * s * s * s
    ks = jax.random.split(key, 4)

    def w(k, shape, fan_in):
        return jax.random.normal(k, shape, jnp.float32) / jnp.sqrt(fan_in)

    return {
        "conv1_w": w(ks[0], (32, input_channels, 3, 3, 3), 27 * input_channels),
        "conv1_b": 0.01 * jnp.arange(32, dtype=jnp.float32),
        "conv2_w": w(ks[1], (64, 32, 3, 3, 3), 27 * 32),
        "conv2_b": 0.01 * jnp.arange(64, dtype=jnp.float32),
        "conv3_w": w(ks[2], (128, 64, 3, 3, 3), 27 * 64),
        "conv3_b": 0.01 * jnp.arange(128, dtype=jnp.float32),
        # torch Linear weight (out, in); "in" flattened in NCDHW (torch) order
        "fc_w": w(ks[3], (output_dimension, flat), flat),
        "fc_b": 0.01 * jnp.arange(output_dimension, dtype=jnp.float32),
    }


def prepare_params(torch_params, input_shape):
    """One-time weight re-layouts (outside jit)."""
    def conv_taps(w):                 # (Cout,Cin,3,3,3) -> (3, 9*Cin, Cout) bf16
        cout, cin = w.shape[0], w.shape[1]
        # (kd, kh, kw, cin, cout) -> rows of w_taps[kd] ordered (kh*3+kw)*Cin + cin
        wt = jnp.transpose(w, (2, 3, 4, 1, 0)).reshape(3, 9 * cin, cout)
        return wt.astype(jnp.bfloat16)

    s = input_shape // 8                      # spatial size after the 3 max-pools
    c_last = torch_params["conv3_w"].shape[0]
    n_out = torch_params["fc_w"].shape[0]
    # Permute FC weight rows from NCDHW flatten order to NDHWC flatten order so
    # the conv3 output can be flattened without any transpose.
    fcw = torch_params["fc_w"].reshape(n_out, c_last, s, s, s)
    fcw = jnp.transpose(fcw, (2, 3, 4, 1, 0)).reshape(s * s * s * c_last, n_out)

    return {
        "conv1_w": conv_taps(torch_params["conv1_w"]), "conv1_b": torch_params["conv1_b"],
        "conv2_w": conv_taps(torch_params["conv2_w"]), "conv2_b": torch_params["conv2_b"],
        "conv3_w": conv_taps(torch_params["conv3_w"]), "conv3_b": torch_params["conv3_b"],
        "fc_w": fcw.astype(jnp.bfloat16), "fc_b": torch_params["fc_b"],
    }


if __name__ == "__main__":
    batch = 2
    input_channels = 4
    input_shape = 16          # D = H = W = 16
    output_dimension = 2

    key = jax.random.PRNGKey(0)
    k_x, k_p = jax.random.split(key)
    x = jax.random.normal(
        k_x, (batch, input_channels, input_shape, input_shape, input_shape),
        jnp.float32)
    torch_params = init_params(k_p, input_channels, output_dimension, input_shape)
    params = prepare_params(torch_params, input_shape)

    fwd = jax.jit(gnina2017_forward)
    out = fwd(x, params)
    out = jax.block_until_ready(out)
    assert out.shape == (batch, output_dimension), out.shape
    assert out.dtype == jnp.float32
    print("KERNEL_OK")
</pallas_src>

<mosaic_0001>
module attributes {stable_mosaic.version = 11 : i64} {
  func.func @_conv_relu_maxpool_kernel(%arg0: i32, %arg1: i32, %arg2: i32, %arg3: memref<1x1x18x18x4xbf16, #tpu.memory_space<vmem>>, %arg4: memref<3x36x32xbf16, #tpu.memory_space<vmem>>, %arg5: memref<1x32xf32, #tpu.memory_space<vmem>>, %arg6: memref<1x1x64x32xbf16, #tpu.memory_space<vmem>>, %arg7: memref<256x32xf32, #tpu.memory_space<vmem>>, %arg8: memref<256x32xf32, #tpu.memory_space<vmem>>) attributes {dimension_semantics = [#tpu.dimension_semantics<parallel>, #tpu.dimension_semantics<parallel>, #tpu.dimension_semantics<arbitrary>], iteration_bounds = array<i64: 2, 8, 4>, scalar_prefetch = 0 : i64, scratch_operands = 2 : i64, tpu.core_type = #tpu.core_type<tc>, window_params = [{transform_indices = @transform_0, window_bounds = array<i64: 1, 1, 18, 18, 4>}, {pipeline_mode = #tpu.pipeline_mode<synchronous>, transform_indices = @transform_1, window_bounds = array<i64: 3, 36, 32>}, {pipeline_mode = #tpu.pipeline_mode<synchronous>, transform_indices = @transform_2, window_bounds = array<i64: 1, 32>}, {transform_indices = @transform_3, window_bounds = array<i64: 1, 1, 64, 32>}]} {
    %c0_i32 = arith.constant 0 : i32
    %0 = arith.cmpi eq, %arg2, %c0_i32 : i32
    %1 = arith.extui %0 : i1 to i32
    %c0_i32_0 = arith.constant 0 : i32
    %2 = arith.cmpi ne, %1, %c0_i32_0 : i32
    scf.if %2 {
      %cst = arith.constant 0.000000e+00 : f32
      %40 = vector.broadcast %cst : f32 to vector<256x32xf32>
      %c0_48 = arith.constant 0 : index
      %c0_49 = arith.constant 0 : index
      %41 = vector.load %arg7[%c0_48, %c0_49] : memref<256x32xf32, #tpu.memory_space<vmem>>, vector<256x32xf32>
      tpu.vector_store %arg7[%c0_48, %c0_49], %40 {strides = array<i32>} : memref<256x32xf32, #tpu.memory_space<vmem>>, vector<256x32xf32>,
      %cst_50 = arith.constant 0.000000e+00 : f32
      %42 = vector.broadcast %cst_50 : f32 to vector<256x32xf32>
      %c0_51 = arith.constant 0 : index
      %c0_52 = arith.constant 0 : index
      %43 = vector.load %arg8[%c0_51, %c0_52] : memref<256x32xf32, #tpu.memory_space<vmem>>, vector<256x32xf32>
      tpu.vector_store %arg8[%c0_51, %c0_52], %42 {strides = array<i32>} : memref<256x32xf32, #tpu.memory_space<vmem>>, vector<256x32xf32>,
    } else {
    }
    %c0 = arith.constant 0 : index
    %c0_1 = arith.constant 0 : index
    %c0_2 = arith.constant 0 : index
    %c0_3 = arith.constant 0 : index
    %c0_4 = arith.constant 0 : index
    %3 = vector.load %arg3[%c0, %c0_1, %c0_2, %c0_3, %c0_4] : memref<1x1x18x18x4xbf16, #tpu.memory_space<vmem>>, vector<1x1x16x16x4xbf16>
    %4 = vector.shape_cast %3 : vector<1x1x16x16x4xbf16> to vector<16x16x4xbf16>
    %5 = vector.shape_cast %4 : vector<16x16x4xbf16> to vector<256x4xbf16>
    %c0_5 = arith.constant 0 : index
    %c0_6 = arith.constant 0 : index
    %c0_7 = arith.constant 0 : index
    %c1 = arith.constant 1 : index
    %c0_8 = arith.constant 0 : index
    %6 = vector.load %arg3[%c0_5, %c0_6, %c0_7, %c1, %c0_8] : memref<1x1x18x18x4xbf16, #tpu.memory_space<vmem>>, vector<1x1x16x16x4xbf16>
    %7 = vector.shape_cast %6 : vector<1x1x16x16x4xbf16> to vector<16x16x4xbf16>
    %8 = vector.shape_cast %7 : vector<16x16x4xbf16> to vector<256x4xbf16>
    %c0_9 = arith.constant 0 : index
    %c0_10 = arith.constant 0 : index
    %c0_11 = arith.constant 0 : index
    %c2 = arith.constant 2 : index
    %c0_12 = arith.constant 0 : index
    %9 = vector.load %arg3[%c0_9, %c0_10, %c0_11, %c2, %c0_12] : memref<1x1x18x18x4xbf16, #tpu.memory_space<vmem>>, vector<1x1x16x16x4xbf16>
    %10 = vector.shape_cast %9 : vector<1x1x16x16x4xbf16> to vector<16x16x4xbf16>
    %11 = vector.shape_cast %10 : vector<16x16x4xbf16> to vector<256x4xbf16>
    %c0_13 = arith.constant 0 : index
    %c0_14 = arith.constant 0 : index
    %c1_15 = arith.constant 1 : index
    %c0_16 = arith.constant 0 : index
    %c0_17 = arith.constant 0 : index
    %12 = vector.load %arg3[%c0_13, %c0_14, %c1_15, %c0_16, %c0_17] : memref<1x1x18x18x4xbf16, #tpu.memory_space<vmem>>, vector<1x1x16x16x4xbf16>
    %13 = vector.shape_cast %12 : vector<1x1x16x16x4xbf16> to vector<16x16x4xbf16>
    %14 = vector.shape_cast %13 : vector<16x16x4xbf16> to vector<256x4xbf16>
    %c0_18 = arith.constant 0 : index
    %c0_19 = arith.constant 0 : index
    %c1_20 = arith.constant 1 : index
    %c1_21 = arith.constant 1 : index
    %c0_22 = arith.constant 0 : index
    %15 = vector.load %arg3[%c0_18, %c0_19, %c1_20, %c1_21, %c0_22] : memref<1x1x18x18x4xbf16, #tpu.memory_space<vmem>>, vector<1x1x16x16x4xbf16>
    %16 = vector.shape_cast %15 : vector<1x1x16x16x4xbf16> to vector<16x16x4xbf16>
    %17 = vector.shape_cast %16 : vector<16x16x4xbf16> to vector<256x4xbf16>
    %c0_23 = arith.constant 0 : index
    %c0_24 = arith.constant 0 : index
    %c1_25 = arith.constant 1 : index
    %c2_26 = arith.constant 2 : index
    %c0_27 = arith.constant 0 : index
    %18 = vector.load %arg3[%c0_23, %c0_24, %c1_25, %c2_26, %c0_27] : memref<1x1x18x18x4xbf16, #tpu.memory_space<vmem>>, vector<1x1x16x16x4xbf16>
    %19 = vector.shape_cast %18 : vector<1x1x16x16x4xbf16> to vector<16x16x4xbf16>
    %20 = vector.shape_cast %19 : vector<16x16x4xbf16> to vector<256x4xbf16>
    %c0_28 = arith.constant 0 : index
    %c0_29 = arith.constant 0 : index
    %c2_30 = arith.constant 2 : index
    %c0_31 = arith.constant 0 : index
    %c0_32 = arith.constant 0 : index
    %21 = vector.load %arg3[%c0_28, %c0_29, %c2_30, %c0_31, %c0_32] : memref<1x1x18x18x4xbf16, #tpu.memory_space<vmem>>, vector<1x1x16x16x4xbf16>
    %22 = vector.shape_cast %21 : vector<1x1x16x16x4xbf16> to vector<16x16x4xbf16>
    %23 = vector.shape_cast %22 : vector<16x16x4xbf16> to vector<256x4xbf16>
    %c0_33 = arith.constant 0 : index
    %c0_34 = arith.constant 0 : index
    %c2_35 = arith.constant 2 : index
    %c1_36 = arith.constant 1 : index
    %c0_37 = arith.constant 0 : index
    %24 = vector.load %arg3[%c0_33, %c0_34, %c2_35, %c1_36, %c0_37] : memref<1x1x18x18x4xbf16, #tpu.memory_space<vmem>>, vector<1x1x16x16x4xbf16>
    %25 = vector.shape_cast %24 : vector<1x1x16x16x4xbf16> to vector<16x16x4xbf16>
    %26 = vector.shape_cast %25 : vector<16x16x4xbf16> to vector<256x4xbf16>
    %c0_38 = arith.constant 0 : index
    %c0_39 = arith.constant 0 : index
    %c2_40 = arith.constant 2 : index
    %c2_41 = arith.constant 2 : index
    %c0_42 = arith.constant 0 : index
    %27 = vector.load %arg3[%c0_38, %c0_39, %c2_40, %c2_41, %c0_42] : memref<1x1x18x18x4xbf16, #tpu.memory_space<vmem>>, vector<1x1x16x16x4xbf16>
    %28 = vector.shape_cast %27 : vector<1x1x16x16x4xbf16> to vector<16x16x4xbf16>
    %29 = vector.shape_cast %28 : vector<16x16x4xbf16> to vector<256x4xbf16>
    %30 = tpu.concatenate %5, %8, %11, %14, %17, %20, %23, %26, %29 in 1 : vector<256x4xbf16>, vector<256x4xbf16>, vector<256x4xbf16>, vector<256x4xbf16>, vector<256x4xbf16>, vector<256x4xbf16>, vector<256x4xbf16>, vector<256x4xbf16>, vector<256x4xbf16> -> vector<256x36xbf16>
    %c3_i32 = arith.constant 3 : i32
    %31 = arith.cmpi slt, %arg2, %c3_i32 : i32
    %32 = arith.extui %31 : i1 to i32
    %c0_i32_43 = arith.constant 0 : i32
    %33 = arith.cmpi ne, %32, %c0_i32_43 : i32
    scf.if %33 {
      %c0_48 = arith.constant 0 : index
      %c0_49 = arith.constant 0 : index
      %40 = vector.load %arg7[%c0_48, %c0_49] : memref<256x32xf32, #tpu.memory_space<vmem>>, vector<256x32xf32>
      %c2_i32 = arith.constant 2 : i32
      %41 = arith.minsi %arg2, %c2_i32 : i32
      %42 = arith.index_cast %41 : i32 to index
      %c0_50 = arith.constant 0 : index
      %c0_51 = arith.constant 0 : index
      %43 = vector.load %arg4[%42, %c0_50, %c0_51] : memref<3x36x32xbf16, #tpu.memory_space<vmem>>, vector<1x36x32xbf16>
      %44 = vector.shape_cast %43 : vector<1x36x32xbf16> to vector<36x32xbf16>
      %cst = arith.constant dense<0.000000e+00> : vector<256x32xf32>
      %45 = tpu.matmul %30, %44, %cst {dimension_numbers = #tpu.dot_dimension_numbers<[1], [0], [0], [1], [0, 0, 1, 1], [], []>} : vector<256x36xbf16>, vector<36x32xbf16>, vector<256x32xf32> -> vector<256x32xf32>
      %46 = arith.addf %40, %45 : vector<256x32xf32>
      %c0_52 = arith.constant 0 : index
      %c0_53 = arith.constant 0 : index
      %47 = vector.load %arg7[%c0_52, %c0_53] : memref<256x32xf32, #tpu.memory_space<vmem>>, vector<256x32xf32>
      tpu.vector_store %arg7[%c0_52, %c0_53], %46 {strides = array<i32>} : memref<256x32xf32, #tpu.memory_space<vmem>>, vector<256x32xf32>,
    } else {
    }
    %c0_i32_44 = arith.constant 0 : i32
    %34 = arith.cmpi sgt, %arg2, %c0_i32_44 : i32
    %35 = arith.extui %34 : i1 to i32
    %c0_i32_45 = arith.constant 0 : i32
    %36 = arith.cmpi ne, %35, %c0_i32_45 : i32
    scf.if %36 {
      %c0_48 = arith.constant 0 : index
      %c0_49 = arith.constant 0 : index
      %40 = vector.load %arg8[%c0_48, %c0_49] : memref<256x32xf32, #tpu.memory_space<vmem>>, vector<256x32xf32>
      %c1_i32 = arith.constant 1 : i32
      %41 = arith.subi %arg2, %c1_i32 : i32
      %c0_i32_50 = arith.constant 0 : i32
      %42 = arith.maxsi %41, %c0_i32_50 : i32
      %43 = arith.index_cast %42 : i32 to index
      %c0_51 = arith.constant 0 : index
      %c0_52 = arith.constant 0 : index
      %44 = vector.load %arg4[%43, %c0_51, %c0_52] : memref<3x36x32xbf16, #tpu.memory_space<vmem>>, vector<1x36x32xbf16>
      %45 = vector.shape_cast %44 : vector<1x36x32xbf16> to vector<36x32xbf16>
      %cst = arith.constant dense<0.000000e+00> : vector<256x32xf32>
      %46 = tpu.matmul %30, %45, %cst {dimension_numbers = #tpu.dot_dimension_numbers<[1], [0], [0], [1], [0, 0, 1, 1], [], []>} : vector<256x36xbf16>, vector<36x32xbf16>, vector<256x32xf32> -> vector<256x32xf32>
      %47 = arith.addf %40, %46 : vector<256x32xf32>
      %c0_53 = arith.constant 0 : index
      %c0_54 = arith.constant 0 : index
      %48 = vector.load %arg8[%c0_53, %c0_54] : memref<256x32xf32, #tpu.memory_space<vmem>>, vector<256x32xf32>
      tpu.vector_store %arg8[%c0_53, %c0_54], %47 {strides = array<i32>} : memref<256x32xf32, #tpu.memory_space<vmem>>, vector<256x32xf32>,
    } else {
    }
    %c3_i32_46 = arith.constant 3 : i32
    %37 = arith.cmpi eq, %arg2, %c3_i32_46 : i32
    %38 = arith.extui %37 : i1 to i32
    %c0_i32_47 = arith.constant 0 : i32
    %39 = arith.cmpi ne, %38, %c0_i32_47 : i32
    scf.if %39 {
      %c0_48 = arith.constant 0 : index
      %c0_49 = arith.constant 0 : index
      %40 = vector.load %arg5[%c0_48, %c0_49] : memref<1x32xf32, #tpu.memory_space<vmem>>, vector<1x32xf32>
      %c0_50 = arith.constant 0 : index
      %c0_51 = arith.constant 0 : index
      %41 = vector.load %arg7[%c0_50, %c0_51] : memref<256x32xf32, #tpu.memory_space<vmem>>, vector<256x32xf32>
      %42 = vector.broadcast %40 : vector<1x32xf32> to vector<256x32xf32>
      %43 = arith.addf %41, %42 : vector<256x32xf32>
      %cst = arith.constant 0.000000e+00 : f32
      %44 = vector.broadcast %cst : f32 to vector<256x32xf32>
      %45 = arith.maximumf %43, %44 : vector<256x32xf32>
      %c0_52 = arith.constant 0 : index
      %c0_53 = arith.constant 0 : index
      %46 = vector.load %arg8[%c0_52, %c0_53] : memref<256x32xf32, #tpu.memory_space<vmem>>, vector<256x32xf32>
      %47 = vector.broadcast %40 : vector<1x32xf32> to vector<256x32xf32>
      %48 = arith.addf %46, %47 : vector<256x32xf32>
      %cst_54 = arith.constant 0.000000e+00 : f32
      %49 = vector.broadcast %cst_54 : f32 to vector<256x32xf32>
      %50 = arith.maximumf %48, %49 : vector<256x32xf32>
      %51 = arith.maximumf %45, %50 : vector<256x32xf32>
      %52 = vector.shape_cast %51 : vector<256x32xf32> to vector<128x2x32xf32>
      %cst_55 = arith.constant dense<0xFF800000> : vector<128x32xf32>
      %53 = vector.multi_reduction <maximumf>, %52, %cst_55 [1] : vector<128x2x32xf32> to vector<128x32xf32>
      %54 = vector.shape_cast %53 : vector<128x32xf32> to vector<8x2x8x32xf32>
      %cst_56 = arith.constant dense<0xFF800000> : vector<8x8x32xf32>
      %55 = vector.multi_reduction <maximumf>, %54, %cst_56 [1] : vector<8x2x8x32xf32> to vector<8x8x32xf32>
      %56 = vector.shape_cast %55 : vector<8x8x32xf32> to vector<64x32xf32>
      %57 = arith.truncf %56 : vector<64x32xf32> to vector<64x32xbf16>
      %c0_57 = arith.constant 0 : index
      %c0_58 = arith.constant 0 : index
      %c0_59 = arith.constant 0 : index
      %c0_60 = arith.constant 0 : index
      %58 = vector.load %arg6[%c0_57, %c0_58, %c0_59, %c0_60] : memref<1x1x64x32xbf16, #tpu.memory_space<vmem>>, vector<1x1x64x32xbf16>
      %59 = vector.shape_cast %58 : vector<1x1x64x32xbf16> to vector<64x32xbf16>
      %60 = vector.shape_cast %57 : vector<64x32xbf16> to vector<1x1x64x32xbf16>
      tpu.vector_store %arg6[%c0_57, %c0_58, %c0_59, %c0_60], %60 {strides = array<i32>} : memref<1x1x64x32xbf16, #tpu.memory_space<vmem>>, vector<1x1x64x32xbf16>,
    } else {
    }
    return
  }
  func.func @transform_0(%arg0: i32, %arg1: i32, %arg2: i32) -> (i32, i32, i32, i32, i32) {
    %c2_i32 = arith.constant 2 : i32
    %0 = arith.muli %c2_i32, %arg1 : i32
    %1 = arith.addi %0, %arg2 : i32
    %c0_i32 = arith.constant 0 : i32
    %c0_i32_0 = arith.constant 0 : i32
    %c0_i32_1 = arith.constant 0 : i32
    %c0_i32_2 = arith.constant 0 : i32
    return %arg0, %1, %c0_i32, %c0_i32_0, %c0_i32_1 : i32, i32, i32, i32, i32
  }
  func.func @transform_1(%arg0: i32, %arg1: i32, %arg2: i32) -> (i32, i32, i32) {
    %c0_i32 = arith.constant 0 : i32
    %c0_i32_0 = arith.constant 0 : i32
    %c0_i32_1 = arith.constant 0 : i32
    %c0_i32_2 = arith.constant 0 : i32
    return %c0_i32, %c0_i32_0, %c0_i32_1 : i32, i32, i32
  }
  func.func @transform_2(%arg0: i32, %arg1: i32, %arg2: i32) -> (i32, i32) {
    %c0_i32 = arith.constant 0 : i32
    %c0_i32_0 = arith.constant 0 : i32
    %c0_i32_1 = arith.constant 0 : i32
    return %c0_i32, %c0_i32_0 : i32, i32
  }
  func.func @transform_3(%arg0: i32, %arg1: i32, %arg2: i32) -> (i32, i32, i32, i32) {
    %c0_i32 = arith.constant 0 : i32
    %c0_i32_0 = arith.constant 0 : i32
    %c0_i32_1 = arith.constant 0 : i32
    return %arg0, %arg1, %c0_i32, %c0_i32_0 : i32, i32, i32, i32
  }
}

module attributes {stable_mosaic.version = 11 : i64} {
  func.func @_conv_relu_maxpool_kernel(%arg0: i32, %arg1: i32, %arg2: i32, %arg3: memref<1x1x10x10x32xbf16, #tpu.memory_space<vmem>>, %arg4: memref<3x288x64xbf16, #tpu.memory_space<vmem>>, %arg5: memref<1x64xf32, #tpu.memory_space<vmem>>, %arg6: memref<1x1x16x64xbf16, #tpu.memory_space<vmem>>, %arg7: memref<64x64xf32, #tpu.memory_space<vmem>>, %arg8: memref<64x64xf32, #tpu.memory_space<vmem>>) attributes {dimension_semantics = [#tpu.dimension_semantics<parallel>, #tpu.dimension_semantics<parallel>, #tpu.dimension_semantics<arbitrary>], iteration_bounds = array<i64: 2, 4, 4>, scalar_prefetch = 0 : i64, scratch_operands = 2 : i64, tpu.core_type = #tpu.core_type<tc>, window_params = [{transform_indices = @transform_0, window_bounds = array<i64: 1, 1, 10, 10, 32>}, {pipeline_mode = #tpu.pipeline_mode<synchronous>, transform_indices = @transform_1, window_bounds = array<i64: 3, 288, 64>}, {pipeline_mode = #tpu.pipeline_mode<synchronous>, transform_indices = @transform_2, window_bounds = array<i64: 1, 64>}, {transform_indices = @transform_3, window_bounds = array<i64: 1, 1, 16, 64>}]} {
    %c0_i32 = arith.constant 0 : i32
    %0 = arith.cmpi eq, %arg2, %c0_i32 : i32
    %1 = arith.extui %0 : i1 to i32
    %c0_i32_0 = arith.constant 0 : i32
    %2 = arith.cmpi ne, %1, %c0_i32_0 : i32
    scf.if %2 {
      %cst = arith.constant 0.000000e+00 : f32
      %40 = vector.broadcast %cst : f32 to vector<64x64xf32>
      %c0_48 = arith.constant 0 : index
      %c0_49 = arith.constant 0 : index
      %41 = vector.load %arg7[%c0_48, %c0_49] : memref<64x64xf32, #tpu.memory_space<vmem>>, vector<64x64xf32>
      tpu.vector_store %arg7[%c0_48, %c0_49], %40 {strides = array<i32>} : memref<64x64xf32, #tpu.memory_space<vmem>>, vector<64x64xf32>,
      %cst_50 = arith.constant 0.000000e+00 : f32
      %42 = vector.broadcast %cst_50 : f32 to vector<64x64xf32>
      %c0_51 = arith.constant 0 : index
      %c0_52 = arith.constant 0 : index
      %43 = vector.load %arg8[%c0_51, %c0_52] : memref<64x64xf32, #tpu.memory_space<vmem>>, vector<64x64xf32>
      tpu.vector_store %arg8[%c0_51, %c0_52], %42 {strides = array<i32>} : memref<64x64xf32, #tpu.memory_space<vmem>>, vector<64x64xf32>,
    } else {
    }
    %c0 = arith.constant 0 : index
    %c0_1 = arith.constant 0 : index
    %c0_2 = arith.constant 0 : index
    %c0_3 = arith.constant 0 : index
    %c0_4 = arith.constant 0 : index
    %3 = vector.load %arg3[%c0, %c0_1, %c0_2, %c0_3, %c0_4] : memref<1x1x10x10x32xbf16, #tpu.memory_space<vmem>>, vector<1x1x8x8x32xbf16>
    %4 = vector.shape_cast %3 : vector<1x1x8x8x32xbf16> to vector<8x8x32xbf16>
    %5 = vector.shape_cast %4 : vector<8x8x32xbf16> to vector<64x32xbf16>
    %c0_5 = arith.constant 0 : index
    %c0_6 = arith.constant 0 : index
    %c0_7 = arith.constant 0 : index
    %c1 = arith.constant 1 : index
    %c0_8 = arith.constant 0 : index
    %6 = vector.load %arg3[%c0_5, %c0_6, %c0_7, %c1, %c0_8] : memref<1x1x10x10x32xbf16, #tpu.memory_space<vmem>>, vector<1x1x8x8x32xbf16>
    %7 = vector.shape_cast %6 : vector<1x1x8x8x32xbf16> to vector<8x8x32xbf16>
    %8 = vector.shape_cast %7 : vector<8x8x32xbf16> to vector<64x32xbf16>
    %c0_9 = arith.constant 0 : index
    %c0_10 = arith.constant 0 : index
    %c0_11 = arith.constant 0 : index
    %c2 = arith.constant 2 : index
    %c0_12 = arith.constant 0 : index
    %9 = vector.load %arg3[%c0_9, %c0_10, %c0_11, %c2, %c0_12] : memref<1x1x10x10x32xbf16, #tpu.memory_space<vmem>>, vector<1x1x8x8x32xbf16>
    %10 = vector.shape_cast %9 : vector<1x1x8x8x32xbf16> to vector<8x8x32xbf16>
    %11 = vector.shape_cast %10 : vector<8x8x32xbf16> to vector<64x32xbf16>
    %c0_13 = arith.constant 0 : index
    %c0_14 = arith.constant 0 : index
    %c1_15 = arith.constant 1 : index
    %c0_16 = arith.constant 0 : index
    %c0_17 = arith.constant 0 : index
    %12 = vector.load %arg3[%c0_13, %c0_14, %c1_15, %c0_16, %c0_17] : memref<1x1x10x10x32xbf16, #tpu.memory_space<vmem>>, vector<1x1x8x8x32xbf16>
    %13 = vector.shape_cast %12 : vector<1x1x8x8x32xbf16> to vector<8x8x32xbf16>
    %14 = vector.shape_cast %13 : vector<8x8x32xbf16> to vector<64x32xbf16>
    %c0_18 = arith.constant 0 : index
    %c0_19 = arith.constant 0 : index
    %c1_20 = arith.constant 1 : index
    %c1_21 = arith.constant 1 : index
    %c0_22 = arith.constant 0 : index
    %15 = vector.load %arg3[%c0_18, %c0_19, %c1_20, %c1_21, %c0_22] : memref<1x1x10x10x32xbf16, #tpu.memory_space<vmem>>, vector<1x1x8x8x32xbf16>
    %16 = vector.shape_cast %15 : vector<1x1x8x8x32xbf16> to vector<8x8x32xbf16>
    %17 = vector.shape_cast %16 : vector<8x8x32xbf16> to vector<64x32xbf16>
    %c0_23 = arith.constant 0 : index
    %c0_24 = arith.constant 0 : index
    %c1_25 = arith.constant 1 : index
    %c2_26 = arith.constant 2 : index
    %c0_27 = arith.constant 0 : index
    %18 = vector.load %arg3[%c0_23, %c0_24, %c1_25, %c2_26, %c0_27] : memref<1x1x10x10x32xbf16, #tpu.memory_space<vmem>>, vector<1x1x8x8x32xbf16>
    %19 = vector.shape_cast %18 : vector<1x1x8x8x32xbf16> to vector<8x8x32xbf16>
    %20 = vector.shape_cast %19 : vector<8x8x32xbf16> to vector<64x32xbf16>
    %c0_28 = arith.constant 0 : index
    %c0_29 = arith.constant 0 : index
    %c2_30 = arith.constant 2 : index
    %c0_31 = arith.constant 0 : index
    %c0_32 = arith.constant 0 : index
    %21 = vector.load %arg3[%c0_28, %c0_29, %c2_30, %c0_31, %c0_32] : memref<1x1x10x10x32xbf16, #tpu.memory_space<vmem>>, vector<1x1x8x8x32xbf16>
    %22 = vector.shape_cast %21 : vector<1x1x8x8x32xbf16> to vector<8x8x32xbf16>
    %23 = vector.shape_cast %22 : vector<8x8x32xbf16> to vector<64x32xbf16>
    %c0_33 = arith.constant 0 : index
    %c0_34 = arith.constant 0 : index
    %c2_35 = arith.constant 2 : index
    %c1_36 = arith.constant 1 : index
    %c0_37 = arith.constant 0 : index
    %24 = vector.load %arg3[%c0_33, %c0_34, %c2_35, %c1_36, %c0_37] : memref<1x1x10x10x32xbf16, #tpu.memory_space<vmem>>, vector<1x1x8x8x32xbf16>
    %25 = vector.shape_cast %24 : vector<1x1x8x8x32xbf16> to vector<8x8x32xbf16>
    %26 = vector.shape_cast %25 : vector<8x8x32xbf16> to vector<64x32xbf16>
    %c0_38 = arith.constant 0 : index
    %c0_39 = arith.constant 0 : index
    %c2_40 = arith.constant 2 : index
    %c2_41 = arith.constant 2 : index
    %c0_42 = arith.constant 0 : index
    %27 = vector.load %arg3[%c0_38, %c0_39, %c2_40, %c2_41, %c0_42] : memref<1x1x10x10x32xbf16, #tpu.memory_space<vmem>>, vector<1x1x8x8x32xbf16>
    %28 = vector.shape_cast %27 : vector<1x1x8x8x32xbf16> to vector<8x8x32xbf16>
    %29 = vector.shape_cast %28 : vector<8x8x32xbf16> to vector<64x32xbf16>
    %30 = tpu.concatenate %5, %8, %11, %14, %17, %20, %23, %26, %29 in 1 : vector<64x32xbf16>, vector<64x32xbf16>, vector<64x32xbf16>, vector<64x32xbf16>, vector<64x32xbf16>, vector<64x32xbf16>, vector<64x32xbf16>, vector<64x32xbf16>, vector<64x32xbf16> -> vector<64x288xbf16>
    %c3_i32 = arith.constant 3 : i32
    %31 = arith.cmpi slt, %arg2, %c3_i32 : i32
    %32 = arith.extui %31 : i1 to i32
    %c0_i32_43 = arith.constant 0 : i32
    %33 = arith.cmpi ne, %32, %c0_i32_43 : i32
    scf.if %33 {
      %c0_48 = arith.constant 0 : index
      %c0_49 = arith.constant 0 : index
      %40 = vector.load %arg7[%c0_48, %c0_49] : memref<64x64xf32, #tpu.memory_space<vmem>>, vector<64x64xf32>
      %c2_i32 = arith.constant 2 : i32
      %41 = arith.minsi %arg2, %c2_i32 : i32
      %42 = arith.index_cast %41 : i32 to index
      %c0_50 = arith.constant 0 : index
      %c0_51 = arith.constant 0 : index
      %43 = vector.load %arg4[%42, %c0_50, %c0_51] : memref<3x288x64xbf16, #tpu.memory_space<vmem>>, vector<1x288x64xbf16>
      %44 = vector.shape_cast %43 : vector<1x288x64xbf16> to vector<288x64xbf16>
      %cst = arith.constant dense<0.000000e+00> : vector<64x64xf32>
      %45 = tpu.matmul %30, %44, %cst {dimension_numbers = #tpu.dot_dimension_numbers<[1], [0], [0], [1], [0, 0, 1, 1], [], []>} : vector<64x288xbf16>, vector<288x64xbf16>, vector<64x64xf32> -> vector<64x64xf32>
      %46 = arith.addf %40, %45 : vector<64x64xf32>
      %c0_52 = arith.constant 0 : index
      %c0_53 = arith.constant 0 : index
      %47 = vector.load %arg7[%c0_52, %c0_53] : memref<64x64xf32, #tpu.memory_space<vmem>>, vector<64x64xf32>
      tpu.vector_store %arg7[%c0_52, %c0_53], %46 {strides = array<i32>} : memref<64x64xf32, #tpu.memory_space<vmem>>, vector<64x64xf32>,
    } else {
    }
    %c0_i32_44 = arith.constant 0 : i32
    %34 = arith.cmpi sgt, %arg2, %c0_i32_44 : i32
    %35 = arith.extui %34 : i1 to i32
    %c0_i32_45 = arith.constant 0 : i32
    %36 = arith.cmpi ne, %35, %c0_i32_45 : i32
    scf.if %36 {
      %c0_48 = arith.constant 0 : index
      %c0_49 = arith.constant 0 : index
      %40 = vector.load %arg8[%c0_48, %c0_49] : memref<64x64xf32, #tpu.memory_space<vmem>>, vector<64x64xf32>
      %c1_i32 = arith.constant 1 : i32
      %41 = arith.subi %arg2, %c1_i32 : i32
      %c0_i32_50 = arith.constant 0 : i32
      %42 = arith.maxsi %41, %c0_i32_50 : i32
      %43 = arith.index_cast %42 : i32 to index
      %c0_51 = arith.constant 0 : index
      %c0_52 = arith.constant 0 : index
      %44 = vector.load %arg4[%43, %c0_51, %c0_52] : memref<3x288x64xbf16, #tpu.memory_space<vmem>>, vector<1x288x64xbf16>
      %45 = vector.shape_cast %44 : vector<1x288x64xbf16> to vector<288x64xbf16>
      %cst = arith.constant dense<0.000000e+00> : vector<64x64xf32>
      %46 = tpu.matmul %30, %45, %cst {dimension_numbers = #tpu.dot_dimension_numbers<[1], [0], [0], [1], [0, 0, 1, 1], [], []>} : vector<64x288xbf16>, vector<288x64xbf16>, vector<64x64xf32> -> vector<64x64xf32>
      %47 = arith.addf %40, %46 : vector<64x64xf32>
      %c0_53 = arith.constant 0 : index
      %c0_54 = arith.constant 0 : index
      %48 = vector.load %arg8[%c0_53, %c0_54] : memref<64x64xf32, #tpu.memory_space<vmem>>, vector<64x64xf32>
      tpu.vector_store %arg8[%c0_53, %c0_54], %47 {strides = array<i32>} : memref<64x64xf32, #tpu.memory_space<vmem>>, vector<64x64xf32>,
    } else {
    }
    %c3_i32_46 = arith.constant 3 : i32
    %37 = arith.cmpi eq, %arg2, %c3_i32_46 : i32
    %38 = arith.extui %37 : i1 to i32
    %c0_i32_47 = arith.constant 0 : i32
    %39 = arith.cmpi ne, %38, %c0_i32_47 : i32
    scf.if %39 {
      %c0_48 = arith.constant 0 : index
      %c0_49 = arith.constant 0 : index
      %40 = vector.load %arg5[%c0_48, %c0_49] : memref<1x64xf32, #tpu.memory_space<vmem>>, vector<1x64xf32>
      %c0_50 = arith.constant 0 : index
      %c0_51 = arith.constant 0 : index
      %41 = vector.load %arg7[%c0_50, %c0_51] : memref<64x64xf32, #tpu.memory_space<vmem>>, vector<64x64xf32>
      %42 = vector.broadcast %40 : vector<1x64xf32> to vector<64x64xf32>
      %43 = arith.addf %41, %42 : vector<64x64xf32>
      %cst = arith.constant 0.000000e+00 : f32
      %44 = vector.broadcast %cst : f32 to vector<64x64xf32>
      %45 = arith.maximumf %43, %44 : vector<64x64xf32>
      %c0_52 = arith.constant 0 : index
      %c0_53 = arith.constant 0 : index
      %46 = vector.load %arg8[%c0_52, %c0_53] : memref<64x64xf32, #tpu.memory_space<vmem>>, vector<64x64xf32>
      %47 = vector.broadcast %40 : vector<1x64xf32> to vector<64x64xf32>
      %48 = arith.addf %46, %47 : vector<64x64xf32>
      %cst_54 = arith.constant 0.000000e+00 : f32
      %49 = vector.broadcast %cst_54 : f32 to vector<64x64xf32>
      %50 = arith.maximumf %48, %49 : vector<64x64xf32>
      %51 = arith.maximumf %45, %50 : vector<64x64xf32>
      %52 = vector.shape_cast %51 : vector<64x64xf32> to vector<32x2x64xf32>
      %cst_55 = arith.constant dense<0xFF800000> : vector<32x64xf32>
      %53 = vector.multi_reduction <maximumf>, %52, %cst_55 [1] : vector<32x2x64xf32> to vector<32x64xf32>
      %54 = vector.shape_cast %53 : vector<32x64xf32> to vector<4x2x4x64xf32>
      %cst_56 = arith.constant dense<0xFF800000> : vector<4x4x64xf32>
      %55 = vector.multi_reduction <maximumf>, %54, %cst_56 [1] : vector<4x2x4x64xf32> to vector<4x4x64xf32>
      %56 = vector.shape_cast %55 : vector<4x4x64xf32> to vector<16x64xf32>
      %57 = arith.truncf %56 : vector<16x64xf32> to vector<16x64xbf16>
      %c0_57 = arith.constant 0 : index
      %c0_58 = arith.constant 0 : index
      %c0_59 = arith.constant 0 : index
      %c0_60 = arith.constant 0 : index
      %58 = vector.load %arg6[%c0_57, %c0_58, %c0_59, %c0_60] : memref<1x1x16x64xbf16, #tpu.memory_space<vmem>>, vector<1x1x16x64xbf16>
      %59 = vector.shape_cast %58 : vector<1x1x16x64xbf16> to vector<16x64xbf16>
      %60 = vector.shape_cast %57 : vector<16x64xbf16> to vector<1x1x16x64xbf16>
      tpu.vector_store %arg6[%c0_57, %c0_58, %c0_59, %c0_60], %60 {strides = array<i32>} : memref<1x1x16x64xbf16, #tpu.memory_space<vmem>>, vector<1x1x16x64xbf16>,
    } else {
    }
    return
  }
  func.func @transform_0(%arg0: i32, %arg1: i32, %arg2: i32) -> (i32, i32, i32, i32, i32) {
    %c2_i32 = arith.constant 2 : i32
    %0 = arith.muli %c2_i32, %arg1 : i32
    %1 = arith.addi %0, %arg2 : i32
    %c0_i32 = arith.constant 0 : i32
    %c0_i32_0 = arith.constant 0 : i32
    %c0_i32_1 = arith.constant 0 : i32
    %c0_i32_2 = arith.constant 0 : i32
    return %arg0, %1, %c0_i32, %c0_i32_0, %c0_i32_1 : i32, i32, i32, i32, i32
  }
  func.func @transform_1(%arg0: i32, %arg1: i32, %arg2: i32) -> (i32, i32, i32) {
    %c0_i32 = arith.constant 0 : i32
    %c0_i32_0 = arith.constant 0 : i32
    %c0_i32_1 = arith.constant 0 : i32
    %c0_i32_2 = arith.constant 0 : i32
    return %c0_i32, %c0_i32_0, %c0_i32_1 : i32, i32, i32
  }
  func.func @transform_2(%arg0: i32, %arg1: i32, %arg2: i32) -> (i32, i32) {
    %c0_i32 = arith.constant 0 : i32
    %c0_i32_0 = arith.constant 0 : i32
    %c0_i32_1 = arith.constant 0 : i32
    return %c0_i32, %c0_i32_0 : i32, i32
  }
  func.func @transform_3(%arg0: i32, %arg1: i32, %arg2: i32) -> (i32, i32, i32, i32) {
    %c0_i32 = arith.constant 0 : i32
    %c0_i32_0 = arith.constant 0 : i32
    %c0_i32_1 = arith.constant 0 : i32
    return %arg0, %arg1, %c0_i32, %c0_i32_0 : i32, i32, i32, i32
  }
}

module attributes {stable_mosaic.version = 11 : i64} {
  func.func @_conv_relu_maxpool_kernel(%arg0: i32, %arg1: i32, %arg2: i32, %arg3: memref<1x1x6x6x64xbf16, #tpu.memory_space<vmem>>, %arg4: memref<3x576x128xbf16, #tpu.memory_space<vmem>>, %arg5: memref<1x128xf32, #tpu.memory_space<vmem>>, %arg6: memref<1x1x4x128xbf16, #tpu.memory_space<vmem>>, %arg7: memref<16x128xf32, #tpu.memory_space<vmem>>, %arg8: memref<16x128xf32, #tpu.memory_space<vmem>>) attributes {dimension_semantics = [#tpu.dimension_semantics<parallel>, #tpu.dimension_semantics<parallel>, #tpu.dimension_semantics<arbitrary>], iteration_bounds = array<i64: 2, 2, 4>, scalar_prefetch = 0 : i64, scratch_operands = 2 : i64, tpu.core_type = #tpu.core_type<tc>, window_params = [{transform_indices = @transform_0, window_bounds = array<i64: 1, 1, 6, 6, 64>}, {pipeline_mode = #tpu.pipeline_mode<synchronous>, transform_indices = @transform_1, window_bounds = array<i64: 3, 576, 128>}, {pipeline_mode = #tpu.pipeline_mode<synchronous>, transform_indices = @transform_2, window_bounds = array<i64: 1, 128>}, {transform_indices = @transform_3, window_bounds = array<i64: 1, 1, 4, 128>}]} {
    %c0_i32 = arith.constant 0 : i32
    %0 = arith.cmpi eq, %arg2, %c0_i32 : i32
    %1 = arith.extui %0 : i1 to i32
    %c0_i32_0 = arith.constant 0 : i32
    %2 = arith.cmpi ne, %1, %c0_i32_0 : i32
    scf.if %2 {
      %cst = arith.constant 0.000000e+00 : f32
      %40 = vector.broadcast %cst : f32 to vector<16x128xf32>
      %c0_48 = arith.constant 0 : index
      %c0_49 = arith.constant 0 : index
      %41 = vector.load %arg7[%c0_48, %c0_49] : memref<16x128xf32, #tpu.memory_space<vmem>>, vector<16x128xf32>
      tpu.vector_store %arg7[%c0_48, %c0_49], %40 {strides = array<i32>} : memref<16x128xf32, #tpu.memory_space<vmem>>, vector<16x128xf32>,
      %cst_50 = arith.constant 0.000000e+00 : f32
      %42 = vector.broadcast %cst_50 : f32 to vector<16x128xf32>
      %c0_51 = arith.constant 0 : index
      %c0_52 = arith.constant 0 : index
      %43 = vector.load %arg8[%c0_51, %c0_52] : memref<16x128xf32, #tpu.memory_space<vmem>>, vector<16x128xf32>
      tpu.vector_store %arg8[%c0_51, %c0_52], %42 {strides = array<i32>} : memref<16x128xf32, #tpu.memory_space<vmem>>, vector<16x128xf32>,
    } else {
    }
    %c0 = arith.constant 0 : index
    %c0_1 = arith.constant 0 : index
    %c0_2 = arith.constant 0 : index
    %c0_3 = arith.constant 0 : index
    %c0_4 = arith.constant 0 : index
    %3 = vector.load %arg3[%c0, %c0_1, %c0_2, %c0_3, %c0_4] : memref<1x1x6x6x64xbf16, #tpu.memory_space<vmem>>, vector<1x1x4x4x64xbf16>
    %4 = vector.shape_cast %3 : vector<1x1x4x4x64xbf16> to vector<4x4x64xbf16>
    %5 = vector.shape_cast %4 : vector<4x4x64xbf16> to vector<16x64xbf16>
    %c0_5 = arith.constant 0 : index
    %c0_6 = arith.constant 0 : index
    %c0_7 = arith.constant 0 : index
    %c1 = arith.constant 1 : index
    %c0_8 = arith.constant 0 : index
    %6 = vector.load %arg3[%c0_5, %c0_6, %c0_7, %c1, %c0_8] : memref<1x1x6x6x64xbf16, #tpu.memory_space<vmem>>, vector<1x1x4x4x64xbf16>
    %7 = vector.shape_cast %6 : vector<1x1x4x4x64xbf16> to vector<4x4x64xbf16>
    %8 = vector.shape_cast %7 : vector<4x4x64xbf16> to vector<16x64xbf16>
    %c0_9 = arith.constant 0 : index
    %c0_10 = arith.constant 0 : index
    %c0_11 = arith.constant 0 : index
    %c2 = arith.constant 2 : index
    %c0_12 = arith.constant 0 : index
    %9 = vector.load %arg3[%c0_9, %c0_10, %c0_11, %c2, %c0_12] : memref<1x1x6x6x64xbf16, #tpu.memory_space<vmem>>, vector<1x1x4x4x64xbf16>
    %10 = vector.shape_cast %9 : vector<1x1x4x4x64xbf16> to vector<4x4x64xbf16>
    %11 = vector.shape_cast %10 : vector<4x4x64xbf16> to vector<16x64xbf16>
    %c0_13 = arith.constant 0 : index
    %c0_14 = arith.constant 0 : index
    %c1_15 = arith.constant 1 : index
    %c0_16 = arith.constant 0 : index
    %c0_17 = arith.constant 0 : index
    %12 = vector.load %arg3[%c0_13, %c0_14, %c1_15, %c0_16, %c0_17] : memref<1x1x6x6x64xbf16, #tpu.memory_space<vmem>>, vector<1x1x4x4x64xbf16>
    %13 = vector.shape_cast %12 : vector<1x1x4x4x64xbf16> to vector<4x4x64xbf16>
    %14 = vector.shape_cast %13 : vector<4x4x64xbf16> to vector<16x64xbf16>
    %c0_18 = arith.constant 0 : index
    %c0_19 = arith.constant 0 : index
    %c1_20 = arith.constant 1 : index
    %c1_21 = arith.constant 1 : index
    %c0_22 = arith.constant 0 : index
    %15 = vector.load %arg3[%c0_18, %c0_19, %c1_20, %c1_21, %c0_22] : memref<1x1x6x6x64xbf16, #tpu.memory_space<vmem>>, vector<1x1x4x4x64xbf16>
    %16 = vector.shape_cast %15 : vector<1x1x4x4x64xbf16> to vector<4x4x64xbf16>
    %17 = vector.shape_cast %16 : vector<4x4x64xbf16> to vector<16x64xbf16>
    %c0_23 = arith.constant 0 : index
    %c0_24 = arith.constant 0 : index
    %c1_25 = arith.constant 1 : index
    %c2_26 = arith.constant 2 : index
    %c0_27 = arith.constant 0 : index
    %18 = vector.load %arg3[%c0_23, %c0_24, %c1_25, %c2_26, %c0_27] : memref<1x1x6x6x64xbf16, #tpu.memory_space<vmem>>, vector<1x1x4x4x64xbf16>
    %19 = vector.shape_cast %18 : vector<1x1x4x4x64xbf16> to vector<4x4x64xbf16>
    %20 = vector.shape_cast %19 : vector<4x4x64xbf16> to vector<16x64xbf16>
    %c0_28 = arith.constant 0 : index
    %c0_29 = arith.constant 0 : index
    %c2_30 = arith.constant 2 : index
    %c0_31 = arith.constant 0 : index
    %c0_32 = arith.constant 0 : index
    %21 = vector.load %arg3[%c0_28, %c0_29, %c2_30, %c0_31, %c0_32] : memref<1x1x6x6x64xbf16, #tpu.memory_space<vmem>>, vector<1x1x4x4x64xbf16>
    %22 = vector.shape_cast %21 : vector<1x1x4x4x64xbf16> to vector<4x4x64xbf16>
    %23 = vector.shape_cast %22 : vector<4x4x64xbf16> to vector<16x64xbf16>
    %c0_33 = arith.constant 0 : index
    %c0_34 = arith.constant 0 : index
    %c2_35 = arith.constant 2 : index
    %c1_36 = arith.constant 1 : index
    %c0_37 = arith.constant 0 : index
    %24 = vector.load %arg3[%c0_33, %c0_34, %c2_35, %c1_36, %c0_37] : memref<1x1x6x6x64xbf16, #tpu.memory_space<vmem>>, vector<1x1x4x4x64xbf16>
    %25 = vector.shape_cast %24 : vector<1x1x4x4x64xbf16> to vector<4x4x64xbf16>
    %26 = vector.shape_cast %25 : vector<4x4x64xbf16> to vector<16x64xbf16>
    %c0_38 = arith.constant 0 : index
    %c0_39 = arith.constant 0 : index
    %c2_40 = arith.constant 2 : index
    %c2_41 = arith.constant 2 : index
    %c0_42 = arith.constant 0 : index
    %27 = vector.load %arg3[%c0_38, %c0_39, %c2_40, %c2_41, %c0_42] : memref<1x1x6x6x64xbf16, #tpu.memory_space<vmem>>, vector<1x1x4x4x64xbf16>
    %28 = vector.shape_cast %27 : vector<1x1x4x4x64xbf16> to vector<4x4x64xbf16>
    %29 = vector.shape_cast %28 : vector<4x4x64xbf16> to vector<16x64xbf16>
    %30 = tpu.concatenate %5, %8, %11, %14, %17, %20, %23, %26, %29 in 1 : vector<16x64xbf16>, vector<16x64xbf16>, vector<16x64xbf16>, vector<16x64xbf16>, vector<16x64xbf16>, vector<16x64xbf16>, vector<16x64xbf16>, vector<16x64xbf16>, vector<16x64xbf16> -> vector<16x576xbf16>
    %c3_i32 = arith.constant 3 : i32
    %31 = arith.cmpi slt, %arg2, %c3_i32 : i32
    %32 = arith.extui %31 : i1 to i32
    %c0_i32_43 = arith.constant 0 : i32
    %33 = arith.cmpi ne, %32, %c0_i32_43 : i32
    scf.if %33 {
      %c0_48 = arith.constant 0 : index
      %c0_49 = arith.constant 0 : index
      %40 = vector.load %arg7[%c0_48, %c0_49] : memref<16x128xf32, #tpu.memory_space<vmem>>, vector<16x128xf32>
      %c2_i32 = arith.constant 2 : i32
      %41 = arith.minsi %arg2, %c2_i32 : i32
      %42 = arith.index_cast %41 : i32 to index
      %c0_50 = arith.constant 0 : index
      %c0_51 = arith.constant 0 : index
      %43 = vector.load %arg4[%42, %c0_50, %c0_51] : memref<3x576x128xbf16, #tpu.memory_space<vmem>>, vector<1x576x128xbf16>
      %44 = vector.shape_cast %43 : vector<1x576x128xbf16> to vector<576x128xbf16>
      %cst = arith.constant dense<0.000000e+00> : vector<16x128xf32>
      %45 = tpu.matmul %30, %44, %cst {dimension_numbers = #tpu.dot_dimension_numbers<[1], [0], [0], [1], [0, 0, 1, 1], [], []>} : vector<16x576xbf16>, vector<576x128xbf16>, vector<16x128xf32> -> vector<16x128xf32>
      %46 = arith.addf %40, %45 : vector<16x128xf32>
      %c0_52 = arith.constant 0 : index
      %c0_53 = arith.constant 0 : index
      %47 = vector.load %arg7[%c0_52, %c0_53] : memref<16x128xf32, #tpu.memory_space<vmem>>, vector<16x128xf32>
      tpu.vector_store %arg7[%c0_52, %c0_53], %46 {strides = array<i32>} : memref<16x128xf32, #tpu.memory_space<vmem>>, vector<16x128xf32>,
    } else {
    }
    %c0_i32_44 = arith.constant 0 : i32
    %34 = arith.cmpi sgt, %arg2, %c0_i32_44 : i32
    %35 = arith.extui %34 : i1 to i32
    %c0_i32_45 = arith.constant 0 : i32
    %36 = arith.cmpi ne, %35, %c0_i32_45 : i32
    scf.if %36 {
      %c0_48 = arith.constant 0 : index
      %c0_49 = arith.constant 0 : index
      %40 = vector.load %arg8[%c0_48, %c0_49] : memref<16x128xf32, #tpu.memory_space<vmem>>, vector<16x128xf32>
      %c1_i32 = arith.constant 1 : i32
      %41 = arith.subi %arg2, %c1_i32 : i32
      %c0_i32_50 = arith.constant 0 : i32
      %42 = arith.maxsi %41, %c0_i32_50 : i32
      %43 = arith.index_cast %42 : i32 to index
      %c0_51 = arith.constant 0 : index
      %c0_52 = arith.constant 0 : index
      %44 = vector.load %arg4[%43, %c0_51, %c0_52] : memref<3x576x128xbf16, #tpu.memory_space<vmem>>, vector<1x576x128xbf16>
      %45 = vector.shape_cast %44 : vector<1x576x128xbf16> to vector<576x128xbf16>
      %cst = arith.constant dense<0.000000e+00> : vector<16x128xf32>
      %46 = tpu.matmul %30, %45, %cst {dimension_numbers = #tpu.dot_dimension_numbers<[1], [0], [0], [1], [0, 0, 1, 1], [], []>} : vector<16x576xbf16>, vector<576x128xbf16>, vector<16x128xf32> -> vector<16x128xf32>
      %47 = arith.addf %40, %46 : vector<16x128xf32>
      %c0_53 = arith.constant 0 : index
      %c0_54 = arith.constant 0 : index
      %48 = vector.load %arg8[%c0_53, %c0_54] : memref<16x128xf32, #tpu.memory_space<vmem>>, vector<16x128xf32>
      tpu.vector_store %arg8[%c0_53, %c0_54], %47 {strides = array<i32>} : memref<16x128xf32, #tpu.memory_space<vmem>>, vector<16x128xf32>,
    } else {
    }
    %c3_i32_46 = arith.constant 3 : i32
    %37 = arith.cmpi eq, %arg2, %c3_i32_46 : i32
    %38 = arith.extui %37 : i1 to i32
    %c0_i32_47 = arith.constant 0 : i32
    %39 = arith.cmpi ne, %38, %c0_i32_47 : i32
    scf.if %39 {
      %c0_48 = arith.constant 0 : index
      %c0_49 = arith.constant 0 : index
      %40 = vector.load %arg5[%c0_48, %c0_49] : memref<1x128xf32, #tpu.memory_space<vmem>>, vector<1x128xf32>
      %c0_50 = arith.constant 0 : index
      %c0_51 = arith.constant 0 : index
      %41 = vector.load %arg7[%c0_50, %c0_51] : memref<16x128xf32, #tpu.memory_space<vmem>>, vector<16x128xf32>
      %42 = vector.broadcast %40 : vector<1x128xf32> to vector<16x128xf32>
      %43 = arith.addf %41, %42 : vector<16x128xf32>
      %cst = arith.constant 0.000000e+00 : f32
      %44 = vector.broadcast %cst : f32 to vector<16x128xf32>
      %45 = arith.maximumf %43, %44 : vector<16x128xf32>
      %c0_52 = arith.constant 0 : index
      %c0_53 = arith.constant 0 : index
      %46 = vector.load %arg8[%c0_52, %c0_53] : memref<16x128xf32, #tpu.memory_space<vmem>>, vector<16x128xf32>
      %47 = vector.broadcast %40 : vector<1x128xf32> to vector<16x128xf32>
      %48 = arith.addf %46, %47 : vector<16x128xf32>
      %cst_54 = arith.constant 0.000000e+00 : f32
      %49 = vector.broadcast %cst_54 : f32 to vector<16x128xf32>
      %50 = arith.maximumf %48, %49 : vector<16x128xf32>
      %51 = arith.maximumf %45, %50 : vector<16x128xf32>
      %52 = vector.shape_cast %51 : vector<16x128xf32> to vector<8x2x128xf32>
      %cst_55 = arith.constant dense<0xFF800000> : vector<8x128xf32>
      %53 = vector.multi_reduction <maximumf>, %52, %cst_55 [1] : vector<8x2x128xf32> to vector<8x128xf32>
      %54 = vector.shape_cast %53 : vector<8x128xf32> to vector<2x2x2x128xf32>
      %cst_56 = arith.constant dense<0xFF800000> : vector<2x2x128xf32>
      %55 = vector.multi_reduction <maximumf>, %54, %cst_56 [1] : vector<2x2x2x128xf32> to vector<2x2x128xf32>
      %56 = vector.shape_cast %55 : vector<2x2x128xf32> to vector<4x128xf32>
      %57 = arith.truncf %56 : vector<4x128xf32> to vector<4x128xbf16>
      %c0_57 = arith.constant 0 : index
      %c0_58 = arith.constant 0 : index
      %c0_59 = arith.constant 0 : index
      %c0_60 = arith.constant 0 : index
      %58 = vector.load %arg6[%c0_57, %c0_58, %c0_59, %c0_60] : memref<1x1x4x128xbf16, #tpu.memory_space<vmem>>, vector<1x1x4x128xbf16>
      %59 = vector.shape_cast %58 : vector<1x1x4x128xbf16> to vector<4x128xbf16>
      %60 = vector.shape_cast %57 : vector<4x128xbf16> to vector<1x1x4x128xbf16>
      tpu.vector_store %arg6[%c0_57, %c0_58, %c0_59, %c0_60], %60 {strides = array<i32>} : memref<1x1x4x128xbf16, #tpu.memory_space<vmem>>, vector<1x1x4x128xbf16>,
    } else {
    }
    return
  }
  func.func @transform_0(%arg0: i32, %arg1: i32, %arg2: i32) -> (i32, i32, i32, i32, i32) {
    %c2_i32 = arith.constant 2 : i32
    %0 = arith.muli %c2_i32, %arg1 : i32
    %1 = arith.addi %0, %arg2 : i32
    %c0_i32 = arith.constant 0 : i32
    %c0_i32_0 = arith.constant 0 : i32
    %c0_i32_1 = arith.constant 0 : i32
    %c0_i32_2 = arith.constant 0 : i32
    return %arg0, %1, %c0_i32, %c0_i32_0, %c0_i32_1 : i32, i32, i32, i32, i32
  }
  func.func @transform_1(%arg0: i32, %arg1: i32, %arg2: i32) -> (i32, i32, i32) {
    %c0_i32 = arith.constant 0 : i32
    %c0_i32_0 = arith.constant 0 : i32
    %c0_i32_1 = arith.constant 0 : i32
    %c0_i32_2 = arith.constant 0 : i32
    return %c0_i32, %c0_i32_0, %c0_i32_1 : i32, i32, i32
  }
  func.func @transform_2(%arg0: i32, %arg1: i32, %arg2: i32) -> (i32, i32) {
    %c0_i32 = arith.constant 0 : i32
    %c0_i32_0 = arith.constant 0 : i32
    %c0_i32_1 = arith.constant 0 : i32
    return %c0_i32, %c0_i32_0 : i32, i32
  }
  func.func @transform_3(%arg0: i32, %arg1: i32, %arg2: i32) -> (i32, i32, i32, i32) {
    %c0_i32 = arith.constant 0 : i32
    %c0_i32_0 = arith.constant 0 : i32
    %c0_i32_1 = arith.constant 0 : i32
    return %arg0, %arg1, %c0_i32, %c0_i32_0 : i32, i32, i32, i32
  }
}

module attributes {stable_mosaic.version = 11 : i64} {
  func.func @_linear_kernel(%arg0: i32, %arg1: memref<2x512xbf16, #tpu.memory_space<vmem>>, %arg2: memref<512x2xbf16, #tpu.memory_space<vmem>>, %arg3: memref<1x2xf32, #tpu.memory_space<vmem>>, %arg4: memref<2x2xf32, #tpu.memory_space<vmem>>, %arg5: memref<2x2xf32, #tpu.memory_space<vmem>>) attributes {dimension_semantics = [#tpu.dimension_semantics<arbitrary>], iteration_bounds = array<i64: 2>, scalar_prefetch = 0 : i64, scratch_operands = 1 : i64, tpu.core_type = #tpu.core_type<tc>, window_params = [{transform_indices = @transform_0, window_bounds = array<i64: 2, 512>}, {transform_indices = @transform_1, window_bounds = array<i64: 512, 2>}, {pipeline_mode = #tpu.pipeline_mode<synchronous>, transform_indices = @transform_2, window_bounds = array<i64: 1, 2>}, {pipeline_mode = #tpu.pipeline_mode<synchronous>, transform_indices = @transform_3, window_bounds = array<i64: 2, 2>}]} {
    %c0_i32 = arith.constant 0 : i32
    %0 = arith.cmpi eq, %arg0, %c0_i32 : i32
    %1 = arith.extui %0 : i1 to i32
    %c0_i32_0 = arith.constant 0 : i32
    %2 = arith.cmpi ne, %1, %c0_i32_0 : i32
    scf.if %2 {
      %cst_9 = arith.constant 0.000000e+00 : f32
      %12 = vector.broadcast %cst_9 : f32 to vector<2x2xf32>
      %c0_10 = arith.constant 0 : index
      %c0_11 = arith.constant 0 : index
      %13 = vector.load %arg5[%c0_10, %c0_11] : memref<2x2xf32, #tpu.memory_space<vmem>>, vector<2x2xf32>
      tpu.vector_store %arg5[%c0_10, %c0_11], %12 {strides = array<i32>} : memref<2x2xf32, #tpu.memory_space<vmem>>, vector<2x2xf32>,
    } else {
    }
    %c0 = arith.constant 0 : index
    %c0_1 = arith.constant 0 : index
    %3 = vector.load %arg5[%c0, %c0_1] : memref<2x2xf32, #tpu.memory_space<vmem>>, vector<2x2xf32>
    %c0_2 = arith.constant 0 : index
    %c0_3 = arith.constant 0 : index
    %4 = vector.load %arg1[%c0_2, %c0_3] : memref<2x512xbf16, #tpu.memory_space<vmem>>, vector<2x512xbf16>
    %c0_4 = arith.constant 0 : index
    %c0_5 = arith.constant 0 : index
    %5 = vector.load %arg2[%c0_4, %c0_5] : memref<512x2xbf16, #tpu.memory_space<vmem>>, vector<512x2xbf16>
    %cst = arith.constant dense<0.000000e+00> : vector<2x2xf32>
    %6 = tpu.matmul %4, %5, %cst {dimension_numbers = #tpu.dot_dimension_numbers<[1], [0], [0], [1], [0, 0, 1, 1], [], []>} : vector<2x512xbf16>, vector<512x2xbf16>, vector<2x2xf32> -> vector<2x2xf32>
    %7 = arith.addf %3, %6 : vector<2x2xf32>
    %c0_6 = arith.constant 0 : index
    %c0_7 = arith.constant 0 : index
    %8 = vector.load %arg5[%c0_6, %c0_7] : memref<2x2xf32, #tpu.memory_space<vmem>>, vector<2x2xf32>
    tpu.vector_store %arg5[%c0_6, %c0_7], %7 {strides = array<i32>} : memref<2x2xf32, #tpu.memory_space<vmem>>, vector<2x2xf32>,
    %c1_i32 = arith.constant 1 : i32
    %9 = arith.cmpi eq, %arg0, %c1_i32 : i32
    %10 = arith.extui %9 : i1 to i32
    %c0_i32_8 = arith.constant 0 : i32
    %11 = arith.cmpi ne, %10, %c0_i32_8 : i32
    scf.if %11 {
      %c0_9 = arith.constant 0 : index
      %c0_10 = arith.constant 0 : index
      %12 = vector.load %arg5[%c0_9, %c0_10] : memref<2x2xf32, #tpu.memory_space<vmem>>, vector<2x2xf32>
      %c0_11 = arith.constant 0 : index
      %c0_12 = arith.constant 0 : index
      %13 = vector.load %arg3[%c0_11, %c0_12] : memref<1x2xf32, #tpu.memory_space<vmem>>, vector<1x2xf32>
      %14 = vector.broadcast %13 : vector<1x2xf32> to vector<2x2xf32>
      %15 = arith.addf %12, %14 : vector<2x2xf32>
      %c0_13 = arith.constant 0 : index
      %c0_14 = arith.constant 0 : index
      %16 = vector.load %arg4[%c0_13, %c0_14] : memref<2x2xf32, #tpu.memory_space<vmem>>, vector<2x2xf32>
      tpu.vector_store %arg4[%c0_13, %c0_14], %15 {strides = array<i32>} : memref<2x2xf32, #tpu.memory_space<vmem>>, vector<2x2xf32>,
    } else {
    }
    return
  }
  func.func @transform_0(%arg0: i32) -> (i32, i32) {
    %c0_i32 = arith.constant 0 : i32
    %c0_i32_0 = arith.constant 0 : i32
    return %c0_i32, %arg0 : i32, i32
  }
  func.func @transform_1(%arg0: i32) -> (i32, i32) {
    %c0_i32 = arith.constant 0 : i32
    %c0_i32_0 = arith.constant 0 : i32
    return %arg0, %c0_i32 : i32, i32
  }
  func.func @transform_2(%arg0: i32) -> (i32, i32) {
    %c0_i32 = arith.constant 0 : i32
    %c0_i32_0 = arith.constant 0 : i32
    %c0_i32_1 = arith.constant 0 : i32
    return %c0_i32, %c0_i32_0 : i32, i32
  }
  func.func @transform_3(%arg0: i32) -> (i32, i32) {
    %c0_i32 = arith.constant 0 : i32
    %c0_i32_0 = arith.constant 0 : i32
    %c0_i32_1 = arith.constant 0 : i32
    return %c0_i32, %c0_i32_0 : i32, i32
  }
}

</mosaic_0001>

<bundles_post_ra>
// kernel: gnina2017_forward.5
= control target key start
LH: loop header
LB: loop body
LE: loop exit
PB: predicated region body
PF: predicated region fallthrough
CT: control target
= control target key end

     0   :  { %s2973_s12 = smov 0   ;;  %s2975_s13 = smov 0   ;;  %s3843_s0 = inlined_call_operand.vmem [shape: bf16[2,10,10,10,32], index: 0, kind: input, shape index: {}]   ;;  %s3844_s1 = inlined_call_operand.vmem [shape: bf16[3,288,64], index: 1, kind: input, shape index: {}]   ;;  %s3845_s2 = inlined_call_operand.vmem [shape: f32[1,64], index: 2, kind: input, shape index: {}]   ;;  %s3846_s3 = inlined_call_operand.vmem [shape: bf16[2,4,16,64], index: 3, kind: output, shape index: {}]  }
   0x1   :  { %s2977_s14 = smov 0   ;;  %s2979_s15 = smov 0  }
   0x2   :  { %s2981_s16 = smov 0   ;;  %s2983_s17 = smov 0  }
   0x3   :  { %s2985_s18 = smov 0  }
   0x4 LB: > { %s25_s19 = sadd.s32 1, %s2934_s15  ;;  %s28_s20 = sadd.s32 1, %s2938_s16  ;;  %s2946_s18 = sphi %s2985_s18, %s13_s18   ;;  %s2942_s17 = sphi %s2983_s17, %s3859_s17   ;;  %s2938_s16 = sphi %s2981_s16, %s3858_s16   ;;  %s2934_s15 = sphi %s2979_s15, %s3857_s15   ;;  %s2930_s14 = sphi %s2977_s14, %s3856_s14   ;;  %s2926_s13 = sphi %s2975_s13, %s3855_s13   ;;  %s2922_s12 = sphi %s2973_s12, %s3854_s12  }
   0x5   : > { %p26_p0 = scmp.ge.s32.totalorder %s25_s19, 4  ;;  %p2431_p1 = scmp.ge.s32.totalorder %s2946_s18, 1 }
   0x6   : > { %p172_p2 = scmp.lt.s32.totalorder %s2946_s18, 33  ;;  %s32_s21 = sadd.s32 1, %s2942_s17 }
   0x7   : > { %s3861_s19 = smov (%p26_p0, %s25_s19), 0  ;;  %s3863_s20 = smov (!%p26_p0, %s28_s20), %s2938_s16 }
   0x8   : > { %p173_p3 = pnand %p2431_p1, %p172_p2  ;;  %p30_p4 = scmp.ge.s32.totalorder %s3863_s20, 4 }
   0x9   : > { %s2432_s22 = sshll.u32 (!%p173_p3), %s2926_s13, 1  ;;  %p208_p6 = scmp.lt.s32.totalorder (!%p173_p3), %s2930_s14, 1 }
   0xa   : > { %s3865_s20 = smov (%p30_p4, %s3863_s20), 0  ;;  %s3867_s21 = smov (!%p30_p4, %s32_s21), %s2942_s17 }
   0xb   : > { %p34_p5 = scmp.ge.s32.totalorder %s3867_s21, 2  ;;  %176 = sbr.rel (%p173_p3) target bundleno = 895 (0x37f), region = 32 }
   0xc   : > { %s207_s23 = sadd.s32 (!%p173_p3), %s2922_s12, %s2432_s22  ;;  %p221_p7 = scmp.lt.s32.totalorder (!%p173_p3), %s2926_s13, 3 }
   0xd   : > { %s3869_s21 = smov (%p34_p5, %s3867_s21), 0  ;;  %p210_p8 = scmp.lt.s32.totalorder (!%p173_p3), %s207_s23, 9 }
   0xe   : > { %p2437_p9 = scmp.ne.s32.totalorder (!%p173_p3), %s2922_s12, 0 }
  0x12   : > { %s3871_s14 = smov (!%p208_p6, %s2930_s14), 1  ;;  %s3873_s23 = smov (!%p210_p8, %s207_s23), 9 }
  0x13   : > { %s2782_s24 = smul.u32 200, %s3871_s14  ;;  %s2435_s25 = sshll.u32 %s3871_s14, 3  ;;  %vm233_vm0 = vcmask (!%p2437_p9), 523264   ;;  %v2948_v0 = vmov (!%p2437_p9), 0.0  }
  0x14   : > { %s3875_s13 = smov (!%p221_p7, %s2926_s13), 3  ;;  %s2781_s26 = smul.u32 20, %s3873_s23  ;;  %234 = vst.msk [vmem:[#allocation2] sm:$0xff] (!%p2437_p9), %vm233_vm0, %v2948_v0  ;;  %235 = vst.msk [vmem:[#allocation2 + $0x8] sm:$0xff] (!%p2437_p9), %vm233_vm0, %v2948_v0 }
  0x15   : > { %s2434_s27 = sshll.u32 %s3875_s13, 1  ;;  %232 = sbr.rel (%p2437_p9) target bundleno = 28 (0x1c), region = 36  ;;  %236 = vst.msk [vmem:[#allocation2 + $0x10] sm:$0xff] (!%p2437_p9), %vm233_vm0, %v2948_v0  ;;  %237 = vst.msk [vmem:[#allocation2 + $0x18] sm:$0xff] (!%p2437_p9), %vm233_vm0, %v2948_v0 }
  0x16   : > { %s214_s28 = sadd.s32 %s2782_s24, %s2781_s26  ;;  %s225_s29 = sadd.s32 %s2435_s25, %s2434_s27  ;;  %238 = vst.msk [vmem:[#allocation2 + $0x20] sm:$0xff] (!%p2437_p9), %vm233_vm0, %v2948_v0  ;;  %239 = vst.msk [vmem:[#allocation2 + $0x28] sm:$0xff] (!%p2437_p9), %vm233_vm0, %v2948_v0 }
  0x17   : > { %s2433_s30 = sshll.u32 %s214_s28, 2  ;;  %s2436_s4 = sshll.u32 %s225_s29, 2  ;;  %240 = vst.msk [vmem:[#allocation2 + $0x30] sm:$0xff] (!%p2437_p9), %vm233_vm0, %v2948_v0  ;;  %241 = vst.msk [vmem:[#allocation2 + $0x38] sm:$0xff] (!%p2437_p9), %vm233_vm0, %v2948_v0 }
  0x18   : > { %s3026_s7 = scalar_lea.vmem %s3843_s0, %s2433_s30  ;;  %s3031_s10 = scalar_lea.vmem %s3846_s3, %s2436_s4  ;;  %242 = vst.msk [vmem:[#allocation3] sm:$0xff] (!%p2437_p9), %vm233_vm0, %v2948_v0  ;;  %243 = vst.msk [vmem:[#allocation3 + $0x8] sm:$0xff] (!%p2437_p9), %vm233_vm0, %v2948_v0 }
  0x19   : > { %244 = vst.msk [vmem:[#allocation3 + $0x10] sm:$0xff] (!%p2437_p9), %vm233_vm0, %v2948_v0  ;;  %245 = vst.msk [vmem:[#allocation3 + $0x18] sm:$0xff] (!%p2437_p9), %vm233_vm0, %v2948_v0 }
  0x1a   : > { %246 = vst.msk [vmem:[#allocation3 + $0x20] sm:$0xff] (!%p2437_p9), %vm233_vm0, %v2948_v0  ;;  %247 = vst.msk [vmem:[#allocation3 + $0x28] sm:$0xff] (!%p2437_p9), %vm233_vm0, %v2948_v0 }
  0x1b   : > { %248 = vst.msk [vmem:[#allocation3 + $0x30] sm:$0xff] (!%p2437_p9), %vm233_vm0, %v2948_v0  ;;  %249 = vst.msk [vmem:[#allocation3 + $0x38] sm:$0xff] (!%p2437_p9), %vm233_vm0, %v2948_v0 }
  0x1c PF: > { %vm405_vm1 = vcmask 1042432   ;;  %vm406_vm2 = vcmask 1046532   ;;  %v2456_v1 = vld [vmem:[%s3026_s7 + $0x1c] sm:$0x1]  ;;  %v2457_v2 = vld [vmem:[%s3026_s7 + $0x24] sm:$0x1] }
  0x1d   : > { %vm3052_vm3 = vmor %vm405_vm1, %vm406_vm2  ;;  %v495_v4 = vshll.u32 %v2456_v1, 16  ;;  %v509_v5 = vshll.u32 %v2457_v2, 16  ;;  %v2464_v6 = vld [vmem:[%s3026_s7 + $0x18] sm:$0xe]  ;;  %v2465_v7 = vld [vmem:[%s3026_s7 + $0x20] sm:$0xe] }
  0x1e   : > { %v2472_v8 = vrot.slane %v2464_v6, 9  ;;  %v603_v9 = vrot.slane %v2456_v1, 5  ;;  %v2473_v10 = vrot.slane %v2465_v7, 9  ;;  %v607_v11 = vrot.slane %v2457_v2, 5  ;;  %v2454_v14 = vld [vmem:[%s3026_s7 + $0xc] sm:$0x1] }
  0x1f   : > { %v3058_v12 = vrot.slane %v495_v4, 5  ;;  %v3060_v13 = vrot.slane %v509_v5, 5  ;;  %v2455_v15 = vld [vmem:[%s3026_s7 + $0x14] sm:$0x1]  ;;  %v467_v18 = vshll.u32 %v2454_v14, 16  ;;  %v595_v24 = vrot.slane %v2454_v14, 5 }
  0x20   : > { %v604_v16 = vsel %vm3052_vm3, %v2472_v8, %v603_v9  ;;  %v608_v17 = vsel %vm3052_vm3, %v2473_v10, %v607_v11  ;;  %v481_v19 = vshll.u32 %v2455_v15, 16  ;;  %v2462_v20 = vld [vmem:[%s3026_s7 + $0x8] sm:$0xe]  ;;  %v2463_v21 = vld [vmem:[%s3026_s7 + $0x10] sm:$0xe]  ;;  %v599_v29 = vrot.slane %v2455_v15, 5 }
  0x21   : > { %v2531_v22 = vcombine.low %v604_v16, %v608_v17  ;;  %v2470_v23 = vrot.slane %v2462_v20, 9  ;;  %v2471_v25 = vrot.slane %v2463_v21, 9  ;;  %v3071_v26 = vld [vmem:[%s3026_s7 + $0x3c] sm:$0x1]  ;;  %v3073_v27 = vrot.slane %v467_v18, 5  ;;  %s2949_s11 = smov 32  }
  0x22   : > { %v3075_v28 = vrot.slane %v481_v19, 5  ;;  %v3078_v30 = vld [vmem:[%s3026_s7 + $0x44] sm:$0x1]  ;;  %v551_v31 = vshll.u32 %v3071_v26, 16  ;;  %v2468_v34 = vld [vmem:[%s3026_s7 + $0x38] sm:$0xe] }
  0x23   : > { %924 = vrot.lane.b32.xlu1 %v2531_v22, %s2949_s11  ;;  %v596_v32 = vsel %vm3052_vm3, %v2470_v23, %v595_v24  ;;  %v565_v33 = vshll.u32 %v3078_v30, 16  ;;  %v2469_v35 = vld [vmem:[%s3026_s7 + $0x40] sm:$0xe]  ;;  %v619_v36 = vrot.slane %v3071_v26, 5  ;;  %v600_v37 = vsel %vm3052_vm3, %v2471_v25, %v599_v29  ;;  %v3092_v41 = vld [vmem:[%s3026_s7 + $0x2c] sm:$0x1] }
  0x24   : > { %v2476_v38 = vrot.slane %v2468_v34, 9  ;;  %v2477_v39 = vrot.slane %v2469_v35, 9  ;;  %v623_v40 = vrot.slane %v3078_v30, 5  ;;  %v2530_v42 = vcombine.low %v596_v32, %v600_v37  ;;  %v3095_v43 = vld [vmem:[%s3026_s7 + $0x34] sm:$0x1]  ;;  %s2950_s13 = smov 64  }
  0x25   : > { %v2466_v45 = vld [vmem:[%s3026_s7 + $0x28] sm:$0xe]  ;;  %v611_v46 = vrot.slane %v3092_v41, 5  ;;  %v2467_v50 = vld [vmem:[%s3026_s7 + $0x30] sm:$0xe]  ;;  %v615_v55 = vrot.slane %v3095_v43, 5 }
  0x26   : > { %v620_v47 = vsel %vm3052_vm3, %v2476_v38, %v619_v36  ;;  %v624_v48 = vsel %vm3052_vm3, %v2477_v39, %v623_v40  ;;  %v2474_v51 = vrot.slane %v2466_v45, 9  ;;  %v3107_v52 = vld [vmem:[%s3026_s7 + $0x20] sm:$0xf]  ;;  %922 = vrot.lane.b32.xlu0 %v2530_v42, %s2949_s11  ;;  %v2475_v54 = vrot.slane %v2467_v50, 9  ;;  %v3112_v56 = vld [vmem:[%s3026_s7 + $0x28] sm:$0xf] }
  0x27   : > { %v2533_v53 = vcombine.low %v620_v47, %v624_v48  ;;  %v3115_v57 = vld [vmem:[%s3026_s7 + $0x24] sm:$0x1]  ;;  %v3120_v59 = vld [vmem:[%s3026_s7 + $0x2c] sm:$0x1]  ;;  %vm266_vm4 = vsmask.f32 3328 }
  0x28   : > { %v612_v58 = vsel %vm3052_vm3, %v2474_v51, %v611_v46  ;;  %vm267_vm5 = vsmask.f32 7440  ;;  %v616_v61 = vsel %vm3052_vm3, %v2475_v54, %v615_v55  ;;  %v326_v62 = vshrl.u32 %v3107_v52, 16  ;;  %v3131_v1 = vld [vmem:[%s3026_s7] sm:$0xf]  ;;  %s2951_s14 = smov 96  }
  0x29   : > { %928 = vrot.lane.b32.xlu1 %v2533_v53, %s2949_s11  ;;  %v329_v63 = vshll.u32 %v3107_v52, 16  ;;  %v335_v0 = vshll.u32 %v3115_v57, 16  ;;  %v2532_v2 = vcombine.low %v612_v58, %v616_v61  ;;  %v340_v4 = vshrl.u32 %v3112_v56, 16  ;;  %v3137_v7 = vld [vmem:[%s3026_s7 + $0x8] sm:$0xf]  ;;  %vm3155_vm6 = vmor %vm266_vm4, %vm267_vm5  ;;  %p2546_p10 = scmp.ge.s32.totalorder %s2922_s12, 3 }
  0x2a   : > { %v343_v5 = vshll.u32 %v3112_v56, 16  ;;  %v349_v6 = vshll.u32 %v3120_v59, 16  ;;  %v328_v8 = vrot.slane %v326_v62, 4  ;;  %v3140_v11 = vld [vmem:[%s3026_s7 + $0x4] sm:$0x1]  ;;  %v270_v14 = vshrl.u32 %v3131_v1, 16 }
  0x2b   : > { %v331_v9 = vrot.slane %v329_v63, 5  ;;  %v337_v10 = vrot.slane %v335_v0, 5  ;;  %926 = vrot.lane.b32.xlu0 %v2532_v2, %s2949_s11  ;;  %v342_v15 = vrot.slane %v340_v4, 4  ;;  %v3145_v18 = vld [vmem:[%s3026_s7 + $0xc] sm:$0x1]  ;;  %v273_v19 = vshll.u32 %v3131_v1, 16 }
  0x2c   : > { %v345_v16 = vrot.slane %v343_v5, 5  ;;  %v351_v17 = vrot.slane %v349_v6, 5  ;;  %v272_v21 = vrot.slane %v270_v14, 4  ;;  %v279_v22 = vshll.u32 %v3140_v11, 16  ;;  %v3151_v24 = vld [vmem:[%s3026_s7 + $0x30] sm:$0xf] }
  0x2d   : > { %v332_v20 = vor.u32 %v331_v9, %v328_v8  ;;  %v284_v23 = vshrl.u32 %v3137_v7, 16  ;;  %v275_v32 = vrot.slane %v273_v19, 5  ;;  %v287_v34 = vshll.u32 %v3137_v7, 16  ;;  %v3162_v36 = vld [vmem:[%s3026_s7 + $0x38] sm:$0xf]  ;;  %p1069_p11 = scmp.lt.s32.totalorder (!%p2546_p10), %s2922_s12, 2 }
  0x2e   : > { %v346_v29 = vor.u32 %v345_v16, %v342_v15  ;;  %v293_v35 = vshll.u32 %v3145_v18, 16  ;;  %v281_v38 = vrot.slane %v279_v22, 5  ;;  %v3165_v40 = vld [vmem:[%s3026_s7 + $0x34] sm:$0x1]  ;;  %v354_v42 = vshrl.u32 %v3151_v24, 16 }
  0x2f   : > { %v333_v37 = vrot.slane %v332_v20, 4  ;;  %v286_v39 = vrot.slane %v284_v23, 4  ;;  %v276_v46 = vor.u32 %v275_v32, %v272_v21  ;;  %v289_v47 = vrot.slane %v287_v34, 5  ;;  %v3171_v51 = vld [vmem:[%s3026_s7 + $0x3c] sm:$0x1] }
  0x30   : > { %v347_v45 = vrot.slane %v346_v29, 4  ;;  %v295_v48 = vrot.slane %v293_v35, 5  ;;  %v356_v53 = vrot.slane %v354_v42, 4  ;;  %v357_v54 = vshll.u32 %v3151_v24, 16  ;;  %v3179_v0 = vld [vmem:[%s3026_s7 + $0x10] sm:$0xf] }
  0x31   : > { %v338_v50 = vsel %vm3155_vm6, %v333_v37, %v337_v10  ;;  %v363_v55 = vshll.u32 %v3165_v40, 16  ;;  %v277_v61 = vrot.slane %v276_v46, 4  ;;  %v290_v62 = vor.u32 %v289_v47, %v286_v39  ;;  %v3182_v2 = vld [vmem:[%s3026_s7 + $0x18] sm:$0xf]  ;;  %v260_v9 = vld [vmem:[%s3026_s7 + $0x14] sm:$0x1] }
  0x32   : > { %v352_v58 = vsel %vm3155_vm6, %v347_v45, %v351_v17  ;;  %v368_v63 = vshrl.u32 %v3162_v36, 16  ;;  %v359_v5 = vrot.slane %v357_v54, 5  ;;  %v371_v8 = vshll.u32 %v3162_v36, 16  ;;  %v261_v20 = vld [vmem:[%s3026_s7 + $0x1c] sm:$0x1] }
  0x33   : > { %v2516_v4 = vcombine.low %v338_v50, %v352_v58  ;;  %v365_v6 = vrot.slane %v363_v55, 5  ;;  %v282_v10 = vsel %vm3155_vm6, %v277_v61, %v281_v38  ;;  %v291_v14 = vrot.slane %v290_v62, 4  ;;  %v383_v35 = vld [vmem:[%s3026_s7 + $0x10] sm:$0xe]  ;;  %v384_v45 = vld [vmem:[%s3026_s7 + $0x18] sm:$0xe] }
  0x34   : > { %v370_v15 = vrot.slane %v368_v63, 4  ;;  %v377_v16 = vshll.u32 %v3171_v51, 16  ;;  %v360_v17 = vor.u32 %v359_v5, %v356_v53  ;;  %v373_v19 = vrot.slane %v371_v8, 5  ;;  %v381_v54 = vld [vmem:[%s3026_s7] sm:$0xe] }
  0x35   : > { %846 = vrot.lane.b32.xlu1 %v2516_v4, %s2949_s11  ;;  %v298_v21 = vshrl.u32 %v3179_v0, 16  ;;  %v301_v22 = vshll.u32 %v3179_v0, 16  ;;  %v296_v23 = vsel %vm3155_vm6, %v291_v14, %v295_v48  ;;  %v307_v32 = vshll.u32 %v260_v9, 16  ;;  %v382_v8 = vld [vmem:[%s3026_s7 + $0x8] sm:$0xe] }
  0x36   : > { %v379_v29 = vrot.slane %v377_v16, 5  ;;  %v312_v34 = vshrl.u32 %v3182_v2, 16  ;;  %v2514_v37 = vcombine.low %v282_v10, %v296_v23  ;;  %v361_v38 = vrot.slane %v360_v17, 4  ;;  %v387_v17 = vld [vmem:[%s3026_s7 + $0x30] sm:$0xe] }
  0x37   : > { %v374_v39 = vor.u32 %v373_v19, %v370_v15  ;;  %v300_v42 = vrot.slane %v298_v21, 4  ;;  %v303_v46 = vrot.slane %v301_v22, 5  ;;  %v309_v47 = vrot.slane %v307_v32, 5  ;;  %v388_v23 = vld [vmem:[%s3026_s7 + $0x38] sm:$0xe] }
  0x38   : > { %v314_v50 = vrot.slane %v312_v34, 4  ;;  %v315_v53 = vshll.u32 %v3182_v2, 16  ;;  %842 = vrot.lane.b32.xlu0 %v2514_v37, %s2949_s11  ;;  %v366_v48 = vsel %vm3155_vm6, %v361_v38, %v365_v6  ;;  %v321_v58 = vshll.u32 %v261_v20, 16  ;;  %v2450_v60 = vld [vmem:[%s3026_s7 + $0x28] sm:$0xf] }
  0x39   : > { %v375_v55 = vrot.slane %v374_v39, 4  ;;  %v2440_v61 = vrot.slane %v383_v35, 9  ;;  %v304_v62 = vor.u32 %v303_v46, %v300_v42  ;;  %v418_v4 = vrot.slane %v260_v9, 5  ;;  %v385_v35 = vld [vmem:[%s3026_s7 + $0x20] sm:$0xe] }
  0x3a   : > { %v317_v63 = vrot.slane %v315_v53, 5  ;;  %v2441_v5 = vrot.slane %v384_v45, 9  ;;  %v323_v14 = vrot.slane %v321_v58, 5  ;;  %v422_v15 = vrot.slane %v261_v20, 5  ;;  %v386_v42 = vld [vmem:[%s3026_s7 + $0x28] sm:$0xe] }
  0x3b   : > { %v380_v10 = vsel %vm3155_vm6, %v375_v55, %v379_v29  ;;  %v2438_v16 = vrot.slane %v381_v54, 9  ;;  %v305_v6 = vrot.slane %v304_v62, 4  ;;  %v419_v22 = vsel %vm3052_vm3, %v2440_v61, %v418_v4  ;;  %v2480_v62 = vld [vmem:[%s3026_s7 + $0x20] sm:$0xf]  ;;  %v2488_v49 = vld [vmem:[%s3026_s7 + $0x24] sm:$0x1] }
  0x3c   : > { %v2517_v19 = vcombine.low %v366_v48, %v380_v10  ;;  %v318_v21 = vor.u32 %v317_v63, %v314_v50  ;;  %v423_v9 = vsel %vm3052_vm3, %v2441_v5, %v422_v15  ;;  %v410_v32 = vrot.slane %v3140_v11, 5 }
  0x3d   : > { %v2439_v34 = vrot.slane %v382_v8, 9  ;;  %v414_v29 = vrot.slane %v3145_v18, 5  ;;  %v310_v20 = vsel %vm3155_vm6, %v305_v6, %v309_v47  ;;  %v2519_v38 = vcombine.low %v419_v22, %v423_v9  ;;  %v2484_v9 = vld [vmem:[%s3026_s7 + $0x40] sm:$0xf] }
  0x3e   : > { %848 = vrot.lane.b32.xlu1 %v2517_v19, %s2949_s11  ;;  %v319_v37 = vrot.slane %v318_v21, 4  ;;  %v2444_v39 = vrot.slane %v387_v17, 9  ;;  %v411_v45 = vsel %vm3052_vm3, %v2438_v16, %v410_v32  ;;  %v434_v18 = vrot.slane %v3165_v40, 5  ;;  %v2479_v19 = vld [vmem:[%s3026_s7 + $0x18] sm:$0xf] }
  0x3f   : > { %v415_v11 = vsel %vm3052_vm3, %v2439_v34, %v414_v29  ;;  %v2445_v46 = vrot.slane %v388_v23, 9  ;;  %v438_v47 = vrot.slane %v3171_v51, 5  ;;  %v2442_v54 = vrot.slane %v385_v35, 9  ;;  %v2481_v51 = vld [vmem:[%s3026_s7 + $0x28] sm:$0xf] }
  0x40   : > { %v324_v50 = vsel %vm3155_vm6, %v319_v37, %v323_v14  ;;  %v2518_v53 = vcombine.low %v411_v45, %v415_v11  ;;  %v435_v55 = vsel %vm3052_vm3, %v2444_v39, %v434_v18  ;;  %v426_v58 = vrot.slane %v3115_v57, 5 }
  0x41   : > { %v2515_v48 = vcombine.low %v310_v20, %v324_v50  ;;  %v2443_v61 = vrot.slane %v386_v42, 9  ;;  %v439_v40 = vsel %vm3052_vm3, %v2445_v46, %v438_v47  ;;  %v430_v63 = vrot.slane %v3120_v59, 5  ;;  %v2478_v59 = vld [vmem:[%s3026_s7 + $0x10] sm:$0xf]  ;;  %v2485_v20 = vld [vmem:[%s3026_s7 + $0x48] sm:$0xf] }
  0x42   : > { %864 = vrot.lane.b32.xlu1 %v2519_v38, %s2950_s13  ;;  %v671_v4 = vshrl.u32 %v2480_v62, 16  ;;  %v674_v5 = vshll.u32 %v2480_v62, 16  ;;  %v2521_v8 = vcombine.low %v435_v55, %v439_v40  ;;  %v427_v57 = vsel %vm3052_vm3, %v2442_v54, %v426_v58  ;;  %v2482_v50 = vld [vmem:[%s3026_s7 + $0x30] sm:$0xf]  ;;  %v2483_v55 = vld [vmem:[%s3026_s7 + $0x38] sm:$0xf] }
  0x43   : > { %844 = vrot.lane.b32.xlu0 %v2515_v48, %s2949_s11  ;;  %v685_v10 = vshrl.u32 %v2481_v51, 16  ;;  %v688_v14 = vshll.u32 %v2481_v51, 16  ;;  %v431_v15 = vsel %vm3052_vm3, %v2443_v61, %v430_v63  ;;  %v2535_v22 = vcombine.low %v2480_v62, %v2481_v51  ;;  %v2448_v63 = vld [vmem:[%s3026_s7 + $0x18] sm:$0xf] }
  0x44   : > { %v3241_v16 = vrot.slane %v671_v4, 4  ;;  %v3243_v17 = vrot.slane %v674_v5, 5  ;;  %v2520_v6 = vcombine.low %v427_v57, %v431_v15  ;;  %v643_v23 = vshrl.u32 %v2478_v59, 16  ;;  %v2449_v5 = vld [vmem:[%s3026_s7 + $0x20] sm:$0xf] }
  0x45   : > { %v3247_v21 = vrot.slane %v685_v10, 4  ;;  %v3251_v32 = vrot.slane %v688_v14, 5  ;;  %v646_v34 = vshll.u32 %v2478_v59, 16  ;;  %v657_v29 = vshrl.u32 %v2479_v19, 16 }
  0x46   : > { %868 = vrot.lane.b32.xlu1 %v2521_v8, %s2950_s13  ;;  %v660_v35 = vshll.u32 %v2479_v19, 16  ;;  %v2534_v37 = vcombine.low %v2478_v59, %v2479_v19  ;;  %v727_v38 = vshrl.u32 %v2484_v9, 16  ;;  %v730_v39 = vshll.u32 %v2484_v9, 16 }
  0x47   : > { %862 = vrot.lane.b32.xlu0 %v2518_v53, %s2950_s13  ;;  %v741_v42 = vshrl.u32 %v2485_v20, 16  ;;  %v3255_v45 = vrot.slane %v643_v23, 4  ;;  %v3257_v11 = vrot.slane %v646_v34, 5  ;;  %v3259_v18 = vrot.slane %v657_v29, 4 }
  0x48   : > { %v744_v46 = vshll.u32 %v2485_v20, 16  ;;  %v3262_v47 = vrot.slane %v660_v35, 5  ;;  %v3264_v54 = vrot.slane %v727_v38, 4  ;;  %v3266_v48 = vrot.slane %v730_v39, 5  ;;  %v2447_v35 = vld [vmem:[%s3026_s7 + $0x10] sm:$0xf] }
  0x49   : > { %v3268_v53 = vrot.slane %v741_v42, 4  ;;  %v2537_v58 = vcombine.low %v2484_v9, %v2485_v20  ;;  %v699_v61 = vshrl.u32 %v2482_v50, 16  ;;  %v702_v62 = vshll.u32 %v2482_v50, 16 }
  0x4a   : > { %952 = vrot.lane.b32.xlu1 %v2535_v22, %s2950_s13  ;;  %v713_v40 = vshrl.u32 %v2483_v55, 16  ;;  %v3274_v51 = vrot.slane %v744_v46, 5  ;;  %v716_v4 = vshll.u32 %v2483_v55, 16  ;;  %v486_v8 = vshrl.u32 %v2448_v63, 16 }
  0x4b   : > { %866 = vrot.lane.b32.xlu0 %v2520_v6, %s2950_s13  ;;  %v489_v57 = vshll.u32 %v2448_v63, 16  ;;  %v3277_v10 = vrot.slane %v699_v61, 4  ;;  %v3279_v14 = vrot.slane %v702_v62, 5  ;;  %v2536_v15 = vcombine.low %v2482_v50, %v2483_v55  ;;  %v2446_v6 = vld [vmem:[%s3026_s7 + $0x8] sm:$0xf] }
  0x4c   : > { %v500_v59 = vshrl.u32 %v2449_v5, 16  ;;  %v3281_v19 = vrot.slane %v713_v40, 4  ;;  %v488_v22 = vrot.slane %v486_v8, 4  ;;  %v503_v9 = vshll.u32 %v2449_v5, 16  ;;  %v2452_v55 = vld [vmem:[%s3026_s7 + $0x38] sm:$0xf] }
  0x4d   : > { %v491_v23 = vrot.slane %v489_v57, 5  ;;  %v2523_v29 = vcombine.low %v2448_v63, %v2449_v5  ;;  %v458_v20 = vshrl.u32 %v2446_v6, 16  ;;  %v461_v38 = vshll.u32 %v2446_v6, 16  ;;  %v2453_v8 = vld [vmem:[%s3026_s7 + $0x40] sm:$0xf] }
  0x4e   : > { %956 = vrot.lane.b32.xlu1 %v2537_v58, %s2950_s13  ;;  %v502_v34 = vrot.slane %v500_v59, 4  ;;  %v505_v42 = vrot.slane %v503_v9, 5  ;;  %v472_v46 = vshrl.u32 %v2447_v35, 16  ;;  %v475_v50 = vshll.u32 %v2447_v35, 16 }
  0x4f   : > { %950 = vrot.lane.b32.xlu0 %v2534_v37, %s2950_s13  ;;  %v492_v39 = vor.u32 %v491_v23, %v488_v22  ;;  %v3288_v61 = vrot.slane %v716_v4, 5  ;;  %v460_v62 = vrot.slane %v458_v20, 4  ;;  %v463_v40 = vrot.slane %v461_v38, 5 }
  0x50   : > { %v542_v57 = vshrl.u32 %v2452_v55, 16  ;;  %v506_v58 = vor.u32 %v505_v42, %v502_v34  ;;  %v474_v63 = vrot.slane %v472_v46, 4  ;;  %v477_v5 = vrot.slane %v475_v50, 5  ;;  %v2451_v42 = vld [vmem:[%s3026_s7 + $0x30] sm:$0xf] }
  0x51   : > { %v2522_v59 = vcombine.low %v2446_v6, %v2447_v35  ;;  %v464_v37 = vor.u32 %v463_v40, %v460_v62  ;;  %v545_v23 = vshll.u32 %v2452_v55, 16  ;;  %v556_v9 = vshrl.u32 %v2453_v8, 16 }
  0x52   : > { %892 = vrot.lane.b32.xlu1 %v2523_v29, %s2951_s14  ;;  %v544_v22 = vrot.slane %v542_v57, 4  ;;  %v3294_v4 = vrot.slane %v492_v39, 4  ;;  %v3296_v20 = vrot.slane %v506_v58, 4  ;;  %v559_v34 = vshll.u32 %v2453_v8, 16 }
  0x53   : > { %954 = vrot.lane.b32.xlu0 %v2536_v15, %s2950_s13  ;;  %v2525_v38 = vcombine.low %v2452_v55, %v2453_v8  ;;  %v478_v6 = vor.u32 %v477_v5, %v474_v63  ;;  %v547_v35 = vrot.slane %v545_v23, 5  ;;  %v558_v46 = vrot.slane %v556_v9, 4  ;;  %v2489_v8 = vld [vmem:[%s3026_s7 + $0x2c] sm:$0x1]  ;;  %v2496_v9 = vld [vmem:[%s3026_s7 + $0x20] sm:$0xe] }
  0x54   : > { %v514_v29 = vshrl.u32 %v2450_v60, 16  ;;  %v3299_v50 = vrot.slane %v464_v37, 4  ;;  %v561_v62 = vrot.slane %v559_v34, 5  ;;  %v517_v40 = vshll.u32 %v2450_v60, 16 }
  0x55   : > { %v528_v57 = vshrl.u32 %v2451_v42, 16  ;;  %v548_v15 = vor.u32 %v547_v35, %v544_v22  ;;  %v531_v58 = vshll.u32 %v2451_v42, 16  ;;  %v2524_v55 = vcombine.low %v2450_v60, %v2451_v42  ;;  %v2497_v42 = vld [vmem:[%s3026_s7 + $0x28] sm:$0xe] }
  0x56   : > { %896 = vrot.lane.b32.xlu1 %v2525_v38, %s2951_s14  ;;  %v516_v39 = vrot.slane %v514_v29, 4  ;;  %v562_v63 = vor.u32 %v561_v62, %v558_v46  ;;  %v519_v5 = vrot.slane %v517_v40, 5  ;;  %v677_v37 = vor.u32 %v3243_v17, %v3241_v16  ;;  %v2486_v40 = vld [vmem:[%s3026_s7 + $0x14] sm:$0x1] }
  0x57   : > { %890 = vrot.lane.b32.xlu0 %v2522_v59, %s2951_s14  ;;  %v3305_v23 = vrot.slane %v528_v57, 4  ;;  %v3310_v34 = vrot.slane %v478_v6, 4  ;;  %v3312_v22 = vrot.slane %v531_v58, 5  ;;  %v680_v38 = vshll.u32 %v2488_v49, 16 }
  0x58   : > { %v691_v60 = vor.u32 %v3251_v32, %v3247_v21  ;;  %v3317_v59 = vrot.slane %v548_v15, 4  ;;  %v520_v35 = vor.u32 %v519_v5, %v516_v39  ;;  %v678_v46 = vrot.slane %v677_v37, 4  ;;  %v2487_v39 = vld [vmem:[%s3026_s7 + $0x1c] sm:$0x1] }
  0x59   : > { %v694_v29 = vshll.u32 %v2489_v8, 16  ;;  %v3319_v62 = vrot.slane %v562_v63, 4  ;;  %v682_v16 = vrot.slane %v680_v38, 5  ;;  %v2504_v6 = vrot.slane %v2496_v9, 9  ;;  %v2494_v9 = vld [vmem:[%s3026_s7 + $0x10] sm:$0xe] }
  0x5a   : > { %v692_v17 = vrot.slane %v691_v60, 4  ;;  %v534_v57 = vor.u32 %v3312_v22, %v3305_v23  ;;  %v788_v32 = vrot.slane %v2488_v49, 5  ;;  %v2505_v15 = vrot.slane %v2497_v42, 9  ;;  %v2495_v42 = vld [vmem:[%s3026_s7 + $0x18] sm:$0xe] }
  0x5b   : > { %894 = vrot.lane.b32.xlu0 %v2524_v55, %s2951_s14  ;;  %v696_v21 = vrot.slane %v694_v29, 5  ;;  %v3326_v58 = vrot.slane %v520_v35, 4  ;;  %v683_v63 = vsel %vm3155_vm6, %v678_v46, %v682_v16  ;;  %v792_v5 = vrot.slane %v2489_v8, 5 }
  0x5c   : > { %v649_v37 = vor.u32 %v3257_v11, %v3255_v45  ;;  %v789_v49 = vsel %vm3052_vm3, %v2504_v6, %v788_v32  ;;  %v652_v55 = vshll.u32 %v2486_v40, 16  ;;  %v663_v60 = vor.u32 %v3262_v47, %v3259_v18  ;;  %v2492_v45 = vld [vmem:[%s3026_s7 + $0x44] sm:$0x1]  ;;  %v2493_v6 = vld [vmem:[%s3026_s7 + $0x4c] sm:$0x1] }
  0x5d   : > { %v697_v38 = vsel %vm3155_vm6, %v692_v17, %v696_v21  ;;  %v793_v35 = vsel %vm3052_vm3, %v2505_v15, %v792_v5  ;;  %v666_v29 = vshll.u32 %v2487_v39, 16  ;;  %v2502_v21 = vrot.slane %v2494_v9, 9  ;;  %v2500_v9 = vld [vmem:[%s3026_s7 + $0x40] sm:$0xe] }
  0x5e   : > { %v2539_v8 = vcombine.low %v683_v63, %v697_v38  ;;  %v650_v46 = vrot.slane %v649_v37, 4  ;;  %v3343_v11 = vcombine.low %v789_v49, %v793_v35  ;;  %v654_v16 = vrot.slane %v652_v55, 5  ;;  %v2501_v55 = vld [vmem:[%s3026_s7 + $0x48] sm:$0xe] }
  0x5f   : > { %v664_v17 = vrot.slane %v663_v60, 4  ;;  %v668_v32 = vrot.slane %v666_v29, 5  ;;  %v780_v18 = vrot.slane %v2486_v40, 5  ;;  %v2503_v47 = vrot.slane %v2495_v42, 9  ;;  %v2491_v29 = vld [vmem:[%s3026_s7 + $0x3c] sm:$0x1] }
  0x60   : > { %972 = vrot.lane.b32.xlu1 %v2539_v8, %s2951_s14  ;;  %v784_v44 = vrot.slane %v2487_v39, 5  ;;  %v655_v15 = vsel %vm3155_vm6, %v650_v46, %v654_v16  ;;  %v733_v63 = vor.u32 %v3266_v48, %v3264_v54  ;;  %v736_v5 = vshll.u32 %v2492_v45, 16 }
  0x61   : > { %v747_v37 = vor.u32 %v3274_v51, %v3268_v53  ;;  %v669_v38 = vsel %vm3155_vm6, %v664_v17, %v668_v32  ;;  %v781_v40 = vsel %vm3052_vm3, %v2502_v21, %v780_v18  ;;  %v750_v49 = vshll.u32 %v2493_v6, 16  ;;  %v2490_v53 = vld [vmem:[%s3026_s7 + $0x34] sm:$0x1]  ;;  %v2498_v32 = vld [vmem:[%s3026_s7 + $0x30] sm:$0xe] }
  0x62   : > { %v785_v39 = vsel %vm3052_vm3, %v2503_v47, %v784_v44  ;;  %v2538_v60 = vcombine.low %v655_v15, %v669_v38  ;;  %v734_v48 = vrot.slane %v733_v63, 4  ;;  %v738_v42 = vrot.slane %v736_v5, 5  ;;  %v2499_v63 = vld [vmem:[%s3026_s7 + $0x38] sm:$0xe] }
  0x63   : > { %v3361_v54 = vcombine.low %v781_v40, %v785_v39  ;;  %v748_v51 = vrot.slane %v747_v37, 4  ;;  %v752_v35 = vrot.slane %v750_v49, 5  ;;  %v2508_v8 = vrot.slane %v2500_v9, 9 }
  0x64   : > { %v804_v46 = vrot.slane %v2492_v45, 5  ;;  %970 = vrot.lane.b32.xlu0 %v2538_v60, %s2951_s14  ;;  %v739_v44 = vsel %vm3155_vm6, %v734_v48, %v738_v42  ;;  %v2509_v16 = vrot.slane %v2501_v55, 9  ;;  %v808_v17 = vrot.slane %v2493_v6, 5 }
  0x65   : > { %v705_v21 = vor.u32 %v3279_v14, %v3277_v10  ;;  %v753_v18 = vsel %vm3155_vm6, %v748_v51, %v752_v35  ;;  %v708_v15 = vshll.u32 %v2490_v53, 16  ;;  %v719_v45 = vor.u32 %v3288_v61, %v3281_v19 }
  0x66   : > { %v805_v47 = vsel %vm3052_vm3, %v2508_v8, %v804_v46  ;;  %v809_v5 = vsel %vm3052_vm3, %v2509_v16, %v808_v17  ;;  %v2541_v37 = vcombine.low %v739_v44, %v753_v18  ;;  %v722_v9 = vshll.u32 %v2491_v29, 16 }
  0x67   : > { %v706_v6 = vrot.slane %v705_v21, 4  ;;  %v3380_v38 = vcombine.low %v805_v47, %v809_v5  ;;  %v710_v10 = vrot.slane %v708_v15, 5  ;;  %v720_v14 = vrot.slane %v719_v45, 4 }
  0x68   : > { %v2506_v40 = vrot.slane %v2498_v32, 9  ;;  %976 = vrot.lane.b32.xlu1 %v2541_v37, %s2951_s14  ;;  %v724_v39 = vrot.slane %v722_v9, 5  ;;  %v796_v49 = vrot.slane %v2490_v53, 5  ;;  %v2507_v55 = vrot.slane %v2499_v63, 9 }
  0x69   : > { %v800_v60 = vrot.slane %v2491_v29, 5  ;;  %v535_v19 = vrot.slane %v534_v57, 4  ;;  %v711_v61 = vsel %vm3155_vm6, %v706_v6, %v710_v10  ;;  %v498_v48 = vsel %vm3155_vm6, %v3294_v4, %v3058_v12 }
  0x6a   : > { %v512_v42 = vsel %vm3155_vm6, %v3296_v20, %v3060_v13  ;;  %v725_v53 = vsel %vm3155_vm6, %v720_v14, %v724_v39  ;;  %v797_v23 = vsel %vm3052_vm3, %v2506_v40, %v796_v49  ;;  %v470_v12 = vsel %vm3155_vm6, %v3299_v50, %v3073_v27 }
  0x6b   : > { %v801_v22 = vsel %vm3052_vm3, %v2507_v55, %v800_v60  ;;  %v2527_v57 = vcombine.low %v498_v48, %v512_v42  ;;  %v2540_v51 = vcombine.low %v711_v61, %v725_v53  ;;  %v484_v13 = vsel %vm3155_vm6, %v3310_v34, %v3075_v28 }
  0x6c   : > { %v3402_v35 = vcombine.low %v797_v23, %v801_v22  ;;  %v2526_v4 = vcombine.low %v470_v12, %v484_v13  ;;  %v553_v20 = vrot.slane %v551_v31, 5  ;;  %v567_v3 = vrot.slane %v565_v33, 5 }
  0x6d   : > { %v3851_v8 = vshll.u32 %v3092_v41, 16  ;;  %974 = vrot.lane.b32.xlu0 %v2540_v51, %s2951_s14  ;;  %v3852_v29 = vshll.u32 %v3095_v43, 16  ;;  %v2513_v50 = vcombine.low %v3151_v24, %v3162_v36  ;;  %v2511_v28 = vcombine.low %v3179_v0, %v3182_v2 }
  0x6e   : > { %v554_v26 = vsel %vm3155_vm6, %v3317_v59, %v553_v20  ;;  %v568_v30 = vsel %vm3155_vm6, %v3319_v62, %v567_v3  ;;  %vm1003_vm7 = vcmask 523264   ;;  %vm990_vm8 = vcmask 261120  }
  0x6f   : > { %v525_v46 = vrot.slane %v3851_v8, 5  ;;  %v539_v27 = vrot.slane %v3852_v29, 5  ;;  %v2529_v33 = vcombine.low %v554_v26, %v568_v30  ;;  %vm1012_vm9 = vcmask 785408  }
  0x70   : > { %v2510_v15 = vcombine.low %v3131_v1, %v3137_v7  ;;  %v3853_v7 = vcombine.low %v3107_v52, %v3112_v56 }
  0x71   : > { %v526_v31 = vsel %vm3155_vm6, %v3326_v58, %v525_v46  ;;  %v540_v41 = vsel %vm3155_vm6, %v535_v19, %v539_v27 }
  0x72   : > { %v2528_v43 = vcombine.low %v526_v31, %v540_v41 }
  0x95   : > { %v925_v24 = vpop.permute.xlu1 %924 }
  0x96   : > { %v1030_v48 = vsel %vm990_vm8, %v2527_v57, %v925_v24 }
  0x98   : > { %v923_v36 = vpop.permute.xlu0 %922 }
  0x99   : > { %v1027_v22 = vsel %vm990_vm8, %v2526_v4, %v923_v36 }
  0x9b   : > { %v929_v0 = vpop.permute.xlu1 %928 }
  0x9c   : > { %v1036_v12 = vsel %vm990_vm8, %v2529_v33, %v929_v0 }
  0x9d   : > { %v927_v2 = vpop.permute.xlu0 %926 }
  0x9e   : > { %v1033_v3 = vsel %vm990_vm8, %v2528_v43, %v927_v2 }
  0xa7   : > { %v847_v34 = vpop.permute.xlu1 %846 }
  0xa8   : > { %v999_v55 = vsel %vm990_vm8, %v3853_v7, %v847_v34 }
  0xaa   : > { %v843_v44 = vpop.permute.xlu0 %842 }
  0xab   : > { %v993_v9 = vsel %vm990_vm8, %v2510_v15, %v843_v44 }
  0xb0   : > { %v849_v59 = vpop.permute.xlu1 %848 }
  0xb1   : > { %v1002_v6 = vsel %vm990_vm8, %v2513_v50, %v849_v59 }
  0xb4   : > { %v865_v16 = vpop.permute.xlu1 %864 }
  0xb5   : > { %v845_v17 = vpop.permute.xlu0 %844 }
  0xb6   : > { %v996_v25 = vsel %vm990_vm8, %v2511_v28, %v845_v17 }
  0xb7   : > { %v1007_v45 = vsel %vm1003_vm7, %v996_v25, %v865_v16 }
  0xb8   : > { %v869_v21 = vpop.permute.xlu1 %868 }
  0xb9   : > { %v863_v62 = vpop.permute.xlu0 %862  ;;  %v1011_v10 = vsel %vm1003_vm7, %v1002_v6, %v869_v21 }
  0xba   : > { %v1005_v40 = vsel %vm1003_vm7, %v993_v9, %v863_v62 }
  0xbc   : > { %v953_v32 = vpop.permute.xlu1 %952 }
  0xbd   : > { %v867_v18 = vpop.permute.xlu0 %866  ;;  %v1040_v42 = vsel %vm1003_vm7, %v1030_v48, %v953_v32 }
  0xbe   : > { %v1009_v60 = vsel %vm1003_vm7, %v999_v55, %v867_v18 }
  0xc0   : > { %v957_v47 = vpop.permute.xlu1 %956 }
  0xc1   : > { %v951_v58 = vpop.permute.xlu0 %950  ;;  %v1044_v13 = vsel %vm1003_vm7, %v1036_v12, %v957_v47 }
  0xc2   : > { %v1038_v52 = vsel %vm1003_vm7, %v1027_v22, %v951_v58 }
  0xc4   : > { %v893_v63 = vpop.permute.xlu1 %892 }
  0xc5   : > { %v955_v5 = vpop.permute.xlu0 %954  ;;  %v3441_v37 = vsel %vm1012_vm9, %v1007_v45, %v893_v63 }
  0xc6   : > { %v1042_v8 = vsel %vm1003_vm7, %v1033_v3, %v955_v5 }
  0xc8   : > { %v897_v14 = vpop.permute.xlu1 %896 }
  0xc9   : > { %v891_v39 = vpop.permute.xlu0 %890  ;;  %v3448_v49 = vsel %vm1012_vm9, %v1011_v10, %v897_v14  ;;  %v1061_v14 = vld [vmem:[#allocation2] sm:$0xff] (!%p2546_p10) }
  0xca   : > { %v3451_v1 = vsel %vm1012_vm9, %v1005_v40, %v891_v39 }
  0xcd   : > { %v895_v19 = vpop.permute.xlu0 %894 }
  0xce   : > { %v3459_v61 = vsel %vm1012_vm9, %v1009_v60, %v895_v19  ;;  %v1063_v19 = vld [vmem:[#allocation2 + $0x10] sm:$0xff] (!%p2546_p10) }
  0xd2   : > { %v973_v53 = vpop.permute.xlu1 %972 }
  0xd3   : > { %v3464_v23 = vsel %vm1012_vm9, %v1040_v42, %v973_v53  ;;  %v1062_v42 = vld [vmem:[#allocation2 + $0x8] sm:$0xff] (!%p2546_p10) }
  0xd6   : > { %v971_v56 = vpop.permute.xlu0 %970 }
  0xd7   : > { %v3469_v51 = vsel %vm1012_vm9, %v1038_v52, %v971_v56 }
  0xd8   : > { %1262 = vmatprep.mubr.bf16.mxu0 (!%p2546_p10), %v3469_v51 }
  0xda   : > { %v977_v20 = vpop.permute.xlu1 %976  ;;  %1060 = sbr.rel (%p2546_p10) target bundleno = 501 (0x1f5), region = 40 }
  0xdb   : > { %v3474_v57 = vsel %vm1012_vm9, %v1044_v13, %v977_v20  ;;  %v1064_v13 = vld [vmem:[#allocation2 + $0x18] sm:$0xff] (!%p2546_p10) }
  0xdc   : > { %1286 = vmatprep.mubr.bf16.mxu1 (!%p2546_p10), %v3474_v57 }
  0xdf   : > { %v975_v46 = vpop.permute.xlu0 %974 }
  0xe0   : > { %v3479_v4 = vsel %vm1012_vm9, %v1042_v8, %v975_v46 }
  0xe1   : > { %s1070_s22 = scalar_select %p1069_p11, %s2922_s12, 2 }
  0xe3   : > { %s2615_s23 = smul.u32 144, %s1070_s22 }
  0xe5   : > { %s3489_s26 = scalar_lea.vmem %s3844_s1, %s2615_s23 }
  0xe6   : > { %v2856_v29 = vld [vmem:[%s3489_s26 + $0x40] sm:$0xff]   ;;  %v2858_v50 = vld [vmem:[%s3489_s26 + $0x48] sm:$0xff]   ;;  %v2860_v26 = vld [vmem:[%s3489_s26 + $0x50] sm:$0xff]  }
  0xe7   : > { %v2857_v27 = vld [vmem:[%s3489_s26] sm:$0xff]   ;;  %2633 = vmatprep.subr.bf16.mxu0 %v2856_v29  ;;  %2749 = vmatprep.subr.bf16.mxu1 %v2856_v29  ;;  %v2859_v28 = vld [vmem:[%s3489_s26 + $0x8] sm:$0xff]   ;;  %v2861_v30 = vld [vmem:[%s3489_s26 + $0x10] sm:$0xff]  }
  0xe8   : > { %2634 = vmatpush3.bf16.msra.mxu0 %v2857_v27  ;;  %2757 = vmatpush3.bf16.msra.mxu1 %v2857_v27  ;;  %v2862_v31 = vld [vmem:[%s3489_s26 + $0x58] sm:$0xff]   ;;  %v2864_v41 = vld [vmem:[%s3489_s26 + $0x60] sm:$0xff]   ;;  %v2866_v24 = vld [vmem:[%s3489_s26 + $0x68] sm:$0xff]  }
  0xe9   : > { %2635 = vmatprep.subr.bf16.mxu0 %v2858_v50  ;;  %2750 = vmatprep.subr.bf16.mxu1 %v2858_v50  ;;  %v2863_v33 = vld [vmem:[%s3489_s26 + $0x18] sm:$0xff]   ;;  %v2865_v43 = vld [vmem:[%s3489_s26 + $0x20] sm:$0xff]   ;;  %v2867_v36 = vld [vmem:[%s3489_s26 + $0x28] sm:$0xff]  }
  0xea   : > { %v2868_v0 = vld [vmem:[%s3489_s26 + $0x70] sm:$0xff]   ;;  %v2870_v34 = vld [vmem:[%s3489_s26 + $0x78] sm:$0xff]   ;;  %v2872_v59 = vld [vmem:[%s3489_s26 + $0x80] sm:$0xff]  }
  0xeb   : > { %v2869_v2 = vld [vmem:[%s3489_s26 + $0x30] sm:$0xff]   ;;  %v2871_v44 = vld [vmem:[%s3489_s26 + $0x38] sm:$0xff]   ;;  %v2873_v16 = vld [vmem:[%s3489_s26 + $0x88] sm:$0xff]  }
  0xec   : > { %2636 = vmatpush3.bf16.msra.mxu0 %v2859_v28  ;;  %2758 = vmatpush3.bf16.msra.mxu1 %v2859_v28  ;;  %v1067_v27 = vld [vmem:[#allocation2 + $0x30] sm:$0xff] }
  0xed   : > { %2637 = vmatprep.subr.bf16.mxu0 %v2860_v26  ;;  %2751 = vmatprep.subr.bf16.mxu1 %v2860_v26 }
  0xf0   : > { %2638 = vmatpush3.bf16.msra.mxu0 %v2861_v30  ;;  %2759 = vmatpush3.bf16.msra.mxu1 %v2861_v30 }
  0xf1   : > { %2639 = vmatprep.subr.bf16.mxu0 %v2862_v31  ;;  %2752 = vmatprep.subr.bf16.mxu1 %v2862_v31 }
  0xf4   : > { %2640 = vmatpush3.bf16.msra.mxu0 %v2863_v33  ;;  %2760 = vmatpush3.bf16.msra.mxu1 %v2863_v33 }
  0xf5   : > { %2641 = vmatprep.subr.bf16.mxu0 %v2864_v41  ;;  %2753 = vmatprep.subr.bf16.mxu1 %v2864_v41  ;;  %v1068_v41 = vld [vmem:[#allocation2 + $0x38] sm:$0xff] }
  0xf8   : > { %2642 = vmatpush3.bf16.msra.mxu0 %v2865_v43  ;;  %2761 = vmatpush3.bf16.msra.mxu1 %v2865_v43 }
  0xf9   : > { %2643 = vmatprep.subr.bf16.mxu0 %v2866_v24  ;;  %2754 = vmatprep.subr.bf16.mxu1 %v2866_v24 }
  0xfc   : > { %2644 = vmatpush3.bf16.msra.mxu0 %v2867_v36  ;;  %2762 = vmatpush3.bf16.msra.mxu1 %v2867_v36  ;;  %v1065_v36 = vld [vmem:[#allocation2 + $0x20] sm:$0xff] }
  0xfd   : > { %2645 = vmatprep.subr.bf16.mxu0 %v2868_v0  ;;  %2755 = vmatprep.subr.bf16.mxu1 %v2868_v0 }
 0x100   : > { %2646 = vmatpush3.bf16.msra.mxu0 %v2869_v2  ;;  %2763 = vmatpush3.bf16.msra.mxu1 %v2869_v2 }
 0x101   : > { %2647 = vmatprep.subr.bf16.mxu0 %v2870_v34  ;;  %2756 = vmatprep.subr.bf16.mxu1 %v2870_v34 }
 0x104   : > { %2648 = vmatpush3.bf16.msra.mxu0 %v2871_v44  ;;  %2764 = vmatpush3.bf16.msra.mxu1 %v2871_v44 }
 0x105   : > { %2725 = vmatprep.subr.bf16.mxu1 %v2872_v59 }
 0x107   : > { %1263 = vmatmul.mubr.bf16.vlgmr.msra.gmra.mrb[0].mxu0 %v3451_v1  ;;  %1287 = vmatmul.mubr.bf16.vlgmr.msra.gmra.mrb[0].mxu1 %v3448_v49 }
 0x108   : > { %2726 = vmatpush3.bf16.msra.mxu1 %v2872_v59  ;;  %1270 = vmatprep.mubr.bf16.mxu0 %v3464_v23 }
 0x109   : > { %2727 = vmatprep.subr.bf16.mxu1 %v2873_v16  ;;  %2729 = vmatprep.mubr.msk.bf16.mxu1 %vm990_vm8, %v3361_v54 }
 0x10c   : > { %2728 = vmatpush3.bf16.msra.mxu1 %v2873_v16 }
 0x10f   : > { %1271 = vmatmul.mubr.bf16.gmra.mrb[4].mxu0 %v3441_v37  ;;  %2730 = vmatmul.mubr.msk.bf16.vlgmr.msra.gmra.mrb[4].mxu1 %vm990_vm8, %v3343_v11 }
 0x110   : > { %1278 = vmatprep.mubr.bf16.mxu0 %v3479_v4  ;;  %2733 = vmatprep.mubr.msk.bf16.mxu1 %vm990_vm8, %v3402_v35 }
 0x117   : > { %1279 = vmatmul.mubr.bf16.gmra.mrb[8].mxu0 %v3459_v61  ;;  %2734 = vmatmul.mubr.msk.bf16.gmra.mrb[8].mxu1 %vm990_vm8, %v3380_v38 }
 0x1da   : > { %v2649_v17 = vpop.f32.mrb[0].mxu0  ;;  %v2667_v21 = vpop.f32.mrb[0].mxu1 }
 0x1db   : > { %v2650_v62 = vpop.f32.mrb[1].mxu0  ;;  %v2668_v32 = vpop.f32.mrb[1].mxu1 }
 0x1dc   : > { %v2651_v18 = vadd.f32 %v2650_v62, %v2649_v17  ;;  %v2669_v47 = vadd.f32 %v2668_v32, %v2667_v21  ;;  %v2652_v58 = vpop.f32.mrb[2].mxu0  ;;  %v2670_v25 = vpop.f32.mrb[2].mxu1  ;;  %v1066_v17 = vld [vmem:[#allocation2 + $0x28] sm:$0xff] }
 0x1dd   : > { %v2653_v15 = vpop.f32.mrb[3].mxu0  ;;  %v2671_v45 = vpop.f32.mrb[3].mxu1 }
 0x1de   : > { %v2654_v63 = vadd.f32 %v2653_v15, %v2652_v58  ;;  %v2672_v5 = vadd.f32 %v2671_v45, %v2670_v25 }
 0x1e2   : > { %v2655_v6 = vpop.f32.mrb[4].mxu0  ;;  %v2731_v9 = vpop.f32.mrb[4].mxu1 }
 0x1e3   : > { %v2656_v10 = vpop.f32.mrb[5].mxu0  ;;  %v1329_v40 = vpop.f32.mrb[5].mxu1 }
 0x1e4   : > { %v2657_v39 = vadd.f32 %v2656_v10, %v2655_v6  ;;  %v1330_v7 = vadd.f32 %v2651_v18, %v1329_v40  ;;  %v2658_v55 = vpop.f32.mrb[6].mxu0  ;;  %v2732_v60 = vpop.f32.mrb[6].mxu1 }
 0x1e5   : > { %v2659_v48 = vpop.f32.mrb[7].mxu0  ;;  %v1332_v53 = vpop.f32.mrb[7].mxu1 }
 0x1e6   : > { %v1338_v22 = vadd.f32 %v2731_v9, %v2657_v39  ;;  %v1360_v52 = vadd.f32 %v1330_v7, %v1061_v14  ;;  %v2660_v56 = vadd.f32 %v2659_v48, %v2658_v55  ;;  %v1333_v12 = vadd.f32 %v2654_v63, %v1332_v53 }
 0x1e8   : > { %v1362_v20 = vadd.f32 %v1338_v22, %v1063_v19  ;;  %1368 = vst.msk [vmem:[#allocation2] sm:$0xff] %vm1003_vm7, %v1360_v52  ;;  %v1341_v3 = vadd.f32 %v2732_v60, %v2660_v56  ;;  %v1361_v8 = vadd.f32 %v1333_v12, %v1062_v42 }
 0x1ea   : > { %1370 = vst.msk [vmem:[#allocation2 + $0x10] sm:$0xff] %vm1003_vm7, %v1362_v20  ;;  %v1363_v46 = vadd.f32 %v1341_v3, %v1064_v13  ;;  %1369 = vst.msk [vmem:[#allocation2 + $0x8] sm:$0xff] %vm1003_vm7, %v1361_v8  ;;  %v2661_v29 = vpop.f32.mrb[8].mxu0  ;;  %v2735_v50 = vpop.f32.mrb[8].mxu1 }
 0x1eb   : > { %v1354_v28 = vadd.f32 %v2735_v50, %v2669_v47  ;;  %v2662_v26 = vpop.f32.mrb[9].mxu0  ;;  %v1345_v30 = vpop.f32.mrb[9].mxu1 }
 0x1ec   : > { %1371 = vst.msk [vmem:[#allocation2 + $0x18] sm:$0xff] %vm1003_vm7, %v1363_v46  ;;  %v2663_v31 = vadd.f32 %v2662_v26, %v2661_v29  ;;  %v2664_v33 = vpop.f32.mrb[10].mxu0  ;;  %v2736_v43 = vpop.f32.mrb[10].mxu1 }
 0x1ed   : > { %v1366_v24 = vadd.f32 %v1354_v28, %v1067_v27  ;;  %v1357_v0 = vadd.f32 %v2736_v43, %v2672_v5  ;;  %v2665_v2 = vpop.f32.mrb[11].mxu0  ;;  %v1348_v34 = vpop.f32.mrb[11].mxu1 }
 0x1ee   : > { %v1346_v44 = vadd.f32 %v2663_v31, %v1345_v30  ;;  %v2666_v59 = vadd.f32 %v2665_v2, %v2664_v33 }
 0x1ef   : > { %1374 = vst.msk [vmem:[#allocation2 + $0x30] sm:$0xff] %vm1003_vm7, %v1366_v24  ;;  %v1367_v16 = vadd.f32 %v1357_v0, %v1068_v41 }
 0x1f0   : > { %v1364_v21 = vadd.f32 %v1346_v44, %v1065_v36  ;;  %v1349_v62 = vadd.f32 %v2666_v59, %v1348_v34 }
 0x1f1   : > { %1375 = vst.msk [vmem:[#allocation2 + $0x38] sm:$0xff] %vm1003_vm7, %v1367_v16 }
 0x1f2   : > { %1372 = vst.msk [vmem:[#allocation2 + $0x20] sm:$0xff] %vm1003_vm7, %v1364_v21  ;;  %v1365_v32 = vadd.f32 %v1349_v62, %v1066_v17 }
 0x1f4   : > { %1373 = vst.msk [vmem:[#allocation2 + $0x28] sm:$0xff] %vm1003_vm7, %v1365_v32 }
 0x1f5 PF: > { %p2570_p12 = scmp.le.s32.totalorder %s2922_s12, 0 }
 0x1f6   : > { %s2571_s27 = sadd.s32 (!%p2570_p12), 4294967295, %s2922_s12  ;;  %1582 = vmatprep.mubr.bf16.mxu0 (!%p2570_p12), %v3469_v51  ;;  %1606 = vmatprep.mubr.bf16.mxu1 (!%p2570_p12), %v3474_v57  ;;  %v1380_v56 = vld [vmem:[#allocation3] sm:$0xff] (!%p2570_p12)  ;;  %v1382_v3 = vld [vmem:[#allocation3 + $0x10] sm:$0xff] (!%p2570_p12)  ;;  %v1381_v46 = vld [vmem:[#allocation3 + $0x8] sm:$0xff] (!%p2570_p12) }
 0x1f7   : > { %1379 = sbr.rel (%p2570_p12) target bundleno = 785 (0x311), region = 44  ;;  %p1389_p13 = scmp.gt.s32.totalorder (!%p2570_p12), %s2571_s27, 0  ;;  %v1383_v30 = vld [vmem:[#allocation3 + $0x18] sm:$0xff] (!%p2570_p12)  ;;  %v1386_v36 = vld [vmem:[#allocation3 + $0x30] sm:$0xff] (!%p2570_p12)  ;;  %v1384_v32 = vld [vmem:[#allocation3 + $0x20] sm:$0xff] (!%p2570_p12) }
 0x1f8   : > { %v1387_v17 = vld [vmem:[#allocation3 + $0x38] sm:$0xff] (!%p2570_p12) }
 0x1fe   : > { %s3877_s27 = smov (!%p1389_p13, %s2571_s27), 0 }
 0x1ff   : > { %s2616_s28 = smul.u32 144, %s3877_s27 }
 0x201   : > { %s3538_s4 = scalar_lea.vmem %s3844_s1, %s2616_s28 }
 0x202   : > { %v2874_v18 = vld [vmem:[%s3538_s4 + $0x40] sm:$0xff]   ;;  %v2876_v51 = vld [vmem:[%s3538_s4 + $0x48] sm:$0xff]   ;;  %v2878_v58 = vld [vmem:[%s3538_s4 + $0x50] sm:$0xff]  }
 0x203   : > { %v2875_v47 = vld [vmem:[%s3538_s4] sm:$0xff]   ;;  %2679 = vmatprep.subr.bf16.mxu0 %v2874_v18  ;;  %2765 = vmatprep.subr.bf16.mxu1 %v2874_v18  ;;  %v2877_v57 = vld [vmem:[%s3538_s4 + $0x8] sm:$0xff]   ;;  %v2879_v25 = vld [vmem:[%s3538_s4 + $0x10] sm:$0xff]  }
 0x204   : > { %2680 = vmatpush3.bf16.msra.mxu0 %v2875_v47  ;;  %2773 = vmatpush3.bf16.msra.mxu1 %v2875_v47  ;;  %v2880_v15 = vld [vmem:[%s3538_s4 + $0x58] sm:$0xff]   ;;  %v2882_v63 = vld [vmem:[%s3538_s4 + $0x60] sm:$0xff]   ;;  %v2884_v6 = vld [vmem:[%s3538_s4 + $0x68] sm:$0xff]  }
 0x205   : > { %2681 = vmatprep.subr.bf16.mxu0 %v2876_v51  ;;  %2766 = vmatprep.subr.bf16.mxu1 %v2876_v51  ;;  %v2881_v45 = vld [vmem:[%s3538_s4 + $0x18] sm:$0xff]   ;;  %v2883_v5 = vld [vmem:[%s3538_s4 + $0x20] sm:$0xff]   ;;  %v2885_v9 = vld [vmem:[%s3538_s4 + $0x28] sm:$0xff]  }
 0x206   : > { %v2886_v10 = vld [vmem:[%s3538_s4 + $0x70] sm:$0xff]   ;;  %v2888_v40 = vld [vmem:[%s3538_s4 + $0x78] sm:$0xff]   ;;  %v2890_v7 = vld [vmem:[%s3538_s4 + $0x80] sm:$0xff]  }
 0x207   : > { %v2887_v14 = vld [vmem:[%s3538_s4 + $0x30] sm:$0xff]   ;;  %v2889_v39 = vld [vmem:[%s3538_s4 + $0x38] sm:$0xff]   ;;  %v2891_v55 = vld [vmem:[%s3538_s4 + $0x88] sm:$0xff]  }
 0x208   : > { %2682 = vmatpush3.bf16.msra.mxu0 %v2877_v57  ;;  %2774 = vmatpush3.bf16.msra.mxu1 %v2877_v57 }
 0x209   : > { %2683 = vmatprep.subr.bf16.mxu0 %v2878_v58  ;;  %2767 = vmatprep.subr.bf16.mxu1 %v2878_v58 }
 0x20c   : > { %2684 = vmatpush3.bf16.msra.mxu0 %v2879_v25  ;;  %2775 = vmatpush3.bf16.msra.mxu1 %v2879_v25 }
 0x20d   : > { %2685 = vmatprep.subr.bf16.mxu0 %v2880_v15  ;;  %2768 = vmatprep.subr.bf16.mxu1 %v2880_v15  ;;  %v1385_v15 = vld [vmem:[#allocation3 + $0x28] sm:$0xff] }
 0x210   : > { %2686 = vmatpush3.bf16.msra.mxu0 %v2881_v45  ;;  %2776 = vmatpush3.bf16.msra.mxu1 %v2881_v45 }
 0x211   : > { %2687 = vmatprep.subr.bf16.mxu0 %v2882_v63  ;;  %2769 = vmatprep.subr.bf16.mxu1 %v2882_v63 }
 0x214   : > { %2688 = vmatpush3.bf16.msra.mxu0 %v2883_v5  ;;  %2777 = vmatpush3.bf16.msra.mxu1 %v2883_v5 }
 0x215   : > { %2689 = vmatprep.subr.bf16.mxu0 %v2884_v6  ;;  %2770 = vmatprep.subr.bf16.mxu1 %v2884_v6 }
 0x218   : > { %2690 = vmatpush3.bf16.msra.mxu0 %v2885_v9  ;;  %2778 = vmatpush3.bf16.msra.mxu1 %v2885_v9 }
 0x219   : > { %2691 = vmatprep.subr.bf16.mxu0 %v2886_v10  ;;  %2771 = vmatprep.subr.bf16.mxu1 %v2886_v10 }
 0x21c   : > { %2692 = vmatpush3.bf16.msra.mxu0 %v2887_v14  ;;  %2779 = vmatpush3.bf16.msra.mxu1 %v2887_v14 }
 0x21d   : > { %2693 = vmatprep.subr.bf16.mxu0 %v2888_v40  ;;  %2772 = vmatprep.subr.bf16.mxu1 %v2888_v40 }
 0x220   : > { %2694 = vmatpush3.bf16.msra.mxu0 %v2889_v39  ;;  %2780 = vmatpush3.bf16.msra.mxu1 %v2889_v39 }
 0x221   : > { %2737 = vmatprep.subr.bf16.mxu1 %v2890_v7 }
 0x223   : > { %1583 = vmatmul.mubr.bf16.vlgmr.msra.gmra.mrb[0].mxu0 %v3451_v1  ;;  %1607 = vmatmul.mubr.bf16.vlgmr.msra.gmra.mrb[0].mxu1 %v3448_v49 }
 0x224   : > { %2738 = vmatpush3.bf16.msra.mxu1 %v2890_v7  ;;  %1590 = vmatprep.mubr.bf16.mxu0 %v3464_v23 }
 0x225   : > { %2739 = vmatprep.subr.bf16.mxu1 %v2891_v55  ;;  %2741 = vmatprep.mubr.msk.bf16.mxu1 %vm990_vm8, %v3361_v54 }
 0x228   : > { %2740 = vmatpush3.bf16.msra.mxu1 %v2891_v55 }
 0x22b   : > { %1591 = vmatmul.mubr.bf16.gmra.mrb[4].mxu0 %v3441_v37  ;;  %2742 = vmatmul.mubr.msk.bf16.vlgmr.msra.gmra.mrb[4].mxu1 %vm990_vm8, %v3343_v11 }
 0x22c   : > { %1598 = vmatprep.mubr.bf16.mxu0 %v3479_v4  ;;  %2745 = vmatprep.mubr.msk.bf16.mxu1 %vm990_vm8, %v3402_v35 }
 0x233   : > { %1599 = vmatmul.mubr.bf16.gmra.mrb[8].mxu0 %v3459_v61  ;;  %2746 = vmatmul.mubr.msk.bf16.gmra.mrb[8].mxu1 %vm990_vm8, %v3380_v38 }
 0x2f6   : > { %v2695_v49 = vpop.f32.mrb[0].mxu0  ;;  %v2713_v1 = vpop.f32.mrb[0].mxu1 }
 0x2f7   : > { %v2696_v23 = vpop.f32.mrb[1].mxu0  ;;  %v2714_v54 = vpop.f32.mrb[1].mxu1 }
 0x2f8   : > { %v2697_v60 = vadd.f32 %v2696_v23, %v2695_v49  ;;  %v2715_v19 = vadd.f32 %v2714_v54, %v2713_v1  ;;  %v2698_v37 = vpop.f32.mrb[2].mxu0  ;;  %v2716_v48 = vpop.f32.mrb[2].mxu1 }
 0x2f9   : > { %v2699_v42 = vpop.f32.mrb[3].mxu0  ;;  %v2717_v11 = vpop.f32.mrb[3].mxu1 }
 0x2fa   : > { %v2700_v53 = vadd.f32 %v2699_v42, %v2698_v37  ;;  %v2718_v4 = vadd.f32 %v2717_v11, %v2716_v48 }
 0x2fe   : > { %v2701_v22 = vpop.f32.mrb[4].mxu0  ;;  %v2743_v52 = vpop.f32.mrb[4].mxu1 }
 0x2ff   : > { %v2702_v35 = vpop.f32.mrb[5].mxu0  ;;  %v1649_v61 = vpop.f32.mrb[5].mxu1 }
 0x300   : > { %v2703_v12 = vadd.f32 %v2702_v35, %v2701_v22  ;;  %v1650_v13 = vadd.f32 %v2697_v60, %v1649_v61  ;;  %v2704_v38 = vpop.f32.mrb[6].mxu0  ;;  %v2744_v20 = vpop.f32.mrb[6].mxu1 }
 0x301   : > { %v2705_v8 = vpop.f32.mrb[7].mxu0  ;;  %v1652_v29 = vpop.f32.mrb[7].mxu1 }
 0x302   : > { %v1658_v27 = vadd.f32 %v2743_v52, %v2703_v12  ;;  %v1680_v50 = vadd.f32 %v1650_v13, %v1380_v56  ;;  %v2706_v28 = vadd.f32 %v2705_v8, %v2704_v38  ;;  %v1653_v26 = vadd.f32 %v2700_v53, %v1652_v29 }
 0x304   : > { %v1682_v31 = vadd.f32 %v1658_v27, %v1382_v3  ;;  %1688 = vst.msk [vmem:[#allocation3] sm:$0xff] %vm1003_vm7, %v1680_v50  ;;  %v1661_v33 = vadd.f32 %v2744_v20, %v2706_v28  ;;  %v1681_v41 = vadd.f32 %v1653_v26, %v1381_v46 }
 0x306   : > { %1690 = vst.msk [vmem:[#allocation3 + $0x10] sm:$0xff] %vm1003_vm7, %v1682_v31  ;;  %v1683_v43 = vadd.f32 %v1661_v33, %v1383_v30  ;;  %1689 = vst.msk [vmem:[#allocation3 + $0x8] sm:$0xff] %vm1003_vm7, %v1681_v41  ;;  %v2707_v24 = vpop.f32.mrb[8].mxu0  ;;  %v2747_v0 = vpop.f32.mrb[8].mxu1 }
 0x307   : > { %v1674_v2 = vadd.f32 %v2747_v0, %v2715_v19  ;;  %v2708_v34 = vpop.f32.mrb[9].mxu0  ;;  %v1665_v44 = vpop.f32.mrb[9].mxu1 }
 0x308   : > { %1691 = vst.msk [vmem:[#allocation3 + $0x18] sm:$0xff] %vm1003_vm7, %v1683_v43  ;;  %v2709_v59 = vadd.f32 %v2708_v34, %v2707_v24  ;;  %v2710_v16 = vpop.f32.mrb[10].mxu0  ;;  %v2748_v21 = vpop.f32.mrb[10].mxu1 }
 0x309   : > { %v1686_v62 = vadd.f32 %v1674_v2, %v1386_v36  ;;  %v1677_v18 = vadd.f32 %v2748_v21, %v2718_v4  ;;  %v2711_v47 = vpop.f32.mrb[11].mxu0  ;;  %v1668_v51 = vpop.f32.mrb[11].mxu1 }
 0x30a   : > { %v1666_v57 = vadd.f32 %v2709_v59, %v1665_v44  ;;  %v2712_v58 = vadd.f32 %v2711_v47, %v2710_v16 }
 0x30b   : > { %1694 = vst.msk [vmem:[#allocation3 + $0x30] sm:$0xff] %vm1003_vm7, %v1686_v62  ;;  %v1687_v25 = vadd.f32 %v1677_v18, %v1387_v17 }
 0x30c   : > { %v1684_v45 = vadd.f32 %v1666_v57, %v1384_v32  ;;  %v1669_v63 = vadd.f32 %v2712_v58, %v1668_v51 }
 0x30d   : > { %1695 = vst.msk [vmem:[#allocation3 + $0x38] sm:$0xff] %vm1003_vm7, %v1687_v25 }
 0x30e   : > { %1692 = vst.msk [vmem:[#allocation3 + $0x20] sm:$0xff] %vm1003_vm7, %v1684_v45  ;;  %v1685_v5 = vadd.f32 %v1669_v63, %v1385_v15 }
 0x310   : > { %1693 = vst.msk [vmem:[#allocation3 + $0x28] sm:$0xff] %vm1003_vm7, %v1685_v5 }
 0x311 PF: > { %p2595_p0 = scmp.ne.s32.totalorder %s2922_s12, 3 }
 0x312   : > { %v2596_v6 = vld [vmem:[%s3845_s2] ss:$0 sm:$0xff] (!%p2595_p0)  ;;  %v1702_v10 = vld [vmem:[#allocation2 + $0x8] sm:$0xff] (!%p2595_p0)  ;;  %v1775_v14 = vlaneseq (!%p2595_p0)  ;;  %v1703_v40 = vld [vmem:[#allocation2 + $0x10] sm:$0xff] (!%p2595_p0)  ;;  %v2952_v48 = vmov (!%p2595_p0), 1983009808  }
 0x313   : > { %1699 = sbr.rel (%p2595_p0) target bundleno = 895 (0x37f), region = 48  ;;  %v1701_v9 = vld [vmem:[#allocation2] sm:$0xff] (!%p2595_p0)  ;;  %v1704_v39 = vld [vmem:[#allocation2 + $0x18] sm:$0xff] (!%p2595_p0)  ;;  %v1716_v49 = vadd.f32 (!%p2595_p0), %v2596_v6, %v1702_v10  ;;  %v1706_v1 = vld [vmem:[#allocation2 + $0x28] sm:$0xff] (!%p2595_p0)  ;;  %v1717_v60 = vadd.f32 (!%p2595_p0), %v2596_v6, %v1703_v40  ;;  %v1773_v42 = vunpack.c.l.s4 (!%p2595_p0), %v2952_v48  ;;  %vm1939_vm10 = vcmask (!%p2595_p0), 517120  }
 0x314   : > { %v1705_v7 = vld [vmem:[#allocation2 + $0x20] sm:$0xff] (!%p2595_p0)  ;;  %v1715_v55 = vadd.f32 (!%p2595_p0), %v2596_v6, %v1701_v9  ;;  %v1707_v23 = vld [vmem:[#allocation2 + $0x30] sm:$0xff] (!%p2595_p0)  ;;  %v1708_v54 = vld [vmem:[#allocation2 + $0x38] sm:$0xff] (!%p2595_p0)  ;;  %v1718_v19 = vadd.f32 (!%p2595_p0), %v2596_v6, %v1704_v39  ;;  %v1720_v11 = vadd.f32 (!%p2595_p0), %v2596_v6, %v1706_v1  ;;  %v1776_v56 = vshrl.u32 (!%p2595_p0), %v1775_v14, 7 }
 0x315   : > { %v1719_v37 = vadd.f32 (!%p2595_p0), %v2596_v6, %v1705_v7  ;;  %v1721_v53 = vadd.f32 (!%p2595_p0), %v2596_v6, %v1707_v23  ;;  %v1722_v4 = vadd.f32 (!%p2595_p0), %v2596_v6, %v1708_v54  ;;  %v1731_v22 = vld [vmem:[#allocation3] sm:$0xff] (!%p2595_p0)  ;;  %v1732_v52 = vld [vmem:[#allocation3 + $0x8] sm:$0xff] (!%p2595_p0)  ;;  %v1733_v35 = vld [vmem:[#allocation3 + $0x10] sm:$0xff] (!%p2595_p0)  ;;  %v1724_v12 = vmax.f32 (!%p2595_p0), %v1716_v49, 0.0 }
 0x316   : > { %v1723_v61 = vmax.f32 (!%p2595_p0), %v1715_v55, 0.0  ;;  %v1725_v13 = vmax.f32 (!%p2595_p0), %v1717_v60, 0.0  ;;  %v1726_v38 = vmax.f32 (!%p2595_p0), %v1718_v19, 0.0  ;;  %v1734_v20 = vld [vmem:[#allocation3 + $0x18] sm:$0xff] (!%p2595_p0)  ;;  %v1735_v3 = vld [vmem:[#allocation3 + $0x20] sm:$0xff] (!%p2595_p0)  ;;  %v1728_v46 = vmax.f32 (!%p2595_p0), %v1720_v11, 0.0 }
 0x317   : > { %v1727_v8 = vmax.f32 (!%p2595_p0), %v1719_v37, 0.0  ;;  %v1729_v29 = vmax.f32 (!%p2595_p0), %v1721_v53, 0.0  ;;  %v1736_v27 = vld [vmem:[#allocation3 + $0x28] sm:$0xff] (!%p2595_p0)  ;;  %v1737_v50 = vld [vmem:[#allocation3 + $0x30] sm:$0xff] (!%p2595_p0)  ;;  %v1738_v28 = vld [vmem:[#allocation3 + $0x38] sm:$0xff] (!%p2595_p0)  ;;  %v1739_v26 = vadd.f32 (!%p2595_p0), %v2596_v6, %v1731_v22  ;;  %v1740_v30 = vadd.f32 (!%p2595_p0), %v2596_v6, %v1732_v52 }
 0x318   : > { %v1741_v31 = vadd.f32 (!%p2595_p0), %v2596_v6, %v1733_v35  ;;  %v1742_v33 = vadd.f32 (!%p2595_p0), %v2596_v6, %v1734_v20  ;;  %v1743_v41 = vadd.f32 (!%p2595_p0), %v2596_v6, %v1735_v3  ;;  %v1744_v43 = vadd.f32 (!%p2595_p0), %v2596_v6, %v1736_v27 }
 0x319   : > { %v1745_v24 = vadd.f32 (!%p2595_p0), %v2596_v6, %v1737_v50  ;;  %v1746_v36 = vadd.f32 (!%p2595_p0), %v2596_v6, %v1738_v28  ;;  %v1747_v0 = vmax.f32 (!%p2595_p0), %v1739_v26, 0.0  ;;  %v1748_v2 = vmax.f32 (!%p2595_p0), %v1740_v30, 0.0 }
 0x31a   : > { %v1749_v34 = vmax.f32 %v1741_v31, 0.0  ;;  %v1750_v44 = vmax.f32 %v1742_v33, 0.0  ;;  %v1751_v59 = vmax.f32 %v1743_v41, 0.0  ;;  %v1730_v16 = vmax.f32 %v1722_v4, 0.0 }
 0x31b   : > { %v1752_v17 = vmax.f32 %v1744_v43, 0.0  ;;  %v1753_v21 = vmax.f32 %v1745_v24, 0.0  ;;  %v1755_v62 = vmax.f32 %v1723_v61, %v1747_v0  ;;  %v1754_v32 = vmax.f32 %v1746_v36, 0.0 }
 0x31c   : > { %v1756_v18 = vmax.f32 %v1724_v12, %v1748_v2  ;;  %v1757_v47 = vmax.f32 %v1725_v13, %v1749_v34  ;;  %v1758_v51 = vmax.f32 %v1726_v38, %v1750_v44  ;;  %v1759_v57 = vmax.f32 %v1727_v8, %v1751_v59 }
 0x31d   : > { %v1760_v58 = vmax.f32 %v1728_v46, %v1752_v17  ;;  %v1771_v25 = vcombine.high %v1755_v62, %v1755_v62  ;;  %v1774_v15 = vunpack.c.0.s8 %v1773_v42  ;;  %v1761_v6 = vmax.f32 %v1729_v29, %v1753_v21 }
 0x31e   : > { %v1788_v45 = vcombine.high %v1756_v18, %v1756_v18  ;;  %v1805_v63 = vcombine.high %v1757_v47, %v1757_v47  ;;  %v1822_v5 = vcombine.high %v1758_v51, %v1758_v51  ;;  %v1762_v9 = vmax.f32 %v1730_v16, %v1754_v32 }
 0x31f   : > { %v1777_v10 = vsub.s32 %v1774_v15, %v1776_v56  ;;  %v1839_v14 = vcombine.high %v1759_v57, %v1759_v57  ;;  %v1856_v40 = vcombine.high %v1760_v58, %v1760_v58  ;;  %v1873_v19 = vcombine.high %v1761_v6, %v1761_v6 }
 0x320   : > { %v1890_v37 = vcombine.high %v1762_v9, %v1762_v9  ;;  %vm2292_vm11 = vcmask 1041409   ;;  %vm2294_vm12 = vcmask 1042434   ;;  %vm2296_vm13 = vcmask 1043459  }
 0x321   : > { %v1778_v39 = vrot.slane %v1755_v62, %v1777_v10  ;;  %v1785_v7 = vrot.slane %v1771_v25, %v1777_v10  ;;  %v1795_v55 = vrot.slane %v1756_v18, %v1777_v10  ;;  %v1802_v49 = vrot.slane %v1788_v45, %v1777_v10 }
 0x322   : > { %v3584_v1 = vrot.slane %v1757_v47, %v1777_v10  ;;  %v3586_v23 = vrot.slane %v1805_v63, %v1777_v10  ;;  %v3588_v54 = vrot.slane %v1758_v51, %v1777_v10  ;;  %v3590_v60 = vrot.slane %v1822_v5, %v1777_v10 }
 0x323   : > { %v1786_v48 = vcombine.high %v1778_v39, %v1778_v39  ;;  %v1787_v42 = vcombine.high %v1785_v7, %v1785_v7  ;;  %v1803_v11 = vcombine.high %v1795_v55, %v1795_v55  ;;  %v1804_v53 = vcombine.high %v1802_v49, %v1802_v49 }
 0x324   : > { %v3592_v4 = vrot.slane %v1759_v57, %v1777_v10  ;;  %v3594_v22 = vrot.slane %v1839_v14, %v1777_v10  ;;  %v3596_v52 = vrot.slane %v1760_v58, %v1777_v10  ;;  %v3598_v35 = vrot.slane %v1856_v40, %v1777_v10 }
 0x325   : > { %v1820_v56 = vcombine.high %v3584_v1, %v3584_v1  ;;  %v1821_v61 = vcombine.high %v3586_v23, %v3586_v23  ;;  %v1837_v12 = vcombine.high %v3588_v54, %v3588_v54  ;;  %v1838_v13 = vcombine.high %v3590_v60, %v3590_v60 }
 0x326   : > { %v3608_v38 = vrot.slane %v1761_v6, %v1777_v10  ;;  %v3610_v20 = vrot.slane %v1873_v19, %v1777_v10  ;;  %v3612_v3 = vrot.slane %v1762_v9, %v1777_v10  ;;  %v3614_v8 = vrot.slane %v1890_v37, %v1777_v10 }
 0x327   : > { %v1854_v46 = vcombine.high %v3592_v4, %v3592_v4  ;;  %v1855_v29 = vcombine.high %v3594_v22, %v3594_v22  ;;  %v1871_v27 = vcombine.high %v3596_v52, %v3596_v52  ;;  %v1872_v50 = vcombine.high %v3598_v35, %v3598_v35 }
 0x328   : > { %v1940_v28 = vsel %vm1939_vm10, %v1778_v39, -inf  ;;  %v1947_v26 = vsel %vm1939_vm10, %v1786_v48, -inf  ;;  %v1954_v30 = vsel %vm1939_vm10, %v1785_v7, -inf  ;;  %v1961_v31 = vsel %vm1939_vm10, %v1787_v42, -inf }
 0x329   : > { %v1941_v33 = vrot.slane %v1940_v28, 4  ;;  %v1948_v41 = vrot.slane %v1947_v26, 4  ;;  %v1955_v43 = vrot.slane %v1954_v30, 4  ;;  %v1962_v24 = vrot.slane %v1961_v31, 4 }
 0x32a   : > { %v1968_v36 = vsel %vm1939_vm10, %v1795_v55, -inf  ;;  %v1975_v0 = vsel %vm1939_vm10, %v1803_v11, -inf  ;;  %v1982_v2 = vsel %vm1939_vm10, %v1802_v49, -inf  ;;  %v1989_v34 = vsel %vm1939_vm10, %v1804_v53, -inf }
 0x32b   : > { %v1942_v44 = vmax.f32 %v1940_v28, %v1941_v33  ;;  %v1949_v59 = vmax.f32 %v1947_v26, %v1948_v41  ;;  %v1956_v16 = vmax.f32 %v1954_v30, %v1955_v43  ;;  %v1963_v17 = vmax.f32 %v1961_v31, %v1962_v24 }
 0x32c   : > { %v1969_v21 = vrot.slane %v1968_v36, 4  ;;  %v1976_v62 = vrot.slane %v1975_v0, 4  ;;  %v1983_v32 = vrot.slane %v1982_v2, 4  ;;  %v1990_v18 = vrot.slane %v1989_v34, 4 }
 0x32d   : > { %v1943_v47 = vrot.slane %v1942_v44, 2  ;;  %v1950_v51 = vrot.slane %v1949_v59, 2  ;;  %v1957_v57 = vrot.slane %v1956_v16, 2  ;;  %v1964_v58 = vrot.slane %v1963_v17, 2 }
 0x32e   : > { %v1970_v25 = vmax.f32 %v1968_v36, %v1969_v21  ;;  %v1977_v15 = vmax.f32 %v1975_v0, %v1976_v62  ;;  %v1984_v45 = vmax.f32 %v1982_v2, %v1983_v32  ;;  %v1991_v63 = vmax.f32 %v1989_v34, %v1990_v18 }
 0x32f   : > { %v1944_v5 = vmax.f32 %v1942_v44, %v1943_v47  ;;  %v1951_v6 = vmax.f32 %v1949_v59, %v1950_v51  ;;  %v1958_v9 = vmax.f32 %v1956_v16, %v1957_v57  ;;  %v1965_v10 = vmax.f32 %v1963_v17, %v1964_v58 }
 0x330   : > { %v1971_v14 = vrot.slane %v1970_v25, 2  ;;  %v1978_v40 = vrot.slane %v1977_v15, 2  ;;  %v1985_v39 = vrot.slane %v1984_v45, 2  ;;  %v1992_v7 = vrot.slane %v1991_v63, 2 }
 0x331   : > { %v1945_v55 = vrot.slane %v1944_v5, 1  ;;  %v1952_v49 = vrot.slane %v1951_v6, 1  ;;  %v1959_v19 = vrot.slane %v1958_v9, 1  ;;  %v1966_v37 = vrot.slane %v1965_v10, 1 }
 0x332   : > { %v1972_v48 = vmax.f32 %v1970_v25, %v1971_v14  ;;  %v1979_v42 = vmax.f32 %v1977_v15, %v1978_v40  ;;  %v1986_v11 = vmax.f32 %v1984_v45, %v1985_v39  ;;  %v1993_v53 = vmax.f32 %v1991_v63, %v1992_v7 }
 0x333   : > { %v1888_v28 = vcombine.high %v3608_v38, %v3608_v38  ;;  %v1889_v26 = vcombine.high %v3610_v20, %v3610_v20  ;;  %v1905_v30 = vcombine.high %v3612_v3, %v3612_v3  ;;  %v1906_v31 = vcombine.high %v3614_v8, %v3614_v8 }
 0x334   : > { %v3640_v33 = vmax.f32 %v1944_v5, %v1945_v55  ;;  %v3642_v41 = vmax.f32 %v1951_v6, %v1952_v49  ;;  %v3644_v43 = vmax.f32 %v1958_v9, %v1959_v19  ;;  %v3646_v24 = vmax.f32 %v1965_v10, %v1966_v37 }
 0x335   : > { %v1996_v36 = vsel %vm1939_vm10, %v3584_v1, -inf  ;;  %v2003_v0 = vsel %vm1939_vm10, %v1820_v56, -inf  ;;  %v2010_v2 = vsel %vm1939_vm10, %v3586_v23, -inf  ;;  %v2017_v34 = vsel %vm1939_vm10, %v1821_v61, -inf }
 0x336   : > { %v1973_v44 = vrot.slane %v1972_v48, 1  ;;  %v1980_v59 = vrot.slane %v1979_v42, 1  ;;  %v1987_v16 = vrot.slane %v1986_v11, 1  ;;  %v1994_v17 = vrot.slane %v1993_v53, 1 }
 0x337   : > { %v1997_v21 = vrot.slane %v1996_v36, 4  ;;  %v2004_v62 = vrot.slane %v2003_v0, 4  ;;  %v2011_v32 = vrot.slane %v2010_v2, 4  ;;  %v2018_v18 = vrot.slane %v2017_v34, 4 }
 0x338   : > { %v2024_v1 = vsel %vm1939_vm10, %v3588_v54, -inf  ;;  %v2031_v56 = vsel %vm1939_vm10, %v1837_v12, -inf  ;;  %v2038_v23 = vsel %vm1939_vm10, %v3590_v60, -inf  ;;  %v2045_v61 = vsel %vm1939_vm10, %v1838_v13, -inf }
 0x339   : > { %v1998_v47 = vmax.f32 %v1996_v36, %v1997_v21  ;;  %v2005_v51 = vmax.f32 %v2003_v0, %v2004_v62  ;;  %v2012_v57 = vmax.f32 %v2010_v2, %v2011_v32  ;;  %v2019_v58 = vmax.f32 %v2017_v34, %v2018_v18 }
 0x33a   : > { %v2025_v25 = vrot.slane %v2024_v1, 4  ;;  %v2032_v15 = vrot.slane %v2031_v56, 4  ;;  %v2039_v45 = vrot.slane %v2038_v23, 4  ;;  %v2046_v63 = vrot.slane %v2045_v61, 4 }
 0x33b   : > { %v1999_v5 = vrot.slane %v1998_v47, 2  ;;  %v2006_v54 = vrot.slane %v2005_v51, 2  ;;  %v2013_v6 = vrot.slane %v2012_v57, 2  ;;  %v2020_v12 = vrot.slane %v2019_v58, 2 }
 0x33c   : > { %v2026_v9 = vmax.f32 %v2024_v1, %v2025_v25  ;;  %v2033_v10 = vmax.f32 %v2031_v56, %v2032_v15  ;;  %v2040_v14 = vmax.f32 %v2038_v23, %v2039_v45  ;;  %v2047_v40 = vmax.f32 %v2045_v61, %v2046_v63 }
 0x33d   : > { %v2000_v39 = vmax.f32 %v1998_v47, %v1999_v5  ;;  %v2007_v60 = vmax.f32 %v2005_v51, %v2006_v54  ;;  %v2014_v7 = vmax.f32 %v2012_v57, %v2013_v6  ;;  %v2021_v13 = vmax.f32 %v2019_v58, %v2020_v12 }
 0x33e   : > { %v2027_v55 = vrot.slane %v2026_v9, 2  ;;  %v2034_v49 = vrot.slane %v2033_v10, 2  ;;  %v2041_v19 = vrot.slane %v2040_v14, 2  ;;  %v2048_v37 = vrot.slane %v2047_v40, 2 }
 0x33f   : > { %v2001_v36 = vrot.slane %v2000_v39, 1  ;;  %v2008_v0 = vrot.slane %v2007_v60, 1  ;;  %v2015_v2 = vrot.slane %v2014_v7, 1  ;;  %v2022_v34 = vrot.slane %v2021_v13, 1 }
 0x340   : > { %v2028_v21 = vmax.f32 %v2026_v9, %v2027_v55  ;;  %v2035_v62 = vmax.f32 %v2033_v10, %v2034_v49  ;;  %v2042_v32 = vmax.f32 %v2040_v14, %v2041_v19  ;;  %v2049_v18 = vmax.f32 %v2047_v40, %v2048_v37 }
 0x341   : > { %v3672_v1 = vmax.f32 %v1972_v48, %v1973_v44  ;;  %v3674_v56 = vmax.f32 %v1979_v42, %v1980_v59  ;;  %v3676_v23 = vmax.f32 %v1986_v11, %v1987_v16  ;;  %v3678_v61 = vmax.f32 %v1993_v53, %v1994_v17 }
 0x342   : > { %v3680_v47 = vmax.f32 %v2000_v39, %v2001_v36  ;;  %v3682_v51 = vmax.f32 %v2007_v60, %v2008_v0  ;;  %v3684_v57 = vmax.f32 %v2014_v7, %v2015_v2  ;;  %v3686_v58 = vmax.f32 %v2021_v13, %v2022_v34 }
 0x343   : > { %v2052_v25 = vsel %vm1939_vm10, %v3592_v4, -inf  ;;  %v2059_v48 = vsel %vm1939_vm10, %v1854_v46, -inf  ;;  %v2066_v42 = vsel %vm1939_vm10, %v3594_v22, -inf  ;;  %v2073_v11 = vsel %vm1939_vm10, %v1855_v29, -inf }
 0x344   : > { %v2029_v53 = vrot.slane %v2028_v21, 1  ;;  %v2036_v44 = vrot.slane %v2035_v62, 1  ;;  %v2043_v59 = vrot.slane %v2042_v32, 1  ;;  %v2050_v16 = vrot.slane %v2049_v18, 1 }
 0x345   : > { %v2053_v17 = vrot.slane %v2052_v25, 4  ;;  %v2060_v15 = vrot.slane %v2059_v48, 4  ;;  %v2067_v45 = vrot.slane %v2066_v42, 4  ;;  %v2074_v63 = vrot.slane %v2073_v11, 4 }
 0x346   : > { %v2080_v4 = vsel %vm1939_vm10, %v3596_v52, -inf  ;;  %v2087_v46 = vsel %vm1939_vm10, %v1871_v27, -inf  ;;  %v2094_v22 = vsel %vm1939_vm10, %v3598_v35, -inf  ;;  %v2101_v29 = vsel %vm1939_vm10, %v1872_v50, -inf }
 0x347   : > { %v2054_v5 = vmax.f32 %v2052_v25, %v2053_v17  ;;  %v2061_v54 = vmax.f32 %v2059_v48, %v2060_v15  ;;  %v2068_v6 = vmax.f32 %v2066_v42, %v2067_v45  ;;  %v2075_v12 = vmax.f32 %v2073_v11, %v2074_v63 }
 0x348   : > { %v2081_v9 = vrot.slane %v2080_v4, 4  ;;  %v2088_v10 = vrot.slane %v2087_v46, 4  ;;  %v2095_v14 = vrot.slane %v2094_v22, 4  ;;  %v2102_v40 = vrot.slane %v2101_v29, 4 }
 0x349   : > { %v2055_v39 = vrot.slane %v2054_v5, 2  ;;  %v2062_v52 = vrot.slane %v2061_v54, 2  ;;  %v2069_v60 = vrot.slane %v2068_v6, 2  ;;  %v2076_v27 = vrot.slane %v2075_v12, 2 }
 0x34a   : > { %v2082_v7 = vmax.f32 %v2080_v4, %v2081_v9  ;;  %v2089_v13 = vmax.f32 %v2087_v46, %v2088_v10  ;;  %v2096_v55 = vmax.f32 %v2094_v22, %v2095_v14  ;;  %v2103_v49 = vmax.f32 %v2101_v29, %v2102_v40 }
 0x34b   : > { %v2056_v19 = vmax.f32 %v2054_v5, %v2055_v39  ;;  %v2063_v35 = vmax.f32 %v2061_v54, %v2062_v52  ;;  %v2070_v37 = vmax.f32 %v2068_v6, %v2069_v60  ;;  %v2077_v50 = vmax.f32 %v2075_v12, %v2076_v27 }
 0x34c   : > { %v2083_v36 = vrot.slane %v2082_v7, 2  ;;  %v2090_v0 = vrot.slane %v2089_v13, 2  ;;  %v2097_v2 = vrot.slane %v2096_v55, 2  ;;  %v2104_v34 = vrot.slane %v2103_v49, 2 }
 0x34d   : > { %v2057_v25 = vrot.slane %v2056_v19, 1  ;;  %v2064_v48 = vrot.slane %v2063_v35, 1  ;;  %v2071_v42 = vrot.slane %v2070_v37, 1  ;;  %v2078_v11 = vrot.slane %v2077_v50, 1 }
 0x34e   : > { %v2084_v17 = vmax.f32 %v2082_v7, %v2083_v36  ;;  %v2091_v15 = vmax.f32 %v2089_v13, %v2090_v0  ;;  %v2098_v45 = vmax.f32 %v2096_v55, %v2097_v2  ;;  %v2105_v63 = vmax.f32 %v2103_v49, %v2104_v34 }
 0x34f   : > { %v3712_v4 = vmax.f32 %v2028_v21, %v2029_v53  ;;  %v3714_v46 = vmax.f32 %v2035_v62, %v2036_v44  ;;  %v3716_v22 = vmax.f32 %v2042_v32, %v2043_v59  ;;  %v3718_v29 = vmax.f32 %v2049_v18, %v2050_v16 }
 0x350   : > { %v3720_v5 = vmax.f32 %v2056_v19, %v2057_v25  ;;  %v3722_v54 = vmax.f32 %v2063_v35, %v2064_v48  ;;  %v3724_v6 = vmax.f32 %v2070_v37, %v2071_v42  ;;  %v3726_v12 = vmax.f32 %v2077_v50, %v2078_v11 }
 0x351   : > { %v2108_v9 = vsel %vm1939_vm10, %v3608_v38, -inf  ;;  %v2115_v21 = vsel %vm1939_vm10, %v1888_v28, -inf  ;;  %v2122_v62 = vsel %vm1939_vm10, %v3610_v20, -inf  ;;  %v2129_v32 = vsel %vm1939_vm10, %v1889_v26, -inf }
 0x352   : > { %v2085_v18 = vrot.slane %v2084_v17, 1  ;;  %v2092_v53 = vrot.slane %v2091_v15, 1  ;;  %v2099_v44 = vrot.slane %v2098_v45, 1  ;;  %v2106_v59 = vrot.slane %v2105_v63, 1 }
 0x353   : > { %v2109_v16 = vrot.slane %v2108_v9, 4  ;;  %v2116_v10 = vrot.slane %v2115_v21, 4  ;;  %v2123_v14 = vrot.slane %v2122_v62, 4  ;;  %v2130_v40 = vrot.slane %v2129_v32, 4 }
 0x354   : > { %v2136_v38 = vsel %vm1939_vm10, %v3612_v3, -inf  ;;  %v2143_v28 = vsel %vm1939_vm10, %v1905_v30, -inf  ;;  %v2150_v20 = vsel %vm1939_vm10, %v3614_v8, -inf  ;;  %v2157_v26 = vsel %vm1939_vm10, %v1906_v31, -inf }
 0x355   : > { %v2110_v39 = vmax.f32 %v2108_v9, %v2109_v16  ;;  %v2117_v52 = vmax.f32 %v2115_v21, %v2116_v10  ;;  %v2124_v60 = vmax.f32 %v2122_v62, %v2123_v14  ;;  %v2131_v27 = vmax.f32 %v2129_v32, %v2130_v40 }
 0x356   : > { %v2137_v7 = vrot.slane %v2136_v38, 4  ;;  %v2144_v13 = vrot.slane %v2143_v28, 4  ;;  %v2151_v55 = vrot.slane %v2150_v20, 4  ;;  %v2158_v49 = vrot.slane %v2157_v26, 4 }
 0x357   : > { %v2111_v19 = vrot.slane %v2110_v39, 2  ;;  %v2118_v3 = vrot.slane %v2117_v52, 2  ;;  %v2125_v35 = vrot.slane %v2124_v60, 2  ;;  %v2132_v30 = vrot.slane %v2131_v27, 2 }
 0x358   : > { %v2138_v37 = vmax.f32 %v2136_v38, %v2137_v7  ;;  %v2145_v50 = vmax.f32 %v2143_v28, %v2144_v13  ;;  %v2152_v36 = vmax.f32 %v2150_v20, %v2151_v55  ;;  %v2159_v0 = vmax.f32 %v2157_v26, %v2158_v49 }
 0x359   : > { %v2112_v2 = vmax.f32 %v2110_v39, %v2111_v19  ;;  %v2119_v8 = vmax.f32 %v2117_v52, %v2118_v3  ;;  %v2126_v34 = vmax.f32 %v2124_v60, %v2125_v35  ;;  %v2133_v31 = vmax.f32 %v2131_v27, %v2132_v30 }
 0x35a   : > { %v2139_v25 = vrot.slane %v2138_v37, 2  ;;  %v2146_v48 = vrot.slane %v2145_v50, 2  ;;  %v2153_v42 = vrot.slane %v2152_v36, 2  ;;  %v2160_v11 = vrot.slane %v2159_v0, 2 }
 0x35b   : > { %v2113_v9 = vrot.slane %v2112_v2, 1  ;;  %v2120_v21 = vrot.slane %v2119_v8, 1  ;;  %v2127_v62 = vrot.slane %v2126_v34, 1  ;;  %v2134_v32 = vrot.slane %v2133_v31, 1 }
 0x35c   : > { %v2140_v16 = vmax.f32 %v2138_v37, %v2139_v25  ;;  %v2147_v10 = vmax.f32 %v2145_v50, %v2146_v48  ;;  %v2154_v14 = vmax.f32 %v2152_v36, %v2153_v42  ;;  %v2161_v40 = vmax.f32 %v2159_v0, %v2160_v11 }
 0x35d   : > { %v2086_v38 = vmax.f32 %v2084_v17, %v2085_v18  ;;  %v2093_v28 = vmax.f32 %v2091_v15, %v2092_v53  ;;  %v2100_v20 = vmax.f32 %v2098_v45, %v2099_v44  ;;  %v2107_v26 = vmax.f32 %v2105_v63, %v2106_v59 }
 0x35e   : > { %v2114_v39 = vmax.f32 %v2112_v2, %v2113_v9  ;;  %v2141_v52 = vrot.slane %v2140_v16, 1  ;;  %v2148_v60 = vrot.slane %v2147_v10, 1  ;;  %v2155_v27 = vrot.slane %v2154_v14, 1 }
 0x35f   : > { %v2121_v7 = vmax.f32 %v2119_v8, %v2120_v21  ;;  %v2128_v13 = vmax.f32 %v2126_v34, %v2127_v62  ;;  %v2135_v55 = vmax.f32 %v2133_v31, %v2134_v32  ;;  %v2162_v49 = vrot.slane %v2161_v40, 1 }
 0x360   : > { %v2164_v19 = vsel %vm1003_vm7, %v3640_v33, -inf  ;;  %v2165_v3 = vsel %vm1003_vm7, %v3672_v1, -inf  ;;  %v2167_v17 = vsel %vm1003_vm7, %v3642_v41, -inf  ;;  %v2168_v15 = vsel %vm1003_vm7, %v3674_v56, -inf }
 0x361   : > { %v2142_v45 = vmax.f32 %v2140_v16, %v2141_v52  ;;  %v2149_v63 = vmax.f32 %v2147_v10, %v2148_v60  ;;  %v2170_v18 = vsel %vm1003_vm7, %v3644_v43, -inf  ;;  %v2171_v53 = vsel %vm1003_vm7, %v3676_v23, -inf }
 0x362   : > { %v2156_v44 = vmax.f32 %v2154_v14, %v2155_v27  ;;  %v2173_v33 = vsel %vm1003_vm7, %v3646_v24, -inf  ;;  %v2174_v1 = vsel %vm1003_vm7, %v3678_v61, -inf  ;;  %v2176_v41 = vsel %vm1003_vm7, %v3680_v47, -inf }
 0x363   : > { %v2163_v59 = vmax.f32 %v2161_v40, %v2162_v49  ;;  %v2177_v56 = vsel %vm1003_vm7, %v3712_v4, -inf  ;;  %v2179_v43 = vsel %vm1003_vm7, %v3682_v51, -inf  ;;  %v2180_v23 = vsel %vm1003_vm7, %v3714_v46, -inf }
 0x364   : > { %v2166_v35 = vmax.f32 %v2164_v19, %v2165_v3  ;;  %v2169_v30 = vmax.f32 %v2167_v17, %v2168_v15  ;;  %v2172_v37 = vmax.f32 %v2170_v18, %v2171_v53  ;;  %v2175_v24 = vmax.f32 %v2173_v33, %v2174_v1 }
 0x365   : > { %v2178_v50 = vmax.f32 %v2176_v41, %v2177_v56  ;;  %v3776_v36 = vmax.f32 %v2179_v43, %v2180_v23  ;;  %v2182_v61 = vsel %vm1003_vm7, %v3684_v57, -inf  ;;  %v2188_v47 = vsel %vm1003_vm7, %v3720_v5, -inf }
 0x366   : > { %v2183_v4 = vsel %vm1003_vm7, %v3716_v22, -inf  ;;  %v2189_v51 = vsel %vm1003_vm7, %v2086_v38, -inf  ;;  %v2191_v46 = vsel %vm1003_vm7, %v3722_v54, -inf  ;;  %v2192_v0 = vsel %vm1003_vm7, %v2093_v28, -inf }
 0x367   : > { %v2185_v2 = vsel %vm1003_vm7, %v3686_v58, -inf  ;;  %v2186_v8 = vsel %vm1003_vm7, %v3718_v29, -inf  ;;  %v2194_v57 = vsel %vm1003_vm7, %v3724_v6, -inf  ;;  %v2195_v5 = vsel %vm1003_vm7, %v2100_v20, -inf }
 0x368   : > { %v2190_v34 = vmax.f32 %v2188_v47, %v2189_v51  ;;  %v2197_v22 = vsel %vm1003_vm7, %v3726_v12, -inf  ;;  %v2198_v31 = vsel %vm1003_vm7, %v2107_v26, -inf  ;;  %v2200_v54 = vsel %vm1003_vm7, %v2114_v39, -inf }
 0x369   : > { %v2193_v25 = vmax.f32 %v2191_v46, %v2192_v0  ;;  %v2201_v48 = vsel %vm1003_vm7, %v2142_v45, -inf  ;;  %v2203_v58 = vsel %vm1003_vm7, %v2121_v7, -inf  ;;  %v2204_v29 = vsel %vm1003_vm7, %v2149_v63, -inf }
 0x36a   : > { %v2196_v42 = vmax.f32 %v2194_v57, %v2195_v5  ;;  %v2199_v6 = vmax.f32 %v2197_v22, %v2198_v31  ;;  %v2206_v11 = vsel %vm1003_vm7, %v2128_v13, -inf  ;;  %v2207_v9 = vsel %vm1003_vm7, %v2156_v44, -inf }
 0x36b   : > { %v2184_v12 = vmax.f32 %v2182_v61, %v2183_v4  ;;  %v2202_v21 = vmax.f32 %v2200_v54, %v2201_v48  ;;  %v2209_v62 = vsel %vm1003_vm7, %v2135_v55, -inf  ;;  %v2210_v32 = vsel %vm1003_vm7, %v2163_v59, -inf }
 0x36c   : > { %v2187_v16 = vmax.f32 %v2185_v2, %v2186_v8  ;;  %v2205_v10 = vmax.f32 %v2203_v58, %v2204_v29  ;;  %v2617_v14 = vpack.c.bf16 %v2166_v35, %v2166_v35  ;;  %v2618_v40 = vpack.c.bf16 %v2169_v30, %v2169_v30 }
 0x36d   : > { %vm2298_vm14 = vcmask 1044484   ;;  %v2208_v38 = vmax.f32 %v2206_v11, %v2207_v9  ;;  %v2211_v28 = vmax.f32 %v2209_v62, %v2210_v32  ;;  %v2619_v20 = vpack.c.bf16 %v2172_v37, %v2172_v37 }
 0x36e   : > { %v2620_v26 = vpack.c.bf16 %v2175_v24, %v2175_v24  ;;  %v2625_v39 = vpack.c.bf16 %v2190_v34, %v2190_v34  ;;  %v2626_v52 = vpack.c.bf16 %v2193_v25, %v2193_v25  ;;  %v2627_v60 = vpack.c.bf16 %v2196_v42, %v2196_v42 }
 0x36f   : > { %v2628_v27 = vpack.c.bf16 %v2199_v6, %v2199_v6  ;;  %v2621_v7 = vpack.c.bf16 %v2178_v50, %v2178_v50  ;;  %v2622_v13 = vpack.c.bf16 %v3776_v36, %v3776_v36  ;;  %v2623_v55 = vpack.c.bf16 %v2184_v12, %v2184_v12 }
 0x370   : > { %v2629_v49 = vpack.c.bf16 %v2202_v21, %v2202_v21  ;;  %v2624_v19 = vpack.c.bf16 %v2187_v16, %v2187_v16  ;;  %v2630_v3 = vpack.c.bf16 %v2205_v10, %v2205_v10  ;;  %v2276_v17 = vunpack.c.l.b16 %v2617_v14 }
 0x371   : > { %v2277_v15 = vunpack.c.l.b16 %v2618_v40  ;;  %v2631_v45 = vpack.c.bf16 %v2208_v38, %v2208_v38  ;;  %v2632_v63 = vpack.c.bf16 %v2211_v28, %v2211_v28  ;;  %v2278_v18 = vunpack.c.l.b16 %v2619_v20 }
 0x372   : > { %v2279_v53 = vunpack.c.l.b16 %v2620_v26  ;;  %v2284_v44 = vunpack.c.l.b16 %v2625_v39  ;;  %v2285_v33 = vunpack.c.l.b16 %v2626_v52  ;;  %v2286_v1 = vunpack.c.l.b16 %v2627_v60 }
 0x373   : > { %v2287_v41 = vunpack.c.l.b16 %v2628_v27  ;;  %v2280_v59 = vunpack.c.l.b16 %v2621_v7  ;;  %v2288_v56 = vunpack.c.l.b16 %v2629_v49  ;;  %vm2300_vm15 = vcmask 1045509  }
 0x374   : > { %vm2302_vm0 = vcmask 1046534   ;;  %v2281_v43 = vunpack.c.l.b16 %v2622_v13  ;;  %v2289_v23 = vunpack.c.l.b16 %v2630_v3  ;;  %v2293_v35 = vsel %vm2292_vm11, %v2277_v15, %v2276_v17 }
 0x375   : > { %v2306_v30 = vsel %vm2292_vm11, %v2285_v33, %v2284_v44  ;;  %v2282_v37 = vunpack.c.l.b16 %v2623_v55  ;;  %v2290_v24 = vunpack.c.l.b16 %v2631_v45  ;;  %v2295_v50 = vsel %vm2294_vm12, %v2278_v18, %v2293_v35 }
 0x376   : > { %v2307_v36 = vsel %vm2294_vm12, %v2286_v1, %v2306_v30  ;;  %v2283_v61 = vunpack.c.l.b16 %v2624_v19  ;;  %v2291_v47 = vunpack.c.l.b16 %v2632_v63  ;;  %v2297_v4 = vsel %vm2296_vm13, %v2279_v53, %v2295_v50 }
 0x377   : > { %v2308_v51 = vsel %vm2296_vm13, %v2287_v41, %v2307_v36  ;;  %v2299_v46 = vsel %vm2298_vm14, %v2280_v59, %v2297_v4  ;;  %vm2304_vm1 = vcmask 1047559   ;;  %vm2317_vm2 = vcmask 519168  }
 0x378   : > { %v2309_v0 = vsel %vm2298_vm14, %v2288_v56, %v2308_v51  ;;  %v2301_v2 = vsel %vm2300_vm15, %v2281_v43, %v2299_v46 }
 0x379   : > { %v2310_v8 = vsel %vm2300_vm15, %v2289_v23, %v2309_v0  ;;  %v2303_v57 = vsel %vm2302_vm0, %v2282_v37, %v2301_v2 }
 0x37a   : > { %v2311_v5 = vsel %vm2302_vm0, %v2290_v24, %v2310_v8  ;;  %v2305_v34 = vsel %vm2304_vm1, %v2283_v61, %v2303_v57 }
 0x37b   : > { %v2312_v22 = vsel %vm2304_vm1, %v2291_v47, %v2311_v5  ;;  %v2313_v31 = vpack.c.b16 %v2305_v34, %v2305_v34 }
 0x37c   : > { %v2314_v54 = vpack.c.b16 %v2312_v22, %v2312_v22 }
 0x37d   : > { %2318 = vst.msk [vmem:[%s3031_s10] sm:$0xf] %vm2317_vm2, %v2313_v31 }
 0x37e   : > { %2319 = vst.msk [vmem:[%s3031_s10 + $0x4] sm:$0xf] %vm2317_vm2, %v2314_v54 }
 0x37f PF: > { %s13_s18 = sadd.s32 1, %s2946_s18   ;;  %s3854_s12 = smov %s2934_s15 }
 0x380   : > { %p10_p1 = scmp.ge.s32.totalorder %s13_s18, 34   ;;  %s3855_s13 = smov %s2938_s16 }
 0x381   : > { %s3856_s14 = smov %s2942_s17  ;;  %s3857_s15 = smov %s3861_s19 }
 0x382   : > { %s3858_s16 = smov %s3865_s20  ;;  %s3859_s17 = smov %s3869_s21 }
 0x383   :  { %12 = sbr.rel (!%p10_p1) target bundleno = 4 (0x4), region = 82 }

// kernel: gnina2017_forward.4
= control target key start
LH: loop header
LB: loop body
LE: loop exit
PB: predicated region body
PF: predicated region fallthrough
CT: control target
= control target key end

     0   :  { %s7214_s12 = smov 0   ;;  %s7216_s13 = smov 0   ;;  %s12095_s0 = inlined_call_operand.vmem [shape: bf16[2,18,18,18,4], index: 0, kind: input, shape index: {}]   ;;  %s12096_s1 = inlined_call_operand.vmem [shape: bf16[3,36,32], index: 1, kind: input, shape index: {}]   ;;  %s12097_s2 = inlined_call_operand.vmem [shape: f32[1,32], index: 2, kind: input, shape index: {}]   ;;  %s12098_s3 = inlined_call_operand.vmem [shape: bf16[2,8,64,32], index: 3, kind: output, shape index: {}]  }
   0x1   :  { %s7218_s14 = smov 0   ;;  %s7220_s15 = smov 0  }
   0x2   :  { %s7222_s16 = smov 0   ;;  %s7224_s17 = smov 0  }
   0x3   :  { %s7226_s18 = smov 0  }
   0x4 LB: > { %s25_s19 = sadd.s32 1, %s7170_s15  ;;  %s28_s20 = sadd.s32 1, %s7174_s16  ;;  %s7182_s18 = sphi %s7226_s18, %s13_s18   ;;  %s7178_s17 = sphi %s7224_s17, %s12888_s17   ;;  %s7174_s16 = sphi %s7222_s16, %s12887_s16   ;;  %s7170_s15 = sphi %s7220_s15, %s12886_s15   ;;  %s7166_s14 = sphi %s7218_s14, %s12885_s14   ;;  %s7162_s13 = sphi %s7216_s13, %s12884_s13   ;;  %s7158_s12 = sphi %s7214_s12, %s12883_s12  }
   0x5   : > { %p26_p0 = scmp.ge.s32.totalorder %s25_s19, 4  ;;  %p6340_p1 = scmp.ge.s32.totalorder %s7182_s18, 1 }
   0x6   : > { %p172_p2 = scmp.lt.s32.totalorder %s7182_s18, 65  ;;  %s32_s21 = sadd.s32 1, %s7178_s17 }
   0x7   : > { %s12890_s19 = smov (%p26_p0, %s25_s19), 0  ;;  %s12892_s20 = smov (!%p26_p0, %s28_s20), %s7174_s16 }
   0x8   : > { %p173_p3 = pnand %p6340_p1, %p172_p2  ;;  %p30_p4 = scmp.ge.s32.totalorder %s12892_s20, 8 }
   0xa   : > { %s12894_s20 = smov (%p30_p4, %s12892_s20), 0  ;;  %s12896_s21 = smov (!%p30_p4, %s32_s21), %s7178_s17 }
   0xb   : > { %p34_p5 = scmp.ge.s32.totalorder %s12896_s21, 2  ;;  %176 = sbr.rel (%p173_p3) target bundleno = 1462 (0x5b6), region = 32 }
   0xd   : > { %s12898_s21 = smov (%p34_p5, %s12896_s21), 0 }
  0x12   : > { %s6341_s22 = sshll.u32 %s7162_s13, 1  ;;  %p208_p6 = scmp.lt.s32.totalorder %s7166_s14, 1 }
  0x13   : > { %s207_s23 = sadd.s32 %s7158_s12, %s6341_s22  ;;  %p221_p7 = scmp.lt.s32.totalorder %s7162_s13, 7 }
  0x14   : > { %s12900_s14 = smov (!%p208_p6, %s7166_s14), 1  ;;  %p210_p8 = scmp.lt.s32.totalorder %s207_s23, 17 }
  0x15   : > { %s6975_s24 = smul.u32 972, %s12900_s14  ;;  %s6344_s25 = sshll.u32 %s12900_s14, 6 }
  0x16   : > { %s12902_s23 = smov (!%p210_p8, %s207_s23), 17  ;;  %s12904_s13 = smov (!%p221_p7, %s7162_s13), 7 }
  0x17   : > { %s6974_s26 = smul.u32 54, %s12902_s23  ;;  %s6343_s27 = sshll.u32 %s12904_s13, 3 }
  0x18   : > { %s225_s29 = sadd.s32 %s6344_s25, %s6343_s27  ;;  %p6346_p9 = scmp.ne.s32.totalorder %s7158_s12, 0 }
  0x19   : > { %s214_s28 = sadd.s32 %s6975_s24, %s6974_s26  ;;  %s6345_s4 = sshll.u32 %s225_s29, 2  ;;  %vm233_vm0 = vcmask (!%p6346_p9), 261120   ;;  %v7184_v0 = vmov (!%p6346_p9), 0.0  }
  0x1a   : > { %s6342_s30 = sshll.u32 %s214_s28, 2  ;;  %s7272_s10 = scalar_lea.vmem %s12098_s3, %s6345_s4  ;;  %234 = vst.msk [vmem:[#allocation2] sm:$0xff] (!%p6346_p9), %vm233_vm0, %v7184_v0  ;;  %235 = vst.msk [vmem:[#allocation2 + $0x8] sm:$0xff] (!%p6346_p9), %vm233_vm0, %v7184_v0 }
  0x1b   : > { %s7267_s7 = scalar_lea.vmem %s12095_s0, %s6342_s30  ;;  %232 = sbr.rel (%p6346_p9) target bundleno = 58 (0x3a), region = 36  ;;  %236 = vst.msk [vmem:[#allocation2 + $0x10] sm:$0xff] (!%p6346_p9), %vm233_vm0, %v7184_v0  ;;  %237 = vst.msk [vmem:[#allocation2 + $0x18] sm:$0xff] (!%p6346_p9), %vm233_vm0, %v7184_v0 }
  0x1c   : > { %238 = vst.msk [vmem:[#allocation2 + $0x20] sm:$0xff] (!%p6346_p9), %vm233_vm0, %v7184_v0  ;;  %239 = vst.msk [vmem:[#allocation2 + $0x28] sm:$0xff] (!%p6346_p9), %vm233_vm0, %v7184_v0 }
  0x1d   : > { %240 = vst.msk [vmem:[#allocation2 + $0x30] sm:$0xff] (!%p6346_p9), %vm233_vm0, %v7184_v0  ;;  %241 = vst.msk [vmem:[#allocation2 + $0x38] sm:$0xff] (!%p6346_p9), %vm233_vm0, %v7184_v0 }
  0x1e   : > { %242 = vst.msk [vmem:[#allocation2 + $0x40] sm:$0xff] (!%p6346_p9), %vm233_vm0, %v7184_v0  ;;  %243 = vst.msk [vmem:[#allocation2 + $0x48] sm:$0xff] (!%p6346_p9), %vm233_vm0, %v7184_v0 }
  0x1f   : > { %244 = vst.msk [vmem:[#allocation2 + $0x50] sm:$0xff] (!%p6346_p9), %vm233_vm0, %v7184_v0  ;;  %245 = vst.msk [vmem:[#allocation2 + $0x58] sm:$0xff] (!%p6346_p9), %vm233_vm0, %v7184_v0 }
  0x20   : > { %246 = vst.msk [vmem:[#allocation2 + $0x60] sm:$0xff] (!%p6346_p9), %vm233_vm0, %v7184_v0  ;;  %247 = vst.msk [vmem:[#allocation2 + $0x68] sm:$0xff] (!%p6346_p9), %vm233_vm0, %v7184_v0 }
  0x21   : > { %248 = vst.msk [vmem:[#allocation2 + $0x70] sm:$0xff] (!%p6346_p9), %vm233_vm0, %v7184_v0  ;;  %249 = vst.msk [vmem:[#allocation2 + $0x78] sm:$0xff] (!%p6346_p9), %vm233_vm0, %v7184_v0 }
  0x22   : > { %250 = vst.msk [vmem:[#allocation2 + $0x80] sm:$0xff] %vm233_vm0, %v7184_v0  ;;  %251 = vst.msk [vmem:[#allocation2 + $0x88] sm:$0xff] %vm233_vm0, %v7184_v0 }
  0x23   : > { %252 = vst.msk [vmem:[#allocation2 + $0x90] sm:$0xff] %vm233_vm0, %v7184_v0  ;;  %253 = vst.msk [vmem:[#allocation2 + $0x98] sm:$0xff] %vm233_vm0, %v7184_v0 }
  0x24   : > { %254 = vst.msk [vmem:[#allocation2 + $0xa0] sm:$0xff] %vm233_vm0, %v7184_v0  ;;  %255 = vst.msk [vmem:[#allocation2 + $0xa8] sm:$0xff] %vm233_vm0, %v7184_v0 }
  0x25   : > { %256 = vst.msk [vmem:[#allocation2 + $0xb0] sm:$0xff] %vm233_vm0, %v7184_v0  ;;  %257 = vst.msk [vmem:[#allocation2 + $0xb8] sm:$0xff] %vm233_vm0, %v7184_v0 }
  0x26   : > { %258 = vst.msk [vmem:[#allocation2 + $0xc0] sm:$0xff] %vm233_vm0, %v7184_v0  ;;  %259 = vst.msk [vmem:[#allocation2 + $0xc8] sm:$0xff] %vm233_vm0, %v7184_v0 }
  0x27   : > { %260 = vst.msk [vmem:[#allocation2 + $0xd0] sm:$0xff] %vm233_vm0, %v7184_v0  ;;  %261 = vst.msk [vmem:[#allocation2 + $0xd8] sm:$0xff] %vm233_vm0, %v7184_v0 }
  0x28   : > { %262 = vst.msk [vmem:[#allocation2 + $0xe0] sm:$0xff] %vm233_vm0, %v7184_v0  ;;  %263 = vst.msk [vmem:[#allocation2 + $0xe8] sm:$0xff] %vm233_vm0, %v7184_v0 }
  0x29   : > { %264 = vst.msk [vmem:[#allocation2 + $0xf0] sm:$0xff] %vm233_vm0, %v7184_v0  ;;  %265 = vst.msk [vmem:[#allocation2 + $0xf8] sm:$0xff] %vm233_vm0, %v7184_v0 }
  0x2a   : > { %266 = vst.msk [vmem:[#allocation3] sm:$0xff] %vm233_vm0, %v7184_v0  ;;  %267 = vst.msk [vmem:[#allocation3 + $0x8] sm:$0xff] %vm233_vm0, %v7184_v0 }
  0x2b   : > { %268 = vst.msk [vmem:[#allocation3 + $0x10] sm:$0xff] %vm233_vm0, %v7184_v0  ;;  %269 = vst.msk [vmem:[#allocation3 + $0x18] sm:$0xff] %vm233_vm0, %v7184_v0 }
  0x2c   : > { %270 = vst.msk [vmem:[#allocation3 + $0x20] sm:$0xff] %vm233_vm0, %v7184_v0  ;;  %271 = vst.msk [vmem:[#allocation3 + $0x28] sm:$0xff] %vm233_vm0, %v7184_v0 }
  0x2d   : > { %272 = vst.msk [vmem:[#allocation3 + $0x30] sm:$0xff] %vm233_vm0, %v7184_v0  ;;  %273 = vst.msk [vmem:[#allocation3 + $0x38] sm:$0xff] %vm233_vm0, %v7184_v0 }
  0x2e   : > { %274 = vst.msk [vmem:[#allocation3 + $0x40] sm:$0xff] %vm233_vm0, %v7184_v0  ;;  %275 = vst.msk [vmem:[#allocation3 + $0x48] sm:$0xff] %vm233_vm0, %v7184_v0 }
  0x2f   : > { %276 = vst.msk [vmem:[#allocation3 + $0x50] sm:$0xff] %vm233_vm0, %v7184_v0  ;;  %277 = vst.msk [vmem:[#allocation3 + $0x58] sm:$0xff] %vm233_vm0, %v7184_v0 }
  0x30   : > { %278 = vst.msk [vmem:[#allocation3 + $0x60] sm:$0xff] %vm233_vm0, %v7184_v0  ;;  %279 = vst.msk [vmem:[#allocation3 + $0x68] sm:$0xff] %vm233_vm0, %v7184_v0 }
  0x31   : > { %280 = vst.msk [vmem:[#allocation3 + $0x70] sm:$0xff] %vm233_vm0, %v7184_v0  ;;  %281 = vst.msk [vmem:[#allocation3 + $0x78] sm:$0xff] %vm233_vm0, %v7184_v0 }
  0x32   : > { %282 = vst.msk [vmem:[#allocation3 + $0x80] sm:$0xff] %vm233_vm0, %v7184_v0  ;;  %283 = vst.msk [vmem:[#allocation3 + $0x88] sm:$0xff] %vm233_vm0, %v7184_v0 }
  0x33   : > { %284 = vst.msk [vmem:[#allocation3 + $0x90] sm:$0xff] %vm233_vm0, %v7184_v0  ;;  %285 = vst.msk [vmem:[#allocation3 + $0x98] sm:$0xff] %vm233_vm0, %v7184_v0 }
  0x34   : > { %286 = vst.msk [vmem:[#allocation3 + $0xa0] sm:$0xff] %vm233_vm0, %v7184_v0  ;;  %287 = vst.msk [vmem:[#allocation3 + $0xa8] sm:$0xff] %vm233_vm0, %v7184_v0 }
  0x35   : > { %288 = vst.msk [vmem:[#allocation3 + $0xb0] sm:$0xff] %vm233_vm0, %v7184_v0  ;;  %289 = vst.msk [vmem:[#allocation3 + $0xb8] sm:$0xff] %vm233_vm0, %v7184_v0 }
  0x36   : > { %290 = vst.msk [vmem:[#allocation3 + $0xc0] sm:$0xff] %vm233_vm0, %v7184_v0  ;;  %291 = vst.msk [vmem:[#allocation3 + $0xc8] sm:$0xff] %vm233_vm0, %v7184_v0 }
  0x37   : > { %292 = vst.msk [vmem:[#allocation3 + $0xd0] sm:$0xff] %vm233_vm0, %v7184_v0  ;;  %293 = vst.msk [vmem:[#allocation3 + $0xd8] sm:$0xff] %vm233_vm0, %v7184_v0 }
  0x38   : > { %294 = vst.msk [vmem:[#allocation3 + $0xe0] sm:$0xff] %vm233_vm0, %v7184_v0  ;;  %295 = vst.msk [vmem:[#allocation3 + $0xe8] sm:$0xff] %vm233_vm0, %v7184_v0 }
  0x39   : > { %296 = vst.msk [vmem:[#allocation3 + $0xf0] sm:$0xff] %vm233_vm0, %v7184_v0  ;;  %297 = vst.msk [vmem:[#allocation3 + $0xf8] sm:$0xff] %vm233_vm0, %v7184_v0 }
  0x3a PF: > { %v302_v1 = vld [vmem:[%s7267_s7 + $0x18] sm:$0xf]  ;;  %v7405_v2 = vld [vmem:[%s7267_s7 + $0x1c] sm:$0xf]  ;;  %v7408_v3 = vld [vmem:[%s7267_s7 + $0x20] sm:$0x1] }
  0x3b   : > { %vm346_vm1 = vsmask.f32 3328  ;;  %vm347_vm2 = vsmask.f32 7440  ;;  %v398_v4 = vshrl.u32 %v302_v1, 16  ;;  %v401_v5 = vshll.u32 %v302_v1, 16 }
  0x3c   : > { %v407_v6 = vshll.u32 %v7405_v2, 16  ;;  %v411_v7 = vshrl.u32 %v7405_v2, 16  ;;  %v417_v8 = vshll.u32 %v7408_v3, 16  ;;  %v298_v9 = vld [vmem:[%s7267_s7] sm:$0xf]  ;;  %vm7425_vm3 = vmor %vm346_vm1, %vm347_vm2  ;;  %s7185_s11 = smov 4  }
  0x3d   : > { %v400_v10 = vrot.slane %v398_v4, 4  ;;  %v403_v11 = vrot.slane %v401_v5, 5  ;;  %v7415_v12 = vld [vmem:[%s7267_s7 + $0x4] sm:$0xf]  ;;  %v7418_v13 = vld [vmem:[%s7267_s7 + $0x8] sm:$0x1] }
  0x3e   : > { %v409_v14 = vrot.slane %v407_v6, 5  ;;  %v413_v15 = vrot.slane %v411_v7, 4  ;;  %v419_v16 = vrot.slane %v417_v8, 5  ;;  %v350_v17 = vshrl.u32 %v298_v9, 16  ;;  %v304_v18 = vld [vmem:[%s7267_s7 + $0x24] sm:$0xf] }
  0x3f   : > { %v404_v19 = vor.u32 %v403_v11, %v400_v10  ;;  %v353_v20 = vshll.u32 %v298_v9, 16  ;;  %v359_v21 = vshll.u32 %v7415_v12, 16  ;;  %v363_v22 = vshrl.u32 %v7415_v12, 16  ;;  %v7431_v27 = vld [vmem:[%s7267_s7 + $0x28] sm:$0xf]  ;;  %s7186_s13 = smov 8  }
  0x40   : > { %v414_v24 = vor.u32 %v413_v15, %v409_v14  ;;  %v352_v25 = vrot.slane %v350_v17, 4  ;;  %v369_v26 = vshll.u32 %v7418_v13, 16  ;;  %v422_v28 = vshrl.u32 %v304_v18, 16  ;;  %v7434_v33 = vld [vmem:[%s7267_s7 + $0x2c] sm:$0x1]  ;;  %s7187_s14 = smov 12  }
  0x41   : > { %v405_v29 = vrot.slane %v404_v19, 4  ;;  %v355_v30 = vrot.slane %v353_v20, 5  ;;  %v361_v31 = vrot.slane %v359_v21, 5  ;;  %v365_v32 = vrot.slane %v363_v22, 4  ;;  %v300_v42 = vld [vmem:[%s7267_s7 + $0xc] sm:$0xf] }
  0x42   : > { %v415_v34 = vrot.slane %v414_v24, 4  ;;  %v371_v35 = vrot.slane %v369_v26, 5  ;;  %v424_v36 = vrot.slane %v422_v28, 4  ;;  %v425_v37 = vshll.u32 %v304_v18, 16  ;;  %v7445_v47 = vld [vmem:[%s7267_s7 + $0x10] sm:$0xf] }
  0x43   : > { %v410_v38 = vsel %vm7425_vm3, %v405_v29, %v409_v14  ;;  %v356_v39 = vor.u32 %v355_v30, %v352_v25  ;;  %v366_v40 = vor.u32 %v365_v32, %v361_v31  ;;  %v431_v41 = vshll.u32 %v7431_v27, 16  ;;  %v7448_v55 = vld [vmem:[%s7267_s7 + $0x14] sm:$0x1]  ;;  %v308_v61 = vld [vmem:[%s7267_s7 + $0x3c] sm:$0xf]  ;;  %s7188_s22 = smov 16  }
  0x44   : > { %v420_v43 = vsel %vm7425_vm3, %v415_v34, %v419_v16  ;;  %v427_v44 = vrot.slane %v425_v37, 5  ;;  %v435_v45 = vshrl.u32 %v7431_v27, 16  ;;  %v441_v46 = vshll.u32 %v7434_v33, 16  ;;  %v7458_v4 = vld [vmem:[%s7267_s7 + $0x40] sm:$0xf]  ;;  %s7189_s23 = smov 20  }
  0x45   : > { %v6541_v48 = vcombine.low %v410_v38, %v420_v43  ;;  %v357_v49 = vrot.slane %v356_v39, 4  ;;  %v367_v50 = vrot.slane %v366_v40, 4  ;;  %v433_v51 = vrot.slane %v431_v41, 5  ;;  %v7466_v11 = vld [vmem:[%s7267_s7 + $0x44] sm:$0x1]  ;;  %s7190_s24 = smov 24  }
  0x46   : > { %v428_v52 = vor.u32 %v427_v44, %v424_v36  ;;  %v437_v53 = vrot.slane %v435_v45, 4  ;;  %v443_v54 = vrot.slane %v441_v46, 5  ;;  %v374_v56 = vshrl.u32 %v300_v42, 16  ;;  %v306_v20 = vld [vmem:[%s7267_s7 + $0x30] sm:$0xf]  ;;  %s7191_s25 = smov 28  }
  0x47   : > { %2246 = vrot.lane.b32.xlu1 %v6541_v48, %s7185_s11  ;;  %v362_v57 = vsel %vm7425_vm3, %v357_v49, %v361_v31  ;;  %v372_v58 = vsel %vm7425_vm3, %v367_v50, %v371_v35  ;;  %v377_v59 = vshll.u32 %v300_v42, 16  ;;  %v383_v60 = vshll.u32 %v7445_v47, 16  ;;  %v7474_v26 = vld [vmem:[%s7267_s7 + $0x34] sm:$0xf]  ;;  %v7481_v39 = vld [vmem:[%s7267_s7 + $0x38] sm:$0x1] }
  0x48   : > { %v6539_v62 = vcombine.low %v362_v57, %v372_v58  ;;  %v429_v63 = vrot.slane %v428_v52, 4  ;;  %v438_v0 = vor.u32 %v437_v53, %v433_v51  ;;  %v376_v1 = vrot.slane %v374_v56, 4  ;;  %v312_v46 = vld [vmem:[%s7267_s7 + $0x54] sm:$0xf]  ;;  %v7489_v52 = vld [vmem:[%s7267_s7 + $0x58] sm:$0xf] }
  0x49   : > { %v379_v5 = vrot.slane %v377_v59, 5  ;;  %v385_v6 = vrot.slane %v383_v60, 5  ;;  %v387_v7 = vshrl.u32 %v7445_v47, 16  ;;  %v393_v8 = vshll.u32 %v7448_v55, 16  ;;  %v7495_v60 = vld [vmem:[%s7267_s7 + $0x5c] sm:$0x1] }
  0x4a   : > { %2242 = vrot.lane.b32.xlu0 %v6539_v62, %s7185_s11  ;;  %v434_v9 = vsel %vm7425_vm3, %v429_v63, %v433_v51  ;;  %v439_v10 = vrot.slane %v438_v0, 4  ;;  %v470_v14 = vshrl.u32 %v308_v61, 16  ;;  %v473_v15 = vshll.u32 %v308_v61, 16  ;;  %s7192_s26 = smov 32   ;;  %p6667_p10 = scmp.ge.s32.totalorder %s7158_s12, 3 }
  0x4b   : > { %v380_v16 = vor.u32 %v379_v5, %v376_v1  ;;  %v389_v17 = vrot.slane %v387_v7, 4  ;;  %v395_v18 = vrot.slane %v393_v8, 5  ;;  %v479_v19 = vshll.u32 %v7458_v4, 16  ;;  %p3182_p11 = scmp.lt.s32.totalorder (!%p6667_p10), %s7158_s12, 2 }
  0x4c   : > { %v444_v21 = vsel %vm7425_vm3, %v439_v10, %v443_v54  ;;  %v472_v22 = vrot.slane %v470_v14, 4  ;;  %v475_v24 = vrot.slane %v473_v15, 5  ;;  %v483_v25 = vshrl.u32 %v7458_v4, 16  ;;  %v7504_v14 = vld [vmem:[%s7267_s7 + $0x4c] sm:$0xf] }
  0x4d   : > { %v6542_v28 = vcombine.low %v434_v9, %v444_v21  ;;  %v381_v29 = vrot.slane %v380_v16, 4  ;;  %v390_v30 = vor.u32 %v389_v17, %v385_v6  ;;  %v481_v31 = vrot.slane %v479_v19, 5 }
  0x4e   : > { %v476_v32 = vor.u32 %v475_v24, %v472_v22  ;;  %v485_v34 = vrot.slane %v483_v25, 4  ;;  %v489_v35 = vshll.u32 %v7466_v11, 16  ;;  %v446_v36 = vshrl.u32 %v306_v20, 16 }
  0x4f   : > { %2248 = vrot.lane.b32.xlu1 %v6542_v28, %s7185_s11  ;;  %v386_v37 = vsel %vm7425_vm3, %v381_v29, %v385_v6  ;;  %v391_v38 = vrot.slane %v390_v30, 4  ;;  %v449_v40 = vshll.u32 %v306_v20, 16  ;;  %v455_v41 = vshll.u32 %v7474_v26, 16  ;;  %v310_v6 = vld [vmem:[%s7267_s7 + $0x48] sm:$0xf] }
  0x50   : > { %v477_v42 = vrot.slane %v476_v32, 4  ;;  %v486_v43 = vor.u32 %v485_v34, %v481_v31  ;;  %v491_v44 = vrot.slane %v489_v35, 5  ;;  %v448_v45 = vrot.slane %v446_v36, 4  ;;  %v7511_v29 = vld [vmem:[%s7267_s7 + $0x50] sm:$0x1] }
  0x51   : > { %v396_v48 = vsel %vm7425_vm3, %v391_v38, %v395_v18  ;;  %v451_v49 = vrot.slane %v449_v40, 5  ;;  %v457_v50 = vrot.slane %v455_v41, 5  ;;  %v459_v51 = vshrl.u32 %v7474_v26, 16 }
  0x52   : > { %v6540_v53 = vcombine.low %v386_v37, %v396_v48  ;;  %v482_v54 = vsel %vm7425_vm3, %v477_v42, %v481_v31  ;;  %v487_v56 = vrot.slane %v486_v43, 4  ;;  %v465_v57 = vshll.u32 %v7481_v39, 16  ;;  %v316_v31 = vld [vmem:[%s7267_s7 + $0x6c] sm:$0xf]  ;;  %v7519_v37 = vld [vmem:[%s7267_s7 + $0x70] sm:$0xf] }
  0x53   : > { %v452_v58 = vor.u32 %v451_v49, %v448_v45  ;;  %v461_v59 = vrot.slane %v459_v51, 4  ;;  %v518_v61 = vshrl.u32 %v312_v46, 16  ;;  %v521_v62 = vshll.u32 %v312_v46, 16 }
  0x54   : > { %2244 = vrot.lane.b32.xlu0 %v6540_v53, %s7185_s11  ;;  %v492_v63 = vsel %vm7425_vm3, %v487_v56, %v491_v44  ;;  %v467_v0 = vrot.slane %v465_v57, 5  ;;  %v527_v1 = vshll.u32 %v7489_v52, 16  ;;  %v531_v5 = vshrl.u32 %v7489_v52, 16 }
  0x55   : > { %v6544_v7 = vcombine.low %v482_v54, %v492_v63  ;;  %v453_v8 = vrot.slane %v452_v58, 4  ;;  %v462_v9 = vor.u32 %v461_v59, %v457_v50  ;;  %v520_v10 = vrot.slane %v518_v61, 4  ;;  %v314_v54 = vld [vmem:[%s7267_s7 + $0x60] sm:$0xf]  ;;  %v7533_v61 = vld [vmem:[%s7267_s7 + $0x64] sm:$0xf] }
  0x56   : > { %v523_v15 = vrot.slane %v521_v62, 5  ;;  %v529_v16 = vrot.slane %v527_v1, 5  ;;  %v533_v17 = vrot.slane %v531_v5, 4  ;;  %v537_v18 = vshll.u32 %v7495_v60, 16 }
  0x57   : > { %2252 = vrot.lane.b32.xlu1 %v6544_v7, %s7185_s11  ;;  %v458_v19 = vsel %vm7425_vm3, %v453_v8, %v457_v50  ;;  %v463_v20 = vrot.slane %v462_v9, 4  ;;  %v494_v21 = vshrl.u32 %v310_v6, 16  ;;  %v497_v22 = vshll.u32 %v310_v6, 16  ;;  %v7528_v50 = vld [vmem:[%s7267_s7 + $0x74] sm:$0x1] }
  0x58   : > { %v524_v24 = vor.u32 %v523_v15, %v520_v10  ;;  %v534_v25 = vor.u32 %v533_v17, %v529_v16  ;;  %v539_v28 = vrot.slane %v537_v18, 5  ;;  %v503_v30 = vshll.u32 %v7504_v14, 16  ;;  %v7541_v8 = vld [vmem:[%s7267_s7 + $0x68] sm:$0x1]  ;;  %v320_v18 = vld [vmem:[%s7267_s7 + $0x84] sm:$0xf] }
  0x59   : > { %v468_v32 = vsel %vm7425_vm3, %v463_v20, %v467_v0  ;;  %v496_v34 = vrot.slane %v494_v21, 4  ;;  %v499_v35 = vrot.slane %v497_v22, 5  ;;  %v507_v36 = vshrl.u32 %v7504_v14, 16 }
  0x5a   : > { %v6543_v38 = vcombine.low %v458_v19, %v468_v32  ;;  %v525_v40 = vrot.slane %v524_v24, 4  ;;  %v535_v41 = vrot.slane %v534_v25, 4  ;;  %v505_v42 = vrot.slane %v503_v30, 5 }
  0x5b   : > { %v500_v43 = vor.u32 %v499_v35, %v496_v34  ;;  %v509_v44 = vrot.slane %v507_v36, 4  ;;  %v513_v45 = vshll.u32 %v7511_v29, 16  ;;  %v566_v46 = vshrl.u32 %v316_v31, 16 }
  0x5c   : > { %2250 = vrot.lane.b32.xlu0 %v6543_v38, %s7185_s11  ;;  %v530_v48 = vsel %vm7425_vm3, %v525_v40, %v529_v16  ;;  %v540_v49 = vsel %vm7425_vm3, %v535_v41, %v539_v28  ;;  %v569_v51 = vshll.u32 %v316_v31, 16  ;;  %v575_v53 = vshll.u32 %v7519_v37, 16  ;;  %v7549_v31 = vld [vmem:[%s7267_s7 + $0x88] sm:$0xf] }
  0x5d   : > { %v6546_v56 = vcombine.low %v530_v48, %v540_v49  ;;  %v501_v57 = vrot.slane %v500_v43, 4  ;;  %v510_v58 = vor.u32 %v509_v44, %v505_v42  ;;  %v515_v59 = vrot.slane %v513_v45, 5  ;;  %v318_v49 = vld [vmem:[%s7267_s7 + $0x78] sm:$0xf] }
  0x5e   : > { %v568_v62 = vrot.slane %v566_v46, 4  ;;  %v571_v63 = vrot.slane %v569_v51, 5  ;;  %v577_v0 = vrot.slane %v575_v53, 5  ;;  %v579_v1 = vshrl.u32 %v7519_v37, 16 }
  0x5f   : > { %2256 = vrot.lane.b32.xlu1 %v6546_v56, %s7185_s11  ;;  %v506_v5 = vsel %vm7425_vm3, %v501_v57, %v505_v42  ;;  %v511_v6 = vrot.slane %v510_v58, 4  ;;  %v585_v7 = vshll.u32 %v7528_v50, 16  ;;  %v542_v9 = vshrl.u32 %v314_v54, 16  ;;  %v7556_v42 = vld [vmem:[%s7267_s7 + $0x8c] sm:$0x1] }
  0x60   : > { %v572_v10 = vor.u32 %v571_v63, %v568_v62  ;;  %v581_v15 = vrot.slane %v579_v1, 4  ;;  %v545_v16 = vshll.u32 %v314_v54, 16  ;;  %v551_v17 = vshll.u32 %v7533_v61, 16  ;;  %v7564_v57 = vld [vmem:[%s7267_s7 + $0x7c] sm:$0xf] }
  0x61   : > { %v516_v19 = vsel %vm7425_vm3, %v511_v6, %v515_v59  ;;  %v587_v20 = vrot.slane %v585_v7, 5  ;;  %v544_v21 = vrot.slane %v542_v9, 4  ;;  %v555_v22 = vshrl.u32 %v7533_v61, 16  ;;  %v7570_v6 = vld [vmem:[%s7267_s7 + $0x80] sm:$0x1] }
  0x62   : > { %v6545_v24 = vcombine.low %v506_v5, %v516_v19  ;;  %v573_v25 = vrot.slane %v572_v10, 4  ;;  %v582_v28 = vor.u32 %v581_v15, %v577_v0  ;;  %v547_v30 = vrot.slane %v545_v16, 5 }
  0x63   : > { %v553_v32 = vrot.slane %v551_v17, 5  ;;  %v557_v34 = vrot.slane %v555_v22, 4  ;;  %v561_v35 = vshll.u32 %v7541_v8, 16  ;;  %v614_v36 = vshrl.u32 %v320_v18, 16  ;;  %v324_v17 = vld [vmem:[%s7267_s7 + $0x9c] sm:$0xf] }
  0x64   : > { %2254 = vrot.lane.b32.xlu0 %v6545_v24, %s7185_s11  ;;  %v578_v38 = vsel %vm7425_vm3, %v573_v25, %v577_v0  ;;  %v583_v40 = vrot.slane %v582_v28, 4  ;;  %v548_v41 = vor.u32 %v547_v30, %v544_v21  ;;  %v617_v43 = vshll.u32 %v320_v18, 16  ;;  %v7578_v22 = vld [vmem:[%s7267_s7 + $0xa0] sm:$0xf] }
  0x65   : > { %v558_v44 = vor.u32 %v557_v34, %v553_v32  ;;  %v563_v45 = vrot.slane %v561_v35, 5  ;;  %v616_v46 = vrot.slane %v614_v36, 4  ;;  %v623_v48 = vshll.u32 %v7549_v31, 16  ;;  %v7586_v35 = vld [vmem:[%s7267_s7 + $0xa4] sm:$0x1] }
  0x66   : > { %v588_v51 = vsel %vm7425_vm3, %v583_v40, %v587_v20  ;;  %v549_v53 = vrot.slane %v548_v41, 4  ;;  %v619_v54 = vrot.slane %v617_v43, 5  ;;  %v627_v56 = vshrl.u32 %v7549_v31, 16 }
  0x67   : > { %v6548_v58 = vcombine.low %v578_v38, %v588_v51  ;;  %v559_v59 = vrot.slane %v558_v44, 4  ;;  %v625_v62 = vrot.slane %v623_v48, 5  ;;  %v633_v63 = vshll.u32 %v7556_v42, 16 }
  0x68   : > { %v554_v0 = vsel %vm7425_vm3, %v549_v53, %v553_v32  ;;  %v620_v1 = vor.u32 %v619_v54, %v616_v46  ;;  %v629_v5 = vrot.slane %v627_v56, 4  ;;  %v590_v7 = vshrl.u32 %v318_v49, 16  ;;  %v7594_v53 = vld [vmem:[%s7267_s7 + $0x94] sm:$0xf] }
  0x69   : > { %2260 = vrot.lane.b32.xlu1 %v6548_v58, %s7185_s11  ;;  %v564_v9 = vsel %vm7425_vm3, %v559_v59, %v563_v45  ;;  %v635_v10 = vrot.slane %v633_v63, 5  ;;  %v593_v15 = vshll.u32 %v318_v49, 16  ;;  %v599_v16 = vshll.u32 %v7564_v57, 16  ;;  %v322_v45 = vld [vmem:[%s7267_s7 + $0x90] sm:$0xf] }
  0x6a   : > { %v6547_v18 = vcombine.low %v554_v0, %v564_v9  ;;  %v621_v19 = vrot.slane %v620_v1, 4  ;;  %v630_v20 = vor.u32 %v629_v5, %v625_v62  ;;  %v592_v21 = vrot.slane %v590_v7, 4  ;;  %v7601_v9 = vld [vmem:[%s7267_s7 + $0x98] sm:$0x1] }
  0x6b   : > { %v595_v24 = vrot.slane %v593_v15, 5  ;;  %v601_v25 = vrot.slane %v599_v16, 5  ;;  %v603_v28 = vshrl.u32 %v7564_v57, 16  ;;  %v609_v30 = vshll.u32 %v7570_v6, 16 }
  0x6c   : > { %2258 = vrot.lane.b32.xlu0 %v6547_v18, %s7185_s11  ;;  %v626_v32 = vsel %vm7425_vm3, %v621_v19, %v625_v62  ;;  %v631_v34 = vrot.slane %v630_v20, 4  ;;  %v662_v36 = vshrl.u32 %v324_v17, 16  ;;  %v665_v38 = vshll.u32 %v324_v17, 16  ;;  %v328_v20 = vld [vmem:[%s7267_s7 + $0xb4] sm:$0xf] }
  0x6d   : > { %v596_v40 = vor.u32 %v595_v24, %v592_v21  ;;  %v605_v41 = vrot.slane %v603_v28, 4  ;;  %v611_v43 = vrot.slane %v609_v30, 5  ;;  %v671_v44 = vshll.u32 %v7578_v22, 16 }
  0x6e   : > { %v636_v46 = vsel %vm7425_vm3, %v631_v34, %v635_v10  ;;  %v664_v48 = vrot.slane %v662_v36, 4  ;;  %v667_v49 = vrot.slane %v665_v38, 5  ;;  %v675_v51 = vshrl.u32 %v7578_v22, 16 }
  0x6f   : > { %v6550_v54 = vcombine.low %v626_v32, %v636_v46  ;;  %v597_v56 = vrot.slane %v596_v40, 4  ;;  %v606_v58 = vor.u32 %v605_v41, %v601_v25  ;;  %v673_v59 = vrot.slane %v671_v44, 5  ;;  %v7615_v44 = vld [vmem:[%s7267_s7 + $0xbc] sm:$0x1] }
  0x70   : > { %v668_v62 = vor.u32 %v667_v49, %v664_v48  ;;  %v677_v63 = vrot.slane %v675_v51, 4  ;;  %v681_v0 = vshll.u32 %v7586_v35, 16  ;;  %v638_v1 = vshrl.u32 %v322_v45, 16 }
  0x71   : > { %2264 = vrot.lane.b32.xlu1 %v6550_v54, %s7185_s11  ;;  %v602_v5 = vsel %vm7425_vm3, %v597_v56, %v601_v25  ;;  %v607_v7 = vrot.slane %v606_v58, 4  ;;  %v641_v10 = vshll.u32 %v322_v45, 16  ;;  %v647_v15 = vshll.u32 %v7594_v53, 16  ;;  %v7609_v25 = vld [vmem:[%s7267_s7 + $0xb8] sm:$0xf] }
  0x72   : > { %v669_v16 = vrot.slane %v668_v62, 4  ;;  %v678_v17 = vor.u32 %v677_v63, %v673_v59  ;;  %v683_v18 = vrot.slane %v681_v0, 5  ;;  %v640_v19 = vrot.slane %v638_v1, 4  ;;  %v326_v54 = vld [vmem:[%s7267_s7 + $0xa8] sm:$0xf] }
  0x73   : > { %v612_v21 = vsel %vm7425_vm3, %v607_v7, %v611_v43  ;;  %v643_v24 = vrot.slane %v641_v10, 5  ;;  %v649_v28 = vrot.slane %v647_v15, 5  ;;  %v651_v30 = vshrl.u32 %v7594_v53, 16  ;;  %v7624_v63 = vld [vmem:[%s7267_s7 + $0xac] sm:$0xf] }
  0x74   : > { %v6549_v32 = vcombine.low %v602_v5, %v612_v21  ;;  %v674_v34 = vsel %vm7425_vm3, %v669_v16, %v673_v59  ;;  %v679_v36 = vrot.slane %v678_v17, 4  ;;  %v657_v38 = vshll.u32 %v7601_v9, 16  ;;  %v7631_v21 = vld [vmem:[%s7267_s7 + $0xb0] sm:$0x1] }
  0x75   : > { %v644_v40 = vor.u32 %v643_v24, %v640_v19  ;;  %v653_v41 = vrot.slane %v651_v30, 4  ;;  %v710_v43 = vshrl.u32 %v328_v20, 16  ;;  %v713_v45 = vshll.u32 %v328_v20, 16 }
  0x76   : > { %2262 = vrot.lane.b32.xlu0 %v6549_v32, %s7185_s11  ;;  %v684_v46 = vsel %vm7425_vm3, %v679_v36, %v683_v18  ;;  %v659_v48 = vrot.slane %v657_v38, 5  ;;  %v719_v49 = vshll.u32 %v7609_v25, 16  ;;  %v723_v51 = vshrl.u32 %v7609_v25, 16 }
  0x77   : > { %v6552_v56 = vcombine.low %v674_v34, %v684_v46  ;;  %v645_v58 = vrot.slane %v644_v40, 4  ;;  %v654_v59 = vor.u32 %v653_v41, %v649_v28  ;;  %v712_v62 = vrot.slane %v710_v43, 4 }
  0x78   : > { %v715_v0 = vrot.slane %v713_v45, 5  ;;  %v721_v1 = vrot.slane %v719_v49, 5  ;;  %v725_v5 = vrot.slane %v723_v51, 4  ;;  %v729_v7 = vshll.u32 %v7615_v44, 16  ;;  %v733_v51 = vld [vmem:[%s7267_s7] sm:$0xe] }
  0x79   : > { %2268 = vrot.lane.b32.xlu1 %v6552_v56, %s7185_s11  ;;  %v650_v10 = vsel %vm7425_vm3, %v645_v58, %v649_v28  ;;  %v655_v15 = vrot.slane %v654_v59, 4  ;;  %v686_v16 = vshrl.u32 %v326_v54, 16  ;;  %v689_v17 = vshll.u32 %v326_v54, 16  ;;  %v734_v28 = vld [vmem:[%s7267_s7 + $0xc] sm:$0xe] }
  0x7a   : > { %v716_v18 = vor.u32 %v715_v0, %v712_v62  ;;  %v726_v19 = vor.u32 %v725_v5, %v721_v1  ;;  %v731_v20 = vrot.slane %v729_v7, 5  ;;  %v695_v24 = vshll.u32 %v7624_v63, 16  ;;  %v736_v58 = vld [vmem:[%s7267_s7 + $0x24] sm:$0xe] }
  0x7b   : > { %v660_v30 = vsel %vm7425_vm3, %v655_v15, %v659_v48  ;;  %v688_v32 = vrot.slane %v686_v16, 4  ;;  %v691_v34 = vrot.slane %v689_v17, 5  ;;  %v699_v36 = vshrl.u32 %v7624_v63, 16  ;;  %v735_v17 = vld [vmem:[%s7267_s7 + $0x18] sm:$0xe] }
  0x7c   : > { %v6551_v38 = vcombine.low %v650_v10, %v660_v30  ;;  %v717_v40 = vrot.slane %v716_v18, 4  ;;  %v727_v41 = vrot.slane %v726_v19, 4  ;;  %v697_v43 = vrot.slane %v695_v24, 5 }
  0x7d   : > { %v692_v45 = vor.u32 %v691_v34, %v688_v32  ;;  %v701_v46 = vrot.slane %v699_v36, 4  ;;  %v705_v49 = vshll.u32 %v7631_v21, 16  ;;  %vm797_vm4 = vcmask 1042432  }
  0x7e   : > { %2266 = vrot.lane.b32.xlu0 %v6551_v38, %s7185_s11  ;;  %v722_v48 = vsel %vm7425_vm3, %v717_v40, %v721_v1  ;;  %v732_v54 = vsel %vm7425_vm3, %v727_v41, %v731_v20  ;;  %vm798_vm5 = vcmask 1046532   ;;  %v6348_v56 = vrot.slane %v734_v28, 9  ;;  %v738_v38 = vld [vmem:[%s7267_s7 + $0x3c] sm:$0xe] }
  0x7f   : > { %v6554_v59 = vcombine.low %v722_v48, %v732_v54  ;;  %v693_v62 = vrot.slane %v692_v45, 4  ;;  %v702_v0 = vor.u32 %v701_v46, %v697_v43  ;;  %v707_v5 = vrot.slane %v705_v49, 5  ;;  %vm7646_vm6 = vmor %vm797_vm4, %vm798_vm5  ;;  %v737_v45 = vld [vmem:[%s7267_s7 + $0x30] sm:$0xe] }
  0x80   : > { %v12235_v7 = vmov 0  ;;  %v809_v10 = vrot.slane %v7445_v47, 5  ;;  %v812_v15 = vrot.slane %v7448_v55, 5  ;;  %v6347_v16 = vrot.slane %v733_v51, 9 }
  0x81   : > { %v12236_v7 = vsel %vm7646_vm6, 4294967295, %v12235_v7  ;;  %v802_v1 = vrot.slane %v7415_v12, 5  ;;  %2272 = vrot.lane.b32.xlu1 %v6554_v59, %s7185_s11  ;;  %v698_v18 = vsel %vm7425_vm3, %v693_v62, %v697_v43  ;;  %v703_v19 = vrot.slane %v702_v0, 4 }
  0x82   : > { %12237 = vst [vmem:[#allocation4_spill] sm:$0xff] %v12236_v7  ;;  %v805_v20 = vrot.slane %v7418_v13, 5  ;;  %v6350_v24 = vrot.slane %v736_v58, 9  ;;  %v810_v47 = vsel %vm7646_vm6, %v6348_v56, %v809_v10  ;;  %v811_v30 = vrot.slane %v809_v10, 4  ;;  %v740_v58 = vld [vmem:[%s7267_s7 + $0x54] sm:$0xe] }
  0x83   : > { %v803_v55 = vsel %vm7646_vm6, %v6347_v16, %v802_v1  ;;  %v804_v32 = vrot.slane %v802_v1, 4  ;;  %v708_v12 = vsel %vm7425_vm3, %v703_v19, %v707_v5  ;;  %v823_v34 = vrot.slane %v7431_v27, 5  ;;  %v739_v16 = vld [vmem:[%s7267_s7 + $0x48] sm:$0xe] }
  0x84   : > { %v826_v36 = vrot.slane %v7434_v33, 5  ;;  %v6349_v28 = vrot.slane %v735_v17, 9  ;;  %v6553_v13 = vcombine.low %v698_v18, %v708_v12  ;;  %v813_v40 = vsel %vm7646_vm6, %v811_v30, %v812_v15 }
  0x85   : > { %v806_v41 = vsel %vm7646_vm6, %v804_v32, %v805_v20  ;;  %v816_v43 = vrot.slane %v7405_v2, 5  ;;  %v6556_v46 = vcombine.low %v810_v47, %v813_v40  ;;  %v824_v27 = vsel %vm7646_vm6, %v6350_v24, %v823_v34  ;;  %v741_v32 = vld [vmem:[%s7267_s7 + $0x60] sm:$0xe]  ;;  %v744_v40 = vld [vmem:[%s7267_s7 + $0x84] sm:$0xe] }
  0x86   : > { %v6555_v49 = vcombine.low %v803_v55, %v806_v41  ;;  %v825_v51 = vrot.slane %v823_v34, 4  ;;  %2270 = vrot.lane.b32.xlu0 %v6553_v13, %s7185_s11  ;;  %v819_v54 = vrot.slane %v7408_v3, 5  ;;  %v6352_v56 = vrot.slane %v738_v38, 9 }
  0x87   : > { %v817_v33 = vsel %vm7646_vm6, %v6349_v28, %v816_v43  ;;  %v818_v48 = vrot.slane %v816_v43, 4  ;;  %2324 = vrot.lane.b32.xlu1 %v6556_v46, %s7186_s13  ;;  %v837_v59 = vrot.slane %v7458_v4, 5  ;;  %v840_v62 = vrot.slane %v7466_v11, 5 }
  0x88   : > { %v827_v2 = vsel %vm7646_vm6, %v825_v51, %v826_v36  ;;  %v6351_v0 = vrot.slane %v737_v45, 9  ;;  %v830_v3 = vrot.slane %v7474_v26, 5  ;;  %v833_v15 = vrot.slane %v7481_v39, 5  ;;  %v742_v39 = vld [vmem:[%s7267_s7 + $0x6c] sm:$0xe] }
  0x89   : > { %v6558_v5 = vcombine.low %v824_v27, %v827_v2  ;;  %v820_v10 = vsel %vm7646_vm6, %v818_v48, %v819_v54  ;;  %v838_v17 = vsel %vm7646_vm6, %v6352_v56, %v837_v59  ;;  %v839_v18 = vrot.slane %v837_v59, 4  ;;  %v743_v51 = vld [vmem:[%s7267_s7 + $0x78] sm:$0xe]  ;;  %v746_v2 = vld [vmem:[%s7267_s7 + $0x9c] sm:$0xe] }
  0x8a   : > { %v6557_v1 = vcombine.low %v817_v33, %v820_v10  ;;  %v6354_v4 = vrot.slane %v740_v58, 9  ;;  %2322 = vrot.lane.b32.xlu0 %v6555_v49, %s7186_s13  ;;  %v831_v11 = vsel %vm7646_vm6, %v6351_v0, %v830_v3  ;;  %v832_v19 = vrot.slane %v830_v3, 4  ;;  %v745_v10 = vld [vmem:[%s7267_s7 + $0x90] sm:$0xe] }
  0x8b   : > { %v851_v20 = vrot.slane %v7489_v52, 5  ;;  %v854_v26 = vrot.slane %v7495_v60, 5  ;;  %2328 = vrot.lane.b32.xlu1 %v6558_v5, %s7186_s13  ;;  %v841_v24 = vsel %vm7646_vm6, %v839_v18, %v840_v62  ;;  %v6353_v47 = vrot.slane %v739_v16, 9 }
  0x8c   : > { %v844_v30 = vrot.slane %v7504_v14, 5  ;;  %v847_v55 = vrot.slane %v7511_v29, 5  ;;  %v6560_v12 = vcombine.low %v838_v17, %v841_v24  ;;  %v834_v34 = vsel %vm7646_vm6, %v832_v19, %v833_v15 }
  0x8d   : > { %v852_v52 = vsel %vm7646_vm6, %v6354_v4, %v851_v20  ;;  %v853_v60 = vrot.slane %v851_v20, 4  ;;  %v6559_v36 = vcombine.low %v831_v11, %v834_v34  ;;  %v6356_v13 = vrot.slane %v742_v39, 9 }
  0x8e   : > { %v845_v28 = vsel %vm7646_vm6, %v6353_v47, %v844_v30  ;;  %v846_v38 = vrot.slane %v844_v30, 4  ;;  %2326 = vrot.lane.b32.xlu0 %v6557_v1, %s7186_s13  ;;  %v865_v29 = vrot.slane %v7519_v37, 5  ;;  %v868_v41 = vrot.slane %v7528_v50, 5  ;;  %v748_v1 = vld [vmem:[%s7267_s7 + $0xb4] sm:$0xe] }
  0x8f   : > { %v855_v14 = vsel %vm7646_vm6, %v853_v60, %v854_v26  ;;  %v6355_v43 = vrot.slane %v741_v32, 9  ;;  %2332 = vrot.lane.b32.xlu1 %v6560_v12, %s7186_s13  ;;  %v858_v49 = vrot.slane %v7533_v61, 5  ;;  %v861_v27 = vrot.slane %v7541_v8, 5  ;;  %v747_v26 = vld [vmem:[%s7267_s7 + $0xa8] sm:$0xe] }
  0x90   : > { %v6562_v45 = vcombine.low %v852_v52, %v855_v14  ;;  %v848_v46 = vsel %vm7646_vm6, %v846_v38, %v847_v55  ;;  %v866_v33 = vsel %vm7646_vm6, %v6356_v13, %v865_v29  ;;  %v867_v48 = vrot.slane %v865_v29, 4  ;;  %v7774_v38 = vld [vmem:[%s7267_s7 + $0x1c] sm:$0xf] }
  0x91   : > { %v6358_v37 = vrot.slane %v744_v40, 9  ;;  %v6561_v54 = vcombine.low %v845_v28, %v848_v46  ;;  %v860_v50 = vrot.slane %v858_v49, 4  ;;  %v879_v56 = vrot.slane %v7549_v31, 5  ;;  %12238 = vst [vmem:[#allocation5_spill] sm:$0xff] %v7774_v38 }
  0x92   : > { %v882_v58 = vrot.slane %v7556_v42, 5  ;;  %2330 = vrot.lane.b32.xlu0 %v6559_v36, %s7186_s13  ;;  %v869_v61 = vsel %vm7646_vm6, %v867_v48, %v868_v41  ;;  %v859_v8 = vsel %vm7646_vm6, %v6355_v43, %v858_v49  ;;  %v6357_v59 = vrot.slane %v743_v51, 9  ;;  %v7768_v36 = vld [vmem:[%s7267_s7 + $0x18] sm:$0xf]  ;;  %v7783_v41 = vld [vmem:[%s7267_s7 + $0xc] sm:$0xf] }
  0x93   : > { %v872_v62 = vrot.slane %v7564_v57, 5  ;;  %2336 = vrot.lane.b32.xlu1 %v6562_v45, %s7186_s13  ;;  %v6564_v0 = vcombine.low %v866_v33, %v869_v61  ;;  %v862_v31 = vsel %vm7646_vm6, %v860_v50, %v861_v27  ;;  %v881_v42 = vrot.slane %v879_v56, 4  ;;  %v7786_v43 = vld [vmem:[%s7267_s7 + $0x10] sm:$0xf]  ;;  %v7796_v33 = vld [vmem:[%s7267_s7 + $0x34] sm:$0xf] }
  0x94   : > { %v875_v5 = vrot.slane %v7570_v6, 5  ;;  %v880_v3 = vsel %vm7646_vm6, %v6358_v37, %v879_v56  ;;  %v6360_v16 = vrot.slane %v746_v2, 9  ;;  %v6563_v17 = vcombine.low %v859_v8, %v862_v31  ;;  %12239 = vst [vmem:[#allocation6_spill] sm:$0xff] %v7786_v43  ;;  %v7793_v51 = vld [vmem:[%s7267_s7 + $0x30] sm:$0xf] }
  0x95   : > { %v874_v15 = vrot.slane %v872_v62, 4  ;;  %v883_v57 = vsel %vm7646_vm6, %v881_v42, %v882_v58  ;;  %v893_v18 = vrot.slane %v7578_v22, 5  ;;  %v896_v4 = vrot.slane %v7586_v35, 5  ;;  %v7805_v56 = vld [vmem:[%s7267_s7 + $0x24] sm:$0xf] }
  0x96   : > { %2334 = vrot.lane.b32.xlu0 %v6561_v54, %s7186_s13  ;;  %v873_v6 = vsel %vm7646_vm6, %v6357_v59, %v872_v62  ;;  %v6359_v11 = vrot.slane %v745_v10, 9  ;;  %v886_v19 = vrot.slane %v7594_v53, 5  ;;  %v889_v20 = vrot.slane %v7601_v9, 5  ;;  %v7808_v58 = vld [vmem:[%s7267_s7 + $0x28] sm:$0xf] }
  0x97   : > { %2340 = vrot.lane.b32.xlu1 %v6564_v0, %s7186_s13  ;;  %v6566_v39 = vcombine.low %v880_v3, %v883_v57  ;;  %v876_v24 = vsel %vm7646_vm6, %v874_v15, %v875_v5  ;;  %v895_v22 = vrot.slane %v893_v18, 4  ;;  %v6362_v35 = vrot.slane %v748_v1, 9  ;;  %v7816_v62 = vld [vmem:[%s7267_s7 + $0x48] sm:$0xf]  ;;  %v7819_v0 = vld [vmem:[%s7267_s7 + $0x4c] sm:$0xf] }
  0x98   : > { %v894_v47 = vsel %vm7646_vm6, %v6360_v16, %v893_v18  ;;  %v888_v30 = vrot.slane %v886_v19, 4  ;;  %v907_v55 = vrot.slane %v7609_v25, 5  ;;  %v910_v53 = vrot.slane %v7615_v44, 5  ;;  %v7828_v3 = vld [vmem:[%s7267_s7 + $0x3c] sm:$0xf] }
  0x99   : > { %v897_v9 = vsel %vm7646_vm6, %v895_v22, %v896_v4  ;;  %v6361_v32 = vrot.slane %v747_v26, 9  ;;  %v900_v12 = vrot.slane %v7624_v63, 5  ;;  %v903_v34 = vrot.slane %v7631_v21, 5  ;;  %v7837_v57 = vld [vmem:[%s7267_s7 + $0x40] sm:$0xf] }
  0x9a   : > { %2338 = vrot.lane.b32.xlu0 %v6563_v17, %s7186_s13  ;;  %v6565_v52 = vcombine.low %v873_v6, %v876_v24  ;;  %v887_v60 = vsel %vm7646_vm6, %v6359_v11, %v886_v19  ;;  %v890_v25 = vsel %vm7646_vm6, %v888_v30, %v889_v20  ;;  %v909_v44 = vrot.slane %v907_v55, 4  ;;  %v7847_v19 = vld [vmem:[%s7267_s7 + $0x60] sm:$0xf]  ;;  %v7850_v20 = vld [vmem:[%s7267_s7 + $0x64] sm:$0xf] }
  0x9b   : > { %2344 = vrot.lane.b32.xlu1 %v6566_v39, %s7186_s13  ;;  %v6568_v63 = vcombine.low %v894_v47, %v897_v9  ;;  %v908_v21 = vsel %vm7646_vm6, %v6362_v35, %v907_v55  ;;  %v902_v28 = vrot.slane %v900_v12, 4  ;;  %v986_v13 = vshrl.u32 %v7768_v36, 16  ;;  %v7860_v35 = vld [vmem:[%s7267_s7 + $0x54] sm:$0xf]  ;;  %v7869_v9 = vld [vmem:[%s7267_s7 + $0x58] sm:$0xf] }
  0x9c   : > { %v911_v40 = vsel %vm7646_vm6, %v909_v44, %v910_v53  ;;  %v901_v14 = vsel %vm7646_vm6, %v6361_v32, %v900_v12  ;;  %v989_v29 = vshll.u32 %v7768_v36, 16  ;;  %v6567_v45 = vcombine.low %v887_v60, %v890_v25  ;;  %v7878_v60 = vld [vmem:[%s7267_s7 + $0x78] sm:$0xf]  ;;  %v7881_v25 = vld [vmem:[%s7267_s7 + $0x7c] sm:$0xf] }
  0x9d   : > { %v904_v46 = vsel %vm7646_vm6, %v902_v28, %v903_v34  ;;  %v962_v27 = vshrl.u32 %v7783_v41, 16  ;;  %v6570_v48 = vcombine.low %v908_v21, %v911_v40  ;;  %v7799_v37 = vrot.slane %v986_v13, 4  ;;  %v7891_v28 = vld [vmem:[%s7267_s7 + $0x6c] sm:$0xf] }
  0x9e   : > { %2342 = vrot.lane.b32.xlu0 %v6565_v52, %s7186_s13  ;;  %v6572_v54 = vcombine.low %v7768_v36, %v7774_v38  ;;  %v965_v50 = vshll.u32 %v7783_v41, 16  ;;  %v6569_v2 = vcombine.low %v901_v14, %v904_v46  ;;  %v7811_v61 = vrot.slane %v989_v29, 5  ;;  %v7960_v36 = vld [vmem:[%s7267_s7 + $0x9c] sm:$0xf]  ;;  %v8012_v14 = vld [vmem:[%s7267_s7 + $0x20] sm:$0x1] }
  0x9f   : > { %2348 = vrot.lane.b32.xlu1 %v6568_v63, %s7186_s13  ;;  %v1034_v8 = vshrl.u32 %v7793_v51, 16  ;;  %v1037_v59 = vshll.u32 %v7793_v51, 16  ;;  %v7821_v31 = vrot.slane %v962_v27, 4  ;;  %v6571_v5 = vcombine.low %v7783_v41, %v7786_v43  ;;  %v7901_v41 = vld [vmem:[%s7267_s7 + $0x70] sm:$0xf]  ;;  %12243 = vst [vmem:[#allocation10_spill] sm:$0xff] %v8012_v14 }
  0xa0   : > { %v1010_v10 = vshrl.u32 %v7805_v56, 16  ;;  %v7830_v15 = vrot.slane %v965_v50, 5  ;;  %v6574_v1 = vcombine.low %v7793_v51, %v7796_v33  ;;  %v1013_v17 = vshll.u32 %v7805_v56, 16 }
  0xa1   : > { %v7840_v18 = vrot.slane %v1034_v8, 4  ;;  %v7842_v4 = vrot.slane %v1037_v59, 5  ;;  %v1082_v6 = vshrl.u32 %v7816_v62, 16  ;;  %v1085_v11 = vshll.u32 %v7816_v62, 16  ;;  %v7922_v59 = vld [vmem:[%s7267_s7 + $0x84] sm:$0xf] }
  0xa2   : > { %2346 = vrot.lane.b32.xlu0 %v6567_v45, %s7186_s13  ;;  %v7853_v26 = vrot.slane %v1010_v10, 4  ;;  %v6573_v24 = vcombine.low %v7805_v56, %v7808_v58  ;;  %v1058_v22 = vshrl.u32 %v7828_v3, 16  ;;  %v7862_v47 = vrot.slane %v1013_v17, 5  ;;  %v7970_v10 = vld [vmem:[%s7267_s7 + $0xa0] sm:$0xf] }
  0xa3   : > { %2352 = vrot.lane.b32.xlu1 %v6570_v48, %s7186_s13  ;;  %v6576_v55 = vcombine.low %v7816_v62, %v7819_v0  ;;  %v1061_v53 = vshll.u32 %v7828_v3, 16  ;;  %v7871_v32 = vrot.slane %v1082_v6, 4  ;;  %v7873_v12 = vrot.slane %v1085_v11, 5  ;;  %v7910_v48 = vld [vmem:[%s7267_s7 + $0x90] sm:$0xf] }
  0xa4   : > { %v1130_v34 = vshrl.u32 %v7847_v19, 16  ;;  %v1133_v52 = vshll.u32 %v7847_v19, 16  ;;  %v7884_v44 = vrot.slane %v1058_v22, 4  ;;  %v6575_v63 = vcombine.low %v7828_v3, %v7837_v57  ;;  %v7932_v11 = vld [vmem:[%s7267_s7 + $0x88] sm:$0xf] }
  0xa5   : > { %v1106_v21 = vshrl.u32 %v7860_v35, 16  ;;  %v7894_v13 = vrot.slane %v1061_v53, 5  ;;  %v1109_v29 = vshll.u32 %v7860_v35, 16  ;;  %v1178_v27 = vshrl.u32 %v7878_v60, 16 }
  0xa6   : > { %2350 = vrot.lane.b32.xlu0 %v6569_v2, %s7186_s13  ;;  %v7903_v45 = vrot.slane %v1130_v34, 4  ;;  %v7905_v46 = vrot.slane %v1133_v52, 5  ;;  %v1181_v51 = vshll.u32 %v7878_v60, 16  ;;  %v1154_v8 = vshrl.u32 %v7891_v28, 16  ;;  %v7942_v52 = vld [vmem:[%s7267_s7 + $0xa8] sm:$0xf] }
  0xa7   : > { %2420 = vrot.lane.b32.xlu1 %v6572_v54, %s7187_s14  ;;  %v7913_v54 = vld [vmem:[%s7267_s7 + $0x94] sm:$0xf]  ;;  %v7915_v50 = vrot.slane %v1106_v21, 4  ;;  %v7925_v62 = vrot.slane %v1109_v29, 5  ;;  %v1157_v6 = vshll.u32 %v7891_v28, 16  ;;  %v7935_v22 = vrot.slane %v1178_v27, 4 }
  0xa8   : > { %v7937_v53 = vrot.slane %v1181_v51, 5  ;;  %v1229_v34 = vshll.u32 %v7910_v48, 16  ;;  %v7944_v21 = vrot.slane %v1154_v8, 4  ;;  %v7951_v27 = vld [vmem:[%s7267_s7 + $0xac] sm:$0xf]  ;;  %v1205_v8 = vshll.u32 %v7922_v59, 16 }
  0xa9   : > { %v7953_v51 = vrot.slane %v1157_v6, 5  ;;  %v1274_v6 = vshrl.u32 %v7942_v52, 16  ;;  %v1277_v39 = vshll.u32 %v7942_v52, 16  ;;  %v12244_v7 = vcombine.low %v7847_v19, %v7850_v20 }
  0xaa   : > { %2418 = vrot.lane.b32.xlu0 %v6571_v5, %s7187_s14  ;;  %v1226_v5 = vshrl.u32 %v7910_v48, 16  ;;  %v7965_v30 = vrot.slane %v1229_v34, 5  ;;  %v7980_v34 = vld [vmem:[%s7267_s7 + $0xc0] sm:$0xf]  ;;  %v7982_v16 = vrot.slane %v1205_v8, 5  ;;  %v992_v19 = vor.u32 %v7811_v61, %v7799_v37 }
  0xab   : > { %2424 = vrot.lane.b32.xlu1 %v6574_v1, %s7187_s14  ;;  %v1202_v1 = vshrl.u32 %v7922_v59, 16  ;;  %v7991_v40 = vrot.slane %v1274_v6, 4  ;;  %v1322_v2 = vshrl.u32 %v7980_v34, 16  ;;  %v1325_v49 = vshll.u32 %v7980_v34, 16  ;;  %v7998_v8 = vld [vmem:[%s7267_s7 + $0xb4] sm:$0xf] }
  0xac   : > { %v7963_v29 = vrot.slane %v1226_v5, 4  ;;  %v1250_v5 = vshrl.u32 %v7960_v36, 16  ;;  %v993_v37 = vrot.slane %v992_v19, 4  ;;  %vm2866_vm7 = vcmask 31744  }
  0xad   : > { %v7973_v56 = vrot.slane %v1202_v1, 4  ;;  %v7989_v1 = vld [vmem:[%s7267_s7 + $0xc4] sm:$0xf]  ;;  %v8027_v6 = vrot.slane %v1325_v49, 5  ;;  %v968_v49 = vor.u32 %v7830_v15, %v7821_v31  ;;  %v12253_v31 = vcombine.low %v7891_v28, %v7901_v41 }
  0xae   : > { %2422 = vrot.lane.b32.xlu0 %v6573_v24, %s7187_s14  ;;  %v7993_v24 = vrot.slane %v1277_v39, 5  ;;  %v8004_v17 = vrot.slane %v1250_v5, 4  ;;  %v8024_v5 = vld [vmem:[%s7267_s7 + $0xb8] sm:$0xf]  ;;  %v12248_v39 = vcombine.low %v7860_v35, %v7869_v9  ;;  %v1019_v28 = vshll.u32 %v7808_v58, 16 }
  0xaf   : > { %2428 = vrot.lane.b32.xlu1 %v6576_v55, %s7187_s14  ;;  %v1253_v55 = vshll.u32 %v7960_v36, 16  ;;  %12246 = vst [vmem:[#allocation12_spill] sm:$0xff] %v8027_v6  ;;  %v12249_v6 = vshrl.u32 %v7786_v43, 16  ;;  %v969_v15 = vrot.slane %v968_v49, 4  ;;  %vm2915_vm8 = vcmask 64512  }
  0xb0   : > { %12240 = vst [vmem:[#allocation7_spill] sm:$0xff] %v7993_v24  ;;  %12241 = vst [vmem:[#allocation8_spill] sm:$0xff] %v8004_v17  ;;  %v8018_v24 = vrot.slane %v1322_v2, 4  ;;  %v8034_v2 = vld [vmem:[%s7267_s7 + $0x14] sm:$0x1]  ;;  %vm2948_vm9 = vcmask 97280  }
  0xb1   : > { %v8006_v42 = vrot.slane %v1253_v55, 5  ;;  %v971_v55 = vshll.u32 %v7786_v43, 16  ;;  %v977_v3 = vrot.slane %v12249_v6, 4  ;;  %v8050_v17 = vld [vmem:[%s7267_s7 + $0x38] sm:$0x1]  ;;  %v981_v35 = vshll.u32 %v8034_v2, 16 }
  0xb2   : > { %2426 = vrot.lane.b32.xlu0 %v6575_v63, %s7187_s14  ;;  %12245 = vst [vmem:[#allocation11_spill] sm:$0xff] %v8018_v24  ;;  %v12247_v63 = vshrl.u32 %v7774_v38, 16  ;;  %12250 = vst [vmem:[#allocation13_spill] sm:$0xff] %v8050_v17  ;;  %v1043_v43 = vshll.u32 %v7796_v33, 16  ;;  %v1053_v49 = vshll.u32 %v8050_v17, 16  ;;  %v1021_v17 = vrot.slane %v1019_v28, 5 }
  0xb3   : > { %12242 = vst [vmem:[#allocation9_spill] sm:$0xff] %v8006_v42  ;;  %2432 = vrot.lane.b32.xlu1 %v12244_v7, %s7187_s14  ;;  %v995_v7 = vshll.u32 %v7774_v38, 16  ;;  %v1005_v42 = vshll.u32 %v8012_v14, 16  ;;  %v973_v6 = vrot.slane %v971_v55, 5  ;;  %v8072_v55 = vld [vmem:[%s7267_s7 + $0x2c] sm:$0x1] }
  0xb4   : > { %v1001_v24 = vrot.slane %v12247_v63, 4  ;;  %v12251_v63 = vcombine.low %v7878_v60, %v7881_v25  ;;  %vm2981_vm10 = vcmask 130048   ;;  %vm3014_vm11 = vcmask 162816  }
  0xb5   : > { %v997_v61 = vrot.slane %v995_v7, 5  ;;  %v1007_v7 = vrot.slane %v1005_v42, 5  ;;  %v983_v42 = vrot.slane %v981_v35, 5  ;;  %vm3047_vm12 = vcmask 195584  }
  0xb6   : > { %2430 = vrot.lane.b32.xlu0 %v12248_v39, %s7187_s14  ;;  %v1040_v39 = vor.u32 %v7842_v4, %v7840_v18  ;;  %v978_v4 = vor.u32 %v977_v3, %v973_v6  ;;  %v12255_v3 = vshrl.u32 %v7808_v58, 16  ;;  %vm3080_vm13 = vcmask 228352  }
  0xb7   : > { %2436 = vrot.lane.b32.xlu1 %v12251_v63, %s7187_s14  ;;  %v1002_v19 = vor.u32 %v1001_v24, %v997_v61  ;;  %v998_v14 = vsel %vm7425_vm3, %v993_v37, %v997_v61  ;;  %v12252_v63 = vshrl.u32 %v7796_v33, 16  ;;  %v1045_v24 = vrot.slane %v1043_v43, 5 }
  0xb8   : > { %v1041_v60 = vrot.slane %v1040_v39, 4  ;;  %v12254_v37 = vcombine.low %v7910_v48, %v7913_v54  ;;  %v974_v61 = vsel %vm7425_vm3, %v969_v15, %v973_v6  ;;  %v1016_v39 = vor.u32 %v7862_v47, %v7853_v26  ;;  %v8097_v6 = vld [vmem:[%s7267_s7 + $0x50] sm:$0x1] }
  0xb9   : > { %v1049_v38 = vrot.slane %v12252_v63, 4  ;;  %v1003_v18 = vrot.slane %v1002_v19, 4  ;;  %v979_v35 = vrot.slane %v978_v4, 4  ;;  %v1055_v63 = vrot.slane %v1053_v49, 5 }
  0xba   : > { %2434 = vrot.lane.b32.xlu0 %v12253_v31, %s7187_s14  ;;  %v1025_v31 = vrot.slane %v12255_v3, 4  ;;  %v1046_v48 = vsel %vm7425_vm3, %v1041_v60, %v1045_v24  ;;  %v1029_v15 = vshll.u32 %v8072_v55, 16  ;;  %v12256_v26 = vcombine.low %v7922_v59, %v7932_v11 }
  0xbb   : > { %2440 = vrot.lane.b32.xlu1 %v12254_v37, %s7187_s14  ;;  %v1008_v43 = vsel %vm7425_vm3, %v1003_v18, %v1007_v7  ;;  %v1050_v19 = vor.u32 %v1049_v38, %v1045_v24  ;;  %v1017_v37 = vrot.slane %v1016_v39, 4  ;;  %v984_v47 = vsel %vm7425_vm3, %v979_v35, %v983_v42 }
  0xbc   : > { %v1088_v38 = vor.u32 %v7873_v12, %v7871_v32  ;;  %v1091_v60 = vshll.u32 %v7819_v0, 16  ;;  %v12257_v49 = vcombine.low %v7942_v52, %v7951_v27  ;;  %v6588_v18 = vcombine.low %v998_v14, %v1008_v43  ;;  %v8111_v12 = vld [vmem:[%s7267_s7 + $0x44] sm:$0x1] }
  0xbd   : > { %v1051_v7 = vrot.slane %v1050_v19, 4  ;;  %v6587_v59 = vcombine.low %v974_v61, %v984_v47  ;;  %v1026_v4 = vor.u32 %v1025_v31, %v1021_v17  ;;  %v1031_v24 = vrot.slane %v1029_v15, 5 }
  0xbe   : > { %2438 = vrot.lane.b32.xlu0 %v12256_v26, %s7187_s14  ;;  %v1089_v39 = vrot.slane %v1088_v38, 4  ;;  %v1093_v28 = vrot.slane %v1091_v60, 5  ;;  %v12258_v3 = vshrl.u32 %v7819_v0, 16  ;;  %v1022_v35 = vsel %vm7425_vm3, %v1017_v37, %v1021_v17  ;;  %v8126_v17 = vld [vmem:[%s7267_s7 + $0x68] sm:$0x1] }
  0xbf   : > { %2444 = vrot.lane.b32.xlu1 %v12257_v49, %s7187_s14  ;;  %v1056_v42 = vsel %vm7425_vm3, %v1051_v7, %v1055_v63  ;;  %v1027_v52 = vrot.slane %v1026_v4, 4  ;;  %v1101_v14 = vshll.u32 %v8097_v6, 16  ;;  %v1064_v61 = vor.u32 %v7894_v13, %v7884_v44 }
  0xc0   : > { %v1097_v32 = vrot.slane %v12258_v3, 4  ;;  %v12259_v31 = vcombine.low %v7960_v36, %v7970_v10  ;;  %v6590_v43 = vcombine.low %v1046_v48, %v1056_v42  ;;  %v1067_v63 = vshll.u32 %v7837_v57, 16  ;;  %v8144_v3 = vld [vmem:[%s7267_s7 + $0x5c] sm:$0x1] }
  0xc1   : > { %v12260_v15 = vshrl.u32 %v7837_v57, 16  ;;  %v12261_v37 = vcombine.low %v7980_v34, %v7989_v1  ;;  %v1032_v44 = vsel %vm7425_vm3, %v1027_v52, %v1031_v24  ;;  %v1103_v36 = vrot.slane %v1101_v14, 5 }
  0xc2   : > { %2442 = vrot.lane.b32.xlu0 %v12259_v31, %s7187_s14  ;;  %v1098_v19 = vor.u32 %v1097_v32, %v1093_v28  ;;  %v1065_v13 = vrot.slane %v1064_v61, 4  ;;  %v1077_v48 = vshll.u32 %v8111_v12, 16  ;;  %v1094_v47 = vsel %vm7425_vm3, %v1089_v39, %v1093_v28 }
  0xc3   : > { %v1073_v26 = vrot.slane %v12260_v15, 4  ;;  %2448 = vrot.lane.b32.xlu1 %v12261_v37, %s7187_s14  ;;  %v1069_v38 = vrot.slane %v1067_v63, 5  ;;  %v1136_v60 = vor.u32 %v7905_v46, %v7903_v45  ;;  %v6589_v49 = vcombine.low %v1022_v35, %v1032_v44 }
  0xc4   : > { %v1099_v7 = vrot.slane %v1098_v19, 4  ;;  %v1139_v4 = vshll.u32 %v7850_v20, 16  ;;  %v12262_v34 = vshrl.u32 %v7850_v20, 16  ;;  %v1149_v24 = vshll.u32 %v8126_v17, 16 }
  0xc5   : > { %v12263_v32 = vcombine.low %v7998_v8, %v8024_v5  ;;  %v1074_v28 = vor.u32 %v1073_v26, %v1069_v38  ;;  %v1079_v45 = vrot.slane %v1077_v48, 5  ;;  %v1137_v46 = vrot.slane %v1136_v60, 4 }
  0xc6   : > { %v1145_v42 = vrot.slane %v12262_v34, 4  ;;  %v1104_v39 = vsel %vm7425_vm3, %v1099_v7, %v1103_v36  ;;  %v1070_v52 = vsel %vm7425_vm3, %v1065_v13, %v1069_v38  ;;  %v1141_v14 = vrot.slane %v1139_v4, 5  ;;  %v8164_v36 = vld [vmem:[%s7267_s7 + $0x80] sm:$0x1] }
  0xc7   : > { %2446 = vrot.lane.b32.xlu0 %v12263_v32, %s7187_s14  ;;  %2500 = vrot.lane.b32.xlu1 %v6588_v18, %s7188_s22  ;;  %v6592_v35 = vcombine.low %v1094_v47, %v1104_v39  ;;  %v1112_v61 = vor.u32 %v7925_v62, %v7915_v50  ;;  %v1075_v31 = vrot.slane %v1074_v28, 4  ;;  %v1115_v19 = vshll.u32 %v7869_v9, 16  ;;  %v8168_v50 = vpop.permute.xlu1 %2246  ;;  %v8179_v32 = vld [vmem:[%s7267_s7 + $0x74] sm:$0x1] }
  0xc8   : > { %v12264_v63 = vshrl.u32 %v7869_v9, 16  ;;  %v1125_v26 = vshll.u32 %v8144_v3, 16  ;;  %v1142_v37 = vsel %vm7425_vm3, %v1137_v46, %v1141_v14  ;;  %v1146_v18 = vor.u32 %v1145_v42, %v1141_v14 }
  0xc9   : > { %v1151_v44 = vrot.slane %v1149_v24, 5  ;;  %v1184_v13 = vor.u32 %v7937_v53, %v7935_v22  ;;  %v1080_v62 = vsel %vm7425_vm3, %v1075_v31, %v1079_v45  ;;  %v1113_v48 = vrot.slane %v1112_v61, 4 }
  0xca   : > { %v1121_v15 = vrot.slane %v12264_v63, 4  ;;  %v1117_v47 = vrot.slane %v1115_v19, 5  ;;  %v1187_v7 = vshll.u32 %v7881_v25, 16  ;;  %v6591_v38 = vcombine.low %v1070_v52, %v1080_v62  ;;  %v8191_v19 = vpop.permute.xlu0 %2242 }
  0xcb   : > { %2498 = vrot.lane.b32.xlu0 %v6587_v59, %s7188_s22  ;;  %2504 = vrot.lane.b32.xlu1 %v6590_v43, %s7188_s22  ;;  %v1147_v60 = vrot.slane %v1146_v18, 4  ;;  %v1127_v4 = vrot.slane %v1125_v26, 5  ;;  %v12265_v34 = vshrl.u32 %v7881_v25, 16  ;;  %v1185_v42 = vrot.slane %v1184_v13, 4  ;;  %v8195_v26 = vpop.permute.xlu1 %2248 }
  0xcc   : > { %v1122_v53 = vor.u32 %v1121_v15, %v1117_v47  ;;  %v1189_v24 = vrot.slane %v1187_v7, 5  ;;  %v1197_v59 = vshll.u32 %v8164_v36, 16  ;;  %v1160_v28 = vor.u32 %v7953_v51, %v7944_v21 }
  0xcd   : > { %v1193_v22 = vrot.slane %v12265_v34, 4  ;;  %v1152_v39 = vsel %vm7425_vm3, %v1147_v60, %v1151_v44  ;;  %v1163_v43 = vshll.u32 %v7901_v41, 16  ;;  %v12266_v45 = vshrl.u32 %v7901_v41, 16  ;;  %v8208_v60 = vld [vmem:[%s7267_s7 + $0x98] sm:$0x1] }
  0xce   : > { %v6594_v52 = vcombine.low %v1142_v37, %v1152_v39  ;;  %v1118_v14 = vsel %vm7425_vm3, %v1113_v48, %v1117_v47  ;;  %v1123_v61 = vrot.slane %v1122_v53, 4  ;;  %v1199_v21 = vrot.slane %v1197_v59, 5  ;;  %v7090_v48 = vld [vmem:[%s7267_s7 + $0x18] sm:$0xf]  ;;  %v7091_v47 = vld [vmem:[%s7267_s7 + $0x1c] sm:$0xf] }
  0xcf   : > { %v1169_v46 = vrot.slane %v12266_v45, 4  ;;  %2502 = vrot.lane.b32.xlu0 %v6589_v49, %s7188_s22  ;;  %v1194_v31 = vor.u32 %v1193_v22, %v1189_v24  ;;  %2508 = vrot.lane.b32.xlu1 %v6592_v35, %s7188_s22  ;;  %v1161_v51 = vrot.slane %v1160_v28, 4  ;;  %v1165_v63 = vrot.slane %v1163_v43, 5 }
  0xd0   : > { %v1173_v15 = vshll.u32 %v8179_v32, 16  ;;  %v12267_v49 = vshrl.u32 %v7998_v8, 16  ;;  %v1128_v18 = vsel %vm7425_vm3, %v1123_v61, %v1127_v4  ;;  %v1190_v44 = vsel %vm7425_vm3, %v1185_v42, %v1189_v24 }
  0xd1   : > { %v1195_v13 = vrot.slane %v1194_v31, 4  ;;  %v1170_v35 = vor.u32 %v1169_v46, %v1165_v63  ;;  %v6525_v7 = vcombine.low %v7090_v48, %v7091_v47  ;;  %v6593_v34 = vcombine.low %v1118_v14, %v1128_v18  ;;  %v7093_v18 = vld [vmem:[%s7267_s7 + $0x4] sm:$0xf] }
  0xd2   : > { %v8199_v37 = vrot.slane %v12267_v49, 4  ;;  %v1175_v62 = vrot.slane %v1173_v15, 5  ;;  %v1166_v4 = vsel %vm7425_vm3, %v1161_v51, %v1165_v63  ;;  %v1232_v53 = vor.u32 %v7965_v30, %v7963_v29  ;;  %v8238_v51 = vpop.permute.xlu1 %2252  ;;  %v7092_v49 = vld [vmem:[%s7267_s7] sm:$0xf]  ;;  %v7094_v47 = vld [vmem:[%s7267_s7 + $0x24] sm:$0xf] }
  0xd3   : > { %2506 = vrot.lane.b32.xlu0 %v6591_v38, %s7188_s22  ;;  %v1200_v22 = vsel %vm7425_vm3, %v1195_v13, %v1199_v21  ;;  %2512 = vrot.lane.b32.xlu1 %v6594_v52, %s7188_s22  ;;  %v1171_v24 = vrot.slane %v1170_v35, 4  ;;  %v1235_v59 = vshll.u32 %v7913_v54, 16  ;;  %v12268_v39 = vshrl.u32 %v7913_v54, 16  ;;  %v8222_v38 = vld [vmem:[%s7267_s7 + $0x8c] sm:$0x1]  ;;  %v8231_v52 = vpop.permute.xlu0 %2244 }
  0xd4   : > { %v6596_v42 = vcombine.low %v1190_v44, %v1200_v22  ;;  %v12269_v43 = vshll.u32 %v7998_v8, 16  ;;  %v1233_v46 = vrot.slane %v1232_v53, 4  ;;  %v1245_v30 = vshll.u32 %v8208_v60, 16  ;;  %v12272_v22 = vld [vmem:[#allocation7_spill] sm:$0xff] }
  0xd5   : > { %v1241_v28 = vrot.slane %v12268_v39, 4  ;;  %v1208_v29 = vor.u32 %v7982_v16, %v7973_v56  ;;  %v1176_v14 = vsel %vm7425_vm3, %v1171_v24, %v1175_v62  ;;  %v1237_v61 = vrot.slane %v1235_v59, 5  ;;  %v7096_v39 = vld [vmem:[%s7267_s7 + $0xc] sm:$0xf] }
  0xd6   : > { %v8226_v45 = vrot.slane %v12269_v43, 5  ;;  %v1211_v31 = vshll.u32 %v7932_v11, 16  ;;  %v12270_v8 = vshrl.u32 %v7932_v11, 16  ;;  %v6595_v63 = vcombine.low %v1166_v4, %v1176_v14 }
  0xd7   : > { %2510 = vrot.lane.b32.xlu0 %v6593_v34, %s7188_s22  ;;  %v8243_v16 = vsel %vm2866_vm7, %v6525_v7, %v8168_v50  ;;  %v1209_v56 = vrot.slane %v1208_v29, 4  ;;  %v1221_v15 = vshll.u32 %v8222_v38, 16  ;;  %2516 = vrot.lane.b32.xlu1 %v6596_v42, %s7188_s22  ;;  %v6523_v44 = vcombine.low %v7092_v49, %v7093_v18  ;;  %v7095_v34 = vld [vmem:[%s7267_s7 + $0x28] sm:$0xf]  ;;  %v8254_v7 = vld [vmem:[%s7267_s7 + $0xb0] sm:$0x1] }
  0xd8   : > { %v1217_v21 = vrot.slane %v12270_v8, 4  ;;  %12271 = vst [vmem:[#allocation14_spill] sm:$0xff] %v8243_v16  ;;  %v1242_v13 = vor.u32 %v1241_v28, %v1237_v61  ;;  %v1247_v35 = vrot.slane %v1245_v30, 5  ;;  %v1213_v62 = vrot.slane %v1211_v31, 5  ;;  %v7097_v28 = vld [vmem:[%s7267_s7 + $0x10] sm:$0xf] }
  0xd9   : > { %v1238_v48 = vsel %vm7425_vm3, %v1233_v46, %v1237_v61  ;;  %v6526_v50 = vcombine.low %v7094_v47, %v7095_v34  ;;  %v1280_v4 = vor.u32 %v12272_v22, %v7991_v40  ;;  %v1283_v53 = vshll.u32 %v7951_v27, 16  ;;  %v8266_v40 = vpop.permute.xlu0 %2250  ;;  %v12274_v49 = vld [vmem:[#allocation8_spill] sm:$0xff] }
  0xda   : > { %v1243_v42 = vrot.slane %v1242_v13, 4  ;;  %v1218_v24 = vor.u32 %v1217_v21, %v1213_v62  ;;  %v1223_v59 = vrot.slane %v1221_v15, 5  ;;  %v6524_v43 = vcombine.low %v7096_v39, %v7097_v28  ;;  %v8272_v15 = vld [vmem:[%s7267_s7 + $0xa4] sm:$0x1]  ;;  %v8276_v13 = vpop.permute.xlu1 %2256 }
  0xdb   : > { %2514 = vrot.lane.b32.xlu0 %v6595_v63, %s7188_s22  ;;  %v1214_v46 = vsel %vm7425_vm3, %v1209_v56, %v1213_v62  ;;  %v1281_v30 = vrot.slane %v1280_v4, 4  ;;  %v1285_v29 = vrot.slane %v1283_v53, 5  ;;  %v12273_v14 = vshrl.u32 %v7951_v27, 16  ;;  %v12275_v63 = vld [vmem:[#allocation9_spill] sm:$0xff] }
  0xdc   : > { %v1248_v31 = vsel %vm7425_vm3, %v1243_v42, %v1247_v35  ;;  %v1219_v8 = vrot.slane %v1218_v24, 4  ;;  %v1293_v21 = vshll.u32 %v8254_v7, 16  ;;  %v1256_v18 = vor.u32 %v12275_v63, %v12274_v49 }
  0xdd   : > { %v1289_v61 = vrot.slane %v12273_v14, 4  ;;  %v6598_v56 = vcombine.low %v1238_v48, %v1248_v31  ;;  %v1286_v62 = vsel %vm7425_vm3, %v1281_v30, %v1285_v29  ;;  %v1259_v34 = vshll.u32 %v7970_v10, 16  ;;  %v12277_v14 = vld [vmem:[#allocation11_spill] sm:$0xff] }
  0xde   : > { %v1224_v35 = vsel %vm7425_vm3, %v1219_v8, %v1223_v59  ;;  %v1295_v22 = vrot.slane %v1293_v21, 5  ;;  %v1257_v4 = vrot.slane %v1256_v18, 4  ;;  %v12276_v53 = vshrl.u32 %v7970_v10, 16  ;;  %v7098_v18 = vld [vmem:[%s7267_s7 + $0x3c] sm:$0xf] }
  0xdf   : > { %v1290_v47 = vor.u32 %v1289_v61, %v1285_v29  ;;  %2520 = vrot.lane.b32.xlu1 %v6598_v56, %s7188_s22  ;;  %v6597_v24 = vcombine.low %v1214_v46, %v1224_v35  ;;  %v1261_v48 = vrot.slane %v1259_v34, 5  ;;  %v1269_v28 = vshll.u32 %v8272_v15, 16  ;;  %v8296_v29 = vld [vmem:[%s7267_s7 + $0xc8] sm:$0x1]  ;;  %v12278_v61 = vld [vmem:[#allocation12_spill] sm:$0xff] }
  0xe0   : > { %v1265_v42 = vrot.slane %v12276_v53, 4  ;;  %v8289_v30 = vsel %vm2866_vm7, %v6523_v44, %v8191_v19  ;;  %v8293_v59 = vsel %vm2866_vm7, %v6526_v50, %v8195_v26  ;;  %v1328_v31 = vor.u32 %v12278_v61, %v12277_v14  ;;  %v8309_v26 = vld [vmem:[%s7267_s7 + $0xbc] sm:$0x1]  ;;  %v8311_v50 = vpop.permute.xlu0 %2254  ;;  %v7099_v56 = vld [vmem:[%s7267_s7 + $0x40] sm:$0xf] }
  0xe1   : > { %v1291_v39 = vrot.slane %v1290_v47, 4  ;;  %v1331_v46 = vshll.u32 %v7989_v1, 16  ;;  %2518 = vrot.lane.b32.xlu0 %v6597_v24, %s7188_s22  ;;  %v8304_v8 = vsel %vm2866_vm7, %v6524_v43, %v8231_v52  ;;  %v1271_v21 = vrot.slane %v1269_v28, 5  ;;  %12279 = vst [vmem:[#allocation7_spill] sm:$0xff] %v8309_v26  ;;  %v8317_v47 = vpop.permute.xlu1 %2260  ;;  %v6412_v28 = vld [vmem:[%s7267_s7 + $0x18] sm:$0xe] }
  0xe2   : > { %v1266_v44 = vor.u32 %v1265_v42, %v1261_v48  ;;  %v1262_v63 = vsel %vm7425_vm3, %v1257_v4, %v1261_v48  ;;  %v6528_v52 = vcombine.low %v7098_v18, %v7099_v56  ;;  %v1329_v43 = vrot.slane %v1328_v31, 4  ;;  %v7100_v61 = vld [vmem:[%s7267_s7 + $0x30] sm:$0xf]  ;;  %v7101_v31 = vld [vmem:[%s7267_s7 + $0x34] sm:$0xf] }
  0xe3   : > { %v1296_v19 = vsel %vm7425_vm3, %v1291_v39, %v1295_v22  ;;  %v1333_v35 = vrot.slane %v1331_v46, 5  ;;  %v12280_v22 = vshrl.u32 %v7989_v1, 16  ;;  %v1341_v42 = vshll.u32 %v8296_v29, 16  ;;  %v6411_v56 = vld [vmem:[%s7267_s7 + $0xc] sm:$0xe] }
  0xe4   : > { %v6600_v49 = vcombine.low %v1286_v62, %v1296_v19  ;;  %v1267_v34 = vrot.slane %v1266_v44, 4  ;;  %v1304_v62 = vor.u32 %v8226_v45, %v8199_v37  ;;  %v1307_v4 = vshll.u32 %v8024_v5, 16 }
  0xe5   : > { %v1337_v53 = vrot.slane %v12280_v22, 4  ;;  %v12281_v24 = vshrl.u32 %v8024_v5, 16  ;;  %v1317_v48 = vshll.u32 %v8309_v26, 16  ;;  %v6527_v46 = vcombine.low %v7100_v61, %v7101_v31  ;;  %v7102_v26 = vld [vmem:[%s7267_s7 + $0x54] sm:$0xf]  ;;  %v8343_v61 = vpop.permute.xlu0 %2258 }
  0xe6   : > { %2524 = vrot.lane.b32.xlu1 %v6600_v49, %s7188_s22  ;;  %v1272_v14 = vsel %vm7425_vm3, %v1267_v34, %v1271_v21  ;;  %v1343_v44 = vrot.slane %v1341_v42, 5  ;;  %v8336_v37 = vsel %vm2866_vm7, %v6528_v52, %v8238_v51  ;;  %v1305_v45 = vrot.slane %v1304_v62, 4  ;;  %v7103_v21 = vld [vmem:[%s7267_s7 + $0x58] sm:$0xf]  ;;  %v12282_v52 = vld [vmem:[#allocation5_spill] sm:$0xff]  ;;  %v12283_v42 = vld [vmem:[#allocation10_spill] sm:$0xff] }
  0xe7   : > { %v1313_v39 = vrot.slane %v12281_v24, 4  ;;  %v1338_v19 = vor.u32 %v1337_v53, %v1333_v35  ;;  %v6599_v49 = vcombine.low %v1262_v63, %v1272_v14  ;;  %v1309_v18 = vrot.slane %v1307_v4, 5  ;;  %v8348_v4 = vpop.permute.xlu1 %2264 }
  0xe8   : > { %v1334_v22 = vsel %vm7425_vm3, %v1329_v43, %v1333_v35  ;;  %v6530_v34 = vcombine.low %v7102_v26, %v7103_v21  ;;  %v6428_v16 = vrot.slane %v6412_v28, 9  ;;  %v1319_v51 = vrot.slane %v1317_v48, 5 }
  0xe9   : > { %v1339_v24 = vrot.slane %v1338_v19, 4  ;;  %2522 = vrot.lane.b32.xlu0 %v6599_v49, %s7188_s22  ;;  %v1314_v63 = vor.u32 %v1313_v39, %v1309_v18  ;;  %v1418_v53 = vrot.slane %v12282_v52, 5  ;;  %v1421_v62 = vrot.slane %v12283_v42, 5  ;;  %v6414_v39 = vld [vmem:[%s7267_s7 + $0x30] sm:$0xe]  ;;  %v8378_v42 = vpop.permute.xlu0 %2262 }
  0xea   : > { %v8352_v43 = vsel %vm2866_vm7, %v6527_v46, %v8266_v40  ;;  %v1310_v35 = vsel %vm7425_vm3, %v1305_v45, %v1309_v18  ;;  %v6427_v28 = vrot.slane %v6411_v56, 9  ;;  %v8363_v21 = vsel %vm2866_vm7, %v6530_v34, %v8276_v13  ;;  %v7104_v40 = vld [vmem:[%s7267_s7 + $0x48] sm:$0xf]  ;;  %v7105_v46 = vld [vmem:[%s7267_s7 + $0x4c] sm:$0xf] }
  0xeb   : > { %v1344_v26 = vsel %vm7425_vm3, %v1339_v24, %v1343_v44  ;;  %v1315_v14 = vrot.slane %v1314_v63, 4  ;;  %v1419_v19 = vsel %vm7646_vm6, %v6428_v16, %v1418_v53  ;;  %v1420_v49 = vrot.slane %v1418_v53, 4  ;;  %v12285_v24 = vld [vmem:[#allocation6_spill] sm:$0xff]  ;;  %v6413_v34 = vld [vmem:[%s7267_s7 + $0x24] sm:$0xe] }
  0xec   : > { %v6602_v48 = vcombine.low %v1334_v22, %v1344_v26  ;;  %v6529_v44 = vcombine.low %v7104_v40, %v7105_v46  ;;  %v1411_v45 = vrot.slane %v12285_v24, 5  ;;  %v1414_v18 = vrot.slane %v8034_v2, 5  ;;  %v7106_v26 = vld [vmem:[%s7267_s7 + $0x6c] sm:$0xf] }
  0xed   : > { %v1320_v16 = vsel %vm7425_vm3, %v1315_v14, %v1319_v51  ;;  %v1422_v13 = vsel %vm7646_vm6, %v1420_v49, %v1421_v62  ;;  %v6430_v56 = vrot.slane %v6414_v39, 9  ;;  %v1432_v22 = vrot.slane %v7796_v33, 5  ;;  %v7108_v51 = vld [vmem:[%s7267_s7 + $0x60] sm:$0xf]  ;;  %v7109_v14 = vld [vmem:[%s7267_s7 + $0x64] sm:$0xf] }
  0xee   : > { %2528 = vrot.lane.b32.xlu1 %v6602_v48, %s7188_s22  ;;  %v6601_v63 = vcombine.low %v1310_v35, %v1320_v16  ;;  %v6604_v52 = vcombine.low %v1419_v19, %v1422_v13  ;;  %v1412_v53 = vsel %vm7646_vm6, %v6427_v28, %v1411_v45  ;;  %v1413_v2 = vrot.slane %v1411_v45, 4  ;;  %v7107_v48 = vld [vmem:[%s7267_s7 + $0x70] sm:$0xf]  ;;  %v6416_v35 = vld [vmem:[%s7267_s7 + $0x48] sm:$0xe]  ;;  %v8387_v19 = vpop.permute.xlu1 %2268 }
  0xef   : > { %v6532_v40 = vcombine.low %v7106_v26, %v7107_v48  ;;  %v6531_v62 = vcombine.low %v7108_v51, %v7109_v14  ;;  %v1433_v33 = vsel %vm7646_vm6, %v6430_v56, %v1432_v22  ;;  %v1434_v39 = vrot.slane %v1432_v22, 4  ;;  %v12286_v49 = vld [vmem:[#allocation13_spill] sm:$0xff]  ;;  %v7110_v22 = vld [vmem:[%s7267_s7 + $0x84] sm:$0xf] }
  0xf0   : > { %2526 = vrot.lane.b32.xlu0 %v6601_v63, %s7188_s22  ;;  %v1415_v28 = vsel %vm7646_vm6, %v1413_v2, %v1414_v18  ;;  %v1435_v46 = vrot.slane %v12286_v49, 5  ;;  %v6429_v24 = vrot.slane %v6413_v34, 9  ;;  %v1425_v45 = vrot.slane %v7808_v58, 5  ;;  %v7111_v63 = vld [vmem:[%s7267_s7 + $0x88] sm:$0xf] }
  0xf1   : > { %v8396_v16 = vsel %vm2866_vm7, %v6529_v44, %v8311_v50  ;;  %v6603_v13 = vcombine.low %v1412_v53, %v1415_v28  ;;  %v1428_v56 = vrot.slane %v8072_v55, 5  ;;  %v6534_v26 = vcombine.low %v7110_v22, %v7111_v63  ;;  %v6415_v18 = vld [vmem:[%s7267_s7 + $0x3c] sm:$0xe]  ;;  %v7112_v28 = vld [vmem:[%s7267_s7 + $0x78] sm:$0xf] }
  0xf2   : > { %2580 = vrot.lane.b32.xlu1 %v6604_v52, %s7189_s23  ;;  %v1436_v34 = vsel %vm7646_vm6, %v1434_v39, %v1435_v46  ;;  %v1426_v58 = vsel %vm7646_vm6, %v6429_v24, %v1425_v45  ;;  %v1427_v2 = vrot.slane %v1425_v45, 4  ;;  %v6432_v50 = vrot.slane %v6416_v35, 9  ;;  %v6418_v39 = vld [vmem:[%s7267_s7 + $0x60] sm:$0xe]  ;;  %v6417_v45 = vld [vmem:[%s7267_s7 + $0x54] sm:$0xe] }
  0xf3   : > { %v8409_v44 = vsel %vm2866_vm7, %v6532_v40, %v8317_v47  ;;  %v8413_v55 = vsel %vm2866_vm7, %v6531_v62, %v8343_v61  ;;  %v6606_v52 = vcombine.low %v1433_v33, %v1436_v34  ;;  %v1446_v53 = vrot.slane %v7819_v0, 5  ;;  %v2267_v40 = vpop.permute.xlu0 %2266  ;;  %v2273_v35 = vpop.permute.xlu1 %2272 }
  0xf4   : > { %2578 = vrot.lane.b32.xlu0 %v6603_v13, %s7189_s23  ;;  %v1429_v48 = vsel %vm7646_vm6, %v1427_v2, %v1428_v56  ;;  %v1449_v51 = vrot.slane %v8097_v6, 5  ;;  %v6431_v14 = vrot.slane %v6415_v18, 9  ;;  %v1439_v47 = vrot.slane %v7837_v57, 5  ;;  %v7113_v57 = vld [vmem:[%s7267_s7 + $0x7c] sm:$0xf] }
  0xf5   : > { %v6605_v61 = vcombine.low %v1426_v58, %v1429_v48  ;;  %v1447_v0 = vsel %vm7646_vm6, %v6432_v50, %v1446_v53  ;;  %v1448_v62 = vrot.slane %v1446_v53, 4  ;;  %v1442_v33 = vrot.slane %v8111_v12, 5  ;;  %v7115_v18 = vld [vmem:[%s7267_s7 + $0xa0] sm:$0xf]  ;;  %v7116_v58 = vld [vmem:[%s7267_s7 + $0x90] sm:$0xf] }
  0xf6   : > { %2584 = vrot.lane.b32.xlu1 %v6606_v52, %s7189_s23  ;;  %v8428_v6 = vsel %vm2866_vm7, %v6534_v26, %v8348_v4  ;;  %v6533_v49 = vcombine.low %v7112_v28, %v7113_v57  ;;  %v1440_v46 = vsel %vm7646_vm6, %v6431_v14, %v1439_v47  ;;  %v1441_v24 = vrot.slane %v1439_v47, 4  ;;  %v7114_v26 = vld [vmem:[%s7267_s7 + $0x9c] sm:$0xf]  ;;  %v7117_v2 = vld [vmem:[%s7267_s7 + $0x94] sm:$0xf] }
  0xf7   : > { %v1450_v12 = vsel %vm7646_vm6, %v1448_v62, %v1449_v51  ;;  %v6434_v13 = vrot.slane %v6418_v39, 9  ;;  %v1460_v56 = vrot.slane %v7850_v20, 5  ;;  %v1463_v4 = vrot.slane %v8126_v17, 5  ;;  %v6420_v52 = vld [vmem:[%s7267_s7 + $0x78] sm:$0xe] }
  0xf8   : > { %2582 = vrot.lane.b32.xlu0 %v6605_v61, %s7189_s23  ;;  %v6608_v22 = vcombine.low %v1447_v0, %v1450_v12  ;;  %v1443_v63 = vsel %vm7646_vm6, %v1441_v24, %v1442_v33  ;;  %v6536_v34 = vcombine.low %v7114_v26, %v7115_v18  ;;  %v6535_v50 = vcombine.low %v7116_v58, %v7117_v2  ;;  %v7118_v39 = vld [vmem:[%s7267_s7 + $0xb4] sm:$0xf]  ;;  %v7119_v61 = vld [vmem:[%s7267_s7 + $0xb8] sm:$0xf]  ;;  %v2271_v62 = vpop.permute.xlu0 %2270  ;;  %v6419_v33 = vld [vmem:[%s7267_s7 + $0x6c] sm:$0xe] }
  0xf9   : > { %v6607_v53 = vcombine.low %v1440_v46, %v1443_v63  ;;  %v1461_v20 = vsel %vm7646_vm6, %v6434_v13, %v1460_v56  ;;  %v1462_v17 = vrot.slane %v1460_v56, 4  ;;  %v6433_v48 = vrot.slane %v6417_v45, 9  ;;  %v2325_v46 = vpop.permute.xlu1 %2324  ;;  %v6422_v56 = vld [vmem:[%s7267_s7 + $0x90] sm:$0xe] }
  0xfa   : > { %v8451_v51 = vsel %vm2866_vm7, %v6533_v49, %v8378_v42  ;;  %2588 = vrot.lane.b32.xlu1 %v6608_v22, %s7189_s23  ;;  %v1453_v14 = vrot.slane %v7869_v9, 5  ;;  %v1456_v47 = vrot.slane %v8144_v3, 5  ;;  %v6538_v0 = vcombine.low %v7118_v39, %v7119_v61  ;;  %v7121_v22 = vld [vmem:[%s7267_s7 + $0xac] sm:$0xf] }
  0xfb   : > { %v1464_v28 = vsel %vm7646_vm6, %v1462_v17, %v1463_v4  ;;  %v6436_v57 = vrot.slane %v6420_v52, 9  ;;  %v1474_v42 = vrot.slane %v7881_v25, 5  ;;  %v1477_v49 = vrot.slane %v8164_v36, 5  ;;  %v7120_v4 = vld [vmem:[%s7267_s7 + $0xa8] sm:$0xf] }
  0xfc   : > { %2586 = vrot.lane.b32.xlu0 %v6607_v53, %s7189_s23  ;;  %v8466_v9 = vsel %vm2866_vm7, %v6536_v34, %v8387_v19  ;;  %v6610_v3 = vcombine.low %v1461_v20, %v1464_v28  ;;  %v1454_v24 = vsel %vm7646_vm6, %v6433_v48, %v1453_v14  ;;  %v1455_v45 = vrot.slane %v1453_v14, 4  ;;  %v2323_v18 = vpop.permute.xlu0 %2322  ;;  %v6421_v34 = vld [vmem:[%s7267_s7 + $0x84] sm:$0xe]  ;;  %v6424_v53 = vld [vmem:[%s7267_s7 + $0xa8] sm:$0xe] }
  0xfd   : > { %v8471_v12 = vsel %vm2866_vm7, %v6535_v50, %v2267_v40  ;;  %v1475_v25 = vsel %vm7646_vm6, %v6436_v57, %v1474_v42  ;;  %v1476_v36 = vrot.slane %v1474_v42, 4  ;;  %v6435_v13 = vrot.slane %v6419_v33, 9  ;;  %v2329_v52 = vpop.permute.xlu1 %2328  ;;  %v6423_v57 = vld [vmem:[%s7267_s7 + $0x9c] sm:$0xe] }
  0xfe   : > { %2592 = vrot.lane.b32.xlu1 %v6610_v3, %s7189_s23  ;;  %v1457_v19 = vsel %vm7646_vm6, %v1455_v45, %v1456_v47  ;;  %v6537_v63 = vcombine.low %v7120_v4, %v7121_v22  ;;  %v1467_v26 = vrot.slane %v7901_v41, 5  ;;  %v1470_v40 = vrot.slane %v8179_v32, 5  ;;  %v6425_v4 = vld [vmem:[%s7267_s7 + $0xb4] sm:$0xe] }
  0xff   : > { %v6609_v58 = vcombine.low %v1454_v24, %v1457_v19  ;;  %v8485_v2 = vsel %vm2866_vm7, %v6538_v0, %v2273_v35  ;;  %v1478_v50 = vsel %vm7646_vm6, %v1476_v36, %v1477_v49  ;;  %v6438_v48 = vrot.slane %v6422_v56, 9  ;;  %v6426_v36 = vld [vmem:[%s7267_s7 + $0xc0] sm:$0xe] }
 0x100   : > { %v6612_v20 = vcombine.low %v1475_v25, %v1478_v50  ;;  %v1468_v17 = vsel %vm7646_vm6, %v6435_v13, %v1467_v26  ;;  %v1469_v41 = vrot.slane %v1467_v26, 4  ;;  %v1488_v32 = vrot.slane %v7913_v54, 5  ;;  %v2327_v33 = vpop.permute.xlu0 %2326 }
 0x101   : > { %2590 = vrot.lane.b32.xlu0 %v6609_v58, %s7189_s23  ;;  %v1491_v35 = vrot.slane %v8208_v60, 5  ;;  %v6437_v14 = vrot.slane %v6421_v34, 9  ;;  %v1481_v47 = vrot.slane %v7932_v11, 5  ;;  %v8497_v39 = vsel %vm2866_vm7, %v6537_v63, %v2271_v62  ;;  %v2333_v42 = vpop.permute.xlu1 %2332 }
 0x102   : > { %2596 = vrot.lane.b32.xlu1 %v6612_v20, %s7189_s23  ;;  %v1471_v61 = vsel %vm7646_vm6, %v1469_v41, %v1470_v40  ;;  %v1484_v0 = vrot.slane %v8222_v38, 5  ;;  %v6440_v28 = vrot.slane %v6424_v53, 9  ;;  %v8506_v60 = vsel %vm2915_vm8, %v8304_v8, %v2325_v46 }
 0x103   : > { %v6611_v54 = vcombine.low %v1468_v17, %v1471_v61  ;;  %v1489_v11 = vsel %vm7646_vm6, %v6438_v48, %v1488_v32  ;;  %v1490_v62 = vrot.slane %v1488_v32, 4  ;;  %v1482_v49 = vsel %vm7646_vm6, %v6437_v14, %v1481_v47  ;;  %v6445_v32 = vld [vmem:[%s7267_s7 + $0x24] sm:$0xf] }
 0x104   : > { %v1483_v3 = vrot.slane %v1481_v47, 4  ;;  %v1502_v38 = vrot.slane %v7951_v27, 5  ;;  %v1505_v24 = vrot.slane %v8254_v7, 5  ;;  %v6439_v46 = vrot.slane %v6423_v57, 9  ;;  %v2331_v7 = vpop.permute.xlu0 %2330 }
 0x105   : > { %2594 = vrot.lane.b32.xlu0 %v6611_v54, %s7189_s23  ;;  %v1492_v8 = vsel %vm7646_vm6, %v1490_v62, %v1491_v35  ;;  %v1495_v45 = vrot.slane %v7970_v10, 5  ;;  %v1498_v25 = vrot.slane %v8272_v15, 5  ;;  %v8527_v22 = vsel %vm2915_vm8, %v8289_v30, %v2323_v18  ;;  %v2337_v26 = vpop.permute.xlu1 %2336  ;;  %v12287_v35 = vld [vmem:[#allocation14_spill] sm:$0xff] }
 0x106   : > { %v6614_v13 = vcombine.low %v1489_v11, %v1492_v8  ;;  %v1485_v56 = vsel %vm7646_vm6, %v1483_v3, %v1484_v0  ;;  %v1503_v27 = vsel %vm7646_vm6, %v6440_v28, %v1502_v38  ;;  %v1504_v19 = vrot.slane %v1502_v38, 4 }
 0x107   : > { %v6613_v63 = vcombine.low %v1482_v49, %v1485_v56  ;;  %v1496_v10 = vsel %vm7646_vm6, %v6439_v46, %v1495_v45  ;;  %v1497_v15 = vrot.slane %v1495_v45, 4  ;;  %v8534_v40 = vsel %vm2915_vm8, %v8293_v59, %v2329_v52  ;;  %v6443_v49 = vld [vmem:[%s7267_s7 + $0x18] sm:$0xf] }
 0x108   : > { %2600 = vrot.lane.b32.xlu1 %v6614_v13, %s7189_s23  ;;  %v1506_v34 = vsel %vm7646_vm6, %v1504_v19, %v1505_v24  ;;  %v6442_v58 = vrot.slane %v6426_v36, 9  ;;  %v1516_v30 = vrot.slane %v7989_v1, 5  ;;  %v1519_v53 = vrot.slane %v8296_v29, 5  ;;  %v2335_v48 = vpop.permute.xlu0 %2334  ;;  %v12288_v29 = vld [vmem:[#allocation7_spill] sm:$0xff] }
 0x109   : > { %2598 = vrot.lane.b32.xlu0 %v6613_v63, %s7189_s23  ;;  %v6616_v18 = vcombine.low %v1503_v27, %v1506_v34  ;;  %v1499_v50 = vsel %vm7646_vm6, %v1497_v15, %v1498_v25  ;;  %v6441_v20 = vrot.slane %v6425_v4, 9  ;;  %v1509_v41 = vrot.slane %v8024_v5, 5  ;;  %v2341_v0 = vpop.permute.xlu1 %2340  ;;  %v8584_v24 = vld [vmem:[%s7267_s7 + $0x1c] sm:$0xf]  ;;  %v8597_v4 = vld [vmem:[%s7267_s7 + $0x40] sm:$0xf] }
 0x10a   : > { %v6615_v17 = vcombine.low %v1496_v10, %v1499_v50  ;;  %v1517_v59 = vsel %vm7646_vm6, %v6442_v58, %v1516_v30  ;;  %v1518_v52 = vrot.slane %v1516_v30, 4  ;;  %v8549_v1 = vsel %vm2915_vm8, %v12287_v35, %v2327_v33  ;;  %v6449_v36 = vld [vmem:[%s7267_s7 + $0x3c] sm:$0xf]  ;;  %12290 = vst [vmem:[#allocation9_spill] sm:$0xff] %v8597_v4  ;;  %v6447_v34 = vld [vmem:[%s7267_s7 + $0x30] sm:$0xf] }
 0x10b   : > { %v8553_v14 = vsel %vm2915_vm8, %v8336_v37, %v2333_v42  ;;  %v1512_v47 = vrot.slane %v12288_v29, 5  ;;  %v1595_v61 = vshrl.u32 %v6445_v32, 16  ;;  %v1510_v28 = vsel %vm7646_vm6, %v6441_v20, %v1509_v41  ;;  %v8575_v42 = vld [vmem:[%s7267_s7 + $0x28] sm:$0xf]  ;;  %v8613_v50 = vld [vmem:[%s7267_s7 + $0x34] sm:$0xf] }
 0x10c   : > { %2604 = vrot.lane.b32.xlu1 %v6616_v18, %s7189_s23  ;;  %v1520_v5 = vsel %vm7646_vm6, %v1518_v52, %v1519_v53  ;;  %v1511_v33 = vrot.slane %v1509_v41, 4  ;;  %v1598_v57 = vshll.u32 %v6445_v32, 16  ;;  %v8564_v37 = vsel %vm2915_vm8, %v8352_v43, %v2331_v7  ;;  %12289 = vst [vmem:[#allocation8_spill] sm:$0xff] %v8575_v42  ;;  %12291 = vst [vmem:[#allocation11_spill] sm:$0xff] %v8613_v50  ;;  %v6453_v29 = vld [vmem:[%s7267_s7 + $0x54] sm:$0xf] }
 0x10d   : > { %2602 = vrot.lane.b32.xlu0 %v6615_v17, %s7189_s23  ;;  %v6618_v54 = vcombine.low %v1517_v59, %v1520_v5  ;;  %v8568_v11 = vsel %vm2915_vm8, %v8363_v21, %v2337_v26  ;;  %v8572_v62 = vsel %vm2915_vm8, %v8396_v16, %v2335_v48  ;;  %v8580_v38 = vrot.slane %v1595_v61, 4  ;;  %v2339_v21 = vpop.permute.xlu0 %2338  ;;  %v2345_v13 = vpop.permute.xlu1 %2344  ;;  %v6461_v43 = vld [vmem:[%s7267_s7 + $0x84] sm:$0xf] }
 0x10e   : > { %v1513_v3 = vsel %vm7646_vm6, %v1511_v33, %v1512_v47  ;;  %v1571_v8 = vshrl.u32 %v6443_v49, 16  ;;  %v8586_v45 = vrot.slane %v1598_v57, 5  ;;  %v1574_v25 = vshll.u32 %v6443_v49, 16 }
 0x10f   : > { %v6617_v46 = vcombine.low %v1510_v28, %v1513_v3  ;;  %v6620_v56 = vcombine.low %v6445_v32, %v8575_v42  ;;  %v6619_v63 = vcombine.low %v6443_v49, %v8584_v24  ;;  %v1643_v10 = vshrl.u32 %v6449_v36, 16  ;;  %v8628_v28 = vld [vmem:[%s7267_s7 + $0x58] sm:$0xf] }
 0x110   : > { %2608 = vrot.lane.b32.xlu1 %v6618_v54, %s7189_s23  ;;  %v8592_v27 = vrot.slane %v1571_v8, 4  ;;  %v1646_v15 = vshll.u32 %v6449_v36, 16  ;;  %v1652_v26 = vshll.u32 %v8597_v4, 16  ;;  %v8605_v58 = vsel %vm2915_vm8, %v8409_v44, %v2341_v0  ;;  %12292 = vst [vmem:[#allocation12_spill] sm:$0xff] %v8628_v28 }
 0x111   : > { %2606 = vrot.lane.b32.xlu0 %v6617_v46, %s7189_s23  ;;  %v8609_v30 = vsel %vm2915_vm8, %v8413_v55, %v2339_v21  ;;  %v1656_v18 = vshrl.u32 %v8597_v4, 16  ;;  %v1619_v53 = vshrl.u32 %v6447_v34, 16  ;;  %v2343_v20 = vpop.permute.xlu0 %2342  ;;  %v8615_v17 = vrot.slane %v1574_v25, 5  ;;  %v2349_v48 = vpop.permute.xlu1 %2348 }
 0x112   : > { %v1645_v59 = vrot.slane %v1643_v10, 4  ;;  %v1648_v52 = vrot.slane %v1646_v15, 5  ;;  %v1622_v41 = vshll.u32 %v6447_v34, 16  ;;  %v6622_v44 = vcombine.low %v6449_v36, %v8597_v4 }
 0x113   : > { %v1621_v55 = vrot.slane %v1619_v53, 4  ;;  %v1628_v32 = vshll.u32 %v8613_v50, 16  ;;  %v1632_v35 = vshrl.u32 %v8613_v50, 16  ;;  %v8623_v47 = vrot.slane %v1652_v26, 5  ;;  %v6451_v26 = vld [vmem:[%s7267_s7 + $0x48] sm:$0xf] }
 0x114   : > { %2676 = vrot.lane.b32.xlu1 %v6620_v56, %s7190_s24  ;;  %v1624_v0 = vrot.slane %v1622_v41, 5  ;;  %v6621_v5 = vcombine.low %v6447_v34, %v8613_v50  ;;  %v1649_v33 = vor.u32 %v1648_v52, %v1645_v59  ;;  %v8630_v57 = vrot.slane %v1656_v18, 4  ;;  %v8654_v59 = vld [vmem:[%s7267_s7 + $0x4c] sm:$0xf]  ;;  %v6455_v52 = vld [vmem:[%s7267_s7 + $0x60] sm:$0xf] }
 0x115   : > { %2674 = vrot.lane.b32.xlu0 %v6619_v63, %s7190_s24  ;;  %v8632_v54 = vrot.slane %v1628_v32, 5  ;;  %v2347_v3 = vpop.permute.xlu0 %2346  ;;  %v8635_v21 = vrot.slane %v1632_v35, 4  ;;  %v1691_v46 = vshrl.u32 %v6453_v29, 16  ;;  %v1694_v25 = vshll.u32 %v6453_v29, 16  ;;  %v8637_v36 = vpop.permute.xlu1 %2352  ;;  %12293 = vst [vmem:[#allocation5_spill] sm:$0xff] %v8654_v59 }
 0x116   : > { %v1625_v8 = vor.u32 %v1624_v0, %v1621_v55  ;;  %v8642_v56 = vsel %vm2915_vm8, %v8428_v6, %v2345_v13  ;;  %v1700_v63 = vshll.u32 %v8628_v28, 16  ;;  %v1704_v10 = vshrl.u32 %v8628_v28, 16 }
 0x117   : > { %v6624_v15 = vcombine.low %v6453_v29, %v8628_v28  ;;  %v8651_v34 = vsel %vm2915_vm8, %v8451_v51, %v2343_v20  ;;  %v1693_v18 = vrot.slane %v1691_v46, 4  ;;  %v1696_v53 = vrot.slane %v1694_v25, 5  ;;  %v6457_v20 = vld [vmem:[%s7267_s7 + $0x6c] sm:$0xf] }
 0x118   : > { %2680 = vrot.lane.b32.xlu1 %v6622_v44, %s7190_s24  ;;  %v1667_v6 = vshrl.u32 %v6451_v26, 16  ;;  %v8656_v13 = vrot.slane %v1649_v33, 4  ;;  %v1670_v41 = vshll.u32 %v6451_v26, 16  ;;  %v1676_v44 = vshll.u32 %v8654_v59, 16 }
 0x119   : > { %2678 = vrot.lane.b32.xlu0 %v6621_v5, %s7190_s24  ;;  %v2351_v55 = vpop.permute.xlu0 %2350  ;;  %v8660_v32 = vrot.slane %v1625_v8, 4  ;;  %v1697_v35 = vor.u32 %v1696_v53, %v1693_v18  ;;  %v8662_v29 = vrot.slane %v1700_v63, 5  ;;  %v8665_v0 = vpop.permute.xlu1 %2420  ;;  %v8667_v5 = vrot.slane %v1704_v10, 4  ;;  %v8673_v8 = vld [vmem:[%s7267_s7 + $0x70] sm:$0xf] }
 0x11a   : > { %v1669_v51 = vrot.slane %v1667_v6, 4  ;;  %v1672_v33 = vrot.slane %v1670_v41, 5  ;;  %v1680_v46 = vshrl.u32 %v8654_v59, 16  ;;  %v6623_v25 = vcombine.low %v6451_v26, %v8654_v59  ;;  %12294 = vst [vmem:[#allocation10_spill] sm:$0xff] %v8673_v8 }
 0x11b   : > { %v8675_v18 = vrot.slane %v1676_v44, 5  ;;  %v8680_v53 = vsel %vm2915_vm8, %v8466_v9, %v2349_v48  ;;  %v1739_v10 = vshrl.u32 %v6457_v20, 16  ;;  %v1748_v41 = vshll.u32 %v8673_v8, 16  ;;  %v8692_v9 = vld [vmem:[%s7267_s7 + $0x64] sm:$0xf] }
 0x11c   : > { %2684 = vrot.lane.b32.xlu1 %v6624_v15, %s7190_s24  ;;  %v1673_v6 = vor.u32 %v1672_v33, %v1669_v51  ;;  %v1742_v15 = vshll.u32 %v6457_v20, 16  ;;  %v1752_v26 = vshrl.u32 %v8673_v8, 16  ;;  %v8688_v44 = vrot.slane %v1697_v35, 4  ;;  %12295 = vst [vmem:[#allocation6_spill] sm:$0xff] %v8692_v9 }
 0x11d   : > { %2682 = vrot.lane.b32.xlu0 %v6623_v25, %s7190_s24  ;;  %v8686_v49 = vpop.permute.xlu0 %2418  ;;  %v1741_v63 = vrot.slane %v1739_v10, 4  ;;  %v6626_v61 = vcombine.low %v6457_v20, %v8673_v8  ;;  %v1715_v48 = vshrl.u32 %v6455_v52, 16  ;;  %v8694_v51 = vpop.permute.xlu1 %2424  ;;  %v8696_v33 = vrot.slane %v1680_v46, 4 }
 0x11e   : > { %v8700_v25 = vsel %vm2915_vm8, %v8471_v12, %v2347_v3  ;;  %v1744_v7 = vrot.slane %v1742_v15, 5  ;;  %v1718_v10 = vshll.u32 %v6455_v52, 16  ;;  %v1724_v20 = vshll.u32 %v8692_v9, 16  ;;  %v8715_v3 = vld [vmem:[%s7267_s7 + $0x88] sm:$0xf] }
 0x11f   : > { %12296 = vst [vmem:[#allocation13_spill] sm:$0xff] %v8700_v25  ;;  %v1717_v35 = vrot.slane %v1715_v48, 4  ;;  %v1728_v19 = vshrl.u32 %v8692_v9, 16  ;;  %v8707_v59 = vrot.slane %v1673_v6, 4  ;;  %v8709_v46 = vrot.slane %v1748_v41, 5  ;;  %12297 = vst [vmem:[#allocation14_spill] sm:$0xff] %v8715_v3 }
 0x120   : > { %2688 = vrot.lane.b32.xlu1 %v6626_v61, %s7190_s24  ;;  %v8711_v28 = vrot.slane %v1752_v26, 4  ;;  %v6625_v12 = vcombine.low %v6455_v52, %v8692_v9  ;;  %v1745_v61 = vor.u32 %v1744_v7, %v1741_v63  ;;  %v1720_v48 = vrot.slane %v1718_v10, 5  ;;  %v6459_v9 = vld [vmem:[%s7267_s7 + $0x78] sm:$0xf] }
 0x121   : > { %v8717_v15 = vpop.permute.xlu0 %2422  ;;  %v8723_v6 = vsel %vm2915_vm8, %v8485_v2, %v8637_v36  ;;  %v8725_v41 = vpop.permute.xlu1 %2428  ;;  %v8727_v26 = vrot.slane %v1724_v20, 5  ;;  %v1787_v52 = vshrl.u32 %v6461_v43, 16  ;;  %v1790_v8 = vshll.u32 %v6461_v43, 16 }
 0x122   : > { %12298 = vst [vmem:[#allocation7_spill] sm:$0xff] %v8723_v6  ;;  %2686 = vrot.lane.b32.xlu0 %v6625_v12, %s7190_s24  ;;  %v1796_v25 = vshll.u32 %v8715_v3, 16  ;;  %v1721_v7 = vor.u32 %v1720_v48, %v1717_v35  ;;  %v8731_v63 = vrot.slane %v1728_v19, 4  ;;  %v1800_v10 = vshrl.u32 %v8715_v3, 16  ;;  %v8741_v12 = vld [vmem:[%s7267_s7 + $0x7c] sm:$0xf] }
 0x123   : > { %v6628_v16 = vcombine.low %v6461_v43, %v8715_v3  ;;  %v8738_v2 = vsel %vm2915_vm8, %v8497_v39, %v2351_v55  ;;  %v1789_v36 = vrot.slane %v1787_v52, 4  ;;  %v1792_v20 = vrot.slane %v1790_v8, 5  ;;  %12301 = vst [vmem:[#allocation17_spill] sm:$0xff] %v8741_v12  ;;  %v8762_v3 = vld [vmem:[%s7267_s7 + $0xa0] sm:$0xf] }
 0x124   : > { %12299 = vst [vmem:[#allocation15_spill] sm:$0xff] %v8731_v63  ;;  %12300 = vst [vmem:[#allocation16_spill] sm:$0xff] %v8738_v2  ;;  %v1763_v50 = vshrl.u32 %v6459_v9, 16  ;;  %v8745_v19 = vrot.slane %v1745_v61, 4  ;;  %v1766_v43 = vshll.u32 %v6459_v9, 16  ;;  %v1772_v48 = vshll.u32 %v8741_v12, 16 }
 0x125   : > { %v8743_v4 = vpop.permute.xlu0 %2426  ;;  %2692 = vrot.lane.b32.xlu1 %v6628_v16, %s7190_s24  ;;  %v8750_v39 = vpop.permute.xlu1 %2432  ;;  %v1793_v55 = vor.u32 %v1792_v20, %v1789_v36  ;;  %v8752_v52 = vrot.slane %v1796_v25, 5  ;;  %v1776_v31 = vshrl.u32 %v8741_v12, 16  ;;  %v6465_v2 = vld [vmem:[%s7267_s7 + $0x9c] sm:$0xf]  ;;  %v8756_v6 = vrot.slane %v1721_v7, 4  ;;  %12305 = vst [vmem:[#allocation21_spill] sm:$0xff] %v8762_v3 }
 0x126   : > { %v1765_v8 = vrot.slane %v1763_v50, 4  ;;  %v8758_v61 = vrot.slane %v1800_v10, 4  ;;  %v1768_v35 = vrot.slane %v1766_v43, 5  ;;  %v6627_v16 = vcombine.low %v6459_v9, %v8741_v12  ;;  %v6463_v9 = vld [vmem:[%s7267_s7 + $0x90] sm:$0xf] }
 0x127   : > { %12302 = vst [vmem:[#allocation18_spill] sm:$0xff] %v8752_v52  ;;  %12303 = vst [vmem:[#allocation19_spill] sm:$0xff] %v8756_v6  ;;  %v8764_v63 = vrot.slane %v1793_v55, 4  ;;  %v8766_v36 = vrot.slane %v1772_v48, 5  ;;  %v1835_v7 = vshrl.u32 %v6465_v2, 16  ;;  %v1838_v10 = vshll.u32 %v6465_v2, 16 }
 0x128   : > { %12304 = vst [vmem:[#allocation20_spill] sm:$0xff] %v8758_v61  ;;  %v1769_v20 = vor.u32 %v1768_v35, %v1765_v8  ;;  %2690 = vrot.lane.b32.xlu0 %v6627_v16, %s7190_s24  ;;  %v1844_v43 = vshll.u32 %v8762_v3, 16  ;;  %v8776_v52 = vrot.slane %v1776_v31, 4  ;;  %v1848_v48 = vshrl.u32 %v8762_v3, 16  ;;  %v8781_v50 = vld [vmem:[%s7267_s7 + $0x94] sm:$0xf] }
 0x129   : > { %12306 = vst [vmem:[#allocation22_spill] sm:$0xff] %v8764_v63  ;;  %12307 = vst [vmem:[#allocation23_spill] sm:$0xff] %v8766_v36  ;;  %v8769_v25 = vpop.permute.xlu0 %2430  ;;  %v8774_v61 = vpop.permute.xlu1 %2436  ;;  %v6630_v55 = vcombine.low %v6465_v2, %v8762_v3  ;;  %v1811_v12 = vshrl.u32 %v6463_v9, 16  ;;  %v8786_v35 = vsel %vm2948_vm9, %v8506_v60, %v8665_v0  ;;  %v8791_v8 = vsel %vm2948_vm9, %v8527_v22, %v8686_v49  ;;  %v6469_v49 = vld [vmem:[%s7267_s7 + $0xb4] sm:$0xf] }
 0x12a   : > { %12308 = vst [vmem:[#allocation24_spill] sm:$0xff] %v8776_v52  ;;  %12309 = vst [vmem:[#allocation25_spill] sm:$0xff] %v8781_v50  ;;  %v1837_v31 = vrot.slane %v1835_v7, 4  ;;  %v1840_v16 = vrot.slane %v1838_v10, 5  ;;  %v1814_v36 = vshll.u32 %v6463_v9, 16  ;;  %v1820_v63 = vshll.u32 %v8781_v50, 16 }
 0x12b   : > { %12310 = vst [vmem:[#allocation26_spill] sm:$0xff] %v8786_v35  ;;  %12311 = vst [vmem:[#allocation27_spill] sm:$0xff] %v8791_v8  ;;  %2696 = vrot.lane.b32.xlu1 %v6630_v55, %s7190_s24  ;;  %v1813_v2 = vrot.slane %v1811_v12, 4  ;;  %v8798_v60 = vrot.slane %v1769_v20, 4  ;;  %v8800_v0 = vrot.slane %v1844_v43, 5  ;;  %v8802_v35 = vrot.slane %v1848_v48, 4 }
 0x12c   : > { %v6629_v22 = vcombine.low %v6463_v9, %v8781_v50  ;;  %v1841_v10 = vor.u32 %v1840_v16, %v1837_v31  ;;  %v1816_v55 = vrot.slane %v1814_v36, 5  ;;  %v1824_v12 = vshrl.u32 %v8781_v50, 16  ;;  %v8811_v3 = vld [vmem:[%s7267_s7 + $0xb8] sm:$0xf]  ;;  %v6467_v52 = vld [vmem:[%s7267_s7 + $0xa8] sm:$0xf] }
 0x12d   : > { %v8796_v6 = vpop.permute.xlu0 %2434  ;;  %12312 = vst [vmem:[#allocation28_spill] sm:$0xff] %v8798_v60  ;;  %12313 = vst [vmem:[#allocation29_spill] sm:$0xff] %v8800_v0  ;;  %v8806_v7 = vpop.permute.xlu1 %2440  ;;  %v8813_v20 = vrot.slane %v1820_v63, 5  ;;  %v8819_v43 = vsel %vm2948_vm9, %v8534_v40, %v8694_v51  ;;  %v1883_v9 = vshrl.u32 %v6469_v49, 16  ;;  %v1886_v48 = vshll.u32 %v6469_v49, 16 }
 0x12e   : > { %12314 = vst [vmem:[#allocation30_spill] sm:$0xff] %v8802_v35  ;;  %12315 = vst [vmem:[#allocation31_spill] sm:$0xff] %v8811_v3  ;;  %2694 = vrot.lane.b32.xlu0 %v6629_v22, %s7190_s24  ;;  %v1817_v31 = vor.u32 %v1816_v55, %v1813_v2  ;;  %v8824_v36 = vsel %vm2948_vm9, %v8549_v1, %v8717_v15  ;;  %v1892_v16 = vshll.u32 %v8811_v3, 16  ;;  %v1896_v63 = vshrl.u32 %v8811_v3, 16  ;;  %v8833_v51 = vld [vmem:[%s7267_s7 + $0xac] sm:$0xf] }
 0x12f   : > { %12316 = vst [vmem:[#allocation32_spill] sm:$0xff] %v8813_v20  ;;  %12317 = vst [vmem:[#allocation33_spill] sm:$0xff] %v8819_v43  ;;  %v1885_v22 = vrot.slane %v1883_v9, 4  ;;  %v1888_v20 = vrot.slane %v1886_v48, 5  ;;  %v6632_v40 = vcombine.low %v6469_v49, %v8811_v3  ;;  %v1859_v2 = vshrl.u32 %v6467_v52, 16 }
 0x130   : > { %12318 = vst [vmem:[#allocation34_spill] sm:$0xff] %v8824_v36  ;;  %12319 = vst [vmem:[#allocation35_spill] sm:$0xff] %v8833_v51  ;;  %v8837_v1 = vrot.slane %v1841_v10, 4  ;;  %v8839_v15 = vrot.slane %v1824_v12, 4  ;;  %v1862_v43 = vshll.u32 %v6467_v52, 16  ;;  %v8842_v8 = vrot.slane %v1817_v31, 4 }
 0x131   : > { %v8829_v50 = vpop.permute.xlu0 %2438  ;;  %v8835_v55 = vpop.permute.xlu1 %2444  ;;  %v1889_v35 = vor.u32 %v1888_v20, %v1885_v22  ;;  %2700 = vrot.lane.b32.xlu1 %v6632_v40, %s7190_s24  ;;  %v1861_v9 = vrot.slane %v1859_v2, 4  ;;  %v1868_v49 = vshll.u32 %v8833_v51, 16  ;;  %v6473_v48 = vld [vmem:[%s7267_s7 + $0xcc] sm:$0xf]  ;;  %v8847_v0 = vrot.slane %v1892_v16, 5 }
 0x132   : > { %12320 = vst [vmem:[#allocation36_spill] sm:$0xff] %v8839_v15  ;;  %v1864_v60 = vrot.slane %v1862_v43, 5  ;;  %v1872_v10 = vshrl.u32 %v8833_v51, 16  ;;  %v6631_v12 = vcombine.low %v6467_v52, %v8833_v51  ;;  %v8852_v15 = vld [vmem:[%s7267_s7 + $0xd0] sm:$0xf]  ;;  %v8858_v22 = vrot.slane %v1896_v63, 4 }
 0x133   : > { %12321 = vst [vmem:[#allocation37_spill] sm:$0xff] %v8852_v15  ;;  %v8856_v20 = vrot.slane %v1889_v35, 4  ;;  %v8864_v16 = vsel %vm2948_vm9, %v8553_v14, %v8725_v41  ;;  %v1931_v52 = vshrl.u32 %v6473_v48, 16  ;;  %v1934_v36 = vshll.u32 %v6473_v48, 16  ;;  %v6471_v35 = vld [vmem:[%s7267_s7 + $0xc0] sm:$0xf] }
 0x134   : > { %12323 = vst [vmem:[#allocation39_spill] sm:$0xff] %v8858_v22  ;;  %12324 = vst [vmem:[#allocation40_spill] sm:$0xff] %v8864_v16  ;;  %v1865_v2 = vor.u32 %v1864_v60, %v1861_v9  ;;  %2698 = vrot.lane.b32.xlu0 %v6631_v12, %s7190_s24  ;;  %v1940_v3 = vshll.u32 %v8852_v15, 16  ;;  %v1944_v63 = vshrl.u32 %v8852_v15, 16  ;;  %v6634_v40 = vcombine.low %v6473_v48, %v8852_v15  ;;  %v8876_v51 = vld [vmem:[%s7267_s7 + $0xc4] sm:$0xf] }
 0x135   : > { %v8854_v31 = vpop.permute.xlu0 %2442  ;;  %v8866_v43 = vpop.permute.xlu1 %2448  ;;  %12326 = vst [vmem:[#allocation42_spill] sm:$0xff] %v8876_v51  ;;  %v1907_v14 = vshrl.u32 %v6471_v35, 16  ;;  %v8878_v41 = vrot.slane %v1872_v10, 4  ;;  %v8883_v60 = vsel %vm2948_vm9, %v8564_v37, %v8743_v4  ;;  %v1933_v9 = vrot.slane %v1931_v52, 4 }
 0x136   : > { %12322 = vst [vmem:[#allocation38_spill] sm:$0xff] %v8854_v31  ;;  %v8871_v31 = vrot.slane %v1868_v49, 5  ;;  %12328 = vst [vmem:[#allocation44_spill] sm:$0xff] %v8883_v60  ;;  %v1936_v12 = vrot.slane %v1934_v36, 5  ;;  %v8887_v49 = vrot.slane %v1865_v2, 4  ;;  %2704 = vrot.lane.b32.xlu1 %v6634_v40, %s7190_s24  ;;  %v1910_v15 = vshll.u32 %v6471_v35, 16 }
 0x137   : > { %12327 = vst [vmem:[#allocation43_spill] sm:$0xff] %v8878_v41  ;;  %v1909_v48 = vrot.slane %v1907_v14, 4  ;;  %v8893_v22 = vrot.slane %v1940_v3, 5  ;;  %v1920_v37 = vshrl.u32 %v8876_v51, 16  ;;  %v6633_v4 = vcombine.low %v6471_v35, %v8876_v51  ;;  %v8898_v36 = vld [vmem:[%s7267_s7 + $0x2c] sm:$0x1] }
 0x138   : > { %12325 = vst [vmem:[#allocation41_spill] sm:$0xff] %v8871_v31  ;;  %v1916_v31 = vshll.u32 %v8876_v51, 16  ;;  %v1937_v41 = vor.u32 %v1936_v12, %v1933_v9  ;;  %v8900_v2 = vrot.slane %v1944_v63, 4  ;;  %v1912_v52 = vrot.slane %v1910_v15, 5 }
 0x139   : > { %v8885_v16 = vpop.permute.xlu0 %2446  ;;  %v8891_v10 = vpop.permute.xlu1 %2500  ;;  %v8907_v14 = vsel %vm2948_vm9, %v8568_v11, %v8750_v39  ;;  %2702 = vrot.lane.b32.xlu0 %v6633_v4, %s7190_s24  ;;  %v8915_v3 = vsel %vm2948_vm9, %v8572_v62, %v8769_v25  ;;  %v1601_v35 = vor.u32 %v8586_v45, %v8580_v38  ;;  %v1604_v15 = vshll.u32 %v8575_v42, 16 }
 0x13a   : > { %v8902_v40 = vrot.slane %v1916_v31, 5  ;;  %12329 = vst [vmem:[#allocation45_spill] sm:$0xff] %v8907_v14  ;;  %v8909_v60 = vrot.slane %v1937_v41, 4  ;;  %12330 = vst [vmem:[#allocation46_spill] sm:$0xff] %v8915_v3  ;;  %v8921_v31 = vld [vmem:[%s7267_s7 + $0x20] sm:$0x1]  ;;  %v1913_v11 = vor.u32 %v1912_v52, %v1909_v48  ;;  %v1577_v38 = vor.u32 %v8615_v17, %v8592_v27 }
 0x13b   : > { %v8925_v39 = vrot.slane %v1920_v37, 4  ;;  %v12332_v41 = vshrl.u32 %v8575_v42, 16  ;;  %v1614_v12 = vshll.u32 %v8898_v36, 16  ;;  %v1602_v25 = vrot.slane %v1601_v35, 4 }
 0x13c   : > { %v1606_v4 = vrot.slane %v1604_v15, 5  ;;  %v1580_v45 = vshll.u32 %v8584_v24, 16  ;;  %v8935_v51 = vrot.slane %v1913_v11, 4  ;;  %v12333_v37 = vshrl.u32 %v8584_v24, 16  ;;  %v8942_v15 = vld [vmem:[%s7267_s7 + $0x44] sm:$0x1] }
 0x13d   : > { %v8923_v63 = vpop.permute.xlu0 %2498  ;;  %12331 = vst [vmem:[#allocation47_spill] sm:$0xff] %v8925_v39  ;;  %v1610_v9 = vrot.slane %v12332_v41, 4  ;;  %v8930_v62 = vpop.permute.xlu1 %2504  ;;  %v1590_v41 = vshll.u32 %v8921_v31, 16  ;;  %v1616_v3 = vrot.slane %v1614_v12, 5  ;;  %v1578_v14 = vrot.slane %v1577_v38, 4 }
 0x13e   : > { %v1586_v52 = vrot.slane %v12333_v37, 4  ;;  %v1582_v35 = vrot.slane %v1580_v45, 5  ;;  %v1607_v27 = vsel %vm7425_vm3, %v1602_v25, %v1606_v4  ;;  %v8952_v37 = vsel %vm2948_vm9, %v8605_v58, %v8774_v61 }
 0x13f   : > { %v1611_v42 = vor.u32 %v1610_v9, %v1606_v4  ;;  %v1592_v17 = vrot.slane %v1590_v41, 5  ;;  %v8955_v9 = vld [vmem:[%s7267_s7 + $0x38] sm:$0x1]  ;;  %v8964_v25 = vsel %vm2948_vm9, %v8609_v30, %v8796_v6  ;;  %v1655_v58 = vsel %vm7425_vm3, %v8656_v13, %v8623_v47  ;;  %v8983_v6 = vld [vmem:[%s7267_s7 + $0x5c] sm:$0x1] }
 0x140   : > { %v1583_v45 = vsel %vm7425_vm3, %v1578_v14, %v1582_v35  ;;  %v1587_v48 = vor.u32 %v1586_v52, %v1582_v35  ;;  %v1659_v61 = vor.u32 %v8630_v57, %v8623_v47  ;;  %v1662_v4 = vshll.u32 %v8942_v15, 16 }
 0x141   : > { %v8944_v39 = vpop.permute.xlu0 %2502  ;;  %v8957_v12 = vpop.permute.xlu1 %2508  ;;  %v1612_v38 = vrot.slane %v1611_v42, 4  ;;  %v1635_v42 = vor.u32 %v8635_v21, %v8632_v54  ;;  %v1631_v30 = vsel %vm7425_vm3, %v8660_v32, %v8632_v54  ;;  %v1638_v13 = vshll.u32 %v8955_v9, 16 }
 0x142   : > { %v1588_v52 = vrot.slane %v1587_v48, 4  ;;  %v1660_v41 = vrot.slane %v1659_v61, 4  ;;  %v1664_v35 = vrot.slane %v1662_v4, 5  ;;  %v8994_v54 = vsel %vm2948_vm9, %v8642_v56, %v8806_v7  ;;  %v9019_v4 = vld [vmem:[%s7267_s7 + $0x74] sm:$0x1] }
 0x143   : > { %v1617_v14 = vsel %vm7425_vm3, %v1612_v38, %v1616_v3  ;;  %v1636_v21 = vrot.slane %v1635_v42, 4  ;;  %v1640_v48 = vrot.slane %v1638_v13, 5  ;;  %v8999_v32 = vsel %vm2948_vm9, %v8651_v34, %v8829_v50  ;;  %v9026_v13 = vld [vmem:[%s7267_s7 + $0x68] sm:$0x1] }
 0x144   : > { %v6636_v57 = vcombine.low %v1607_v27, %v1617_v14  ;;  %v1593_v3 = vsel %vm7425_vm3, %v1588_v52, %v1592_v17  ;;  %v9002_v27 = vld [vmem:[%s7267_s7 + $0x50] sm:$0x1]  ;;  %v1665_v17 = vsel %vm7425_vm3, %v1660_v41, %v1664_v35  ;;  %v1707_v61 = vor.u32 %v8667_v5, %v8662_v29 }
 0x145   : > { %v8985_v47 = vpop.permute.xlu0 %2506  ;;  %v8987_v11 = vpop.permute.xlu1 %2512  ;;  %v6635_v38 = vcombine.low %v1583_v45, %v1593_v3  ;;  %v1710_v56 = vshll.u32 %v8983_v6, 16  ;;  %v6638_v7 = vcombine.low %v1655_v58, %v1665_v17  ;;  %v1641_v34 = vsel %vm7425_vm3, %v1636_v21, %v1640_v48  ;;  %v12335_v21 = vld [vmem:[#allocation15_spill] sm:$0xff] }
 0x146   : > { %2756 = vrot.lane.b32.xlu1 %v6636_v57, %s7191_s25  ;;  %v1703_v50 = vsel %vm7425_vm3, %v8688_v44, %v8662_v29  ;;  %v1683_v45 = vor.u32 %v8696_v33, %v8675_v18  ;;  %v6637_v5 = vcombine.low %v1631_v30, %v1641_v34  ;;  %v1708_v14 = vrot.slane %v1707_v61, 4  ;;  %v12336_v61 = vld [vmem:[#allocation7_spill] sm:$0xff] }
 0x147   : > { %2754 = vrot.lane.b32.xlu0 %v6635_v38, %s7191_s25  ;;  %v1712_v58 = vrot.slane %v1710_v56, 5  ;;  %v1686_v52 = vshll.u32 %v9002_v27, 16  ;;  %v1679_v29 = vsel %vm7425_vm3, %v8707_v59, %v8675_v18  ;;  %v9035_v33 = vsel %vm2948_vm9, %v8680_v53, %v8835_v55  ;;  %v12334_v55 = vld [vmem:[#allocation19_spill] sm:$0xff]  ;;  %v9057_v38 = vld [vmem:[%s7267_s7 + $0x8c] sm:$0x1] }
 0x148   : > { %v1684_v44 = vrot.slane %v1683_v45, 4  ;;  %v1751_v30 = vsel %vm7425_vm3, %v8745_v19, %v8709_v46  ;;  %v1755_v59 = vor.u32 %v8711_v28, %v8709_v46  ;;  %v1758_v18 = vshll.u32 %v9019_v4, 16 }
 0x149   : > { %v9021_v42 = vpop.permute.xlu0 %2510  ;;  %v1713_v57 = vsel %vm7425_vm3, %v1708_v14, %v1712_v58  ;;  %v1688_v41 = vrot.slane %v1686_v52, 5  ;;  %v9047_v35 = vpop.permute.xlu1 %2516  ;;  %v1727_v19 = vsel %vm7425_vm3, %v12334_v55, %v8727_v26  ;;  %v1731_v3 = vor.u32 %v12335_v21, %v8727_v26  ;;  %v12337_v26 = vld [vmem:[#allocation16_spill] sm:$0xff]  ;;  %v12339_v52 = vld [vmem:[#allocation22_spill] sm:$0xff] }
 0x14a   : > { %2760 = vrot.lane.b32.xlu1 %v6638_v7, %s7191_s25  ;;  %v6640_v53 = vcombine.low %v1703_v50, %v1713_v57  ;;  %v1734_v48 = vshll.u32 %v9026_v13, 16  ;;  %v1756_v46 = vrot.slane %v1755_v59, 4  ;;  %v1760_v17 = vrot.slane %v1758_v18, 5  ;;  %v9073_v14 = vld [vmem:[%s7267_s7 + $0x80] sm:$0x1]  ;;  %v12341_v18 = vld [vmem:[#allocation23_spill] sm:$0xff] }
 0x14b   : > { %2758 = vrot.lane.b32.xlu0 %v6637_v5, %s7191_s25  ;;  %v1689_v28 = vsel %vm7425_vm3, %v1684_v44, %v1688_v41  ;;  %v9065_v56 = vsel %vm2948_vm9, %v12336_v61, %v8866_v43  ;;  %v1732_v34 = vrot.slane %v1731_v3, 4  ;;  %v9070_v45 = vsel %vm2948_vm9, %v12337_v26, %v8885_v16  ;;  %v12338_v43 = vld [vmem:[#allocation18_spill] sm:$0xff]  ;;  %v12340_v44 = vld [vmem:[#allocation20_spill] sm:$0xff] }
 0x14c   : > { %v6639_v7 = vcombine.low %v1679_v29, %v1689_v28  ;;  %v1736_v50 = vrot.slane %v1734_v48, 5  ;;  %v1761_v58 = vsel %vm7425_vm3, %v1756_v46, %v1760_v17  ;;  %v1799_v29 = vsel %vm7425_vm3, %v12339_v52, %v12338_v43  ;;  %v12343_v21 = vld [vmem:[#allocation24_spill] sm:$0xff] }
 0x14d   : > { %v9075_v5 = vpop.permute.xlu0 %2514  ;;  %v1803_v57 = vor.u32 %v12340_v44, %v12338_v43  ;;  %v1806_v16 = vshll.u32 %v9057_v38, 16  ;;  %v6642_v41 = vcombine.low %v1751_v30, %v1761_v58  ;;  %v1779_v3 = vor.u32 %v12343_v21, %v12341_v18  ;;  %v9098_v61 = vld [vmem:[%s7267_s7 + $0xa4] sm:$0x1]  ;;  %v12345_v58 = vld [vmem:[#allocation30_spill] sm:$0xff] }
 0x14e   : > { %2764 = vrot.lane.b32.xlu1 %v6640_v53, %s7191_s25  ;;  %v1737_v59 = vsel %vm7425_vm3, %v1732_v34, %v1736_v50  ;;  %v12342_v53 = vld [vmem:[#allocation28_spill] sm:$0xff]  ;;  %v1782_v17 = vshll.u32 %v9073_v14, 16  ;;  %v12344_v50 = vld [vmem:[#allocation29_spill] sm:$0xff]  ;;  %v12346_v44 = vld [vmem:[#allocation26_spill] sm:$0xff]  ;;  %vm3113_vm14 = vcmask 261120   ;;  %vm3207_vm15 = vcmask (!%p6667_p10), 293888  }
 0x14f   : > { %v1775_v55 = vsel %vm7425_vm3, %v12342_v53, %v12341_v18  ;;  %2762 = vrot.lane.b32.xlu0 %v6639_v7, %s7191_s25  ;;  %v6641_v48 = vcombine.low %v1727_v19, %v1737_v59  ;;  %v1804_v28 = vrot.slane %v1803_v57, 4  ;;  %v1808_v46 = vrot.slane %v1806_v16, 5  ;;  %v9109_v19 = vld [vmem:[%s7267_s7 + $0x98] sm:$0x1] }
 0x150   : > { %v1780_v34 = vrot.slane %v1779_v3, 4  ;;  %v1847_v26 = vsel %vm7425_vm3, %v8837_v1, %v12344_v50  ;;  %v1851_v7 = vor.u32 %v12345_v58, %v12344_v50  ;;  %v1784_v52 = vrot.slane %v1782_v17, 5  ;;  %v12347_v16 = vld [vmem:[#allocation27_spill] sm:$0xff]  ;;  %v12350_v17 = vld [vmem:[#allocation33_spill] sm:$0xff] }
 0x151   : > { %v9100_v30 = vpop.permute.xlu1 %2520  ;;  %v1809_v43 = vsel %vm7425_vm3, %v1804_v28, %v1808_v46  ;;  %v9117_v57 = vsel %vm2981_vm10, %v12346_v44, %v8891_v10  ;;  %v9122_v1 = vsel %vm2981_vm10, %v12347_v16, %v8923_v63  ;;  %v1854_v53 = vshll.u32 %v9098_v61, 16  ;;  %v9130_v3 = vld [vmem:[%s7267_s7 + $0xbc] sm:$0x1]  ;;  %v12349_v63 = vld [vmem:[#allocation36_spill] sm:$0xff] }
 0x152   : > { %2768 = vrot.lane.b32.xlu1 %v6642_v41, %s7191_s25  ;;  %v6644_v59 = vcombine.low %v1799_v29, %v1809_v43  ;;  %v1852_v18 = vrot.slane %v1851_v7, 4  ;;  %v12348_v41 = vld [vmem:[#allocation32_spill] sm:$0xff]  ;;  %v1785_v10 = vsel %vm7425_vm3, %v1780_v34, %v1784_v52  ;;  %v1830_v46 = vshll.u32 %v9109_v19, 16  ;;  %v12351_v43 = vld [vmem:[#allocation34_spill] sm:$0xff]  ;;  %v12352_v44 = vld [vmem:[#allocation39_spill] sm:$0xff] }
 0x153   : > { %v1823_v21 = vsel %vm7425_vm3, %v8842_v8, %v12348_v41  ;;  %v9132_v28 = vpop.permute.xlu0 %2518  ;;  %2766 = vrot.lane.b32.xlu0 %v6641_v48, %s7191_s25  ;;  %v1827_v29 = vor.u32 %v12349_v63, %v12348_v41  ;;  %v9143_v50 = vsel %vm2981_vm10, %v12350_v17, %v8930_v62  ;;  %v9146_v8 = vld [vmem:[%s7267_s7 + $0xb0] sm:$0x1]  ;;  %v6643_v58 = vcombine.low %v1775_v55, %v1785_v10  ;;  %v12353_v41 = vld [vmem:[#allocation41_spill] sm:$0xff] }
 0x154   : > { %v1856_v7 = vrot.slane %v1854_v53, 5  ;;  %v9151_v48 = vsel %vm2981_vm10, %v12351_v43, %v8944_v39  ;;  %v1895_v34 = vsel %vm7425_vm3, %v8856_v20, %v8847_v0  ;;  %v1832_v62 = vrot.slane %v1830_v46, 5 }
 0x155   : > { %v1828_v52 = vrot.slane %v1827_v29, 4  ;;  %v1899_v16 = vor.u32 %v12352_v44, %v8847_v0  ;;  %v1902_v55 = vshll.u32 %v9130_v3, 16  ;;  %v1871_v20 = vsel %vm7425_vm3, %v8887_v49, %v12353_v41  ;;  %v12355_v44 = vld [vmem:[#allocation40_spill] sm:$0xff] }
 0x156   : > { %2772 = vrot.lane.b32.xlu1 %v6644_v59, %s7191_s25  ;;  %v1857_v39 = vsel %vm7425_vm3, %v1852_v18, %v1856_v7  ;;  %v12354_v59 = vld [vmem:[#allocation43_spill] sm:$0xff]  ;;  %v1878_v63 = vshll.u32 %v9146_v8, 16  ;;  %v9176_v18 = vld [vmem:[%s7267_s7 + $0xd4] sm:$0x1]  ;;  %vm3240_vm0 = vcmask (!%p6667_p10), 1041408  }
 0x157   : > { %v1875_v10 = vor.u32 %v12354_v59, %v12353_v41  ;;  %2770 = vrot.lane.b32.xlu0 %v6643_v58, %s7191_s25  ;;  %v6646_v0 = vcombine.low %v1847_v26, %v1857_v39  ;;  %v1833_v29 = vsel %vm7425_vm3, %v1828_v52, %v1832_v62  ;;  %v1900_v46 = vrot.slane %v1899_v16, 4  ;;  %v9184_v59 = vld [vmem:[%s7267_s7 + $0xc8] sm:$0x1]  ;;  %v12356_v52 = vld [vmem:[#allocation44_spill] sm:$0xff] }
 0x158   : > { %v9161_v53 = vpop.permute.xlu1 %2524  ;;  %v1904_v17 = vrot.slane %v1902_v55, 5  ;;  %v6645_v7 = vcombine.low %v1823_v21, %v1833_v29  ;;  %v1880_v49 = vrot.slane %v1878_v63, 5  ;;  %v9181_v41 = vsel %vm2981_vm10, %v12355_v44, %v8957_v12  ;;  %v6492_v16 = vld [vmem:[%s7267_s7 + $0x24] sm:$0xe]  ;;  %v6491_v63 = vld [vmem:[%s7267_s7 + $0x18] sm:$0xe] }
 0x159   : > { %v1876_v43 = vrot.slane %v1875_v10, 4  ;;  %v9194_v21 = vsel %vm2981_vm10, %v12356_v52, %v8985_v47  ;;  %v1943_v12 = vsel %vm7425_vm3, %v8909_v60, %v8893_v22  ;;  %v1947_v62 = vor.u32 %v8900_v2, %v8893_v22  ;;  %v12357_v29 = vld [vmem:[#allocation47_spill] sm:$0xff]  ;;  %v12360_v44 = vld [vmem:[#allocation8_spill] sm:$0xff] }
 0x15a   : > { %2776 = vrot.lane.b32.xlu1 %v6646_v0, %s7191_s25  ;;  %v1905_v58 = vsel %vm7425_vm3, %v1900_v46, %v1904_v17  ;;  %v1950_v10 = vshll.u32 %v9176_v18, 16  ;;  %v1919_v47 = vsel %vm7425_vm3, %v8935_v51, %v8902_v40  ;;  %v1923_v22 = vor.u32 %v12357_v29, %v8902_v40  ;;  %v12358_v17 = vld [vmem:[#allocation45_spill] sm:$0xff]  ;;  %v12359_v51 = vld [vmem:[#allocation46_spill] sm:$0xff] }
 0x15b   : > { %v9186_v26 = vpop.permute.xlu0 %2522  ;;  %v6648_v55 = vcombine.low %v1895_v34, %v1905_v58  ;;  %v1881_v39 = vsel %vm7425_vm3, %v1876_v43, %v1880_v49  ;;  %2774 = vrot.lane.b32.xlu0 %v6645_v7, %s7191_s25  ;;  %v1948_v60 = vrot.slane %v1947_v62, 4  ;;  %v1926_v2 = vshll.u32 %v9184_v59, 16 }
 0x15c   : > { %v6647_v0 = vcombine.low %v1871_v20, %v1881_v39  ;;  %v1952_v46 = vrot.slane %v1950_v10, 5  ;;  %v9220_v43 = vsel %vm2981_vm10, %v12358_v17, %v8987_v11  ;;  %v9225_v7 = vsel %vm2981_vm10, %v12359_v51, %v9021_v42 }
 0x15d   : > { %v6508_v20 = vrot.slane %v6492_v16, 9  ;;  %v1924_v40 = vrot.slane %v1923_v22, 4  ;;  %v1928_v49 = vrot.slane %v1926_v2, 5  ;;  %v12361_v58 = vrot.slane %v12360_v44, 5  ;;  %v6494_v22 = vld [vmem:[%s7267_s7 + $0x3c] sm:$0xe] }
 0x15e   : > { %2780 = vrot.lane.b32.xlu1 %v6648_v55, %s7191_s25  ;;  %v6507_v62 = vrot.slane %v6491_v63, 9  ;;  %v1953_v39 = vsel %vm7425_vm3, %v1948_v60, %v1952_v46  ;;  %v12364_v42 = vrot.slane %v8584_v24, 5  ;;  %v9241_v55 = vsel %vm2981_vm10, %v8952_v37, %v9047_v35  ;;  %v6493_v35 = vld [vmem:[%s7267_s7 + $0x30] sm:$0xe]  ;;  %v6496_v24 = vld [vmem:[%s7267_s7 + $0x54] sm:$0xe] }
 0x15f   : > { %v2029_v52 = vrot.slane %v12361_v58, 4  ;;  %v12362_v11 = vmov %v12361_v58  ;;  %2778 = vrot.lane.b32.xlu0 %v6647_v0, %s7191_s25  ;;  %v6650_v63 = vcombine.low %v1943_v12, %v1953_v39  ;;  %v1929_v60 = vsel %vm7425_vm3, %v1924_v40, %v1928_v49  ;;  %v12368_v58 = vld [vmem:[#allocation9_spill] sm:$0xff] }
 0x160   : > { %v9215_v34 = vpop.permute.xlu1 %2528  ;;  %v2028_v29 = vsel %vm7646_vm6, %v6508_v20, %v12362_v11  ;;  %v2022_v16 = vrot.slane %v12364_v42, 4  ;;  %v12365_v46 = vrot.slane %v8898_v36, 5  ;;  %v12366_v51 = vmov %v12364_v42 }
 0x161   : > { %v2021_v37 = vsel %vm7646_vm6, %v6507_v62, %v12366_v51  ;;  %v6649_v44 = vcombine.low %v1919_v47, %v1929_v60  ;;  %v12367_v12 = vrot.slane %v8921_v31, 5  ;;  %v9267_v36 = vsel %vm2981_vm10, %v8964_v25, %v9075_v5  ;;  %v12370_v31 = vld [vmem:[#allocation11_spill] sm:$0xff]  ;;  %v6495_v5 = vld [vmem:[%s7267_s7 + $0x48] sm:$0xe]  ;;  %v12373_v60 = vld [vmem:[#allocation38_spill] sm:$0xff] }
 0x162   : > { %v9244_v2 = vpop.permute.xlu0 %2526  ;;  %v2031_v17 = vsel %vm7646_vm6, %v2029_v52, %v12365_v46  ;;  %2784 = vrot.lane.b32.xlu1 %v6650_v63, %s7191_s25  ;;  %v6510_v49 = vrot.slane %v6494_v22, 9  ;;  %v12369_v52 = vrot.slane %v12368_v58, 5  ;;  %v2044_v47 = vrot.slane %v8942_v15, 5  ;;  %v12374_v46 = vld [vmem:[#allocation13_spill] sm:$0xff] }
 0x163   : > { %v6652_v0 = vcombine.low %v2028_v29, %v2031_v17  ;;  %v2024_v23 = vsel %vm7646_vm6, %v2022_v16, %v12367_v12  ;;  %v6509_v39 = vrot.slane %v6493_v35, 9  ;;  %v12371_v11 = vrot.slane %v12370_v31, 5  ;;  %2782 = vrot.lane.b32.xlu0 %v6649_v44, %s7191_s25  ;;  %v12376_v44 = vld [vmem:[#allocation12_spill] sm:$0xff] }
 0x164   : > { %v9258_v20 = vpop.permute.xlu1 %2580  ;;  %v6651_v40 = vcombine.low %v2021_v37, %v2024_v23  ;;  %v2043_v62 = vrot.slane %v12369_v52, 4  ;;  %v2037_v42 = vrot.slane %v8955_v9, 5  ;;  %v9280_v25 = vsel %vm2981_vm10, %v8994_v54, %v9100_v30 }
 0x165   : > { %v2036_v29 = vrot.slane %v12371_v11, 4  ;;  %v12372_v22 = vmov %v12369_v52  ;;  %v9295_v9 = vsel %vm2981_vm10, %v8999_v32, %v9132_v28  ;;  %v6512_v54 = vrot.slane %v6496_v24, 9  ;;  %v6498_v32 = vld [vmem:[%s7267_s7 + $0x6c] sm:$0xe] }
 0x166   : > { %v9283_v16 = vpop.permute.xlu0 %2578  ;;  %v2042_v15 = vsel %vm7646_vm6, %v6510_v49, %v12372_v22  ;;  %v2045_v63 = vsel %vm7646_vm6, %v2043_v62, %v2044_v47  ;;  %v2974_v17 = vsel %vm2948_vm9, %v12374_v46, %v12373_v60  ;;  %v12375_v51 = vmov %v12371_v11  ;;  %2836 = vrot.lane.b32.xlu1 %v6652_v0, %s7192_s26  ;;  %v6497_v62 = vld [vmem:[%s7267_s7 + $0x60] sm:$0xe]  ;;  %v12379_v47 = vld [vmem:[#allocation5_spill] sm:$0xff]  ;;  %v6500_v60 = vld [vmem:[%s7267_s7 + $0x84] sm:$0xe] }
 0x167   : > { %v2035_v37 = vsel %vm7646_vm6, %v6509_v39, %v12375_v51  ;;  %v2038_v35 = vsel %vm7646_vm6, %v2036_v29, %v2037_v42  ;;  %v12377_v12 = vrot.slane %v12376_v44, 5  ;;  %v6654_v28 = vcombine.low %v2042_v15, %v2045_v63  ;;  %2834 = vrot.lane.b32.xlu0 %v6651_v40, %s7192_s26  ;;  %v12381_v15 = vld [vmem:[#allocation10_spill] sm:$0xff] }
 0x168   : > { %v9297_v30 = vpop.permute.xlu1 %2584  ;;  %v2058_v58 = vrot.slane %v8983_v6, 5  ;;  %v6511_v52 = vrot.slane %v6495_v5, 9  ;;  %v12380_v39 = vrot.slane %v12379_v47, 5  ;;  %v2051_v11 = vrot.slane %v9002_v27, 5 }
 0x169   : > { %v2057_v23 = vrot.slane %v12377_v12, 4  ;;  %v12378_v24 = vmov %v12377_v12  ;;  %v9324_v0 = vsel %vm2981_vm10, %v9035_v33, %v9161_v53  ;;  %v9328_v29 = vsel %vm2981_vm10, %v2974_v17, %v9186_v26  ;;  %v12384_v17 = vld [vmem:[#allocation37_spill] sm:$0xff] }
 0x16a   : > { %v2056_v49 = vsel %vm7646_vm6, %v6512_v54, %v12378_v24  ;;  %v2050_v31 = vrot.slane %v12380_v39, 4  ;;  %v2583_v42 = vpop.permute.xlu0 %2582  ;;  %v6653_v6 = vcombine.low %v2035_v37, %v2038_v35  ;;  %v6514_v22 = vrot.slane %v6498_v32, 9  ;;  %2840 = vrot.lane.b32.xlu1 %v6654_v28, %s7192_s26  ;;  %v12385_v35 = vld [vmem:[#allocation6_spill] sm:$0xff]  ;;  %v6499_v32 = vld [vmem:[%s7267_s7 + $0x78] sm:$0xe] }
 0x16b   : > { %v2059_v5 = vsel %vm7646_vm6, %v2057_v23, %v2058_v58  ;;  %v12382_v27 = vrot.slane %v12381_v15, 5  ;;  %v12383_v54 = vmov %v12380_v39  ;;  %v2072_v26 = vrot.slane %v9019_v4, 5 }
 0x16c   : > { %v2049_v33 = vsel %vm7646_vm6, %v6511_v52, %v12383_v54  ;;  %v2052_v53 = vsel %vm7646_vm6, %v2050_v31, %v2051_v11  ;;  %v6513_v40 = vrot.slane %v6497_v62, 9  ;;  %v9343_v46 = vpop.permute.xlu1 %2588  ;;  %v2125_v51 = vrot.slane %v12384_v17, 5  ;;  %2838 = vrot.lane.b32.xlu0 %v6653_v6, %s7192_s26  ;;  %v12389_v31 = vld [vmem:[#allocation14_spill] sm:$0xff]  ;;  %v12391_v6 = vld [vmem:[#allocation17_spill] sm:$0xff] }
 0x16d   : > { %v2071_v63 = vrot.slane %v12382_v27, 4  ;;  %v6656_v37 = vcombine.low %v2056_v49, %v2059_v5  ;;  %v12386_v44 = vrot.slane %v12385_v35, 5  ;;  %v2065_v23 = vrot.slane %v9026_v13, 5  ;;  %v6504_v35 = vld [vmem:[%s7267_s7 + $0xb4] sm:$0xe] }
 0x16e   : > { %v12387_v24 = vmov %v12382_v27  ;;  %v9360_v52 = vsel %vm2981_vm10, %v9065_v56, %v9215_v34  ;;  %v9365_v28 = vsel %vm2981_vm10, %v9070_v45, %v9244_v2  ;;  %v2587_v13 = vpop.permute.xlu0 %2586  ;;  %v6655_v49 = vcombine.low %v2049_v33, %v2052_v53  ;;  %v6502_v34 = vld [vmem:[%s7267_s7 + $0x9c] sm:$0xe] }
 0x16f   : > { %v2064_v12 = vrot.slane %v12386_v44, 4  ;;  %v2070_v4 = vsel %vm7646_vm6, %v6514_v22, %v12387_v24  ;;  %v2073_v58 = vsel %vm7646_vm6, %v2071_v63, %v2072_v26  ;;  %v12388_v62 = vmov %v12386_v44  ;;  %2844 = vrot.lane.b32.xlu1 %v6656_v37, %s7192_s26  ;;  %v6501_v26 = vld [vmem:[%s7267_s7 + $0x90] sm:$0xe] }
 0x170   : > { %v2063_v47 = vsel %vm7646_vm6, %v6513_v40, %v12388_v62  ;;  %v6516_v39 = vrot.slane %v6500_v60, 9  ;;  %v12390_v11 = vrot.slane %v12389_v31, 5  ;;  %v2086_v2 = vrot.slane %v9057_v38, 5  ;;  %v9380_v27 = vpop.permute.xlu1 %2592  ;;  %2842 = vrot.lane.b32.xlu0 %v6655_v49, %s7192_s26 }
 0x171   : > { %v2066_v45 = vsel %vm7646_vm6, %v2064_v12, %v2065_v23  ;;  %v6515_v5 = vrot.slane %v6499_v32, 9  ;;  %v12392_v22 = vrot.slane %v12391_v6, 5  ;;  %v6658_v63 = vcombine.low %v2070_v4, %v2073_v58  ;;  %v12395_v32 = vld [vmem:[#allocation21_spill] sm:$0xff] }
 0x172   : > { %v2085_v56 = vrot.slane %v12390_v11, 4  ;;  %v12393_v54 = vmov %v12390_v11  ;;  %v2079_v53 = vrot.slane %v9073_v14, 5  ;;  %v9394_v40 = vsel %vm3014_vm11, %v9117_v57, %v9258_v20  ;;  %v12397_v58 = vld [vmem:[#allocation25_spill] sm:$0xff] }
 0x173   : > { %v2078_v15 = vrot.slane %v12392_v22, 4  ;;  %v2084_v33 = vsel %vm7646_vm6, %v6516_v39, %v12393_v54  ;;  %v9399_v60 = vsel %vm3014_vm11, %v9122_v1, %v9283_v16  ;;  %v6518_v37 = vrot.slane %v6502_v34, 9  ;;  %v2591_v20 = vpop.permute.xlu0 %2590  ;;  %2848 = vrot.lane.b32.xlu1 %v6658_v63, %s7192_s26 }
 0x174   : > { %v2087_v38 = vsel %vm7646_vm6, %v2085_v56, %v2086_v2  ;;  %v6657_v14 = vcombine.low %v2063_v47, %v2066_v45  ;;  %v12394_v12 = vmov %v12392_v22  ;;  %v12396_v24 = vrot.slane %v12395_v32, 5  ;;  %v6503_v47 = vld [vmem:[%s7267_s7 + $0xa8] sm:$0xe]  ;;  %v2597_v39 = vpop.permute.xlu1 %2596 }
 0x175   : > { %v6660_v44 = vcombine.low %v2084_v33, %v2087_v38  ;;  %v2077_v23 = vsel %vm7646_vm6, %v6515_v5, %v12394_v12  ;;  %v2080_v4 = vsel %vm7646_vm6, %v2078_v15, %v2079_v53  ;;  %v2100_v1 = vrot.slane %v9098_v61, 5  ;;  %v6506_v15 = vld [vmem:[%s7267_s7 + $0xcc] sm:$0xe] }
 0x176   : > { %v2099_v57 = vrot.slane %v12396_v24, 4  ;;  %v6517_v16 = vrot.slane %v6501_v26, 9  ;;  %v12398_v62 = vrot.slane %v12397_v58, 5  ;;  %v2093_v31 = vrot.slane %v9109_v19, 5  ;;  %v12400_v19 = vld [vmem:[#allocation31_spill] sm:$0xff]  ;;  %2846 = vrot.lane.b32.xlu0 %v6657_v14, %s7192_s26 }
 0x177   : > { %v9420_v11 = vsel %vm3014_vm11, %v9143_v50, %v9297_v30  ;;  %v9424_v56 = vsel %vm3014_vm11, %v9151_v48, %v2583_v42  ;;  %v6520_v61 = vrot.slane %v6504_v35, 9  ;;  %v12399_v34 = vmov %v12396_v24  ;;  %v12402_v30 = vld [vmem:[#allocation42_spill] sm:$0xff]  ;;  %v2595_v63 = vpop.permute.xlu0 %2594  ;;  %v12404_v26 = vld [vmem:[#allocation35_spill] sm:$0xff]  ;;  %v6505_v35 = vld [vmem:[%s7267_s7 + $0xc0] sm:$0xe]  ;;  %2852 = vrot.lane.b32.xlu1 %v6660_v44, %s7192_s26 }
 0x178   : > { %v2092_v49 = vrot.slane %v12398_v62, 4  ;;  %v2098_v45 = vsel %vm7646_vm6, %v6518_v37, %v12399_v34  ;;  %v2101_v2 = vsel %vm7646_vm6, %v2099_v57, %v2100_v1  ;;  %v12401_v5 = vrot.slane %v12400_v19, 5 }
 0x179   : > { %v2114_v50 = vrot.slane %v9130_v3, 5  ;;  %v2118_v22 = vrot.slane %v12402_v30, 5  ;;  %v6659_v48 = vcombine.low %v2077_v23, %v2080_v4  ;;  %v6519_v42 = vrot.slane %v6503_v47, 9 }
 0x17a   : > { %v2113_v6 = vrot.slane %v12401_v5, 4  ;;  %v12403_v54 = vmov %v12398_v62  ;;  %v2094_v53 = vsel %vm7646_vm6, %v2092_v49, %v2093_v31  ;;  %v12405_v38 = vrot.slane %v12404_v26, 5  ;;  %v2601_v1 = vpop.permute.xlu1 %2600 }
 0x17b   : > { %v2091_v33 = vsel %vm7646_vm6, %v6517_v16, %v12403_v54  ;;  %v2107_v3 = vrot.slane %v9146_v8, 5  ;;  %v6662_v14 = vcombine.low %v2098_v45, %v2101_v2  ;;  %v12406_v12 = vmov %v12401_v5  ;;  %2850 = vrot.lane.b32.xlu0 %v6659_v48, %s7192_s26 }
 0x17c   : > { %v2106_v37 = vrot.slane %v12405_v38, 4  ;;  %v2112_v23 = vsel %vm7646_vm6, %v6520_v61, %v12406_v12  ;;  %v3026_v32 = vsel %vm3014_vm11, %v9181_v41, %v9343_v46  ;;  %v3024_v24 = vsel %vm3014_vm11, %v9194_v21, %v2587_v13  ;;  %v2599_v13 = vpop.permute.xlu0 %2598 }
 0x17d   : > { %v2115_v57 = vsel %vm7646_vm6, %v2113_v6, %v2114_v50  ;;  %v6522_v8 = vrot.slane %v6506_v15, 9  ;;  %v2127_v44 = vrot.slane %v2125_v51, 4  ;;  %v2128_v4 = vrot.slane %v9176_v18, 5  ;;  %2856 = vrot.lane.b32.xlu1 %v6662_v14, %s7192_s26 }
 0x17e   : > { %v6661_v16 = vcombine.low %v2091_v33, %v2094_v53  ;;  %v12407_v58 = vmov %v12405_v38  ;;  %v2108_v21 = vsel %vm7646_vm6, %v2106_v37, %v2107_v3  ;;  %v6521_v46 = vrot.slane %v6505_v35, 9 }
 0x17f   : > { %v2105_v41 = vsel %vm7646_vm6, %v6519_v42, %v12407_v58  ;;  %v2120_v62 = vrot.slane %v2118_v22, 4  ;;  %v2121_v49 = vrot.slane %v9184_v59, 5  ;;  %v3030_v18 = vsel %vm3014_vm11, %v9220_v43, %v9380_v27 }
 0x180   : > { %v3028_v47 = vsel %vm3014_vm11, %v9225_v7, %v2591_v20  ;;  %v6664_v31 = vcombine.low %v2112_v23, %v2115_v57  ;;  %v2126_v61 = vsel %vm7646_vm6, %v6522_v8, %v2125_v51  ;;  %v3034_v34 = vsel %vm3014_vm11, %v9241_v55, %v2597_v39  ;;  %v2605_v20 = vpop.permute.xlu1 %2604  ;;  %2854 = vrot.lane.b32.xlu0 %v6661_v16, %s7192_s26  ;;  %v2603_v55 = vpop.permute.xlu0 %2602 }
 0x181   : > { %v2129_v59 = vsel %vm7646_vm6, %v2127_v44, %v2128_v4  ;;  %v3032_v43 = vsel %vm3014_vm11, %v9267_v36, %v2595_v63  ;;  %v3038_v7 = vsel %vm3014_vm11, %v9280_v25, %v2601_v1  ;;  %v3036_v27 = vsel %vm3014_vm11, %v9295_v9, %v2599_v13 }
 0x182   : > { %v6663_v17 = vcombine.low %v2105_v41, %v2108_v21  ;;  %v3042_v51 = vsel %vm3014_vm11, %v9324_v0, %v2605_v20  ;;  %v2119_v39 = vsel %vm7646_vm6, %v6521_v46, %v2118_v22  ;;  %v2122_v36 = vsel %vm7646_vm6, %v2120_v62, %v2121_v49  ;;  %2860 = vrot.lane.b32.xlu1 %v6664_v31, %s7192_s26 }
 0x183   : > { %v3040_v25 = vsel %vm3014_vm11, %v9328_v29, %v2603_v55  ;;  %v6666_v9 = vcombine.low %v2126_v61, %v2129_v59  ;;  %v6665_v2 = vcombine.low %v2119_v39, %v2122_v36 }
 0x184   : > { %v2609_v45 = vpop.permute.xlu1 %2608  ;;  %2858 = vrot.lane.b32.xlu0 %v6663_v17, %s7192_s26  ;;  %v2607_v19 = vpop.permute.xlu0 %2606 }
 0x185   : > { %v9504_v0 = vsel %vm3014_vm11, %v9360_v52, %v2609_v45  ;;  %v9508_v5 = vsel %vm3014_vm11, %v9365_v28, %v2607_v19 }
 0x186   : > { %2864 = vrot.lane.b32.xlu1 %v6666_v9, %s7192_s26 }
 0x188   : > { %v2677_v10 = vpop.permute.xlu1 %2676  ;;  %2862 = vrot.lane.b32.xlu0 %v6665_v2, %s7192_s26  ;;  %v2675_v6 = vpop.permute.xlu0 %2674 }
 0x189   : > { %v3051_v29 = vsel %vm3047_vm12, %v9394_v40, %v2677_v10  ;;  %v3049_v50 = vsel %vm3047_vm12, %v9399_v60, %v2675_v6 }
 0x18c   : > { %v2681_v52 = vpop.permute.xlu1 %2680  ;;  %v2679_v22 = vpop.permute.xlu0 %2678 }
 0x18d   : > { %v3055_v30 = vsel %vm3047_vm12, %v9420_v11, %v2681_v52  ;;  %v3053_v28 = vsel %vm3047_vm12, %v9424_v56, %v2679_v22 }
 0x190   : > { %v2685_v48 = vpop.permute.xlu1 %2684  ;;  %v2683_v15 = vpop.permute.xlu0 %2682 }
 0x191   : > { %v3059_v42 = vsel %vm3047_vm12, %v3026_v32, %v2685_v48  ;;  %v3057_v63 = vsel %vm3047_vm12, %v3024_v24, %v2683_v15 }
 0x194   : > { %v2689_v54 = vpop.permute.xlu1 %2688  ;;  %v2687_v33 = vpop.permute.xlu0 %2686 }
 0x195   : > { %v3063_v40 = vsel %vm3047_vm12, %v3030_v18, %v2689_v54  ;;  %v3061_v60 = vsel %vm3047_vm12, %v3028_v47, %v2687_v33 }
 0x198   : > { %v2693_v53 = vpop.permute.xlu1 %2692 }
 0x199   : > { %v3067_v26 = vsel %vm3047_vm12, %v3034_v34, %v2693_v53 }
 0x19a   : > { %v2691_v11 = vpop.permute.xlu0 %2690 }
 0x19b   : > { %v3065_v38 = vsel %vm3047_vm12, %v3032_v43, %v2691_v11 }
 0x19d   : > { %v2697_v37 = vpop.permute.xlu1 %2696 }
 0x19e   : > { %v3071_v56 = vsel %vm3047_vm12, %v3038_v7, %v2697_v37 }
 0x1a0   : > { %v2695_v3 = vpop.permute.xlu0 %2694 }
 0x1a1   : > { %v3069_v35 = vsel %vm3047_vm12, %v3036_v27, %v2695_v3 }
 0x1a3   : > { %v2701_v14 = vpop.permute.xlu1 %2700 }
 0x1a4   : > { %v3075_v12 = vsel %vm3047_vm12, %v3042_v51, %v2701_v14 }
 0x1a6   : > { %v2699_v23 = vpop.permute.xlu0 %2698 }
 0x1a7   : > { %v3073_v32 = vsel %vm3047_vm12, %v3040_v25, %v2699_v23 }
 0x1a8   : > { %v2705_v24 = vpop.permute.xlu1 %2704 }
 0x1ab   : > { %v9530_v57 = vpop.permute.xlu0 %2702 }
 0x1b8   : > { %v2757_v8 = vpop.permute.xlu1 %2756 }
 0x1b9   : > { %v2755_v44 = vpop.permute.xlu0 %2754  ;;  %v3084_v34 = vsel %vm3080_vm13, %v3051_v29, %v2757_v8 }
 0x1ba   : > { %v3082_v7 = vsel %vm3080_vm13, %v3049_v50, %v2755_v44 }
 0x1bc   : > { %v2761_v4 = vpop.permute.xlu1 %2760 }
 0x1bd   : > { %v2759_v1 = vpop.permute.xlu0 %2758  ;;  %v3088_v17 = vsel %vm3080_vm13, %v3055_v30, %v2761_v4 }
 0x1be   : > { %v3086_v39 = vsel %vm3080_vm13, %v3053_v28, %v2759_v1 }
 0x1c0   : > { %v2765_v16 = vpop.permute.xlu1 %2764 }
 0x1c1   : > { %v2763_v58 = vpop.permute.xlu0 %2762  ;;  %v3092_v9 = vsel %vm3080_vm13, %v3059_v42, %v2765_v16 }
 0x1c2   : > { %v3090_v19 = vsel %vm3080_vm13, %v3057_v63, %v2763_v58 }
 0x1c4   : > { %v2769_v41 = vpop.permute.xlu1 %2768 }
 0x1c5   : > { %v2767_v21 = vpop.permute.xlu0 %2766  ;;  %v3096_v6 = vsel %vm3080_vm13, %v3063_v40, %v2769_v41  ;;  %v3152_v41 = vld [vmem:[#allocation2 + $0x10] sm:$0xff] (!%p6667_p10) }
 0x1c6   : > { %v3094_v30 = vsel %vm3080_vm13, %v3061_v60, %v2767_v21  ;;  %v3168_v21 = vld [vmem:[#allocation2 + $0x90] sm:$0xff] (!%p6667_p10) }
 0x1c8   : > { %v2773_v46 = vpop.permute.xlu1 %2772 }
 0x1c9   : > { %v2771_v13 = vpop.permute.xlu0 %2770  ;;  %v3100_v48 = vsel %vm3080_vm13, %v3067_v26, %v2773_v46  ;;  %v3150_v46 = vld [vmem:[#allocation2] sm:$0xff] (!%p6667_p10) }
 0x1ca   : > { %v3098_v63 = vsel %vm3080_vm13, %v3065_v38, %v2771_v13  ;;  %v3166_v13 = vld [vmem:[#allocation2 + $0x80] sm:$0xff] (!%p6667_p10) }
 0x1cc   : > { %v2777_v62 = vpop.permute.xlu1 %2776 }
 0x1cd   : > { %v2775_v49 = vpop.permute.xlu0 %2774  ;;  %v3104_v33 = vsel %vm3080_vm13, %v3071_v56, %v2777_v62  ;;  %v3079_v56 = vsel %vm3047_vm12, %v9504_v0, %v2705_v24 }
 0x1ce   : > { %v3102_v11 = vsel %vm3080_vm13, %v3069_v35, %v2775_v49 }
 0x1d0   : > { %v2781_v18 = vpop.permute.xlu1 %2780 }
 0x1d1   : > { %v2779_v47 = vpop.permute.xlu0 %2778  ;;  %v3108_v3 = vsel %vm3080_vm13, %v3075_v12, %v2781_v18  ;;  %v3077_v12 = vsel %vm3047_vm12, %v9508_v5, %v9530_v57  ;;  %v3153_v18 = vld [vmem:[#allocation2 + $0x18] sm:$0xff] (!%p6667_p10) }
 0x1d2   : > { %v3106_v23 = vsel %vm3080_vm13, %v3073_v32, %v2779_v47  ;;  %v3169_v47 = vld [vmem:[#allocation2 + $0x98] sm:$0xff] (!%p6667_p10) }
 0x1d4   : > { %v2785_v31 = vpop.permute.xlu1 %2784 }
 0x1d5   : > { %v2783_v61 = vpop.permute.xlu0 %2782  ;;  %v3112_v35 = vsel %vm3080_vm13, %v3079_v56, %v2785_v31 }
 0x1d6   : > { %v3110_v16 = vsel %vm3080_vm13, %v3077_v12, %v2783_v61 }
 0x1d8   : > { %v2837_v59 = vpop.permute.xlu1 %2836 }
 0x1d9   : > { %v9534_v43 = vsel %vm3113_vm14, %v3084_v34, %v2837_v59  ;;  %v2835_v27 = vpop.permute.xlu0 %2834 }
 0x1da   : > { %v9538_v20 = vsel %vm3113_vm14, %v3082_v7, %v2835_v27  ;;  %v3151_v7 = vld [vmem:[#allocation2 + $0x8] sm:$0xff] (!%p6667_p10) }
 0x1db   : > { %6888 = vmatprep.mubr.msk.bf16.mxu0 (!%p6667_p10), %vm3207_vm15, %v9538_v20  ;;  %v3167_v27 = vld [vmem:[#allocation2 + $0x88] sm:$0xff] (!%p6667_p10) }
 0x1dc   : > { %v2841_v51 = vpop.permute.xlu1 %2840 }
 0x1dd   : > { %v9542_v55 = vsel %vm3113_vm14, %v3088_v17, %v2841_v51 }
 0x1de   : > { %v2839_v36 = vpop.permute.xlu0 %2838 }
 0x1df   : > { %v9546_v25 = vsel %vm3113_vm14, %v3086_v39, %v2839_v36 }
 0x1e1   : > { %v2845_v45 = vpop.permute.xlu1 %2844 }
 0x1e2   : > { %v9550_v2 = vsel %vm3113_vm14, %v3092_v9, %v2845_v45  ;;  %v2843_v10 = vpop.permute.xlu0 %2842 }
 0x1e3   : > { %v9554_v29 = vsel %vm3113_vm14, %v3090_v19, %v2843_v10 }
 0x1e5   : > { %v2849_v50 = vpop.permute.xlu1 %2848 }
 0x1e6   : > { %v9558_v52 = vsel %vm3113_vm14, %v3096_v6, %v2849_v50 }
 0x1e8   : > { %v2847_v22 = vpop.permute.xlu0 %2846 }
 0x1e9   : > { %v9562_v28 = vsel %vm3113_vm14, %v3094_v30, %v2847_v22  ;;  %v2853_v42 = vpop.permute.xlu1 %2852  ;;  %v3156_v30 = vld [vmem:[#allocation2 + $0x30] sm:$0xff] (!%p6667_p10) }
 0x1ea   : > { %v9566_v15 = vsel %vm3113_vm14, %v3100_v48, %v2853_v42  ;;  %v3172_v22 = vld [vmem:[#allocation2 + $0xb0] sm:$0xff] (!%p6667_p10)  ;;  %v3154_v48 = vld [vmem:[#allocation2 + $0x20] sm:$0xff] (!%p6667_p10) }
 0x1eb   : > { %v3170_v42 = vld [vmem:[#allocation2 + $0xa0] sm:$0xff] (!%p6667_p10) }
 0x1ed   : > { %v2851_v54 = vpop.permute.xlu0 %2850 }
 0x1ee   : > { %v9570_v40 = vsel %vm3113_vm14, %v3098_v63, %v2851_v54 }
 0x1ef   : > { %v2857_v53 = vpop.permute.xlu1 %2856  ;;  %6904 = vmatprep.mubr.msk.bf16.mxu1 (!%p6667_p10), %vm3207_vm15, %v9570_v40 }
 0x1f0   : > { %v9574_v60 = vsel %vm3113_vm14, %v3104_v33, %v2857_v53  ;;  %v3157_v33 = vld [vmem:[#allocation2 + $0x38] sm:$0xff] (!%p6667_p10) }
 0x1f1   : > { %v3173_v53 = vld [vmem:[#allocation2 + $0xb8] sm:$0xff] (!%p6667_p10) }
 0x1f2   : > { %v2855_v37 = vpop.permute.xlu0 %2854 }
 0x1f3   : > { %v9578_v26 = vsel %vm3113_vm14, %v3102_v11, %v2855_v37 }
 0x1f4   : > { %v2861_v14 = vpop.permute.xlu1 %2860 }
 0x1f5   : > { %v9582_v38 = vsel %vm3113_vm14, %v3108_v3, %v2861_v14  ;;  %3149 = sbr.rel (%p6667_p10) target bundleno = 768 (0x300), region = 40 }
 0x1f6   : > { %v2859_v8 = vpop.permute.xlu0 %2858 }
 0x1f7   : > { %v9588_v44 = vsel %vm3113_vm14, %v3106_v23, %v2859_v8  ;;  %v3155_v23 = vld [vmem:[#allocation2 + $0x28] sm:$0xff] (!%p6667_p10) }
 0x1f8   : > { %v2865_v4 = vpop.permute.xlu1 %2864  ;;  %v3171_v8 = vld [vmem:[#allocation2 + $0xa8] sm:$0xff] (!%p6667_p10) }
 0x1f9   : > { %v9595_v1 = vsel %vm3113_vm14, %v3112_v35, %v2865_v4 }
 0x1fa   : > { %v2863_v32 = vpop.permute.xlu0 %2862 }
 0x1fb   : > { %v9599_v58 = vsel %vm3113_vm14, %v3110_v16, %v2863_v32 }
 0x1fc   : > { %s3183_s27 = scalar_select %p3182_p11, %s7158_s12, 2 }
 0x1fe   : > { %s6778_s28 = smul.u32 20, %s3183_s27 }
 0x200   : > { %s3186_s4 = scalar_lea.vmem %s12096_s1, %s6778_s28 }
 0x201   : > { %v7122_v0 = vld [vmem:[%s3186_s4] sm:$0xff]   ;;  %v7123_v5 = vld [vmem:[%s3186_s4 + $0x8] sm:$0xff]   ;;  %v7124_v24 = vld [vmem:[%s3186_s4 + $0x10] ss:$0 sps:$4 sm:$0x33]  }
 0x202   : > { %6882 = vmatprep.subr.bf16.mxu0 %v7122_v0  ;;  %6958 = vmatprep.subr.bf16.mxu1 %v7122_v0  ;;  %v3242_v57 = vsel %vm3240_vm0, %v7124_v24, 0 }
 0x203   : > { %6883 = vmatpush3.bf16.msra.mxu0 %v7122_v0  ;;  %6961 = vmatpush3.bf16.msra.mxu1 %v7122_v0 }
 0x204   : > { %6884 = vmatprep.subr.bf16.mxu0 %v7123_v5  ;;  %6959 = vmatprep.subr.bf16.mxu1 %v7123_v5 }
 0x207   : > { %6885 = vmatpush3.bf16.msra.mxu0 %v7123_v5  ;;  %6962 = vmatpush3.bf16.msra.mxu1 %v7123_v5 }
 0x208   : > { %6970 = vmatprep.subr.msk.bf16.mxu0 %vm3240_vm0, %v7124_v24  ;;  %6971 = vmatprep.subr.msk.bf16.mxu1 %vm3240_vm0, %v7124_v24 }
 0x20b   : > { %6887 = vmatpush3.bf16.msra.mxu0 %v3242_v57  ;;  %6963 = vmatpush3.bf16.msra.mxu1 %v3242_v57 }
 0x20e   : > { %6889 = vmatmul.mubr.msk.bf16.vlgmr.msra.gmra.mrb[0].mxu0 %vm3207_vm15, %v9534_v43  ;;  %6905 = vmatmul.mubr.msk.bf16.vlgmr.msra.gmra.mrb[0].mxu1 %vm3207_vm15, %v9566_v15 }
 0x20f   : > { %6892 = vmatprep.mubr.msk.bf16.mxu0 %vm3207_vm15, %v9546_v25  ;;  %6908 = vmatprep.mubr.msk.bf16.mxu1 %vm3207_vm15, %v9578_v26 }
 0x216   : > { %6893 = vmatmul.mubr.msk.bf16.gmra.mrb[4].mxu0 %vm3207_vm15, %v9542_v55  ;;  %6909 = vmatmul.mubr.msk.bf16.gmra.mrb[4].mxu1 %vm3207_vm15, %v9574_v60 }
 0x217   : > { %6896 = vmatprep.mubr.msk.bf16.mxu0 %vm3207_vm15, %v9554_v29  ;;  %6912 = vmatprep.mubr.msk.bf16.mxu1 %vm3207_vm15, %v9588_v44 }
 0x21e   : > { %6897 = vmatmul.mubr.msk.bf16.gmra.mrb[8].mxu0 %vm3207_vm15, %v9550_v2  ;;  %6913 = vmatmul.mubr.msk.bf16.gmra.mrb[8].mxu1 %vm3207_vm15, %v9582_v38 }
 0x21f   : > { %6900 = vmatprep.mubr.msk.bf16.mxu0 %vm3207_vm15, %v9562_v28  ;;  %6916 = vmatprep.mubr.msk.bf16.mxu1 %vm3207_vm15, %v9599_v58 }
 0x226   : > { %6901 = vmatmul.mubr.msk.bf16.gmra.mrb[12].mxu0 %vm3207_vm15, %v9558_v52  ;;  %6917 = vmatmul.mubr.msk.bf16.gmra.mrb[12].mxu1 %vm3207_vm15, %v9595_v1 }
 0x2e1   : > { %v6890_v62 = vpop.f32.mrb[0].mxu0  ;;  %v6906_v49 = vpop.f32.mrb[0].mxu1 }
 0x2e2   : > { %v3407_v31 = vadd.f32 %v6890_v62, %v3152_v41  ;;  %v3423_v61 = vadd.f32 %v6906_v49, %v3168_v21  ;;  %v3278_v34 = vpop.f32.mrb[1].mxu0  ;;  %v3342_v59 = vpop.f32.mrb[1].mxu1  ;;  %v3160_v41 = vld [vmem:[#allocation2 + $0x50] sm:$0xff] }
 0x2e3   : > { %v3405_v17 = vadd.f32 %v3278_v34, %v3150_v46  ;;  %v3421_v51 = vadd.f32 %v3342_v59, %v3166_v13  ;;  %v6891_v39 = vpop.f32.mrb[2].mxu0  ;;  %v6907_v36 = vpop.f32.mrb[2].mxu1  ;;  %v3176_v21 = vld [vmem:[#allocation2 + $0xd0] sm:$0xff]  ;;  %v3158_v46 = vld [vmem:[#allocation2 + $0x40] sm:$0xff] }
 0x2e4   : > { %3439 = vst.msk [vmem:[#allocation2 + $0x10] sm:$0xff] %vm3113_vm14, %v3407_v31  ;;  %3455 = vst.msk [vmem:[#allocation2 + $0x90] sm:$0xff] %vm3113_vm14, %v3423_v61  ;;  %v3408_v9 = vadd.f32 %v6891_v39, %v3153_v18  ;;  %v3424_v45 = vadd.f32 %v6907_v36, %v3169_v47  ;;  %v3281_v19 = vpop.f32.mrb[3].mxu0  ;;  %v3345_v10 = vpop.f32.mrb[3].mxu1  ;;  %v3174_v13 = vld [vmem:[#allocation2 + $0xc0] sm:$0xff]  ;;  %v3161_v18 = vld [vmem:[#allocation2 + $0x58] sm:$0xff] }
 0x2e5   : > { %3437 = vst.msk [vmem:[#allocation2] sm:$0xff] %vm3113_vm14, %v3405_v17  ;;  %3453 = vst.msk [vmem:[#allocation2 + $0x80] sm:$0xff] %vm3113_vm14, %v3421_v51  ;;  %v3406_v6 = vadd.f32 %v3281_v19, %v3151_v7  ;;  %v3422_v50 = vadd.f32 %v3345_v10, %v3167_v27  ;;  %v3177_v47 = vld [vmem:[#allocation2 + $0xd8] sm:$0xff]  ;;  %v3159_v7 = vld [vmem:[#allocation2 + $0x48] sm:$0xff] }
 0x2e6   : > { %3440 = vst.msk [vmem:[#allocation2 + $0x18] sm:$0xff] %vm3113_vm14, %v3408_v9  ;;  %3456 = vst.msk [vmem:[#allocation2 + $0x98] sm:$0xff] %vm3113_vm14, %v3424_v45  ;;  %v3175_v27 = vld [vmem:[#allocation2 + $0xc8] sm:$0xff] }
 0x2e7   : > { %3438 = vst.msk [vmem:[#allocation2 + $0x8] sm:$0xff] %vm3113_vm14, %v3406_v6  ;;  %3454 = vst.msk [vmem:[#allocation2 + $0x88] sm:$0xff] %vm3113_vm14, %v3422_v50 }
 0x2e9   : > { %v6894_v63 = vpop.f32.mrb[4].mxu0  ;;  %v6910_v54 = vpop.f32.mrb[4].mxu1 }
 0x2ea   : > { %v3411_v11 = vadd.f32 %v6894_v63, %v3156_v30  ;;  %v3427_v37 = vadd.f32 %v6910_v54, %v3172_v22  ;;  %v3294_v3 = vpop.f32.mrb[5].mxu0  ;;  %v3358_v14 = vpop.f32.mrb[5].mxu1  ;;  %v3164_v30 = vld [vmem:[#allocation2 + $0x70] sm:$0xff] }
 0x2eb   : > { %v3409_v56 = vadd.f32 %v3294_v3, %v3154_v48  ;;  %v3425_v35 = vadd.f32 %v3358_v14, %v3170_v42  ;;  %v6895_v4 = vpop.f32.mrb[6].mxu0  ;;  %v6911_v12 = vpop.f32.mrb[6].mxu1  ;;  %v3180_v22 = vld [vmem:[#allocation2 + $0xf0] sm:$0xff]  ;;  %v3162_v48 = vld [vmem:[#allocation2 + $0x60] sm:$0xff] }
 0x2ec   : > { %3443 = vst.msk [vmem:[#allocation2 + $0x30] sm:$0xff] %vm3113_vm14, %v3411_v11  ;;  %3459 = vst.msk [vmem:[#allocation2 + $0xb0] sm:$0xff] %vm3113_vm14, %v3427_v37  ;;  %v3412_v16 = vadd.f32 %v6895_v4, %v3157_v33  ;;  %v3428_v32 = vadd.f32 %v6911_v12, %v3173_v53  ;;  %v3297_v0 = vpop.f32.mrb[7].mxu0  ;;  %v3361_v5 = vpop.f32.mrb[7].mxu1  ;;  %v3178_v42 = vld [vmem:[#allocation2 + $0xe0] sm:$0xff]  ;;  %v3165_v33 = vld [vmem:[#allocation2 + $0x78] sm:$0xff] }
 0x2ed   : > { %3441 = vst.msk [vmem:[#allocation2 + $0x20] sm:$0xff] %vm3113_vm14, %v3409_v56  ;;  %3457 = vst.msk [vmem:[#allocation2 + $0xa0] sm:$0xff] %vm3113_vm14, %v3425_v35  ;;  %v3410_v24 = vadd.f32 %v3297_v0, %v3155_v23  ;;  %v3426_v57 = vadd.f32 %v3361_v5, %v3171_v8  ;;  %v3181_v53 = vld [vmem:[#allocation2 + $0xf8] sm:$0xff]  ;;  %v3163_v23 = vld [vmem:[#allocation2 + $0x68] sm:$0xff] }
 0x2ee   : > { %3444 = vst.msk [vmem:[#allocation2 + $0x38] sm:$0xff] %vm3113_vm14, %v3412_v16  ;;  %3460 = vst.msk [vmem:[#allocation2 + $0xb8] sm:$0xff] %vm3113_vm14, %v3428_v32  ;;  %v3179_v8 = vld [vmem:[#allocation2 + $0xe8] sm:$0xff] }
 0x2ef   : > { %3442 = vst.msk [vmem:[#allocation2 + $0x28] sm:$0xff] %vm3113_vm14, %v3410_v24  ;;  %3458 = vst.msk [vmem:[#allocation2 + $0xa8] sm:$0xff] %vm3113_vm14, %v3426_v57 }
 0x2f1   : > { %v6898_v62 = vpop.f32.mrb[8].mxu0  ;;  %v6914_v49 = vpop.f32.mrb[8].mxu1 }
 0x2f2   : > { %v3415_v31 = vadd.f32 %v6898_v62, %v3160_v41  ;;  %v3431_v61 = vadd.f32 %v6914_v49, %v3176_v21  ;;  %v3310_v34 = vpop.f32.mrb[9].mxu0  ;;  %v3374_v59 = vpop.f32.mrb[9].mxu1 }
 0x2f3   : > { %v3413_v17 = vadd.f32 %v3310_v34, %v3158_v46  ;;  %v3429_v51 = vadd.f32 %v3374_v59, %v3174_v13  ;;  %v6899_v39 = vpop.f32.mrb[10].mxu0  ;;  %v6915_v36 = vpop.f32.mrb[10].mxu1 }
 0x2f4   : > { %3447 = vst.msk [vmem:[#allocation2 + $0x50] sm:$0xff] %vm3113_vm14, %v3415_v31  ;;  %3463 = vst.msk [vmem:[#allocation2 + $0xd0] sm:$0xff] %vm3113_vm14, %v3431_v61  ;;  %v3416_v9 = vadd.f32 %v6899_v39, %v3161_v18  ;;  %v3432_v45 = vadd.f32 %v6915_v36, %v3177_v47  ;;  %v3313_v19 = vpop.f32.mrb[11].mxu0  ;;  %v3377_v10 = vpop.f32.mrb[11].mxu1 }
 0x2f5   : > { %3445 = vst.msk [vmem:[#allocation2 + $0x40] sm:$0xff] %vm3113_vm14, %v3413_v17  ;;  %3461 = vst.msk [vmem:[#allocation2 + $0xc0] sm:$0xff] %vm3113_vm14, %v3429_v51  ;;  %v3414_v6 = vadd.f32 %v3313_v19, %v3159_v7  ;;  %v3430_v50 = vadd.f32 %v3377_v10, %v3175_v27 }
 0x2f6   : > { %3448 = vst.msk [vmem:[#allocation2 + $0x58] sm:$0xff] %vm3113_vm14, %v3416_v9  ;;  %3464 = vst.msk [vmem:[#allocation2 + $0xd8] sm:$0xff] %vm3113_vm14, %v3432_v45 }
 0x2f7   : > { %3446 = vst.msk [vmem:[#allocation2 + $0x48] sm:$0xff] %vm3113_vm14, %v3414_v6  ;;  %3462 = vst.msk [vmem:[#allocation2 + $0xc8] sm:$0xff] %vm3113_vm14, %v3430_v50 }
 0x2f9   : > { %v6902_v63 = vpop.f32.mrb[12].mxu0  ;;  %v6918_v54 = vpop.f32.mrb[12].mxu1 }
 0x2fa   : > { %v3419_v11 = vadd.f32 %v6902_v63, %v3164_v30  ;;  %v3435_v37 = vadd.f32 %v6918_v54, %v3180_v22  ;;  %v3326_v3 = vpop.f32.mrb[13].mxu0  ;;  %v3390_v14 = vpop.f32.mrb[13].mxu1 }
 0x2fb   : > { %v3417_v56 = vadd.f32 %v3326_v3, %v3162_v48  ;;  %v3433_v35 = vadd.f32 %v3390_v14, %v3178_v42  ;;  %v6903_v4 = vpop.f32.mrb[14].mxu0  ;;  %v6919_v12 = vpop.f32.mrb[14].mxu1 }
 0x2fc   : > { %3451 = vst.msk [vmem:[#allocation2 + $0x70] sm:$0xff] %vm3113_vm14, %v3419_v11  ;;  %3467 = vst.msk [vmem:[#allocation2 + $0xf0] sm:$0xff] %vm3113_vm14, %v3435_v37  ;;  %v3420_v16 = vadd.f32 %v6903_v4, %v3165_v33  ;;  %v3436_v32 = vadd.f32 %v6919_v12, %v3181_v53  ;;  %v3329_v0 = vpop.f32.mrb[15].mxu0  ;;  %v3393_v5 = vpop.f32.mrb[15].mxu1 }
 0x2fd   : > { %3449 = vst.msk [vmem:[#allocation2 + $0x60] sm:$0xff] %vm3113_vm14, %v3417_v56  ;;  %3465 = vst.msk [vmem:[#allocation2 + $0xe0] sm:$0xff] %vm3113_vm14, %v3433_v35  ;;  %v3418_v24 = vadd.f32 %v3329_v0, %v3163_v23  ;;  %v3434_v57 = vadd.f32 %v3393_v5, %v3179_v8 }
 0x2fe   : > { %3452 = vst.msk [vmem:[#allocation2 + $0x78] sm:$0xff] %vm3113_vm14, %v3420_v16  ;;  %3468 = vst.msk [vmem:[#allocation2 + $0xf8] sm:$0xff] %vm3113_vm14, %v3436_v32 }
 0x2ff   : > { %3450 = vst.msk [vmem:[#allocation2 + $0x68] sm:$0xff] %vm3113_vm14, %v3418_v24  ;;  %3466 = vst.msk [vmem:[#allocation2 + $0xe8] sm:$0xff] %vm3113_vm14, %v3434_v57 }
 0x300 PF: > { %p6688_p12 = scmp.le.s32.totalorder %s7158_s12, 0 }
 0x301   : > { %s6689_s5 = sadd.s32 (!%p6688_p12), 4294967295, %s7158_s12  ;;  %vm3531_vm1 = vcmask (!%p6688_p12), 293888   ;;  %vm3564_vm2 = vcmask (!%p6688_p12), 1041408   ;;  %v3474_v13 = vld [vmem:[#allocation3 + $0x8] sm:$0xff] (!%p6688_p12)  ;;  %v3479_v7 = vld [vmem:[#allocation3 + $0x30] sm:$0xff] (!%p6688_p12)  ;;  %v3477_v17 = vld [vmem:[#allocation3 + $0x20] sm:$0xff] (!%p6688_p12) }
 0x302   : > { %3472 = sbr.rel (%p6688_p12) target bundleno = 1036 (0x40c), region = 44  ;;  %p3506_p13 = scmp.gt.s32.totalorder (!%p6688_p12), %s6689_s5, 0  ;;  %6926 = vmatprep.mubr.msk.bf16.mxu0 (!%p6688_p12), %vm3531_vm1, %v9538_v20  ;;  %6942 = vmatprep.mubr.msk.bf16.mxu1 (!%p6688_p12), %vm3531_vm1, %v9570_v40  ;;  %v3476_v40 = vld [vmem:[#allocation3 + $0x18] sm:$0xff] (!%p6688_p12)  ;;  %v3495_v27 = vld [vmem:[#allocation3 + $0xb0] sm:$0xff] (!%p6688_p12)  ;;  %v3493_v51 = vld [vmem:[#allocation3 + $0xa0] sm:$0xff] (!%p6688_p12) }
 0x303   : > { %v3480_v9 = vld [vmem:[#allocation3 + $0x38] sm:$0xff] (!%p6688_p12)  ;;  %v3478_v30 = vld [vmem:[#allocation3 + $0x28] sm:$0xff] (!%p6688_p12)  ;;  %v3483_v23 = vld [vmem:[#allocation3 + $0x50] sm:$0xff] (!%p6688_p12) }
 0x304   : > { %v3496_v45 = vld [vmem:[#allocation3 + $0xb8] sm:$0xff] (!%p6688_p12)  ;;  %v3494_v22 = vld [vmem:[#allocation3 + $0xa8] sm:$0xff] (!%p6688_p12)  ;;  %v3499_v8 = vld [vmem:[#allocation3 + $0xd0] sm:$0xff] (!%p6688_p12) }
 0x305   : > { %v3481_v56 = vld [vmem:[#allocation3 + $0x40] sm:$0xff] (!%p6688_p12)  ;;  %v3484_v16 = vld [vmem:[#allocation3 + $0x58] sm:$0xff] (!%p6688_p12) }
 0x306   : > { %v3497_v35 = vld [vmem:[#allocation3 + $0xc0] sm:$0xff] (!%p6688_p12)  ;;  %v3500_v32 = vld [vmem:[#allocation3 + $0xd8] sm:$0xff] (!%p6688_p12) }
 0x309   : > { %s12906_s5 = smov (!%p3506_p13, %s6689_s5), 0 }
 0x30a   : > { %s6779_s6 = smul.u32 20, %s12906_s5 }
 0x30c   : > { %s3510_s9 = scalar_lea.vmem %s12096_s1, %s6779_s6 }
 0x30d   : > { %v7125_v41 = vld [vmem:[%s3510_s9] sm:$0xff]   ;;  %v7126_v21 = vld [vmem:[%s3510_s9 + $0x8] sm:$0xff]   ;;  %v7127_v46 = vld [vmem:[%s3510_s9 + $0x10] ss:$0 sps:$4 sm:$0x33]  }
 0x30e   : > { %6920 = vmatprep.subr.bf16.mxu0 %v7125_v41  ;;  %6964 = vmatprep.subr.bf16.mxu1 %v7125_v41  ;;  %v3566_v20 = vsel %vm3564_vm2, %v7127_v46, 0 }
 0x30f   : > { %6921 = vmatpush3.bf16.msra.mxu0 %v7125_v41  ;;  %6967 = vmatpush3.bf16.msra.mxu1 %v7125_v41  ;;  %v3482_v41 = vld [vmem:[#allocation3 + $0x48] sm:$0xff] }
 0x310   : > { %6922 = vmatprep.subr.bf16.mxu0 %v7126_v21  ;;  %6965 = vmatprep.subr.bf16.mxu1 %v7126_v21 }
 0x313   : > { %6923 = vmatpush3.bf16.msra.mxu0 %v7126_v21  ;;  %6968 = vmatpush3.bf16.msra.mxu1 %v7126_v21  ;;  %v3498_v21 = vld [vmem:[#allocation3 + $0xc8] sm:$0xff] }
 0x314   : > { %6972 = vmatprep.subr.msk.bf16.mxu0 %vm3564_vm2, %v7127_v46  ;;  %6973 = vmatprep.subr.msk.bf16.mxu1 %vm3564_vm2, %v7127_v46 }
 0x317   : > { %6925 = vmatpush3.bf16.msra.mxu0 %v3566_v20  ;;  %6969 = vmatpush3.bf16.msra.mxu1 %v3566_v20 }
 0x31a   : > { %6927 = vmatmul.mubr.msk.bf16.vlgmr.msra.gmra.mrb[0].mxu0 %vm3531_vm1, %v9534_v43  ;;  %6943 = vmatmul.mubr.msk.bf16.vlgmr.msra.gmra.mrb[0].mxu1 %vm3531_vm1, %v9566_v15  ;;  %v3475_v43 = vld [vmem:[#allocation3 + $0x10] sm:$0xff] }
 0x31b   : > { %6930 = vmatprep.mubr.msk.bf16.mxu0 %vm3531_vm1, %v9546_v25  ;;  %6946 = vmatprep.mubr.msk.bf16.mxu1 %vm3531_vm1, %v9578_v26  ;;  %v3473_v25 = vld [vmem:[#allocation3] sm:$0xff] }
 0x322   : > { %6931 = vmatmul.mubr.msk.bf16.gmra.mrb[4].mxu0 %vm3531_vm1, %v9542_v55  ;;  %6947 = vmatmul.mubr.msk.bf16.gmra.mrb[4].mxu1 %vm3531_vm1, %v9574_v60  ;;  %v3491_v55 = vld [vmem:[#allocation3 + $0x90] sm:$0xff]  ;;  %v3492_v60 = vld [vmem:[#allocation3 + $0x98] sm:$0xff] }
 0x323   : > { %6934 = vmatprep.mubr.msk.bf16.mxu0 %vm3531_vm1, %v9554_v29  ;;  %6950 = vmatprep.mubr.msk.bf16.mxu1 %vm3531_vm1, %v9588_v44  ;;  %v3489_v29 = vld [vmem:[#allocation3 + $0x80] sm:$0xff] }
 0x32a   : > { %6935 = vmatmul.mubr.msk.bf16.gmra.mrb[8].mxu0 %vm3531_vm1, %v9550_v2  ;;  %6951 = vmatmul.mubr.msk.bf16.gmra.mrb[8].mxu1 %vm3531_vm1, %v9582_v38 }
 0x32b   : > { %6938 = vmatprep.mubr.msk.bf16.mxu0 %vm3531_vm1, %v9562_v28  ;;  %6954 = vmatprep.mubr.msk.bf16.mxu1 %vm3531_vm1, %v9599_v58  ;;  %v3490_v58 = vld [vmem:[#allocation3 + $0x88] sm:$0xff] }
 0x332   : > { %6939 = vmatmul.mubr.msk.bf16.gmra.mrb[12].mxu0 %vm3531_vm1, %v9558_v52  ;;  %6955 = vmatmul.mubr.msk.bf16.gmra.mrb[12].mxu1 %vm3531_vm1, %v9595_v1 }
 0x3ed   : > { %v6928_v2 = vpop.f32.mrb[0].mxu0  ;;  %v6944_v15 = vpop.f32.mrb[0].mxu1 }
 0x3ee   : > { %v3731_v26 = vadd.f32 %v6928_v2, %v3475_v43  ;;  %v3747_v38 = vadd.f32 %v6944_v15, %v3491_v55  ;;  %v3602_v28 = vpop.f32.mrb[1].mxu0  ;;  %v3666_v44 = vpop.f32.mrb[1].mxu1 }
 0x3ef   : > { %v3729_v62 = vadd.f32 %v3602_v28, %v3473_v25  ;;  %v3745_v49 = vadd.f32 %v3666_v44, %v3489_v29  ;;  %v6929_v52 = vpop.f32.mrb[2].mxu0  ;;  %v6945_v18 = vpop.f32.mrb[2].mxu1  ;;  %v3485_v28 = vld [vmem:[#allocation3 + $0x60] sm:$0xff] }
 0x3f0   : > { %3763 = vst.msk [vmem:[#allocation3 + $0x10] sm:$0xff] %vm3113_vm14, %v3731_v26  ;;  %3779 = vst.msk [vmem:[#allocation3 + $0x90] sm:$0xff] %vm3113_vm14, %v3747_v38  ;;  %v3732_v1 = vadd.f32 %v6929_v52, %v3476_v40  ;;  %v3748_v47 = vadd.f32 %v6945_v18, %v3492_v60  ;;  %v3605_v31 = vpop.f32.mrb[3].mxu0  ;;  %v3669_v61 = vpop.f32.mrb[3].mxu1  ;;  %v3487_v26 = vld [vmem:[#allocation3 + $0x70] sm:$0xff]  ;;  %v3501_v44 = vld [vmem:[#allocation3 + $0xe0] sm:$0xff] }
 0x3f1   : > { %3761 = vst.msk [vmem:[#allocation3] sm:$0xff] %vm3113_vm14, %v3729_v62  ;;  %3777 = vst.msk [vmem:[#allocation3 + $0x80] sm:$0xff] %vm3113_vm14, %v3745_v49  ;;  %v3730_v34 = vadd.f32 %v3605_v31, %v3474_v13  ;;  %v3746_v59 = vadd.f32 %v3669_v61, %v3490_v58  ;;  %v3503_v38 = vld [vmem:[#allocation3 + $0xf0] sm:$0xff]  ;;  %v3488_v62 = vld [vmem:[#allocation3 + $0x78] sm:$0xff] }
 0x3f2   : > { %3764 = vst.msk [vmem:[#allocation3 + $0x18] sm:$0xff] %vm3113_vm14, %v3732_v1  ;;  %3780 = vst.msk [vmem:[#allocation3 + $0x98] sm:$0xff] %vm3113_vm14, %v3748_v47  ;;  %v3504_v49 = vld [vmem:[#allocation3 + $0xf8] sm:$0xff]  ;;  %v3486_v31 = vld [vmem:[#allocation3 + $0x68] sm:$0xff] }
 0x3f3   : > { %3762 = vst.msk [vmem:[#allocation3 + $0x8] sm:$0xff] %vm3113_vm14, %v3730_v34  ;;  %3778 = vst.msk [vmem:[#allocation3 + $0x88] sm:$0xff] %vm3113_vm14, %v3746_v59  ;;  %v3502_v61 = vld [vmem:[#allocation3 + $0xe8] sm:$0xff] }
 0x3f5   : > { %v6932_v39 = vpop.f32.mrb[4].mxu0  ;;  %v6948_v36 = vpop.f32.mrb[4].mxu1 }
 0x3f6   : > { %v3735_v19 = vadd.f32 %v6932_v39, %v3479_v7  ;;  %v3751_v10 = vadd.f32 %v6948_v36, %v3495_v27  ;;  %v3618_v6 = vpop.f32.mrb[5].mxu0  ;;  %v3682_v50 = vpop.f32.mrb[5].mxu1 }
 0x3f7   : > { %v3733_v48 = vadd.f32 %v3618_v6, %v3477_v17  ;;  %v3749_v42 = vadd.f32 %v3682_v50, %v3493_v51  ;;  %v6933_v63 = vpop.f32.mrb[6].mxu0  ;;  %v6949_v54 = vpop.f32.mrb[6].mxu1 }
 0x3f8   : > { %3767 = vst.msk [vmem:[#allocation3 + $0x30] sm:$0xff] %vm3113_vm14, %v3735_v19  ;;  %3783 = vst.msk [vmem:[#allocation3 + $0xb0] sm:$0xff] %vm3113_vm14, %v3751_v10  ;;  %v3736_v33 = vadd.f32 %v6933_v63, %v3480_v9  ;;  %v3752_v53 = vadd.f32 %v6949_v54, %v3496_v45  ;;  %v3621_v11 = vpop.f32.mrb[7].mxu0  ;;  %v3685_v37 = vpop.f32.mrb[7].mxu1 }
 0x3f9   : > { %3765 = vst.msk [vmem:[#allocation3 + $0x20] sm:$0xff] %vm3113_vm14, %v3733_v48  ;;  %3781 = vst.msk [vmem:[#allocation3 + $0xa0] sm:$0xff] %vm3113_vm14, %v3749_v42  ;;  %v3734_v3 = vadd.f32 %v3621_v11, %v3478_v30  ;;  %v3750_v14 = vadd.f32 %v3685_v37, %v3494_v22 }
 0x3fa   : > { %3768 = vst.msk [vmem:[#allocation3 + $0x38] sm:$0xff] %vm3113_vm14, %v3736_v33  ;;  %3784 = vst.msk [vmem:[#allocation3 + $0xb8] sm:$0xff] %vm3113_vm14, %v3752_v53 }
 0x3fb   : > { %3766 = vst.msk [vmem:[#allocation3 + $0x28] sm:$0xff] %vm3113_vm14, %v3734_v3  ;;  %3782 = vst.msk [vmem:[#allocation3 + $0xa8] sm:$0xff] %vm3113_vm14, %v3750_v14 }
 0x3fd   : > { %v6936_v4 = vpop.f32.mrb[8].mxu0  ;;  %v6952_v12 = vpop.f32.mrb[8].mxu1 }
 0x3fe   : > { %v3739_v0 = vadd.f32 %v6936_v4, %v3483_v23  ;;  %v3755_v5 = vadd.f32 %v6952_v12, %v3499_v8  ;;  %v3634_v24 = vpop.f32.mrb[9].mxu0  ;;  %v3698_v57 = vpop.f32.mrb[9].mxu1 }
 0x3ff   : > { %v3737_v46 = vadd.f32 %v3634_v24, %v3481_v56  ;;  %v3753_v20 = vadd.f32 %v3698_v57, %v3497_v35  ;;  %v6937_v43 = vpop.f32.mrb[10].mxu0  ;;  %v6953_v55 = vpop.f32.mrb[10].mxu1 }
 0x400   : > { %3771 = vst.msk [vmem:[#allocation3 + $0x50] sm:$0xff] %vm3113_vm14, %v3739_v0  ;;  %3787 = vst.msk [vmem:[#allocation3 + $0xd0] sm:$0xff] %vm3113_vm14, %v3755_v5  ;;  %v3740_v25 = vadd.f32 %v6937_v43, %v3484_v16  ;;  %v3756_v29 = vadd.f32 %v6953_v55, %v3500_v32  ;;  %v3637_v2 = vpop.f32.mrb[11].mxu0  ;;  %v3701_v15 = vpop.f32.mrb[11].mxu1 }
 0x401   : > { %3769 = vst.msk [vmem:[#allocation3 + $0x40] sm:$0xff] %vm3113_vm14, %v3737_v46  ;;  %3785 = vst.msk [vmem:[#allocation3 + $0xc0] sm:$0xff] %vm3113_vm14, %v3753_v20  ;;  %v3738_v40 = vadd.f32 %v3637_v2, %v3482_v41  ;;  %v3754_v60 = vadd.f32 %v3701_v15, %v3498_v21 }
 0x402   : > { %3772 = vst.msk [vmem:[#allocation3 + $0x58] sm:$0xff] %vm3113_vm14, %v3740_v25  ;;  %3788 = vst.msk [vmem:[#allocation3 + $0xd8] sm:$0xff] %vm3113_vm14, %v3756_v29 }
 0x403   : > { %3770 = vst.msk [vmem:[#allocation3 + $0x48] sm:$0xff] %vm3113_vm14, %v3738_v40  ;;  %3786 = vst.msk [vmem:[#allocation3 + $0xc8] sm:$0xff] %vm3113_vm14, %v3754_v60 }
 0x405   : > { %v6940_v13 = vpop.f32.mrb[12].mxu0  ;;  %v6956_v58 = vpop.f32.mrb[12].mxu1 }
 0x406   : > { %v3743_v52 = vadd.f32 %v6940_v13, %v3487_v26  ;;  %v3759_v18 = vadd.f32 %v6956_v58, %v3503_v38  ;;  %v3650_v1 = vpop.f32.mrb[13].mxu0  ;;  %v3714_v47 = vpop.f32.mrb[13].mxu1 }
 0x407   : > { %v3741_v34 = vadd.f32 %v3650_v1, %v3485_v28  ;;  %v3757_v59 = vadd.f32 %v3714_v47, %v3501_v44  ;;  %v6941_v7 = vpop.f32.mrb[14].mxu0  ;;  %v6957_v27 = vpop.f32.mrb[14].mxu1 }
 0x408   : > { %3775 = vst.msk [vmem:[#allocation3 + $0x70] sm:$0xff] %vm3113_vm14, %v3743_v52  ;;  %3791 = vst.msk [vmem:[#allocation3 + $0xf0] sm:$0xff] %vm3113_vm14, %v3759_v18  ;;  %v3744_v17 = vadd.f32 %v6941_v7, %v3488_v62  ;;  %v3760_v51 = vadd.f32 %v6957_v27, %v3504_v49  ;;  %v3653_v39 = vpop.f32.mrb[15].mxu0  ;;  %v3717_v36 = vpop.f32.mrb[15].mxu1 }
 0x409   : > { %3773 = vst.msk [vmem:[#allocation3 + $0x60] sm:$0xff] %vm3113_vm14, %v3741_v34  ;;  %3789 = vst.msk [vmem:[#allocation3 + $0xe0] sm:$0xff] %vm3113_vm14, %v3757_v59  ;;  %v3742_v9 = vadd.f32 %v3653_v39, %v3486_v31  ;;  %v3758_v45 = vadd.f32 %v3717_v36, %v3502_v61 }
 0x40a   : > { %3776 = vst.msk [vmem:[#allocation3 + $0x78] sm:$0xff] %vm3113_vm14, %v3744_v17  ;;  %3792 = vst.msk [vmem:[#allocation3 + $0xf8] sm:$0xff] %vm3113_vm14, %v3760_v51 }
 0x40b   : > { %3774 = vst.msk [vmem:[#allocation3 + $0x68] sm:$0xff] %vm3113_vm14, %v3742_v9  ;;  %3790 = vst.msk [vmem:[#allocation3 + $0xe8] sm:$0xff] %vm3113_vm14, %v3758_v45 }
 0x40c PF: > { %p6710_p0 = scmp.ne.s32.totalorder %s7158_s12, 3 }
 0x40e   : > { %3796 = sbr.rel (%p6710_p0) target bundleno = 1462 (0x5b6), region = 48 }
 0x415   : > { %v9744_v19 = vld [vmem:[%s12097_s2] ss:$0 sm:$0xff]  ;;  %v3799_v6 = vld [vmem:[#allocation2 + $0x8] sm:$0xff]  ;;  %v4064_v50 = vlaneseq  ;;  %v3800_v30 = vld [vmem:[#allocation2 + $0x10] sm:$0xff]  ;;  %v7193_v54 = vmov 1983009808  }
 0x416   : > { %v3798_v10 = vld [vmem:[#allocation2] sm:$0xff]  ;;  %v3801_v22 = vld [vmem:[#allocation2 + $0x18] sm:$0xff]  ;;  %v9750_v63 = vadd.f32 %v9744_v19, %v3799_v6  ;;  %v9752_v33 = vunpack.c.l.s4 %v7193_v54  ;;  %v3803_v53 = vld [vmem:[#allocation2 + $0x28] sm:$0xff]  ;;  %v9755_v3 = vadd.f32 %v9744_v19, %v3800_v30  ;;  %vm4732_vm3 = vcmask 254976  }
 0x417   : > { %v3802_v48 = vld [vmem:[#allocation2 + $0x20] sm:$0xff]  ;;  %v9747_v42 = vadd.f32 %v9744_v19, %v3798_v10  ;;  %v3804_v11 = vld [vmem:[#allocation2 + $0x30] sm:$0xff]  ;;  %v3805_v37 = vld [vmem:[#allocation2 + $0x38] sm:$0xff]  ;;  %v9758_v14 = vadd.f32 %v9744_v19, %v3801_v22  ;;  %v9763_v8 = vshrl.u32 %v4064_v50, 7  ;;  %v9766_v12 = vadd.f32 %v9744_v19, %v3803_v53 }
 0x418   : > { %12408 = vst [vmem:[#allocation48_spill] sm:$0xff] %v9752_v33  ;;  %v9761_v23 = vadd.f32 %v9744_v19, %v3802_v48  ;;  %v3806_v56 = vld [vmem:[#allocation2 + $0x40] sm:$0xff]  ;;  %v3807_v35 = vld [vmem:[#allocation2 + $0x48] sm:$0xff]  ;;  %v3808_v4 = vld [vmem:[#allocation2 + $0x50] sm:$0xff]  ;;  %v9769_v16 = vadd.f32 %v9744_v19, %v3804_v11  ;;  %v9772_v32 = vadd.f32 %v9744_v19, %v3805_v37  ;;  %vm6141_vm4 = vcmask 1041409  }
 0x419   : > { %12409 = vst [vmem:[#allocation49_spill] sm:$0xff] %v9763_v8  ;;  %v3809_v5 = vld [vmem:[#allocation2 + $0x58] sm:$0xff]  ;;  %v3810_v24 = vld [vmem:[#allocation2 + $0x60] sm:$0xff]  ;;  %v3811_v57 = vld [vmem:[#allocation2 + $0x68] sm:$0xff]  ;;  %v9776_v41 = vadd.f32 %v9744_v19, %v3806_v56  ;;  %v9779_v21 = vadd.f32 %v9744_v19, %v3807_v35  ;;  %v9782_v46 = vadd.f32 %v9744_v19, %v3808_v4  ;;  %vm6143_vm5 = vcmask 1042434  }
 0x41a   : > { %v3812_v43 = vld [vmem:[#allocation2 + $0x70] sm:$0xff]  ;;  %v3813_v55 = vld [vmem:[#allocation2 + $0x78] sm:$0xff]  ;;  %v3814_v25 = vld [vmem:[#allocation2 + $0x80] sm:$0xff]  ;;  %v9786_v29 = vadd.f32 %v9744_v19, %v3809_v5  ;;  %v9789_v2 = vadd.f32 %v9744_v19, %v3810_v24  ;;  %v9792_v15 = vadd.f32 %v9744_v19, %v3811_v57  ;;  %vm6145_vm6 = vcmask 1043459  }
 0x41b   : > { %v3815_v60 = vld [vmem:[#allocation2 + $0x88] sm:$0xff]  ;;  %v3816_v26 = vld [vmem:[#allocation2 + $0x90] sm:$0xff]  ;;  %v3817_v38 = vld [vmem:[#allocation2 + $0x98] sm:$0xff]  ;;  %v9796_v28 = vadd.f32 %v9744_v19, %v3812_v43  ;;  %v9799_v44 = vadd.f32 %v9744_v19, %v3813_v55  ;;  %v9802_v13 = vadd.f32 %v9744_v19, %v3814_v25  ;;  %vm6147_vm7 = vcmask 1044484  }
 0x41c   : > { %v3818_v62 = vld [vmem:[#allocation2 + $0xa0] sm:$0xff]  ;;  %v3819_v49 = vld [vmem:[#allocation2 + $0xa8] sm:$0xff]  ;;  %v3820_v52 = vld [vmem:[#allocation2 + $0xb0] sm:$0xff]  ;;  %v9806_v18 = vadd.f32 %v9744_v19, %v3815_v60  ;;  %v9809_v1 = vadd.f32 %v9744_v19, %v3816_v26  ;;  %v9812_v47 = vadd.f32 %v9744_v19, %v3817_v38  ;;  %vm6149_vm8 = vcmask 1045509  }
 0x41d   : > { %v3821_v61 = vld [vmem:[#allocation2 + $0xb8] sm:$0xff]  ;;  %v3822_v34 = vld [vmem:[#allocation2 + $0xc0] sm:$0xff]  ;;  %v3823_v59 = vld [vmem:[#allocation2 + $0xc8] sm:$0xff]  ;;  %v9816_v7 = vadd.f32 %v9744_v19, %v3818_v62  ;;  %v9819_v27 = vadd.f32 %v9744_v19, %v3819_v49  ;;  %v9822_v17 = vadd.f32 %v9744_v19, %v3820_v52  ;;  %vm6151_vm9 = vcmask 1046534  }
 0x41e   : > { %12410 = vst [vmem:[#allocation50_spill] sm:$0xff] %v9812_v47  ;;  %v3824_v39 = vld [vmem:[#allocation2 + $0xd0] sm:$0xff]  ;;  %v3825_v36 = vld [vmem:[#allocation2 + $0xd8] sm:$0xff]  ;;  %v3826_v9 = vld [vmem:[#allocation2 + $0xe0] sm:$0xff]  ;;  %v9826_v45 = vadd.f32 %v9744_v19, %v3821_v61  ;;  %v9829_v10 = vadd.f32 %v9744_v19, %v3822_v34  ;;  %v9832_v6 = vadd.f32 %v9744_v19, %v3823_v59  ;;  %vm6153_vm10 = vcmask 1047559  }
 0x41f   : > { %12411 = vst [vmem:[#allocation51_spill] sm:$0xff] %v9816_v7  ;;  %12412 = vst [vmem:[#allocation52_spill] sm:$0xff] %v9819_v27  ;;  %v3827_v30 = vld [vmem:[#allocation2 + $0xe8] sm:$0xff]  ;;  %v3828_v22 = vld [vmem:[#allocation2 + $0xf0] sm:$0xff]  ;;  %v9836_v54 = vadd.f32 %v9744_v19, %v3824_v39  ;;  %v9839_v53 = vadd.f32 %v9744_v19, %v3825_v36  ;;  %v9842_v11 = vadd.f32 %v9744_v19, %v3826_v9  ;;  %vm6220_vm11 = vcmask 257024  }
 0x420   : > { %12413 = vst [vmem:[#allocation53_spill] sm:$0xff] %v9822_v17  ;;  %12414 = vst [vmem:[#allocation54_spill] sm:$0xff] %v9826_v45  ;;  %v3829_v48 = vld [vmem:[#allocation2 + $0xf8] sm:$0xff]  ;;  %v9846_v56 = vadd.f32 %v9744_v19, %v3827_v30  ;;  %v9849_v35 = vadd.f32 %v9744_v19, %v3828_v22  ;;  %v3900_v25 = vld [vmem:[#allocation3] sm:$0xff] }
 0x421   : > { %12415 = vst [vmem:[#allocation55_spill] sm:$0xff] %v9829_v10  ;;  %12416 = vst [vmem:[#allocation56_spill] sm:$0xff] %v9832_v6  ;;  %v9852_v4 = vadd.f32 %v9744_v19, %v3829_v48  ;;  %v3901_v49 = vld [vmem:[#allocation3 + $0x8] sm:$0xff]  ;;  %v3902_v52 = vld [vmem:[#allocation3 + $0x10] sm:$0xff]  ;;  %v9879_v51 = vadd.f32 %v9744_v19, %v3900_v25 }
 0x422   : > { %12417 = vst [vmem:[#allocation57_spill] sm:$0xff] %v9836_v54  ;;  %12418 = vst [vmem:[#allocation58_spill] sm:$0xff] %v9839_v53  ;;  %v3903_v61 = vld [vmem:[#allocation3 + $0x18] sm:$0xff]  ;;  %v3904_v34 = vld [vmem:[#allocation3 + $0x20] sm:$0xff]  ;;  %v9882_v9 = vadd.f32 %v9744_v19, %v3901_v49  ;;  %v9885_v57 = vadd.f32 %v9744_v19, %v3902_v52 }
 0x423   : > { %12419 = vst [vmem:[#allocation59_spill] sm:$0xff] %v9842_v11  ;;  %12420 = vst [vmem:[#allocation60_spill] sm:$0xff] %v9846_v56  ;;  %v3905_v30 = vld [vmem:[#allocation3 + $0x28] sm:$0xff]  ;;  %v3906_v22 = vld [vmem:[#allocation3 + $0x30] sm:$0xff]  ;;  %v9888_v38 = vadd.f32 %v9744_v19, %v3903_v61  ;;  %v9891_v60 = vadd.f32 %v9744_v19, %v3904_v34 }
 0x424   : > { %12421 = vst [vmem:[#allocation61_spill] sm:$0xff] %v9849_v35  ;;  %12422 = vst [vmem:[#allocation62_spill] sm:$0xff] %v9852_v4  ;;  %v3907_v48 = vld [vmem:[#allocation3 + $0x38] sm:$0xff]  ;;  %v3908_v26 = vld [vmem:[#allocation3 + $0x40] sm:$0xff]  ;;  %v9894_v25 = vadd.f32 %v9744_v19, %v3905_v30  ;;  %v9897_v20 = vadd.f32 %v9744_v19, %v3906_v22  ;;  %v3966_v45 = vmax.f32 %v9885_v57, 0.0 }
 0x425   : > { %v3909_v43 = vld [vmem:[#allocation3 + $0x48] sm:$0xff]  ;;  %v3910_v59 = vld [vmem:[#allocation3 + $0x50] sm:$0xff]  ;;  %v3911_v24 = vld [vmem:[#allocation3 + $0x58] sm:$0xff]  ;;  %v9900_v49 = vadd.f32 %v9744_v19, %v3907_v48  ;;  %v9903_v52 = vadd.f32 %v9744_v19, %v3908_v26 }
 0x426   : > { %v3912_v5 = vld [vmem:[#allocation3 + $0x60] sm:$0xff]  ;;  %v3913_v37 = vld [vmem:[#allocation3 + $0x68] sm:$0xff]  ;;  %v3914_v55 = vld [vmem:[#allocation3 + $0x70] sm:$0xff]  ;;  %v9906_v34 = vadd.f32 %v9744_v19, %v3909_v43  ;;  %v9909_v33 = vadd.f32 %v9744_v19, %v3910_v59  ;;  %v9912_v30 = vadd.f32 %v9744_v19, %v3911_v24  ;;  %v3969_v17 = vmax.f32 %v9894_v25, 0.0 }
 0x427   : > { %v3915_v50 = vld [vmem:[#allocation3 + $0x78] sm:$0xff]  ;;  %v3916_v39 = vld [vmem:[#allocation3 + $0x80] sm:$0xff]  ;;  %v3917_v36 = vld [vmem:[#allocation3 + $0x88] sm:$0xff]  ;;  %v9915_v22 = vadd.f32 %v9744_v19, %v3912_v5  ;;  %v9918_v26 = vadd.f32 %v9744_v19, %v3913_v37  ;;  %v9921_v56 = vadd.f32 %v9744_v19, %v3914_v55  ;;  %v3972_v27 = vmax.f32 %v9903_v52, 0.0 }
 0x428   : > { %v3918_v31 = vld [vmem:[#allocation3 + $0x90] sm:$0xff]  ;;  %v3919_v62 = vld [vmem:[#allocation3 + $0x98] sm:$0xff]  ;;  %v3920_v58 = vld [vmem:[#allocation3 + $0xa0] sm:$0xff]  ;;  %v9924_v43 = vadd.f32 %v9744_v19, %v3915_v50  ;;  %v9927_v59 = vadd.f32 %v9744_v19, %v3916_v39  ;;  %v9930_v5 = vadd.f32 %v9744_v19, %v3917_v36 }
 0x429   : > { %v3921_v40 = vld [vmem:[#allocation3 + $0xa8] sm:$0xff]  ;;  %v3922_v61 = vld [vmem:[#allocation3 + $0xb0] sm:$0xff]  ;;  %v3923_v0 = vld [vmem:[#allocation3 + $0xb8] sm:$0xff]  ;;  %v9933_v54 = vadd.f32 %v9744_v19, %v3918_v31  ;;  %v9936_v37 = vadd.f32 %v9744_v19, %v3919_v62  ;;  %v9939_v55 = vadd.f32 %v9744_v19, %v3920_v58  ;;  %v3976_v57 = vmax.f32 %v9915_v22, 0.0 }
 0x42a   : > { %v3924_v8 = vld [vmem:[#allocation3 + $0xc0] sm:$0xff]  ;;  %v3925_v48 = vld [vmem:[#allocation3 + $0xc8] sm:$0xff]  ;;  %v3926_v4 = vld [vmem:[#allocation3 + $0xd0] sm:$0xff]  ;;  %v9942_v6 = vadd.f32 %v9744_v19, %v3921_v40  ;;  %v9945_v39 = vadd.f32 %v9744_v19, %v3922_v61  ;;  %v9948_v10 = vadd.f32 %v9744_v19, %v3923_v0  ;;  %v3979_v25 = vmax.f32 %v9924_v43, 0.0 }
 0x42b   : > { %v3927_v35 = vld [vmem:[#allocation3 + $0xd8] sm:$0xff]  ;;  %v3928_v24 = vld [vmem:[#allocation3 + $0xe0] sm:$0xff]  ;;  %v3929_v11 = vld [vmem:[#allocation3 + $0xe8] sm:$0xff]  ;;  %v9951_v36 = vadd.f32 %v9744_v19, %v3924_v8  ;;  %v9954_v31 = vadd.f32 %v9744_v19, %v3925_v48  ;;  %v9957_v62 = vadd.f32 %v9744_v19, %v3926_v4  ;;  %v3964_v48 = vmax.f32 %v9879_v51, 0.0 }
 0x42c   : > { %v3930_v53 = vld [vmem:[#allocation3 + $0xf0] sm:$0xff]  ;;  %v3931_v50 = vld [vmem:[#allocation3 + $0xf8] sm:$0xff]  ;;  %v9960_v58 = vadd.f32 %v9744_v19, %v3927_v35  ;;  %v9963_v40 = vadd.f32 %v9744_v19, %v3928_v24  ;;  %v9966_v61 = vadd.f32 %v9744_v19, %v3929_v11  ;;  %v3965_v4 = vmax.f32 %v9882_v9, 0.0 }
 0x42d   : > { %v9969_v0 = vadd.f32 %v9744_v19, %v3930_v53  ;;  %v9972_v8 = vadd.f32 %v9744_v19, %v3931_v50  ;;  %v3967_v35 = vmax.f32 %v9888_v38, 0.0  ;;  %v3968_v24 = vmax.f32 %v9891_v60, 0.0 }
 0x42e   : > { %v3970_v11 = vmax.f32 %v9897_v20, 0.0  ;;  %v3971_v53 = vmax.f32 %v9900_v49, 0.0  ;;  %v3973_v19 = vmax.f32 %v9906_v34, 0.0  ;;  %v3974_v51 = vmax.f32 %v9909_v33, 0.0 }
 0x42f   : > { %v3975_v9 = vmax.f32 %v9912_v30, 0.0  ;;  %v3977_v38 = vmax.f32 %v9918_v26, 0.0  ;;  %v3978_v60 = vmax.f32 %v9921_v56, 0.0  ;;  %v3980_v20 = vmax.f32 %v9927_v59, 0.0 }
 0x430   : > { %v3981_v49 = vmax.f32 %v9930_v5, 0.0  ;;  %v3982_v52 = vmax.f32 %v9933_v54, 0.0  ;;  %v3983_v34 = vmax.f32 %v9936_v37, 0.0  ;;  %v3984_v33 = vmax.f32 %v9939_v55, 0.0 }
 0x431   : > { %v3985_v30 = vmax.f32 %v9942_v6, 0.0  ;;  %v3986_v22 = vmax.f32 %v9945_v39, 0.0  ;;  %v3987_v26 = vmax.f32 %v9948_v10, 0.0  ;;  %v3988_v56 = vmax.f32 %v9951_v36, 0.0 }
 0x432   : > { %v3989_v43 = vmax.f32 %v9954_v31, 0.0  ;;  %v3990_v59 = vmax.f32 %v9957_v62, 0.0  ;;  %v3991_v5 = vmax.f32 %v9960_v58, 0.0  ;;  %v3992_v54 = vmax.f32 %v9963_v40, 0.0 }
 0x433   : > { %v3993_v37 = vmax.f32 %v9966_v61, 0.0  ;;  %v3994_v55 = vmax.f32 %v9969_v0, 0.0  ;;  %v3995_v6 = vmax.f32 %v9972_v8, 0.0  ;;  %v12423_v50 = vmax.f32 %v9747_v42, 0.0 }
 0x434   : > { %v12424_v10 = vmax.f32 %v9750_v63, 0.0  ;;  %v12425_v31 = vmax.f32 %v9755_v3, 0.0  ;;  %v12426_v62 = vmax.f32 %v9758_v14, 0.0  ;;  %v12427_v40 = vmax.f32 %v9761_v23, 0.0 }
 0x435   : > { %v3996_v39 = vmax.f32 %v12423_v50, %v3964_v48  ;;  %v12428_v61 = vmax.f32 %v9766_v12, 0.0  ;;  %v12429_v42 = vmax.f32 %v9769_v16, 0.0  ;;  %v12430_v63 = vmax.f32 %v9772_v32, 0.0  ;;  %v12448_v50 = vld [vmem:[#allocation53_spill] sm:$0xff] }
 0x436   : > { %v3997_v36 = vmax.f32 %v12424_v10, %v3965_v4  ;;  %v3998_v7 = vmax.f32 %v12425_v31, %v3966_v45  ;;  %v3999_v58 = vmax.f32 %v12426_v62, %v3967_v35  ;;  %v10016_v47 = vmax.f32 %v12427_v40, %v3968_v24  ;;  %v12450_v10 = vld [vmem:[#allocation54_spill] sm:$0xff]  ;;  %v12452_v31 = vld [vmem:[#allocation55_spill] sm:$0xff]  ;;  %v12454_v40 = vld [vmem:[#allocation56_spill] sm:$0xff] }
 0x437   : > { %v10020_v0 = vmax.f32 %v12428_v61, %v3969_v17  ;;  %v10024_v8 = vmax.f32 %v12429_v42, %v3970_v11  ;;  %v10028_v48 = vmax.f32 %v12430_v63, %v3971_v53  ;;  %v12431_v3 = vmax.f32 %v9776_v41, 0.0  ;;  %v12456_v42 = vld [vmem:[#allocation57_spill] sm:$0xff] }
 0x438   : > { %v12432_v23 = vmax.f32 %v9779_v21, 0.0  ;;  %v12433_v12 = vmax.f32 %v9782_v46, 0.0  ;;  %v12434_v16 = vmax.f32 %v9786_v29, 0.0  ;;  %v12435_v32 = vmax.f32 %v9789_v2, 0.0 }
 0x439   : > { %v10032_v14 = vmax.f32 %v12431_v3, %v3972_v27  ;;  %v12436_v41 = vmax.f32 %v9792_v15, 0.0  ;;  %v12437_v21 = vmax.f32 %v9796_v28, 0.0  ;;  %v12438_v46 = vmax.f32 %v9799_v44, 0.0  ;;  %v12458_v3 = vld [vmem:[#allocation58_spill] sm:$0xff] }
 0x43a   : > { %v10036_v45 = vmax.f32 %v12432_v23, %v3973_v19  ;;  %v10040_v17 = vmax.f32 %v12433_v12, %v3974_v51  ;;  %v10044_v4 = vmax.f32 %v12434_v16, %v3975_v9  ;;  %v10048_v35 = vmax.f32 %v12435_v32, %v3976_v57  ;;  %v12442_v9 = vld [vmem:[#allocation50_spill] sm:$0xff]  ;;  %v12460_v12 = vld [vmem:[#allocation59_spill] sm:$0xff]  ;;  %v12462_v32 = vld [vmem:[#allocation60_spill] sm:$0xff] }
 0x43b   : > { %v10052_v27 = vmax.f32 %v12436_v41, %v3977_v38  ;;  %v10056_v24 = vmax.f32 %v12437_v21, %v3978_v60  ;;  %v10060_v11 = vmax.f32 %v12438_v46, %v3979_v25  ;;  %v12439_v29 = vmax.f32 %v9802_v13, 0.0  ;;  %v12444_v38 = vld [vmem:[#allocation51_spill] sm:$0xff]  ;;  %v12446_v25 = vld [vmem:[#allocation52_spill] sm:$0xff]  ;;  %v12464_v21 = vld [vmem:[#allocation61_spill] sm:$0xff] }
 0x43c   : > { %v12440_v2 = vmax.f32 %v9806_v18, 0.0  ;;  %v12441_v15 = vmax.f32 %v9809_v1, 0.0  ;;  %v12443_v28 = vmax.f32 %v12442_v9, 0.0  ;;  %v12445_v44 = vmax.f32 %v12444_v38, 0.0  ;;  %v12468_v9 = vld [vmem:[#allocation48_spill] sm:$0xff] }
 0x43d   : > { %v10064_v53 = vmax.f32 %v12439_v29, %v3980_v20  ;;  %v12447_v13 = vmax.f32 %v12446_v25, 0.0  ;;  %v12449_v18 = vmax.f32 %v12448_v50, 0.0  ;;  %v12451_v1 = vmax.f32 %v12450_v10, 0.0  ;;  %v12466_v29 = vld [vmem:[#allocation62_spill] sm:$0xff] }
 0x43e   : > { %v10068_v19 = vmax.f32 %v12440_v2, %v3981_v49  ;;  %v10072_v51 = vmax.f32 %v12441_v15, %v3982_v52  ;;  %v10076_v57 = vmax.f32 %v12443_v28, %v3983_v34  ;;  %v10080_v60 = vmax.f32 %v12445_v44, %v3984_v33 }
 0x43f   : > { %v10084_v20 = vmax.f32 %v12447_v13, %v3985_v30  ;;  %v10088_v49 = vmax.f32 %v12449_v18, %v3986_v22  ;;  %v10092_v52 = vmax.f32 %v12451_v1, %v3987_v26  ;;  %v12453_v62 = vmax.f32 %v12452_v31, 0.0 }
 0x440   : > { %v12455_v61 = vmax.f32 %v12454_v40, 0.0  ;;  %v12457_v63 = vmax.f32 %v12456_v42, 0.0  ;;  %v12459_v23 = vmax.f32 %v12458_v3, 0.0  ;;  %v12461_v16 = vmax.f32 %v12460_v12, 0.0 }
 0x441   : > { %v10096_v34 = vmax.f32 %v12453_v62, %v3988_v56  ;;  %v12463_v41 = vmax.f32 %v12462_v32, 0.0  ;;  %v12465_v46 = vmax.f32 %v12464_v21, 0.0  ;;  %v12467_v2 = vmax.f32 %v12466_v29, 0.0 }
 0x442   : > { %v10100_v33 = vmax.f32 %v12455_v61, %v3989_v43  ;;  %v10104_v30 = vmax.f32 %v12457_v63, %v3990_v59  ;;  %v10108_v22 = vmax.f32 %v12459_v23, %v3991_v5  ;;  %v10112_v26 = vmax.f32 %v12461_v16, %v3992_v54 }
 0x443   : > { %v10116_v56 = vmax.f32 %v12463_v41, %v3993_v37  ;;  %v10120_v43 = vmax.f32 %v12465_v46, %v3994_v55  ;;  %v10124_v59 = vmax.f32 %v12467_v2, %v3995_v6  ;;  %v4060_v15 = vcombine.high %v3996_v39, %v3996_v39  ;;  %v12469_v6 = vld [vmem:[#allocation49_spill] sm:$0xff] }
 0x444   : > { %v4063_v5 = vunpack.c.0.s8 %v12468_v9  ;;  %v4077_v28 = vcombine.high %v3997_v36, %v3997_v36  ;;  %v4094_v38 = vcombine.high %v3998_v7, %v3998_v7  ;;  %v4111_v44 = vcombine.high %v3999_v58, %v3999_v58 }
 0x445   : > { %v4128_v54 = vcombine.high %v10016_v47, %v10016_v47  ;;  %v4145_v37 = vcombine.high %v10020_v0, %v10020_v0  ;;  %v4162_v55 = vcombine.high %v10024_v8, %v10024_v8  ;;  %v4179_v25 = vcombine.high %v10028_v48, %v10028_v48 }
 0x446   : > { %v10136_v13 = vsub.s32 %v4063_v5, %v12469_v6  ;;  %v4196_v50 = vcombine.high %v10032_v14, %v10032_v14  ;;  %v4213_v18 = vcombine.high %v10036_v45, %v10036_v45  ;;  %v4230_v10 = vcombine.high %v10040_v17, %v10040_v17 }
 0x447   : > { %v4247_v1 = vcombine.high %v10044_v4, %v10044_v4  ;;  %v4264_v31 = vcombine.high %v10048_v35, %v10048_v35  ;;  %v4281_v62 = vcombine.high %v10052_v27, %v10052_v27  ;;  %v4298_v40 = vcombine.high %v10056_v24, %v10056_v24 }
 0x448   : > { %v10153_v61 = vrot.slane %v3996_v39, %v10136_v13  ;;  %v10156_v42 = vrot.slane %v4060_v15, %v10136_v13  ;;  %v10159_v63 = vrot.slane %v3997_v36, %v10136_v13  ;;  %v10162_v3 = vrot.slane %v4077_v28, %v10136_v13 }
 0x449   : > { %v10165_v23 = vrot.slane %v3998_v7, %v10136_v13  ;;  %v10168_v12 = vrot.slane %v4094_v38, %v10136_v13  ;;  %v10171_v16 = vrot.slane %v3999_v58, %v10136_v13  ;;  %v10174_v39 = vrot.slane %v4111_v44, %v10136_v13 }
 0x44a   : > { %v10194_v2 = vrot.slane %v10016_v47, %v10136_v13  ;;  %v10197_v15 = vrot.slane %v4128_v54, %v10136_v13  ;;  %v10201_v9 = vrot.slane %v10020_v0, %v10136_v13  ;;  %v10204_v5 = vrot.slane %v4145_v37, %v10136_v13 }
 0x44b   : > { %v10208_v28 = vrot.slane %v10024_v8, %v10136_v13  ;;  %v10211_v38 = vrot.slane %v4162_v55, %v10136_v13  ;;  %v10215_v47 = vrot.slane %v10028_v48, %v10136_v13  ;;  %v10218_v44 = vrot.slane %v4179_v25, %v10136_v13 }
 0x44c   : > { %v10238_v54 = vrot.slane %v10032_v14, %v10136_v13  ;;  %v10241_v8 = vrot.slane %v4196_v50, %v10136_v13  ;;  %v10245_v37 = vrot.slane %v10036_v45, %v10136_v13  ;;  %v10248_v55 = vrot.slane %v4213_v18, %v10136_v13 }
 0x44d   : > { %v10252_v25 = vrot.slane %v10040_v17, %v10136_v13  ;;  %v10255_v6 = vrot.slane %v4230_v10, %v10136_v13  ;;  %v10259_v14 = vrot.slane %v10044_v4, %v10136_v13  ;;  %v10262_v50 = vrot.slane %v4247_v1, %v10136_v13 }
 0x44e   : > { %v10282_v18 = vrot.slane %v10048_v35, %v10136_v13  ;;  %v10285_v17 = vrot.slane %v4264_v31, %v10136_v13  ;;  %v10289_v10 = vrot.slane %v10052_v27, %v10136_v13  ;;  %v10292_v48 = vrot.slane %v4281_v62, %v10136_v13 }
 0x44f   : > { %v10296_v1 = vrot.slane %v10056_v24, %v10136_v13  ;;  %v10299_v45 = vrot.slane %v4298_v40, %v10136_v13  ;;  %v4315_v35 = vcombine.high %v10060_v11, %v10060_v11  ;;  %v10305_v31 = vrot.slane %v10060_v11, %v10136_v13 }
 0x450   : > { %v4332_v62 = vcombine.high %v10064_v53, %v10064_v53  ;;  %v10328_v24 = vrot.slane %v10064_v53, %v10136_v13  ;;  %v4349_v40 = vcombine.high %v10068_v19, %v10068_v19  ;;  %v10334_v4 = vrot.slane %v10068_v19, %v10136_v13 }
 0x451   : > { %v10320_v11 = vrot.slane %v4315_v35, %v10136_v13  ;;  %v4366_v27 = vcombine.high %v10072_v51, %v10072_v51  ;;  %v10342_v0 = vrot.slane %v10072_v51, %v10136_v13  ;;  %v4383_v53 = vcombine.high %v10076_v57, %v10076_v57 }
 0x452   : > { %v10347_v29 = vrot.slane %v4332_v62, %v10136_v13  ;;  %v10352_v46 = vrot.slane %v4349_v40, %v10136_v13  ;;  %v10363_v21 = vrot.slane %v10076_v57, %v10136_v13  ;;  %v10376_v35 = vrot.slane %v10080_v60, %v10136_v13 }
 0x453   : > { %12470 = vst [vmem:[#allocation50_spill] sm:$0xff] %v10342_v0  ;;  %v10357_v58 = vrot.slane %v4366_v27, %v10136_v13  ;;  %v10366_v62 = vrot.slane %v4383_v53, %v10136_v13  ;;  %v4400_v27 = vcombine.high %v10080_v60, %v10080_v60  ;;  %v4417_v40 = vcombine.high %v10084_v20, %v10084_v20 }
 0x454   : > { %12471 = vst [vmem:[#allocation51_spill] sm:$0xff] %v10352_v46  ;;  %12473 = vst [vmem:[#allocation53_spill] sm:$0xff] %v10363_v21  ;;  %v10393_v60 = vrot.slane %v10084_v20, %v10136_v13  ;;  %v4434_v57 = vcombine.high %v10088_v49, %v10088_v49  ;;  %v10402_v51 = vrot.slane %v10088_v49, %v10136_v13 }
 0x455   : > { %12472 = vst [vmem:[#allocation52_spill] sm:$0xff] %v10357_v58  ;;  %12474 = vst [vmem:[#allocation54_spill] sm:$0xff] %v10366_v62  ;;  %v10387_v19 = vrot.slane %v4400_v27, %v10136_v13  ;;  %v10398_v53 = vrot.slane %v4417_v40, %v10136_v13  ;;  %v4451_v27 = vcombine.high %v10092_v52, %v10092_v52 }
 0x456   : > { %12475 = vst [vmem:[#allocation55_spill] sm:$0xff] %v10376_v35  ;;  %12477 = vst [vmem:[#allocation57_spill] sm:$0xff] %v10393_v60  ;;  %v10408_v7 = vrot.slane %v10092_v52, %v10136_v13  ;;  %v10415_v40 = vrot.slane %v4434_v57, %v10136_v13  ;;  %v4468_v49 = vcombine.high %v10096_v34, %v10096_v34 }
 0x457   : > { %12476 = vst [vmem:[#allocation56_spill] sm:$0xff] %v10387_v19  ;;  %12478 = vst [vmem:[#allocation58_spill] sm:$0xff] %v10398_v53  ;;  %v10424_v32 = vrot.slane %v4451_v27, %v10136_v13  ;;  %v10432_v57 = vrot.slane %v10096_v34, %v10136_v13  ;;  %v4485_v36 = vcombine.high %v10100_v33, %v10100_v33 }
 0x458   : > { %12479 = vst [vmem:[#allocation59_spill] sm:$0xff] %v10402_v51  ;;  %12480 = vst [vmem:[#allocation60_spill] sm:$0xff] %v10408_v7  ;;  %v10435_v60 = vrot.slane %v4468_v49, %v10136_v13  ;;  %v10443_v52 = vrot.slane %v10100_v33, %v10136_v13  ;;  %v4502_v20 = vcombine.high %v10104_v30, %v10104_v30 }
 0x459   : > { %12481 = vst [vmem:[#allocation61_spill] sm:$0xff] %v10415_v40  ;;  %12482 = vst [vmem:[#allocation62_spill] sm:$0xff] %v10424_v32  ;;  %v10449_v34 = vrot.slane %v10104_v30, %v10136_v13  ;;  %v10456_v7 = vrot.slane %v4485_v36, %v10136_v13  ;;  %v4519_v33 = vcombine.high %v10108_v22, %v10108_v22 }
 0x45a   : > { %12483 = vst [vmem:[#allocation48_spill] sm:$0xff] %v10432_v57  ;;  %12484 = vst [vmem:[#allocation49_spill] sm:$0xff] %v10435_v60  ;;  %v10463_v32 = vrot.slane %v4502_v20, %v10136_v13  ;;  %v10469_v49 = vrot.slane %v10108_v22, %v10136_v13  ;;  %v4536_v60 = vcombine.high %v10112_v26, %v10112_v26 }
 0x45b   : > { %12485 = vst [vmem:[#allocation63_spill] sm:$0xff] %v10443_v52  ;;  %12486 = vst [vmem:[#allocation64_spill] sm:$0xff] %v10449_v34  ;;  %v10474_v41 = vrot.slane %v4519_v33, %v10136_v13  ;;  %v10480_v20 = vrot.slane %v10112_v26, %v10136_v13  ;;  %v4553_v27 = vcombine.high %v10116_v56, %v10116_v56 }
 0x45c   : > { %12487 = vst [vmem:[#allocation65_spill] sm:$0xff] %v10456_v7  ;;  %12488 = vst [vmem:[#allocation66_spill] sm:$0xff] %v10463_v32  ;;  %v10490_v33 = vrot.slane %v10116_v56, %v10136_v13  ;;  %v10495_v34 = vrot.slane %v4536_v60, %v10136_v13  ;;  %v4570_v30 = vcombine.high %v10120_v43, %v10120_v43 }
 0x45d   : > { %12489 = vst [vmem:[#allocation67_spill] sm:$0xff] %v10469_v49  ;;  %12490 = vst [vmem:[#allocation68_spill] sm:$0xff] %v10474_v41  ;;  %v10502_v22 = vrot.slane %v4553_v27, %v10136_v13  ;;  %v10508_v56 = vrot.slane %v10120_v43, %v10136_v13  ;;  %v4587_v60 = vcombine.high %v10124_v59, %v10124_v59  ;;  %v4733_v49 = vsel %vm4732_vm3, %v10153_v61, -inf }
 0x45e   : > { %12491 = vst [vmem:[#allocation69_spill] sm:$0xff] %v10480_v20  ;;  %12492 = vst [vmem:[#allocation70_spill] sm:$0xff] %v10490_v33  ;;  %v10515_v26 = vrot.slane %v4570_v30, %v10136_v13  ;;  %v10519_v27 = vrot.slane %v10124_v59, %v10136_v13  ;;  %v4734_v36 = vrot.slane %v4733_v49, 4  ;;  %v4747_v43 = vsel %vm4732_vm3, %v10156_v42, -inf }
 0x45f   : > { %12493 = vst [vmem:[#allocation71_spill] sm:$0xff] %v10495_v34  ;;  %12494 = vst [vmem:[#allocation72_spill] sm:$0xff] %v10502_v22  ;;  %v10528_v20 = vrot.slane %v4587_v60, %v10136_v13  ;;  %v12499_v34 = vcombine.high %v10153_v61, %v10153_v61  ;;  %v12500_v30 = vcombine.high %v10156_v42, %v10156_v42  ;;  %v4761_v59 = vsel %vm4732_vm3, %v10159_v63, -inf }
 0x460   : > { %12495 = vst [vmem:[#allocation73_spill] sm:$0xff] %v10508_v56  ;;  %12496 = vst [vmem:[#allocation74_spill] sm:$0xff] %v10515_v26  ;;  %v4735_v13 = vmax.f32 %v4733_v49, %v4734_v36  ;;  %v4748_v56 = vrot.slane %v4747_v43, 4  ;;  %v12501_v61 = vcombine.high %v10159_v63, %v10159_v63  ;;  %v4762_v22 = vrot.slane %v4761_v59, 4 }
 0x461   : > { %12497 = vst [vmem:[#allocation75_spill] sm:$0xff] %v10519_v27  ;;  %12498 = vst [vmem:[#allocation76_spill] sm:$0xff] %v10528_v20  ;;  %v4740_v41 = vsel %vm4732_vm3, %v12499_v34, -inf  ;;  %v4754_v26 = vsel %vm4732_vm3, %v12500_v30, -inf  ;;  %v4775_v27 = vsel %vm4732_vm3, %v10162_v3, -inf  ;;  %v12502_v30 = vcombine.high %v10162_v3, %v10162_v3 }
 0x462   : > { %v4741_v60 = vrot.slane %v4740_v41, 4  ;;  %v4768_v34 = vsel %vm4732_vm3, %v12501_v61, -inf  ;;  %v4736_v33 = vrot.slane %v4735_v13, 2  ;;  %v4749_v36 = vmax.f32 %v4747_v43, %v4748_v56 }
 0x463   : > { %v4755_v20 = vrot.slane %v4754_v26, 4  ;;  %v4769_v32 = vrot.slane %v4768_v34, 4  ;;  %v4776_v42 = vrot.slane %v4775_v27, 4  ;;  %v4782_v7 = vsel %vm4732_vm3, %v12502_v30, -inf }
 0x464   : > { %v4742_v49 = vmax.f32 %v4740_v41, %v4741_v60  ;;  %v4737_v52 = vmax.f32 %v4735_v13, %v4736_v33  ;;  %v4750_v63 = vrot.slane %v4749_v36, 2  ;;  %v4763_v61 = vmax.f32 %v4761_v59, %v4762_v22 }
 0x465   : > { %v4756_v40 = vmax.f32 %v4754_v26, %v4755_v20  ;;  %v4770_v51 = vmax.f32 %v4768_v34, %v4769_v32  ;;  %v4777_v53 = vmax.f32 %v4775_v27, %v4776_v42  ;;  %v4783_v19 = vrot.slane %v4782_v7, 4 }
 0x466   : > { %v4743_v57 = vrot.slane %v4742_v49, 2  ;;  %v4738_v35 = vrot.slane %v4737_v52, 1  ;;  %v4751_v56 = vmax.f32 %v4749_v36, %v4750_v63  ;;  %v4764_v60 = vrot.slane %v4763_v61, 2 }
 0x467   : > { %v4757_v43 = vrot.slane %v4756_v40, 2  ;;  %v4771_v62 = vrot.slane %v4770_v51, 2  ;;  %v4778_v21 = vrot.slane %v4777_v53, 2  ;;  %v4784_v58 = vmax.f32 %v4782_v7, %v4783_v19 }
 0x468   : > { %v4744_v41 = vmax.f32 %v4742_v49, %v4743_v57  ;;  %v10558_v0 = vmax.f32 %v4737_v52, %v4738_v35  ;;  %v4752_v30 = vrot.slane %v4751_v56, 1  ;;  %v4765_v13 = vmax.f32 %v4763_v61, %v4764_v60 }
 0x469   : > { %v4758_v33 = vmax.f32 %v4756_v40, %v4757_v43  ;;  %v4772_v46 = vmax.f32 %v4770_v51, %v4771_v62  ;;  %v4779_v20 = vmax.f32 %v4777_v53, %v4778_v21  ;;  %v4785_v22 = vrot.slane %v4784_v58, 2 }
 0x46a   : > { %v4745_v3 = vrot.slane %v4744_v41, 1  ;;  %v10562_v26 = vmax.f32 %v4751_v56, %v4752_v30  ;;  %v4789_v27 = vsel %vm4732_vm3, %v10165_v23, -inf  ;;  %v4766_v59 = vrot.slane %v4765_v13, 1 }
 0x46b   : > { %v4759_v57 = vrot.slane %v4758_v33, 1  ;;  %v4773_v34 = vrot.slane %v4772_v46, 1  ;;  %v4780_v7 = vrot.slane %v4779_v20, 1  ;;  %v4786_v35 = vmax.f32 %v4784_v58, %v4785_v22 }
 0x46c   : > { %v10560_v32 = vmax.f32 %v4744_v41, %v4745_v3  ;;  %v4790_v52 = vrot.slane %v4789_v27, 4  ;;  %v12503_v51 = vcombine.high %v10165_v23, %v10165_v23  ;;  %v4803_v62 = vsel %vm4732_vm3, %v10168_v12, -inf }
 0x46d   : > { %v10566_v19 = vmax.f32 %v4758_v33, %v4759_v57  ;;  %v10574_v53 = vmax.f32 %v4765_v13, %v4766_v59  ;;  %v10576_v40 = vmax.f32 %v4772_v46, %v4773_v34  ;;  %v10578_v49 = vmax.f32 %v4779_v20, %v4780_v7 }
 0x46e   : > { %v4796_v21 = vsel %vm4732_vm3, %v12503_v51, -inf  ;;  %v4787_v36 = vrot.slane %v4786_v35, 1  ;;  %v4791_v42 = vmax.f32 %v4789_v27, %v4790_v52  ;;  %v4804_v63 = vrot.slane %v4803_v62, 4 }
 0x46f   : > { %12504 = vst [vmem:[#allocation77_spill] sm:$0xff] %v10578_v49  ;;  %v4797_v58 = vrot.slane %v4796_v21, 4  ;;  %v12505_v61 = vcombine.high %v10168_v12, %v10168_v12  ;;  %v4817_v43 = vsel %vm4732_vm3, %v10171_v16, -inf  ;;  %v12507_v46 = vcombine.high %v10171_v16, %v10171_v16 }
 0x470   : > { %v10584_v41 = vmax.f32 %v4786_v35, %v4787_v36  ;;  %v4792_v3 = vrot.slane %v4791_v42, 2  ;;  %v4805_v33 = vmax.f32 %v4803_v62, %v4804_v63  ;;  %v4818_v13 = vrot.slane %v4817_v43, 4 }
 0x471   : > { %v4810_v23 = vsel %vm4732_vm3, %v12505_v61, -inf  ;;  %v4824_v60 = vsel %vm4732_vm3, %v12507_v46, -inf  ;;  %v4798_v30 = vmax.f32 %v4796_v21, %v4797_v58  ;;  %v4831_v12 = vsel %vm4732_vm3, %v10174_v39, -inf }
 0x472   : > { %12506 = vst [vmem:[#allocation78_spill] sm:$0xff] %v10584_v41  ;;  %v4811_v56 = vrot.slane %v4810_v23, 4  ;;  %v4825_v22 = vrot.slane %v4824_v60, 4  ;;  %v12508_v57 = vcombine.high %v10174_v39, %v10174_v39  ;;  %v4793_v59 = vmax.f32 %v4791_v42, %v4792_v3 }
 0x473   : > { %v4799_v34 = vrot.slane %v4798_v30, 2  ;;  %v4806_v7 = vrot.slane %v4805_v33, 2  ;;  %v4819_v16 = vmax.f32 %v4817_v43, %v4818_v13  ;;  %v4832_v51 = vrot.slane %v4831_v12, 4 }
 0x474   : > { %v4812_v20 = vmax.f32 %v4810_v23, %v4811_v56  ;;  %v4838_v27 = vsel %vm4732_vm3, %v12508_v57, -inf  ;;  %v4826_v52 = vmax.f32 %v4824_v60, %v4825_v22  ;;  %v4794_v62 = vrot.slane %v4793_v59, 1 }
 0x475   : > { %v4839_v21 = vrot.slane %v4838_v27, 4  ;;  %v4800_v36 = vmax.f32 %v4798_v30, %v4799_v34  ;;  %v4807_v58 = vmax.f32 %v4805_v33, %v4806_v7  ;;  %v4820_v63 = vrot.slane %v4819_v16, 2 }
 0x476   : > { %v4813_v35 = vrot.slane %v4812_v20, 2  ;;  %v4827_v23 = vrot.slane %v4826_v52, 2  ;;  %v4833_v56 = vmax.f32 %v4831_v12, %v4832_v51  ;;  %v10598_v41 = vmax.f32 %v4793_v59, %v4794_v62 }
 0x477   : > { %v4840_v46 = vmax.f32 %v4838_v27, %v4839_v21  ;;  %v4801_v39 = vrot.slane %v4800_v36, 1  ;;  %v4808_v57 = vrot.slane %v4807_v58, 1  ;;  %v4821_v42 = vmax.f32 %v4819_v16, %v4820_v63 }
 0x478   : > { %v4814_v61 = vmax.f32 %v4812_v20, %v4813_v35  ;;  %v4828_v49 = vmax.f32 %v4826_v52, %v4827_v23  ;;  %v4834_v43 = vrot.slane %v4833_v56, 2  ;;  %v4845_v33 = vsel %vm4732_vm3, %v10194_v2, -inf }
 0x479   : > { %v4841_v13 = vrot.slane %v4840_v46, 2  ;;  %v10600_v60 = vmax.f32 %v4800_v36, %v4801_v39  ;;  %v10602_v22 = vmax.f32 %v4807_v58, %v4808_v57  ;;  %v4822_v30 = vrot.slane %v4821_v42, 1 }
 0x47a   : > { %v4815_v3 = vrot.slane %v4814_v61, 1  ;;  %v4829_v12 = vrot.slane %v4828_v49, 1  ;;  %v4835_v27 = vmax.f32 %v4833_v56, %v4834_v43  ;;  %v4846_v7 = vrot.slane %v4845_v33, 4 }
 0x47b   : > { %v4842_v59 = vmax.f32 %v4840_v46, %v4841_v13  ;;  %v10608_v34 = vmax.f32 %v4821_v42, %v4822_v30  ;;  %v12509_v16 = vcombine.high %v10194_v2, %v10194_v2  ;;  %v4859_v52 = vsel %vm4732_vm3, %v10197_v15, -inf }
 0x47c   : > { %v10606_v20 = vmax.f32 %v4814_v61, %v4815_v3  ;;  %v10616_v51 = vmax.f32 %v4828_v49, %v4829_v12  ;;  %v4836_v21 = vrot.slane %v4835_v27, 1  ;;  %v4847_v58 = vmax.f32 %v4845_v33, %v4846_v7 }
 0x47d   : > { %v4852_v35 = vsel %vm4732_vm3, %v12509_v16, -inf  ;;  %v4843_v62 = vrot.slane %v4842_v59, 1  ;;  %v4860_v63 = vrot.slane %v4859_v52, 4  ;;  %v12510_v61 = vcombine.high %v10197_v15, %v10197_v15 }
 0x47e   : > { %v4853_v36 = vrot.slane %v4852_v35, 4  ;;  %v4873_v2 = vsel %vm4732_vm3, %v10201_v9, -inf  ;;  %v10624_v56 = vmax.f32 %v4835_v27, %v4836_v21  ;;  %v4848_v57 = vrot.slane %v4847_v58, 2 }
 0x47f   : > { %v4866_v23 = vsel %vm4732_vm3, %v12510_v61, -inf  ;;  %v10626_v46 = vmax.f32 %v4842_v59, %v4843_v62  ;;  %v4861_v42 = vmax.f32 %v4859_v52, %v4860_v63  ;;  %v4874_v3 = vrot.slane %v4873_v2, 4 }
 0x480   : > { %12511 = vst [vmem:[#allocation79_spill] sm:$0xff] %v10624_v56  ;;  %v4854_v39 = vmax.f32 %v4852_v35, %v4853_v36  ;;  %v4867_v49 = vrot.slane %v4866_v23, 4  ;;  %v12513_v43 = vcombine.high %v10201_v9, %v10201_v9  ;;  %v4887_v12 = vsel %vm4732_vm3, %v10204_v5, -inf }
 0x481   : > { %12512 = vst [vmem:[#allocation80_spill] sm:$0xff] %v10626_v46  ;;  %v4849_v27 = vmax.f32 %v4847_v58, %v4848_v57  ;;  %v4862_v7 = vrot.slane %v4861_v42, 2  ;;  %v4875_v59 = vmax.f32 %v4873_v2, %v4874_v3  ;;  %v4888_v16 = vrot.slane %v4887_v12, 4 }
 0x482   : > { %v4880_v13 = vsel %vm4732_vm3, %v12513_v43, -inf  ;;  %v4855_v15 = vrot.slane %v4854_v39, 2  ;;  %v4868_v30 = vmax.f32 %v4866_v23, %v4867_v49  ;;  %v12514_v52 = vcombine.high %v10204_v5, %v10204_v5 }
 0x483   : > { %v4881_v33 = vrot.slane %v4880_v13, 4  ;;  %v4850_v36 = vrot.slane %v4849_v27, 1  ;;  %v4863_v63 = vmax.f32 %v4861_v42, %v4862_v7  ;;  %v4876_v61 = vrot.slane %v4875_v59, 2 }
 0x484   : > { %v4856_v35 = vmax.f32 %v4854_v39, %v4855_v15  ;;  %v4869_v21 = vrot.slane %v4868_v30, 2  ;;  %v4894_v9 = vsel %vm4732_vm3, %v12514_v52, -inf  ;;  %v4889_v23 = vmax.f32 %v4887_v12, %v4888_v16 }
 0x485   : > { %v4882_v62 = vmax.f32 %v4880_v13, %v4881_v33  ;;  %v4895_v56 = vrot.slane %v4894_v9, 4  ;;  %v10638_v58 = vmax.f32 %v4849_v27, %v4850_v36  ;;  %v4864_v2 = vrot.slane %v4863_v63, 1 }
 0x486   : > { %v4857_v49 = vrot.slane %v4856_v35, 1  ;;  %v4870_v43 = vmax.f32 %v4868_v30, %v4869_v21  ;;  %v4877_v57 = vmax.f32 %v4875_v59, %v4876_v61  ;;  %v4890_v39 = vrot.slane %v4889_v23, 2 }
 0x487   : > { %v4883_v46 = vrot.slane %v4882_v62, 2  ;;  %v4896_v5 = vmax.f32 %v4894_v9, %v4895_v56  ;;  %v10642_v33 = vmax.f32 %v4863_v63, %v4864_v2  ;;  %v4901_v12 = vsel %vm4732_vm3, %v10208_v28, -inf }
 0x488   : > { %v10640_v3 = vmax.f32 %v4856_v35, %v4857_v49  ;;  %v4871_v13 = vrot.slane %v4870_v43, 1  ;;  %v4878_v52 = vrot.slane %v4877_v57, 1  ;;  %v4891_v42 = vmax.f32 %v4889_v23, %v4890_v39 }
 0x489   : > { %v4884_v15 = vmax.f32 %v4882_v62, %v4883_v46  ;;  %v4897_v27 = vrot.slane %v4896_v5, 2  ;;  %v4902_v16 = vrot.slane %v4901_v12, 4  ;;  %v12517_v35 = vcombine.high %v10208_v28, %v10208_v28 }
 0x48a   : > { %v10646_v30 = vmax.f32 %v4870_v43, %v4871_v13  ;;  %v10648_v21 = vmax.f32 %v4877_v57, %v4878_v52  ;;  %v4892_v59 = vrot.slane %v4891_v42, 1  ;;  %v4915_v46 = vsel %vm4732_vm3, %v10211_v38, -inf }
 0x48b   : > { %v4885_v7 = vrot.slane %v4884_v15, 1  ;;  %v4908_v56 = vsel %vm4732_vm3, %v12517_v35, -inf  ;;  %v4898_v9 = vmax.f32 %v4896_v5, %v4897_v27  ;;  %v4903_v36 = vmax.f32 %v4901_v12, %v4902_v16 }
 0x48c   : > { %12515 = vst [vmem:[#allocation81_spill] sm:$0xff] %v10646_v30  ;;  %12516 = vst [vmem:[#allocation82_spill] sm:$0xff] %v10648_v21  ;;  %v4909_v63 = vrot.slane %v4908_v56, 4  ;;  %v10658_v61 = vmax.f32 %v4891_v42, %v4892_v59  ;;  %v4916_v23 = vrot.slane %v4915_v46, 4  ;;  %v12520_v49 = vcombine.high %v10211_v38, %v10211_v38 }
 0x48d   : > { %v10656_v62 = vmax.f32 %v4884_v15, %v4885_v7  ;;  %v4929_v28 = vsel %vm4732_vm3, %v10215_v47, -inf  ;;  %v4899_v2 = vrot.slane %v4898_v9, 1  ;;  %v4904_v57 = vrot.slane %v4903_v36, 2 }
 0x48e   : > { %12519 = vst [vmem:[#allocation84_spill] sm:$0xff] %v10658_v61  ;;  %v4922_v43 = vsel %vm4732_vm3, %v12520_v49, -inf  ;;  %v4910_v39 = vmax.f32 %v4908_v56, %v4909_v63  ;;  %v4917_v15 = vmax.f32 %v4915_v46, %v4916_v23  ;;  %v4930_v52 = vrot.slane %v4929_v28, 4 }
 0x48f   : > { %12518 = vst [vmem:[#allocation83_spill] sm:$0xff] %v10656_v62  ;;  %v4923_v13 = vrot.slane %v4922_v43, 4  ;;  %v12521_v5 = vcombine.high %v10215_v47, %v10215_v47  ;;  %v4943_v12 = vsel %vm4732_vm3, %v10218_v44, -inf  ;;  %v10672_v38 = vmax.f32 %v4898_v9, %v4899_v2 }
 0x490   : > { %v4905_v7 = vmax.f32 %v4903_v36, %v4904_v57  ;;  %v4911_v27 = vrot.slane %v4910_v39, 2  ;;  %v4918_v59 = vrot.slane %v4917_v15, 2  ;;  %v4931_v35 = vmax.f32 %v4929_v28, %v4930_v52 }
 0x491   : > { %v4936_v42 = vsel %vm4732_vm3, %v12521_v5, -inf  ;;  %12522 = vst [vmem:[#allocation85_spill] sm:$0xff] %v10672_v38  ;;  %v4924_v16 = vmax.f32 %v4922_v43, %v4923_v13  ;;  %v4944_v56 = vrot.slane %v4943_v12, 4  ;;  %v12523_v47 = vcombine.high %v10218_v44, %v10218_v44 }
 0x492   : > { %v4937_v49 = vrot.slane %v4936_v42, 4  ;;  %v4906_v63 = vrot.slane %v4905_v7, 1  ;;  %v4912_v46 = vmax.f32 %v4910_v39, %v4911_v27  ;;  %v4919_v61 = vmax.f32 %v4917_v15, %v4918_v59 }
 0x493   : > { %v4925_v23 = vrot.slane %v4924_v16, 2  ;;  %v4950_v5 = vsel %vm4732_vm3, %v12523_v47, -inf  ;;  %v4932_v62 = vrot.slane %v4931_v35, 2  ;;  %v4945_v9 = vmax.f32 %v4943_v12, %v4944_v56 }
 0x494   : > { %v4938_v21 = vmax.f32 %v4936_v42, %v4937_v49  ;;  %v10678_v2 = vmax.f32 %v4905_v7, %v4906_v63  ;;  %v4913_v36 = vrot.slane %v4912_v46, 1  ;;  %v4951_v57 = vrot.slane %v4950_v5, 4 }
 0x495   : > { %v4926_v43 = vmax.f32 %v4924_v16, %v4925_v23  ;;  %v4920_v28 = vrot.slane %v4919_v61, 1  ;;  %v4933_v13 = vmax.f32 %v4931_v35, %v4932_v62  ;;  %v4946_v38 = vrot.slane %v4945_v9, 2 }
 0x496   : > { %v4939_v52 = vrot.slane %v4938_v21, 2  ;;  %v10680_v39 = vmax.f32 %v4912_v46, %v4913_v36  ;;  %v4952_v30 = vmax.f32 %v4950_v5, %v4951_v57  ;;  %v4957_v44 = vsel %vm4732_vm3, %v10238_v54, -inf }
 0x497   : > { %v4927_v27 = vrot.slane %v4926_v43, 1  ;;  %v10684_v15 = vmax.f32 %v4919_v61, %v4920_v28  ;;  %v4934_v42 = vrot.slane %v4933_v13, 1  ;;  %v4947_v7 = vmax.f32 %v4945_v9, %v4946_v38 }
 0x498   : > { %v4940_v12 = vmax.f32 %v4938_v21, %v4939_v52  ;;  %v4953_v16 = vrot.slane %v4952_v30, 2  ;;  %v4958_v49 = vrot.slane %v4957_v44, 4  ;;  %v12524_v62 = vcombine.high %v10238_v54, %v10238_v54 }
 0x499   : > { %v10686_v59 = vmax.f32 %v4926_v43, %v4927_v27  ;;  %v10692_v56 = vmax.f32 %v4933_v13, %v4934_v42  ;;  %v4948_v46 = vrot.slane %v4947_v7, 1  ;;  %v4971_v21 = vsel %vm4732_vm3, %v10241_v8, -inf }
 0x49a   : > { %v4964_v35 = vsel %vm4732_vm3, %v12524_v62, -inf  ;;  %v4941_v63 = vrot.slane %v4940_v12, 1  ;;  %v4954_v47 = vmax.f32 %v4952_v30, %v4953_v16  ;;  %v4959_v61 = vmax.f32 %v4957_v44, %v4958_v49 }
 0x49b   : > { %v4965_v23 = vrot.slane %v4964_v35, 4  ;;  %v12525_v38 = vcombine.high %v10241_v8, %v10241_v8  ;;  %v10702_v54 = vmax.f32 %v4947_v7, %v4948_v46  ;;  %v4972_v43 = vrot.slane %v4971_v21, 4 }
 0x49c   : > { %v10700_v9 = vmax.f32 %v4940_v12, %v4941_v63  ;;  %v4955_v57 = vrot.slane %v4954_v47, 1  ;;  %v4960_v28 = vrot.slane %v4959_v61, 2  ;;  %v4985_v30 = vsel %vm4732_vm3, %v10245_v37, -inf }
 0x49d   : > { %v4978_v5 = vsel %vm4732_vm3, %v12525_v38, -inf  ;;  %12527 = vst [vmem:[#allocation87_spill] sm:$0xff] %v10702_v54  ;;  %v4966_v36 = vmax.f32 %v4964_v35, %v4965_v23  ;;  %v4973_v27 = vmax.f32 %v4971_v21, %v4972_v43  ;;  %v4986_v44 = vrot.slane %v4985_v30, 4 }
 0x49e   : > { %12526 = vst [vmem:[#allocation86_spill] sm:$0xff] %v10700_v9  ;;  %v4979_v13 = vrot.slane %v4978_v5, 4  ;;  %v12528_v8 = vcombine.high %v10245_v37, %v10245_v37  ;;  %v10710_v12 = vmax.f32 %v4954_v47, %v4955_v57  ;;  %v4961_v7 = vmax.f32 %v4959_v61, %v4960_v28 }
 0x49f   : > { %v4967_v52 = vrot.slane %v4966_v36, 2  ;;  %v4974_v35 = vrot.slane %v4973_v27, 2  ;;  %v4987_v63 = vmax.f32 %v4985_v30, %v4986_v44  ;;  %v4999_v46 = vsel %vm4732_vm3, %v10248_v55, -inf }
 0x4a0   : > { %v4992_v42 = vsel %vm4732_vm3, %v12528_v8, -inf  ;;  %v4980_v16 = vmax.f32 %v4978_v5, %v4979_v13  ;;  %v4962_v23 = vrot.slane %v4961_v7, 1  ;;  %v5000_v43 = vrot.slane %v4999_v46, 4 }
 0x4a1   : > { %v4993_v49 = vrot.slane %v4992_v42, 4  ;;  %v4968_v62 = vmax.f32 %v4966_v36, %v4967_v52  ;;  %v4975_v9 = vmax.f32 %v4973_v27, %v4974_v35  ;;  %v4988_v37 = vrot.slane %v4987_v63, 2 }
 0x4a2   : > { %v4981_v38 = vrot.slane %v4980_v16, 2  ;;  %v12529_v47 = vcombine.high %v10248_v55, %v10248_v55  ;;  %v10718_v5 = vmax.f32 %v4961_v7, %v4962_v23  ;;  %v5001_v28 = vmax.f32 %v4999_v46, %v5000_v43 }
 0x4a3   : > { %v4994_v21 = vmax.f32 %v4992_v42, %v4993_v49  ;;  %v4969_v54 = vrot.slane %v4968_v62, 1  ;;  %v4976_v30 = vrot.slane %v4975_v9, 1  ;;  %v4989_v52 = vmax.f32 %v4987_v63, %v4988_v37 }
 0x4a4   : > { %v5006_v61 = vsel %vm4732_vm3, %v12529_v47, -inf  ;;  %v4982_v36 = vmax.f32 %v4980_v16, %v4981_v38  ;;  %v5002_v49 = vrot.slane %v5001_v28, 2  ;;  %v5013_v27 = vsel %vm4732_vm3, %v10252_v25, -inf }
 0x4a5   : > { %v4995_v57 = vrot.slane %v4994_v21, 2  ;;  %v10720_v13 = vmax.f32 %v4968_v62, %v4969_v54  ;;  %v5007_v44 = vrot.slane %v5006_v61, 4  ;;  %v10724_v35 = vmax.f32 %v4975_v9, %v4976_v30 }
 0x4a6   : > { %v4983_v8 = vrot.slane %v4982_v36, 1  ;;  %v4990_v55 = vrot.slane %v4989_v52, 1  ;;  %v5014_v7 = vrot.slane %v5013_v27, 4  ;;  %v5003_v46 = vmax.f32 %v5001_v28, %v5002_v49 }
 0x4a7   : > { %v4996_v42 = vmax.f32 %v4994_v21, %v4995_v57  ;;  %v5008_v47 = vmax.f32 %v5006_v61, %v5007_v44  ;;  %v12531_v54 = vcombine.high %v10252_v25, %v10252_v25  ;;  %v5027_v61 = vsel %vm4732_vm3, %v10255_v6, -inf }
 0x4a8   : > { %v10726_v23 = vmax.f32 %v4982_v36, %v4983_v8  ;;  %v10732_v63 = vmax.f32 %v4989_v52, %v4990_v55  ;;  %v5015_v21 = vmax.f32 %v5013_v27, %v5014_v7  ;;  %v5004_v9 = vrot.slane %v5003_v46, 1 }
 0x4a9   : > { %v4997_v16 = vrot.slane %v4996_v42, 1  ;;  %v5020_v62 = vsel %vm4732_vm3, %v12531_v54, -inf  ;;  %v5009_v38 = vrot.slane %v5008_v47, 2  ;;  %v12534_v36 = vcombine.high %v10255_v6, %v10255_v6 }
 0x4aa   : > { %12530 = vst [vmem:[#allocation88_spill] sm:$0xff] %v10726_v23  ;;  %12532 = vst [vmem:[#allocation89_spill] sm:$0xff] %v10732_v63  ;;  %v5021_v43 = vrot.slane %v5020_v62, 4  ;;  %v5016_v25 = vrot.slane %v5015_v21, 2  ;;  %v5028_v44 = vrot.slane %v5027_v61, 4  ;;  %v10742_v52 = vmax.f32 %v5003_v46, %v5004_v9 }
 0x4ab   : > { %v10734_v37 = vmax.f32 %v4996_v42, %v4997_v16  ;;  %v5034_v57 = vsel %vm4732_vm3, %v12534_v36, -inf  ;;  %v5010_v28 = vmax.f32 %v5008_v47, %v5009_v38  ;;  %v5041_v42 = vsel %vm4732_vm3, %v10259_v14, -inf }
 0x4ac   : > { %v5022_v30 = vmax.f32 %v5020_v62, %v5021_v43  ;;  %12535 = vst [vmem:[#allocation91_spill] sm:$0xff] %v10742_v52  ;;  %v5035_v8 = vrot.slane %v5034_v57, 4  ;;  %v12536_v49 = vcombine.high %v10259_v14, %v10259_v14  ;;  %v5017_v7 = vmax.f32 %v5015_v21, %v5016_v25 }
 0x4ad   : > { %12533 = vst [vmem:[#allocation90_spill] sm:$0xff] %v10734_v37  ;;  %v5011_v55 = vrot.slane %v5010_v28, 1  ;;  %v5029_v16 = vmax.f32 %v5027_v61, %v5028_v44  ;;  %v5042_v47 = vrot.slane %v5041_v42, 4  ;;  %v5055_v46 = vsel %vm4732_vm3, %v10262_v50, -inf }
 0x4ae   : > { %v5048_v27 = vsel %vm4732_vm3, %v12536_v49, -inf  ;;  %v5023_v6 = vrot.slane %v5022_v30, 2  ;;  %v5036_v54 = vmax.f32 %v5034_v57, %v5035_v8  ;;  %v5018_v43 = vrot.slane %v5017_v7, 1 }
 0x4af   : > { %v5049_v38 = vrot.slane %v5048_v27, 4  ;;  %v10752_v62 = vmax.f32 %v5010_v28, %v5011_v55  ;;  %v5030_v36 = vrot.slane %v5029_v16, 2  ;;  %v5043_v37 = vmax.f32 %v5041_v42, %v5042_v47 }
 0x4b0   : > { %v5024_v9 = vmax.f32 %v5022_v30, %v5023_v6  ;;  %v5037_v52 = vrot.slane %v5036_v54, 2  ;;  %v5056_v63 = vrot.slane %v5055_v46, 4  ;;  %v10754_v49 = vmax.f32 %v5017_v7, %v5018_v43 }
 0x4b1   : > { %12537 = vst [vmem:[#allocation92_spill] sm:$0xff] %v10752_v62  ;;  %v5050_v14 = vmax.f32 %v5048_v27, %v5049_v38  ;;  %v5031_v25 = vmax.f32 %v5029_v16, %v5030_v36  ;;  %v12538_v61 = vcombine.high %v10262_v50, %v10262_v50  ;;  %v5044_v8 = vrot.slane %v5043_v37, 2 }
 0x4b2   : > { %v5025_v21 = vrot.slane %v5024_v9, 1  ;;  %v5038_v44 = vmax.f32 %v5036_v54, %v5037_v52  ;;  %v5057_v55 = vmax.f32 %v5055_v46, %v5056_v63  ;;  %v5069_v42 = vsel %vm4732_vm3, %v10282_v18, -inf }
 0x4b3   : > { %v5062_v57 = vsel %vm4732_vm3, %v12538_v61, -inf  ;;  %v5051_v28 = vrot.slane %v5050_v14, 2  ;;  %v5032_v30 = vrot.slane %v5031_v25, 1  ;;  %v5045_v7 = vmax.f32 %v5043_v37, %v5044_v8 }
 0x4b4   : > { %v10760_v62 = vmax.f32 %v5024_v9, %v5025_v21  ;;  %v5063_v6 = vrot.slane %v5062_v57, 4  ;;  %v5039_v27 = vrot.slane %v5038_v44, 1  ;;  %v5058_v16 = vrot.slane %v5057_v55, 2 }
 0x4b5   : > { %v5052_v47 = vmax.f32 %v5050_v14, %v5051_v28  ;;  %v10764_v38 = vmax.f32 %v5031_v25, %v5032_v30  ;;  %v5070_v43 = vrot.slane %v5069_v42, 4  ;;  %v12539_v52 = vcombine.high %v10282_v18, %v10282_v18 }
 0x4b6   : > { %v5064_v50 = vmax.f32 %v5062_v57, %v5063_v6  ;;  %v10770_v54 = vmax.f32 %v5038_v44, %v5039_v27  ;;  %v5046_v46 = vrot.slane %v5045_v7, 1  ;;  %v5059_v36 = vmax.f32 %v5057_v55, %v5058_v16 }
 0x4b7   : > { %v5076_v63 = vsel %vm4732_vm3, %v12539_v52, -inf  ;;  %v5053_v9 = vrot.slane %v5052_v47, 1  ;;  %v5071_v61 = vmax.f32 %v5069_v42, %v5070_v43  ;;  %v5083_v37 = vsel %vm4732_vm3, %v10285_v17, -inf }
 0x4b8   : > { %v5065_v21 = vrot.slane %v5064_v50, 2  ;;  %v5077_v23 = vrot.slane %v5076_v63, 4  ;;  %v10774_v14 = vmax.f32 %v5045_v7, %v5046_v46  ;;  %v5060_v57 = vrot.slane %v5059_v36, 1 }
 0x4b9   : > { %v10776_v25 = vmax.f32 %v5052_v47, %v5053_v9  ;;  %v5084_v8 = vrot.slane %v5083_v37, 4  ;;  %v5072_v28 = vrot.slane %v5071_v61, 2  ;;  %v12541_v44 = vcombine.high %v10285_v17, %v10285_v17 }
 0x4ba   : > { %v5066_v18 = vmax.f32 %v5064_v50, %v5065_v21  ;;  %v5078_v30 = vmax.f32 %v5076_v63, %v5077_v23  ;;  %v10782_v6 = vmax.f32 %v5059_v36, %v5060_v57  ;;  %v5097_v7 = vsel %vm4732_vm3, %v10289_v10, -inf }
 0x4bb   : > { %12540 = vst [vmem:[#allocation93_spill] sm:$0xff] %v10776_v25  ;;  %v5090_v55 = vsel %vm4732_vm3, %v12541_v44, -inf  ;;  %v5085_v42 = vmax.f32 %v5083_v37, %v5084_v8  ;;  %v5073_v47 = vmax.f32 %v5071_v61, %v5072_v28  ;;  %v5098_v52 = vrot.slane %v5097_v7, 4 }
 0x4bc   : > { %12542 = vst [vmem:[#allocation94_spill] sm:$0xff] %v10782_v6  ;;  %v5091_v27 = vrot.slane %v5090_v55, 4  ;;  %v5067_v16 = vrot.slane %v5066_v18, 1  ;;  %v5079_v43 = vrot.slane %v5078_v30, 2  ;;  %v12543_v23 = vcombine.high %v10289_v10, %v10289_v10 }
 0x4bd   : > { %v5086_v46 = vrot.slane %v5085_v42, 2  ;;  %v5111_v63 = vsel %vm4732_vm3, %v10292_v48, -inf  ;;  %v5074_v36 = vrot.slane %v5073_v47, 1  ;;  %v5099_v37 = vmax.f32 %v5097_v7, %v5098_v52 }
 0x4be   : > { %v5092_v50 = vmax.f32 %v5090_v55, %v5091_v27  ;;  %v5104_v17 = vsel %vm4732_vm3, %v12543_v23, -inf  ;;  %v10792_v9 = vmax.f32 %v5066_v18, %v5067_v16  ;;  %v5080_v21 = vmax.f32 %v5078_v30, %v5079_v43 }
 0x4bf   : > { %v5087_v57 = vmax.f32 %v5085_v42, %v5086_v46  ;;  %v5105_v61 = vrot.slane %v5104_v17, 4  ;;  %v5112_v28 = vrot.slane %v5111_v63, 4  ;;  %v10794_v44 = vmax.f32 %v5073_v47, %v5074_v36 }
 0x4c0   : > { %12544 = vst [vmem:[#allocation95_spill] sm:$0xff] %v10792_v9  ;;  %v5093_v8 = vrot.slane %v5092_v50, 2  ;;  %v5081_v55 = vrot.slane %v5080_v21, 1  ;;  %v5100_v27 = vrot.slane %v5099_v37, 2  ;;  %v12546_v10 = vcombine.high %v10292_v48, %v10292_v48 }
 0x4c1   : > { %12545 = vst [vmem:[#allocation96_spill] sm:$0xff] %v10794_v44  ;;  %v5088_v6 = vrot.slane %v5087_v57, 1  ;;  %v5106_v18 = vmax.f32 %v5104_v17, %v5105_v61  ;;  %v5113_v16 = vmax.f32 %v5111_v63, %v5112_v28  ;;  %v5125_v7 = vsel %vm4732_vm3, %v10296_v1, -inf }
 0x4c2   : > { %v5118_v23 = vsel %vm4732_vm3, %v12546_v10, -inf  ;;  %v5094_v25 = vmax.f32 %v5092_v50, %v5093_v8  ;;  %v10800_v9 = vmax.f32 %v5080_v21, %v5081_v55  ;;  %v5101_v30 = vmax.f32 %v5099_v37, %v5100_v27 }
 0x4c3   : > { %v5119_v42 = vrot.slane %v5118_v23, 4  ;;  %v10804_v47 = vmax.f32 %v5087_v57, %v5088_v6  ;;  %v5107_v52 = vrot.slane %v5106_v18, 2  ;;  %v5114_v46 = vrot.slane %v5113_v16, 2 }
 0x4c4   : > { %v5095_v43 = vrot.slane %v5094_v25, 1  ;;  %v5102_v36 = vrot.slane %v5101_v30, 1  ;;  %v5126_v44 = vrot.slane %v5125_v7, 4  ;;  %v12547_v50 = vcombine.high %v10296_v1, %v10296_v1 }
 0x4c5   : > { %v5120_v48 = vmax.f32 %v5118_v23, %v5119_v42  ;;  %v5108_v21 = vmax.f32 %v5106_v18, %v5107_v52  ;;  %v5115_v37 = vmax.f32 %v5113_v16, %v5114_v46  ;;  %v5139_v28 = vsel %vm4732_vm3, %v10299_v45, -inf }
 0x4c6   : > { %v5132_v17 = vsel %vm4732_vm3, %v12547_v50, -inf  ;;  %v10810_v63 = vmax.f32 %v5094_v25, %v5095_v43  ;;  %v10812_v61 = vmax.f32 %v5101_v30, %v5102_v36  ;;  %v5127_v57 = vmax.f32 %v5125_v7, %v5126_v44 }
 0x4c7   : > { %v5133_v8 = vrot.slane %v5132_v17, 4  ;;  %v5121_v6 = vrot.slane %v5120_v48, 2  ;;  %v5109_v55 = vrot.slane %v5108_v21, 1  ;;  %v5116_v27 = vrot.slane %v5115_v37, 1 }
 0x4c8   : > { %12548 = vst [vmem:[#allocation97_spill] sm:$0xff] %v10812_v61  ;;  %v5140_v23 = vrot.slane %v5139_v28, 4  ;;  %v5128_v1 = vrot.slane %v5127_v57, 2  ;;  %v12549_v25 = vcombine.high %v10299_v45, %v10299_v45  ;;  %v5153_v16 = vsel %vm4732_vm3, %v10305_v31, -inf }
 0x4c9   : > { %v5134_v10 = vmax.f32 %v5132_v17, %v5133_v8  ;;  %v5122_v42 = vmax.f32 %v5120_v48, %v5121_v6  ;;  %v10822_v30 = vmax.f32 %v5108_v21, %v5109_v55  ;;  %v10824_v44 = vmax.f32 %v5115_v37, %v5116_v27 }
 0x4ca   : > { %v5146_v18 = vsel %vm4732_vm3, %v12549_v25, -inf  ;;  %v5141_v43 = vmax.f32 %v5139_v28, %v5140_v23  ;;  %v5129_v46 = vmax.f32 %v5127_v57, %v5128_v1  ;;  %v5154_v50 = vrot.slane %v5153_v16, 4 }
 0x4cb   : > { %12550 = vst [vmem:[#allocation98_spill] sm:$0xff] %v10822_v30  ;;  %12551 = vst [vmem:[#allocation99_spill] sm:$0xff] %v10824_v44  ;;  %v5135_v7 = vrot.slane %v5134_v10, 2  ;;  %v5123_v52 = vrot.slane %v5122_v42, 1  ;;  %v5147_v36 = vrot.slane %v5146_v18, 4  ;;  %v12552_v45 = vcombine.high %v10305_v31, %v10305_v31 }
 0x4cc   : > { %v5142_v17 = vrot.slane %v5141_v43, 2  ;;  %v5167_v6 = vsel %vm4732_vm3, %v10320_v11, -inf  ;;  %v5130_v37 = vrot.slane %v5129_v46, 1  ;;  %v5155_v27 = vmax.f32 %v5153_v16, %v5154_v50 }
 0x4cd   : > { %v5136_v48 = vmax.f32 %v5134_v10, %v5135_v7  ;;  %v5160_v8 = vsel %vm4732_vm3, %v12552_v45, -inf  ;;  %v10832_v21 = vmax.f32 %v5122_v42, %v5123_v52  ;;  %v5148_v55 = vmax.f32 %v5146_v18, %v5147_v36 }
 0x4ce   : > { %v5143_v23 = vmax.f32 %v5141_v43, %v5142_v17  ;;  %v5161_v57 = vrot.slane %v5160_v8, 4  ;;  %v5168_v1 = vrot.slane %v5167_v6, 4  ;;  %v10834_v25 = vmax.f32 %v5129_v46, %v5130_v37 }
 0x4cf   : > { %12553 = vst [vmem:[#allocation100_spill] sm:$0xff] %v10832_v21  ;;  %v5137_v28 = vrot.slane %v5136_v48, 1  ;;  %v5149_v10 = vrot.slane %v5148_v55, 2  ;;  %v5156_v7 = vrot.slane %v5155_v27, 2  ;;  %v12554_v31 = vcombine.high %v10320_v11, %v10320_v11 }
 0x4d0   : > { %v5144_v42 = vrot.slane %v5143_v23, 1  ;;  %v5162_v52 = vmax.f32 %v5160_v8, %v5161_v57  ;;  %v5169_v21 = vmax.f32 %v5167_v6, %v5168_v1  ;;  %v5181_v43 = vsel %vm4732_vm3, %v10328_v24, -inf }
 0x4d1   : > { %v5174_v45 = vsel %vm4732_vm3, %v12554_v31, -inf  ;;  %v10840_v44 = vmax.f32 %v5136_v48, %v5137_v28  ;;  %v5150_v18 = vmax.f32 %v5148_v55, %v5149_v10  ;;  %v5157_v16 = vmax.f32 %v5155_v27, %v5156_v7 }
 0x4d2   : > { %v5175_v36 = vrot.slane %v5174_v45, 4  ;;  %v10844_v46 = vmax.f32 %v5143_v23, %v5144_v42  ;;  %v5163_v50 = vrot.slane %v5162_v52, 2  ;;  %v5170_v17 = vrot.slane %v5169_v21, 2 }
 0x4d3   : > { %v5182_v37 = vrot.slane %v5181_v43, 4  ;;  %v5151_v30 = vrot.slane %v5150_v18, 1  ;;  %v5158_v11 = vrot.slane %v5157_v16, 1  ;;  %v12555_v48 = vcombine.high %v10328_v24, %v10328_v24 }
 0x4d4   : > { %v5176_v61 = vmax.f32 %v5174_v45, %v5175_v36  ;;  %v5164_v6 = vmax.f32 %v5162_v52, %v5163_v50  ;;  %v5171_v55 = vmax.f32 %v5169_v21, %v5170_v17  ;;  %v5195_v10 = vsel %vm4732_vm3, %v10347_v29, -inf }
 0x4d5   : > { %v5188_v8 = vsel %vm4732_vm3, %v12555_v48, -inf  ;;  %v5183_v27 = vmax.f32 %v5181_v43, %v5182_v37  ;;  %v10850_v57 = vmax.f32 %v5150_v18, %v5151_v30  ;;  %v10852_v1 = vmax.f32 %v5157_v16, %v5158_v11 }
 0x4d6   : > { %v5189_v28 = vrot.slane %v5188_v8, 4  ;;  %v5177_v23 = vrot.slane %v5176_v61, 2  ;;  %v5165_v7 = vrot.slane %v5164_v6, 1  ;;  %v5172_v31 = vrot.slane %v5171_v55, 1 }
 0x4d7   : > { %12556 = vst [vmem:[#allocation101_spill] sm:$0xff] %v10850_v57  ;;  %12557 = vst [vmem:[#allocation102_spill] sm:$0xff] %v10852_v1  ;;  %v5184_v45 = vrot.slane %v5183_v27, 2  ;;  %v5196_v24 = vrot.slane %v5195_v10, 4  ;;  %v12558_v52 = vcombine.high %v10347_v29, %v10347_v29  ;;  %v5209_v30 = vsel %vm4732_vm3, %v10334_v4, -inf }
 0x4d8   : > { %v5190_v42 = vmax.f32 %v5188_v8, %v5189_v28  ;;  %v5178_v36 = vmax.f32 %v5176_v61, %v5177_v23  ;;  %v10862_v18 = vmax.f32 %v5164_v6, %v5165_v7  ;;  %v10864_v16 = vmax.f32 %v5171_v55, %v5172_v31  ;;  %v12562_v23 = vld [vmem:[#allocation51_spill] sm:$0xff] }
 0x4d9   : > { %v5202_v21 = vsel %vm4732_vm3, %v12558_v52, -inf  ;;  %v5185_v43 = vmax.f32 %v5183_v27, %v5184_v45  ;;  %v5197_v37 = vmax.f32 %v5195_v10, %v5196_v24  ;;  %v5210_v48 = vrot.slane %v5209_v30, 4 }
 0x4da   : > { %12559 = vst [vmem:[#allocation103_spill] sm:$0xff] %v10862_v18  ;;  %12560 = vst [vmem:[#allocation104_spill] sm:$0xff] %v10864_v16  ;;  %v5191_v50 = vrot.slane %v5190_v42, 2  ;;  %v5179_v17 = vrot.slane %v5178_v36, 1  ;;  %v5203_v11 = vrot.slane %v5202_v21, 4  ;;  %v12561_v29 = vcombine.high %v10334_v4, %v10334_v4 }
 0x4db   : > { %v5186_v61 = vrot.slane %v5185_v43, 1  ;;  %v5223_v52 = vsel %vm4732_vm3, %v12562_v23, -inf  ;;  %v5198_v55 = vrot.slane %v5197_v37, 2  ;;  %v5211_v27 = vmax.f32 %v5209_v30, %v5210_v48 }
 0x4dc   : > { %v5192_v8 = vmax.f32 %v5190_v42, %v5191_v50  ;;  %v5216_v28 = vsel %vm4732_vm3, %v12561_v29, -inf  ;;  %v10872_v6 = vmax.f32 %v5178_v36, %v5179_v17  ;;  %v5204_v7 = vmax.f32 %v5202_v21, %v5203_v11  ;;  %v12567_v11 = vld [vmem:[#allocation50_spill] sm:$0xff] }
 0x4dd   : > { %v10874_v31 = vmax.f32 %v5185_v43, %v5186_v61  ;;  %v5217_v45 = vrot.slane %v5216_v28, 4  ;;  %v5224_v24 = vrot.slane %v5223_v52, 4  ;;  %v5199_v16 = vmax.f32 %v5197_v37, %v5198_v55 }
 0x4de   : > { %12563 = vst [vmem:[#allocation51_spill] sm:$0xff] %v10872_v6  ;;  %v5193_v10 = vrot.slane %v5192_v8, 1  ;;  %v5205_v42 = vrot.slane %v5204_v7, 2  ;;  %v5212_v50 = vrot.slane %v5211_v27, 2  ;;  %v12565_v4 = vcombine.high %v12562_v23, %v12562_v23 }
 0x4df   : > { %12564 = vst [vmem:[#allocation105_spill] sm:$0xff] %v10874_v31  ;;  %v5218_v36 = vmax.f32 %v5216_v28, %v5217_v45  ;;  %v5225_v17 = vmax.f32 %v5223_v52, %v5224_v24  ;;  %v5200_v21 = vrot.slane %v5199_v16, 1  ;;  %v5237_v48 = vsel %vm4732_vm3, %v12567_v11, -inf }
 0x4e0   : > { %v5230_v29 = vsel %vm4732_vm3, %v12565_v4, -inf  ;;  %v10880_v18 = vmax.f32 %v5192_v8, %v5193_v10  ;;  %v5206_v30 = vmax.f32 %v5204_v7, %v5205_v42  ;;  %v5213_v43 = vmax.f32 %v5211_v27, %v5212_v50 }
 0x4e1   : > { %v5231_v6 = vrot.slane %v5230_v29, 4  ;;  %v5219_v61 = vrot.slane %v5218_v36, 2  ;;  %v5226_v37 = vrot.slane %v5225_v17, 2  ;;  %v5238_v31 = vrot.slane %v5237_v48, 4 }
 0x4e2   : > { %12566 = vst [vmem:[#allocation106_spill] sm:$0xff] %v10880_v18  ;;  %v10884_v1 = vmax.f32 %v5199_v16, %v5200_v21  ;;  %v5207_v23 = vrot.slane %v5206_v30, 1  ;;  %v5214_v57 = vrot.slane %v5213_v43, 1  ;;  %v12569_v8 = vcombine.high %v12567_v11, %v12567_v11 }
 0x4e3   : > { %v5232_v55 = vmax.f32 %v5230_v29, %v5231_v6  ;;  %v5220_v52 = vmax.f32 %v5218_v36, %v5219_v61  ;;  %v5227_v10 = vmax.f32 %v5225_v17, %v5226_v37  ;;  %v5239_v27 = vmax.f32 %v5237_v48, %v5238_v31  ;;  %v12572_v6 = vld [vmem:[#allocation52_spill] sm:$0xff]  ;;  %v12574_v31 = vld [vmem:[#allocation53_spill] sm:$0xff] }
 0x4e4   : > { %12568 = vst [vmem:[#allocation50_spill] sm:$0xff] %v10884_v1  ;;  %v5244_v28 = vsel %vm4732_vm3, %v12569_v8, -inf  ;;  %v10890_v45 = vmax.f32 %v5206_v30, %v5207_v23  ;;  %v10892_v24 = vmax.f32 %v5213_v43, %v5214_v57  ;;  %v5251_v16 = vsel %vm4732_vm3, %v12572_v6, -inf }
 0x4e5   : > { %v5233_v7 = vrot.slane %v5232_v55, 2  ;;  %v5245_v42 = vrot.slane %v5244_v28, 4  ;;  %v5221_v50 = vrot.slane %v5220_v52, 1  ;;  %v5228_v4 = vrot.slane %v5227_v10, 1 }
 0x4e6   : > { %12570 = vst [vmem:[#allocation107_spill] sm:$0xff] %v10890_v45  ;;  %12571 = vst [vmem:[#allocation108_spill] sm:$0xff] %v10892_v24  ;;  %v5240_v21 = vrot.slane %v5239_v27, 2  ;;  %v5252_v11 = vrot.slane %v5251_v16, 4  ;;  %v12573_v36 = vcombine.high %v12572_v6, %v12572_v6  ;;  %v5265_v30 = vsel %vm4732_vm3, %v12574_v31, -inf }
 0x4e7   : > { %v5234_v29 = vmax.f32 %v5232_v55, %v5233_v7  ;;  %v5246_v1 = vmax.f32 %v5244_v28, %v5245_v42  ;;  %v10902_v57 = vmax.f32 %v5220_v52, %v5221_v50  ;;  %v10904_v43 = vmax.f32 %v5227_v10, %v5228_v4 }
 0x4e8   : > { %v5258_v17 = vsel %vm4732_vm3, %v12573_v36, -inf  ;;  %v5241_v61 = vmax.f32 %v5239_v27, %v5240_v21  ;;  %v5253_v23 = vmax.f32 %v5251_v16, %v5252_v11  ;;  %v5266_v8 = vrot.slane %v5265_v30, 4  ;;  %v12579_v36 = vld [vmem:[#allocation54_spill] sm:$0xff] }
 0x4e9   : > { %12575 = vst [vmem:[#allocation52_spill] sm:$0xff] %v10902_v57  ;;  %12576 = vst [vmem:[#allocation53_spill] sm:$0xff] %v10904_v43  ;;  %v5235_v48 = vrot.slane %v5234_v29, 1  ;;  %v5247_v37 = vrot.slane %v5246_v1, 2  ;;  %v5259_v55 = vrot.slane %v5258_v17, 4  ;;  %v12578_v42 = vcombine.high %v12574_v31, %v12574_v31 }
 0x4ea   : > { %v5242_v7 = vrot.slane %v5241_v61, 1  ;;  %v5279_v52 = vsel %vm4732_vm3, %v12579_v36, -inf  ;;  %v5254_v10 = vrot.slane %v5253_v23, 2  ;;  %v5267_v43 = vmax.f32 %v5265_v30, %v5266_v8 }
 0x4eb   : > { %v10906_v28 = vmax.f32 %v5234_v29, %v5235_v48  ;;  %v5272_v6 = vsel %vm4732_vm3, %v12578_v42, -inf  ;;  %v5248_v50 = vmax.f32 %v5246_v1, %v5247_v37  ;;  %v5260_v4 = vmax.f32 %v5258_v17, %v5259_v55  ;;  %v12581_v1 = vld [vmem:[#allocation55_spill] sm:$0xff] }
 0x4ec   : > { %v10914_v27 = vmax.f32 %v5241_v61, %v5242_v7  ;;  %v5273_v16 = vrot.slane %v5272_v6, 4  ;;  %v5280_v21 = vrot.slane %v5279_v52, 4  ;;  %v12580_v29 = vcombine.high %v12579_v36, %v12579_v36 }
 0x4ed   : > { %12577 = vst [vmem:[#allocation109_spill] sm:$0xff] %v10906_v28  ;;  %v5249_v48 = vrot.slane %v5248_v50, 1  ;;  %v5255_v31 = vmax.f32 %v5253_v23, %v5254_v10  ;;  %v5261_v28 = vrot.slane %v5260_v4, 2  ;;  %v5268_v42 = vrot.slane %v5267_v43, 2 }
 0x4ee   : > { %v5286_v11 = vsel %vm4732_vm3, %v12580_v29, -inf  ;;  %v5274_v57 = vmax.f32 %v5272_v6, %v5273_v16  ;;  %v5281_v24 = vmax.f32 %v5279_v52, %v5280_v21  ;;  %v5293_v17 = vsel %vm4732_vm3, %v12581_v1, -inf }
 0x4ef   : > { %v5287_v45 = vrot.slane %v5286_v11, 4  ;;  %v10922_v30 = vmax.f32 %v5248_v50, %v5249_v48  ;;  %v5256_v61 = vrot.slane %v5255_v31, 1  ;;  %v5262_v37 = vmax.f32 %v5260_v4, %v5261_v28 }
 0x4f0   : > { %v5269_v55 = vmax.f32 %v5267_v43, %v5268_v42  ;;  %v5275_v8 = vrot.slane %v5274_v57, 2  ;;  %v5282_v7 = vrot.slane %v5281_v24, 2  ;;  %v5294_v18 = vrot.slane %v5293_v17, 4 }
 0x4f1   : > { %12582 = vst [vmem:[#allocation54_spill] sm:$0xff] %v10922_v30  ;;  %v5288_v36 = vmax.f32 %v5286_v11, %v5287_v45  ;;  %v10924_v29 = vmax.f32 %v5255_v31, %v5256_v61  ;;  %v5263_v23 = vrot.slane %v5262_v37, 1  ;;  %v12584_v6 = vcombine.high %v12581_v1, %v12581_v1  ;;  %v12587_v45 = vld [vmem:[#allocation56_spill] sm:$0xff] }
 0x4f2   : > { %v5270_v10 = vrot.slane %v5269_v55, 1  ;;  %v5276_v16 = vmax.f32 %v5274_v57, %v5275_v8  ;;  %v5283_v21 = vmax.f32 %v5281_v24, %v5282_v7  ;;  %v5295_v48 = vmax.f32 %v5293_v17, %v5294_v18  ;;  %v12589_v18 = vld [vmem:[#allocation57_spill] sm:$0xff] }
 0x4f3   : > { %12583 = vst [vmem:[#allocation55_spill] sm:$0xff] %v10924_v29  ;;  %v5300_v52 = vsel %vm4732_vm3, %v12584_v6, -inf  ;;  %v5289_v50 = vrot.slane %v5288_v36, 2  ;;  %v10930_v30 = vmax.f32 %v5262_v37, %v5263_v23  ;;  %v5307_v4 = vsel %vm4732_vm3, %v12587_v45, -inf }
 0x4f4   : > { %v10932_v43 = vmax.f32 %v5269_v55, %v5270_v10  ;;  %v5301_v28 = vrot.slane %v5300_v52, 4  ;;  %v5277_v11 = vrot.slane %v5276_v16, 1  ;;  %v5284_v31 = vrot.slane %v5283_v21, 1 }
 0x4f5   : > { %12585 = vst [vmem:[#allocation110_spill] sm:$0xff] %v10930_v30  ;;  %v5290_v42 = vmax.f32 %v5288_v36, %v5289_v50  ;;  %v5296_v61 = vrot.slane %v5295_v48, 2  ;;  %v5308_v1 = vrot.slane %v5307_v4, 4  ;;  %v12588_v57 = vcombine.high %v12587_v45, %v12587_v45 }
 0x4f6   : > { %12586 = vst [vmem:[#allocation111_spill] sm:$0xff] %v10932_v43  ;;  %v5302_v29 = vmax.f32 %v5300_v52, %v5301_v28  ;;  %v5321_v17 = vsel %vm4732_vm3, %v12589_v18, -inf  ;;  %v10942_v37 = vmax.f32 %v5276_v16, %v5277_v11  ;;  %v10944_v55 = vmax.f32 %v5283_v21, %v5284_v31 }
 0x4f7   : > { %v5314_v24 = vsel %vm4732_vm3, %v12588_v57, -inf  ;;  %v5291_v8 = vrot.slane %v5290_v42, 1  ;;  %v5297_v7 = vmax.f32 %v5295_v48, %v5296_v61  ;;  %v5309_v10 = vmax.f32 %v5307_v4, %v5308_v1  ;;  %v12594_v57 = vld [vmem:[#allocation58_spill] sm:$0xff] }
 0x4f8   : > { %12590 = vst [vmem:[#allocation56_spill] sm:$0xff] %v10942_v37  ;;  %12591 = vst [vmem:[#allocation57_spill] sm:$0xff] %v10944_v55  ;;  %v5303_v23 = vrot.slane %v5302_v29, 2  ;;  %v5315_v36 = vrot.slane %v5314_v24, 4  ;;  %v5322_v6 = vrot.slane %v5321_v17, 4  ;;  %v12593_v28 = vcombine.high %v12589_v18, %v12589_v18 }
 0x4f9   : > { %v10946_v52 = vmax.f32 %v5290_v42, %v5291_v8  ;;  %v5298_v50 = vrot.slane %v5297_v7, 1  ;;  %v5335_v16 = vsel %vm4732_vm3, %v12594_v57, -inf  ;;  %v5310_v21 = vrot.slane %v5309_v10, 2 }
 0x4fa   : > { %v5328_v45 = vsel %vm4732_vm3, %v12593_v28, -inf  ;;  %v5304_v11 = vmax.f32 %v5302_v29, %v5303_v23  ;;  %v5316_v31 = vmax.f32 %v5314_v24, %v5315_v36  ;;  %v5323_v55 = vmax.f32 %v5321_v17, %v5322_v6  ;;  %v12597_v29 = vld [vmem:[#allocation59_spill] sm:$0xff] }
 0x4fb   : > { %12592 = vst [vmem:[#allocation112_spill] sm:$0xff] %v10946_v52  ;;  %v10954_v48 = vmax.f32 %v5297_v7, %v5298_v50  ;;  %v5329_v4 = vrot.slane %v5328_v45, 4  ;;  %v5336_v61 = vrot.slane %v5335_v16, 4  ;;  %v12596_v42 = vcombine.high %v12594_v57, %v12594_v57 }
 0x4fc   : > { %v5305_v8 = vrot.slane %v5304_v11, 1  ;;  %v5311_v18 = vmax.f32 %v5309_v10, %v5310_v21  ;;  %v5317_v52 = vrot.slane %v5316_v31, 2  ;;  %v5324_v28 = vrot.slane %v5323_v55, 2 }
 0x4fd   : > { %12595 = vst [vmem:[#allocation58_spill] sm:$0xff] %v10954_v48  ;;  %v5342_v1 = vsel %vm4732_vm3, %v12596_v42, -inf  ;;  %v5330_v37 = vmax.f32 %v5328_v45, %v5329_v4  ;;  %v5337_v43 = vmax.f32 %v5335_v16, %v5336_v61  ;;  %v5349_v24 = vsel %vm4732_vm3, %v12597_v29, -inf }
 0x4fe   : > { %v5343_v30 = vrot.slane %v5342_v1, 4  ;;  %v10962_v17 = vmax.f32 %v5304_v11, %v5305_v8  ;;  %v5312_v7 = vrot.slane %v5311_v18, 1  ;;  %v5318_v23 = vmax.f32 %v5316_v31, %v5317_v52 }
 0x4ff   : > { %v5325_v36 = vmax.f32 %v5323_v55, %v5324_v28  ;;  %v5331_v6 = vrot.slane %v5330_v37, 2  ;;  %v5338_v50 = vrot.slane %v5337_v43, 2  ;;  %v5350_v48 = vrot.slane %v5349_v24, 4 }
 0x500   : > { %12598 = vst [vmem:[#allocation59_spill] sm:$0xff] %v10962_v17  ;;  %v5344_v57 = vmax.f32 %v5342_v1, %v5343_v30  ;;  %v10964_v42 = vmax.f32 %v5311_v18, %v5312_v7  ;;  %v5319_v10 = vrot.slane %v5318_v23, 1  ;;  %v12600_v45 = vcombine.high %v12597_v29, %v12597_v29  ;;  %v12603_v30 = vld [vmem:[#allocation61_spill] sm:$0xff] }
 0x501   : > { %v5326_v21 = vrot.slane %v5325_v36, 1  ;;  %v5332_v4 = vmax.f32 %v5330_v37, %v5331_v6  ;;  %v5339_v61 = vmax.f32 %v5337_v43, %v5338_v50  ;;  %v5351_v8 = vmax.f32 %v5349_v24, %v5350_v48  ;;  %v12605_v48 = vld [vmem:[#allocation60_spill] sm:$0xff] }
 0x502   : > { %12599 = vst [vmem:[#allocation113_spill] sm:$0xff] %v10964_v42  ;;  %v5356_v16 = vsel %vm4732_vm3, %v12600_v45, -inf  ;;  %v5345_v11 = vrot.slane %v5344_v57, 2  ;;  %v10970_v17 = vmax.f32 %v5318_v23, %v5319_v10  ;;  %v5363_v31 = vsel %vm4732_vm3, %v12603_v30, -inf }
 0x503   : > { %v10972_v55 = vmax.f32 %v5325_v36, %v5326_v21  ;;  %v5357_v52 = vrot.slane %v5356_v16, 4  ;;  %v5333_v1 = vrot.slane %v5332_v4, 1  ;;  %v5340_v18 = vrot.slane %v5339_v61, 1 }
 0x504   : > { %12601 = vst [vmem:[#allocation114_spill] sm:$0xff] %v10970_v17  ;;  %v5346_v28 = vmax.f32 %v5344_v57, %v5345_v11  ;;  %v5352_v7 = vrot.slane %v5351_v8, 2  ;;  %v5364_v29 = vrot.slane %v5363_v31, 4  ;;  %v12604_v37 = vcombine.high %v12603_v30, %v12603_v30 }
 0x505   : > { %12602 = vst [vmem:[#allocation115_spill] sm:$0xff] %v10972_v55  ;;  %v5358_v42 = vmax.f32 %v5356_v16, %v5357_v52  ;;  %v5377_v24 = vsel %vm4732_vm3, %v12605_v48, -inf  ;;  %v10982_v23 = vmax.f32 %v5332_v4, %v5333_v1  ;;  %v10984_v36 = vmax.f32 %v5339_v61, %v5340_v18 }
 0x506   : > { %v5370_v43 = vsel %vm4732_vm3, %v12604_v37, -inf  ;;  %v5347_v6 = vrot.slane %v5346_v28, 1  ;;  %v5353_v50 = vmax.f32 %v5351_v8, %v5352_v7  ;;  %v5365_v21 = vmax.f32 %v5363_v31, %v5364_v29  ;;  %v12610_v37 = vld [vmem:[#allocation62_spill] sm:$0xff] }
 0x507   : > { %12606 = vst [vmem:[#allocation61_spill] sm:$0xff] %v10982_v23  ;;  %12607 = vst [vmem:[#allocation60_spill] sm:$0xff] %v10984_v36  ;;  %v5359_v10 = vrot.slane %v5358_v42, 2  ;;  %v5371_v57 = vrot.slane %v5370_v43, 4  ;;  %v5378_v45 = vrot.slane %v5377_v24, 4  ;;  %v12609_v52 = vcombine.high %v12605_v48, %v12605_v48 }
 0x508   : > { %v10986_v16 = vmax.f32 %v5346_v28, %v5347_v6  ;;  %v5354_v11 = vrot.slane %v5353_v50, 1  ;;  %v5391_v4 = vsel %vm4732_vm3, %v12610_v37, -inf  ;;  %v5366_v61 = vrot.slane %v5365_v21, 2 }
 0x509   : > { %v5384_v30 = vsel %vm4732_vm3, %v12609_v52, -inf  ;;  %v5360_v1 = vmax.f32 %v5358_v42, %v5359_v10  ;;  %v5372_v18 = vmax.f32 %v5370_v43, %v5371_v57  ;;  %v5379_v36 = vmax.f32 %v5377_v24, %v5378_v45  ;;  %v12613_v42 = vld [vmem:[#allocation48_spill] sm:$0xff] }
 0x50a   : > { %12608 = vst [vmem:[#allocation116_spill] sm:$0xff] %v10986_v16  ;;  %v10994_v8 = vmax.f32 %v5353_v50, %v5354_v11  ;;  %v5385_v31 = vrot.slane %v5384_v30, 4  ;;  %v5392_v7 = vrot.slane %v5391_v4, 4  ;;  %v12612_v28 = vcombine.high %v12610_v37, %v12610_v37 }
 0x50b   : > { %v5361_v6 = vrot.slane %v5360_v1, 1  ;;  %v5367_v48 = vmax.f32 %v5365_v21, %v5366_v61  ;;  %v5373_v16 = vrot.slane %v5372_v18, 2  ;;  %v5380_v52 = vrot.slane %v5379_v36, 2 }
 0x50c   : > { %12611 = vst [vmem:[#allocation62_spill] sm:$0xff] %v10994_v8  ;;  %v5398_v29 = vsel %vm4732_vm3, %v12612_v28, -inf  ;;  %v5386_v23 = vmax.f32 %v5384_v30, %v5385_v31  ;;  %v5393_v55 = vmax.f32 %v5391_v4, %v5392_v7  ;;  %v5405_v43 = vsel %vm4732_vm3, %v12613_v42, -inf }
 0x50d   : > { %v5399_v17 = vrot.slane %v5398_v29, 4  ;;  %v11002_v24 = vmax.f32 %v5360_v1, %v5361_v6  ;;  %v5368_v50 = vrot.slane %v5367_v48, 1  ;;  %v5374_v10 = vmax.f32 %v5372_v18, %v5373_v16 }
 0x50e   : > { %v5381_v57 = vmax.f32 %v5379_v36, %v5380_v52  ;;  %v5387_v45 = vrot.slane %v5386_v23, 2  ;;  %v5394_v11 = vrot.slane %v5393_v55, 2  ;;  %v5406_v8 = vrot.slane %v5405_v43, 4 }
 0x50f   : > { %12614 = vst [vmem:[#allocation48_spill] sm:$0xff] %v11002_v24  ;;  %v5400_v37 = vmax.f32 %v5398_v29, %v5399_v17  ;;  %v11004_v28 = vmax.f32 %v5367_v48, %v5368_v50  ;;  %v5375_v21 = vrot.slane %v5374_v10, 1  ;;  %v12616_v30 = vcombine.high %v12613_v42, %v12613_v42  ;;  %v12619_v17 = vld [vmem:[#allocation49_spill] sm:$0xff] }
 0x510   : > { %v5382_v61 = vrot.slane %v5381_v57, 1  ;;  %v5388_v31 = vmax.f32 %v5386_v23, %v5387_v45  ;;  %v5395_v7 = vmax.f32 %v5393_v55, %v5394_v11  ;;  %v5407_v6 = vmax.f32 %v5405_v43, %v5406_v8  ;;  %v12621_v8 = vld [vmem:[#allocation63_spill] sm:$0xff] }
 0x511   : > { %12615 = vst [vmem:[#allocation117_spill] sm:$0xff] %v11004_v28  ;;  %v5412_v4 = vsel %vm4732_vm3, %v12616_v30, -inf  ;;  %v5401_v1 = vrot.slane %v5400_v37, 2  ;;  %v11010_v24 = vmax.f32 %v5374_v10, %v5375_v21  ;;  %v5419_v18 = vsel %vm4732_vm3, %v12619_v17, -inf }
 0x512   : > { %v11012_v36 = vmax.f32 %v5381_v57, %v5382_v61  ;;  %v5413_v16 = vrot.slane %v5412_v4, 4  ;;  %v5389_v29 = vrot.slane %v5388_v31, 1  ;;  %v5396_v48 = vrot.slane %v5395_v7, 1 }
 0x513   : > { %12617 = vst [vmem:[#allocation118_spill] sm:$0xff] %v11010_v24  ;;  %v5402_v52 = vmax.f32 %v5400_v37, %v5401_v1  ;;  %v5408_v50 = vrot.slane %v5407_v6, 2  ;;  %v5420_v42 = vrot.slane %v5419_v18, 4  ;;  %v12620_v23 = vcombine.high %v12619_v17, %v12619_v17 }
 0x514   : > { %12618 = vst [vmem:[#allocation119_spill] sm:$0xff] %v11012_v36  ;;  %v5414_v28 = vmax.f32 %v5412_v4, %v5413_v16  ;;  %v5433_v43 = vsel %vm4732_vm3, %v12621_v8, -inf  ;;  %v11022_v10 = vmax.f32 %v5388_v31, %v5389_v29  ;;  %v11024_v57 = vmax.f32 %v5395_v7, %v5396_v48 }
 0x515   : > { %v5426_v55 = vsel %vm4732_vm3, %v12620_v23, -inf  ;;  %v5403_v45 = vrot.slane %v5402_v52, 1  ;;  %v5409_v11 = vmax.f32 %v5407_v6, %v5408_v50  ;;  %v5421_v61 = vmax.f32 %v5419_v18, %v5420_v42  ;;  %v12626_v23 = vld [vmem:[#allocation65_spill] sm:$0xff] }
 0x516   : > { %12622 = vst [vmem:[#allocation49_spill] sm:$0xff] %v11022_v10  ;;  %12623 = vst [vmem:[#allocation63_spill] sm:$0xff] %v11024_v57  ;;  %v5415_v21 = vrot.slane %v5414_v28, 2  ;;  %v5427_v37 = vrot.slane %v5426_v55, 4  ;;  %v5434_v30 = vrot.slane %v5433_v43, 4  ;;  %v12625_v16 = vcombine.high %v12621_v8, %v12621_v8 }
 0x517   : > { %v11026_v4 = vmax.f32 %v5402_v52, %v5403_v45  ;;  %v5410_v1 = vrot.slane %v5409_v11, 1  ;;  %v5447_v31 = vsel %vm4732_vm3, %v12626_v23, -inf  ;;  %v5422_v7 = vrot.slane %v5421_v61, 2 }
 0x518   : > { %v5440_v17 = vsel %vm4732_vm3, %v12625_v16, -inf  ;;  %v5416_v29 = vmax.f32 %v5414_v28, %v5415_v21  ;;  %v5428_v48 = vmax.f32 %v5426_v55, %v5427_v37  ;;  %v5435_v57 = vmax.f32 %v5433_v43, %v5434_v30  ;;  %v12629_v28 = vld [vmem:[#allocation64_spill] sm:$0xff] }
 0x519   : > { %12624 = vst [vmem:[#allocation120_spill] sm:$0xff] %v11026_v4  ;;  %v11034_v6 = vmax.f32 %v5409_v11, %v5410_v1  ;;  %v5441_v18 = vrot.slane %v5440_v17, 4  ;;  %v5448_v50 = vrot.slane %v5447_v31, 4  ;;  %v12628_v52 = vcombine.high %v12626_v23, %v12626_v23 }
 0x51a   : > { %v5417_v45 = vrot.slane %v5416_v29, 1  ;;  %v5423_v8 = vmax.f32 %v5421_v61, %v5422_v7  ;;  %v5429_v4 = vrot.slane %v5428_v48, 2  ;;  %v5436_v16 = vrot.slane %v5435_v57, 2 }
 0x51b   : > { %12627 = vst [vmem:[#allocation65_spill] sm:$0xff] %v11034_v6  ;;  %v5454_v42 = vsel %vm4732_vm3, %v12628_v52, -inf  ;;  %v5442_v10 = vmax.f32 %v5440_v17, %v5441_v18  ;;  %v5449_v36 = vmax.f32 %v5447_v31, %v5448_v50  ;;  %v5461_v55 = vsel %vm4732_vm3, %v12629_v28, -inf }
 0x51c   : > { %v5455_v24 = vrot.slane %v5454_v42, 4  ;;  %v11042_v43 = vmax.f32 %v5416_v29, %v5417_v45  ;;  %v5424_v11 = vrot.slane %v5423_v8, 1  ;;  %v5430_v21 = vmax.f32 %v5428_v48, %v5429_v4 }
 0x51d   : > { %v5437_v37 = vmax.f32 %v5435_v57, %v5436_v16  ;;  %v5443_v30 = vrot.slane %v5442_v10, 2  ;;  %v5450_v1 = vrot.slane %v5449_v36, 2  ;;  %v5462_v6 = vrot.slane %v5461_v55, 4 }
 0x51e   : > { %12630 = vst [vmem:[#allocation64_spill] sm:$0xff] %v11042_v43  ;;  %v5456_v23 = vmax.f32 %v5454_v42, %v5455_v24  ;;  %v11044_v52 = vmax.f32 %v5423_v8, %v5424_v11  ;;  %v5431_v61 = vrot.slane %v5430_v21, 1  ;;  %v12632_v17 = vcombine.high %v12629_v28, %v12629_v28  ;;  %v12635_v24 = vld [vmem:[#allocation66_spill] sm:$0xff] }
 0x51f   : > { %v5438_v7 = vrot.slane %v5437_v37, 1  ;;  %v5444_v18 = vmax.f32 %v5442_v10, %v5443_v30  ;;  %v5451_v50 = vmax.f32 %v5449_v36, %v5450_v1  ;;  %v5463_v45 = vmax.f32 %v5461_v55, %v5462_v6  ;;  %v12637_v6 = vld [vmem:[#allocation67_spill] sm:$0xff] }
 0x520   : > { %12631 = vst [vmem:[#allocation121_spill] sm:$0xff] %v11044_v52  ;;  %v5468_v31 = vsel %vm4732_vm3, %v12632_v17, -inf  ;;  %v5457_v29 = vrot.slane %v5456_v23, 2  ;;  %v11050_v43 = vmax.f32 %v5430_v21, %v5431_v61  ;;  %v5475_v48 = vsel %vm4732_vm3, %v12635_v24, -inf }
 0x521   : > { %v11052_v57 = vmax.f32 %v5437_v37, %v5438_v7  ;;  %v5469_v4 = vrot.slane %v5468_v31, 4  ;;  %v5445_v42 = vrot.slane %v5444_v18, 1  ;;  %v5452_v8 = vrot.slane %v5451_v50, 1 }
 0x522   : > { %12633 = vst [vmem:[#allocation122_spill] sm:$0xff] %v11050_v43  ;;  %v5458_v16 = vmax.f32 %v5456_v23, %v5457_v29  ;;  %v5464_v11 = vrot.slane %v5463_v45, 2  ;;  %v5476_v28 = vrot.slane %v5475_v48, 4  ;;  %v12636_v10 = vcombine.high %v12635_v24, %v12635_v24 }
 0x523   : > { %12634 = vst [vmem:[#allocation123_spill] sm:$0xff] %v11052_v57  ;;  %v5470_v52 = vmax.f32 %v5468_v31, %v5469_v4  ;;  %v5489_v55 = vsel %vm4732_vm3, %v12637_v6, -inf  ;;  %v11062_v21 = vmax.f32 %v5444_v18, %v5445_v42  ;;  %v11064_v37 = vmax.f32 %v5451_v50, %v5452_v8 }
 0x524   : > { %v5482_v36 = vsel %vm4732_vm3, %v12636_v10, -inf  ;;  %v5459_v30 = vrot.slane %v5458_v16, 1  ;;  %v5465_v1 = vmax.f32 %v5463_v45, %v5464_v11  ;;  %v5477_v7 = vmax.f32 %v5475_v48, %v5476_v28  ;;  %v12642_v10 = vld [vmem:[#allocation68_spill] sm:$0xff] }
 0x525   : > { %12638 = vst [vmem:[#allocation66_spill] sm:$0xff] %v11062_v21  ;;  %12639 = vst [vmem:[#allocation67_spill] sm:$0xff] %v11064_v37  ;;  %v5471_v61 = vrot.slane %v5470_v52, 2  ;;  %v5483_v23 = vrot.slane %v5482_v36, 4  ;;  %v5490_v17 = vrot.slane %v5489_v55, 4  ;;  %v12641_v4 = vcombine.high %v12637_v6, %v12637_v6 }
 0x526   : > { %v11066_v31 = vmax.f32 %v5458_v16, %v5459_v30  ;;  %v5466_v29 = vrot.slane %v5465_v1, 1  ;;  %v5503_v18 = vsel %vm4732_vm3, %v12642_v10, -inf  ;;  %v5478_v50 = vrot.slane %v5477_v7, 2 }
 0x527   : > { %v5496_v24 = vsel %vm4732_vm3, %v12641_v4, -inf  ;;  %v5472_v42 = vmax.f32 %v5470_v52, %v5471_v61  ;;  %v5484_v8 = vmax.f32 %v5482_v36, %v5483_v23  ;;  %v5491_v37 = vmax.f32 %v5489_v55, %v5490_v17  ;;  %v12645_v52 = vld [vmem:[#allocation69_spill] sm:$0xff] }
 0x528   : > { %12640 = vst [vmem:[#allocation124_spill] sm:$0xff] %v11066_v31  ;;  %v11074_v45 = vmax.f32 %v5465_v1, %v5466_v29  ;;  %v5497_v48 = vrot.slane %v5496_v24, 4  ;;  %v5504_v11 = vrot.slane %v5503_v18, 4  ;;  %v12644_v16 = vcombine.high %v12642_v10, %v12642_v10 }
 0x529   : > { %v5473_v30 = vrot.slane %v5472_v42, 1  ;;  %v5479_v6 = vmax.f32 %v5477_v7, %v5478_v50  ;;  %v5485_v31 = vrot.slane %v5484_v8, 2  ;;  %v5492_v4 = vrot.slane %v5491_v37, 2 }
 0x52a   : > { %12643 = vst [vmem:[#allocation68_spill] sm:$0xff] %v11074_v45  ;;  %v5510_v28 = vsel %vm4732_vm3, %v12644_v16, -inf  ;;  %v5498_v21 = vmax.f32 %v5496_v24, %v5497_v48  ;;  %v5505_v57 = vmax.f32 %v5503_v18, %v5504_v11  ;;  %v5517_v36 = vsel %vm4732_vm3, %v12645_v52, -inf }
 0x52b   : > { %v5511_v43 = vrot.slane %v5510_v28, 4  ;;  %v11082_v55 = vmax.f32 %v5472_v42, %v5473_v30  ;;  %v5480_v1 = vrot.slane %v5479_v6, 1  ;;  %v5486_v61 = vmax.f32 %v5484_v8, %v5485_v31 }
 0x52c   : > { %v5493_v23 = vmax.f32 %v5491_v37, %v5492_v4  ;;  %v5499_v17 = vrot.slane %v5498_v21, 2  ;;  %v5506_v29 = vrot.slane %v5505_v57, 2  ;;  %v5518_v45 = vrot.slane %v5517_v36, 4 }
 0x52d   : > { %12646 = vst [vmem:[#allocation69_spill] sm:$0xff] %v11082_v55  ;;  %v5512_v10 = vmax.f32 %v5510_v28, %v5511_v43  ;;  %v11084_v16 = vmax.f32 %v5479_v6, %v5480_v1  ;;  %v5487_v7 = vrot.slane %v5486_v61, 1  ;;  %v12648_v24 = vcombine.high %v12645_v52, %v12645_v52  ;;  %v12651_v43 = vld [vmem:[#allocation71_spill] sm:$0xff] }
 0x52e   : > { %v5494_v50 = vrot.slane %v5493_v23, 1  ;;  %v5500_v48 = vmax.f32 %v5498_v21, %v5499_v17  ;;  %v5507_v11 = vmax.f32 %v5505_v57, %v5506_v29  ;;  %v5519_v30 = vmax.f32 %v5517_v36, %v5518_v45  ;;  %v12653_v45 = vld [vmem:[#allocation70_spill] sm:$0xff] }
 0x52f   : > { %12647 = vst [vmem:[#allocation125_spill] sm:$0xff] %v11084_v16  ;;  %v5524_v18 = vsel %vm4732_vm3, %v12648_v24, -inf  ;;  %v5513_v42 = vrot.slane %v5512_v10, 2  ;;  %v11090_v55 = vmax.f32 %v5486_v61, %v5487_v7  ;;  %v5531_v8 = vsel %vm4732_vm3, %v12651_v43, -inf }
 0x530   : > { %v11092_v37 = vmax.f32 %v5493_v23, %v5494_v50  ;;  %v5525_v31 = vrot.slane %v5524_v18, 4  ;;  %v5501_v28 = vrot.slane %v5500_v48, 1  ;;  %v5508_v6 = vrot.slane %v5507_v11, 1 }
 0x531   : > { %12649 = vst [vmem:[#allocation126_spill] sm:$0xff] %v11090_v55  ;;  %v5514_v4 = vmax.f32 %v5512_v10, %v5513_v42  ;;  %v5520_v1 = vrot.slane %v5519_v30, 2  ;;  %v5532_v52 = vrot.slane %v5531_v8, 4  ;;  %v12652_v21 = vcombine.high %v12651_v43, %v12651_v43 }
 0x532   : > { %12650 = vst [vmem:[#allocation127_spill] sm:$0xff] %v11092_v37  ;;  %v5526_v16 = vmax.f32 %v5524_v18, %v5525_v31  ;;  %v5545_v36 = vsel %vm4732_vm3, %v12653_v45, -inf  ;;  %v11102_v61 = vmax.f32 %v5500_v48, %v5501_v28  ;;  %v11104_v23 = vmax.f32 %v5507_v11, %v5508_v6 }
 0x533   : > { %v5538_v57 = vsel %vm4732_vm3, %v12652_v21, -inf  ;;  %v5515_v17 = vrot.slane %v5514_v4, 1  ;;  %v5521_v29 = vmax.f32 %v5519_v30, %v5520_v1  ;;  %v5533_v50 = vmax.f32 %v5531_v8, %v5532_v52  ;;  %v12658_v21 = vld [vmem:[#allocation72_spill] sm:$0xff] }
 0x534   : > { %12654 = vst [vmem:[#allocation71_spill] sm:$0xff] %v11102_v61  ;;  %12655 = vst [vmem:[#allocation70_spill] sm:$0xff] %v11104_v23  ;;  %v5527_v7 = vrot.slane %v5526_v16, 2  ;;  %v5539_v10 = vrot.slane %v5538_v57, 4  ;;  %v5546_v24 = vrot.slane %v5545_v36, 4  ;;  %v12657_v31 = vcombine.high %v12653_v45, %v12653_v45 }
 0x535   : > { %v11106_v18 = vmax.f32 %v5514_v4, %v5515_v17  ;;  %v5522_v42 = vrot.slane %v5521_v29, 1  ;;  %v5559_v48 = vsel %vm4732_vm3, %v12658_v21, -inf  ;;  %v5534_v11 = vrot.slane %v5533_v50, 2 }
 0x536   : > { %v5552_v43 = vsel %vm4732_vm3, %v12657_v31, -inf  ;;  %v5528_v28 = vmax.f32 %v5526_v16, %v5527_v7  ;;  %v5540_v6 = vmax.f32 %v5538_v57, %v5539_v10  ;;  %v5547_v23 = vmax.f32 %v5545_v36, %v5546_v24  ;;  %v12661_v16 = vld [vmem:[#allocation73_spill] sm:$0xff] }
 0x537   : > { %12656 = vst [vmem:[#allocation128_spill] sm:$0xff] %v11106_v18  ;;  %v11114_v30 = vmax.f32 %v5521_v29, %v5522_v42  ;;  %v5553_v8 = vrot.slane %v5552_v43, 4  ;;  %v5560_v1 = vrot.slane %v5559_v48, 4  ;;  %v12660_v4 = vcombine.high %v12658_v21, %v12658_v21 }
 0x538   : > { %v5529_v17 = vrot.slane %v5528_v28, 1  ;;  %v5535_v45 = vmax.f32 %v5533_v50, %v5534_v11  ;;  %v5541_v18 = vrot.slane %v5540_v6, 2  ;;  %v5548_v31 = vrot.slane %v5547_v23, 2 }
 0x539   : > { %12659 = vst [vmem:[#allocation72_spill] sm:$0xff] %v11114_v30  ;;  %v5566_v52 = vsel %vm4732_vm3, %v12660_v4, -inf  ;;  %v5554_v61 = vmax.f32 %v5552_v43, %v5553_v8  ;;  %v5561_v37 = vmax.f32 %v5559_v48, %v5560_v1  ;;  %v5573_v57 = vsel %vm4732_vm3, %v12661_v16, -inf }
 0x53a   : > { %v5567_v55 = vrot.slane %v5566_v52, 4  ;;  %v11122_v36 = vmax.f32 %v5528_v28, %v5529_v17  ;;  %v5536_v29 = vrot.slane %v5535_v45, 1  ;;  %v5542_v7 = vmax.f32 %v5540_v6, %v5541_v18 }
 0x53b   : > { %v5549_v10 = vmax.f32 %v5547_v23, %v5548_v31  ;;  %v5555_v24 = vrot.slane %v5554_v61, 2  ;;  %v5562_v42 = vrot.slane %v5561_v37, 2  ;;  %v5574_v30 = vrot.slane %v5573_v57, 4 }
 0x53c   : > { %12662 = vst [vmem:[#allocation73_spill] sm:$0xff] %v11122_v36  ;;  %v5568_v21 = vmax.f32 %v5566_v52, %v5567_v55  ;;  %v11124_v4 = vmax.f32 %v5535_v45, %v5536_v29  ;;  %v5543_v50 = vrot.slane %v5542_v7, 1  ;;  %v12664_v43 = vcombine.high %v12661_v16, %v12661_v16  ;;  %v12667_v55 = vld [vmem:[#allocation74_spill] sm:$0xff] }
 0x53d   : > { %v5550_v11 = vrot.slane %v5549_v10, 1  ;;  %v5556_v8 = vmax.f32 %v5554_v61, %v5555_v24  ;;  %v5563_v1 = vmax.f32 %v5561_v37, %v5562_v42  ;;  %v5575_v17 = vmax.f32 %v5573_v57, %v5574_v30  ;;  %v12669_v30 = vld [vmem:[#allocation75_spill] sm:$0xff] }
 0x53e   : > { %12663 = vst [vmem:[#allocation129_spill] sm:$0xff] %v11124_v4  ;;  %v5580_v48 = vsel %vm4732_vm3, %v12664_v43, -inf  ;;  %v5569_v28 = vrot.slane %v5568_v21, 2  ;;  %v11130_v36 = vmax.f32 %v5542_v7, %v5543_v50  ;;  %v5587_v6 = vsel %vm4732_vm3, %v12667_v55, -inf }
 0x53f   : > { %v11132_v23 = vmax.f32 %v5549_v10, %v5550_v11  ;;  %v5581_v18 = vrot.slane %v5580_v48, 4  ;;  %v5557_v52 = vrot.slane %v5556_v8, 1  ;;  %v5564_v45 = vrot.slane %v5563_v1, 1 }
 0x540   : > { %12665 = vst [vmem:[#allocation130_spill] sm:$0xff] %v11130_v36  ;;  %v5570_v31 = vmax.f32 %v5568_v21, %v5569_v28  ;;  %v5576_v29 = vrot.slane %v5575_v17, 2  ;;  %v5588_v16 = vrot.slane %v5587_v6, 4  ;;  %v12668_v61 = vcombine.high %v12667_v55, %v12667_v55 }
 0x541   : > { %12666 = vst [vmem:[#allocation131_spill] sm:$0xff] %v11132_v23  ;;  %v5582_v4 = vmax.f32 %v5580_v48, %v5581_v18  ;;  %v5601_v57 = vsel %vm4732_vm3, %v12669_v30, -inf  ;;  %v11142_v7 = vmax.f32 %v5556_v8, %v5557_v52  ;;  %v11144_v10 = vmax.f32 %v5563_v1, %v5564_v45 }
 0x542   : > { %v5594_v37 = vsel %vm4732_vm3, %v12668_v61, -inf  ;;  %v5571_v24 = vrot.slane %v5570_v31, 1  ;;  %v5577_v42 = vmax.f32 %v5575_v17, %v5576_v29  ;;  %v5589_v11 = vmax.f32 %v5587_v6, %v5588_v16  ;;  %v12674_v61 = vld [vmem:[#allocation76_spill] sm:$0xff] }
 0x543   : > { %12670 = vst [vmem:[#allocation74_spill] sm:$0xff] %v11142_v7  ;;  %12671 = vst [vmem:[#allocation75_spill] sm:$0xff] %v11144_v10  ;;  %v5583_v50 = vrot.slane %v5582_v4, 2  ;;  %v5595_v21 = vrot.slane %v5594_v37, 4  ;;  %v5602_v43 = vrot.slane %v5601_v57, 4  ;;  %v12673_v18 = vcombine.high %v12669_v30, %v12669_v30 }
 0x544   : > { %v11146_v48 = vmax.f32 %v5570_v31, %v5571_v24  ;;  %v5578_v28 = vrot.slane %v5577_v42, 1  ;;  %v5615_v8 = vsel %vm4732_vm3, %v12674_v61, -inf  ;;  %v5590_v1 = vrot.slane %v5589_v11, 2 }
 0x545   : > { %v5608_v55 = vsel %vm4732_vm3, %v12673_v18, -inf  ;;  %v5584_v52 = vmax.f32 %v5582_v4, %v5583_v50  ;;  %v5596_v45 = vmax.f32 %v5594_v37, %v5595_v21  ;;  %v5603_v10 = vmax.f32 %v5601_v57, %v5602_v43 }
 0x546   : > { %12672 = vst [vmem:[#allocation132_spill] sm:$0xff] %v11146_v48  ;;  %v11154_v17 = vmax.f32 %v5577_v42, %v5578_v28  ;;  %v5609_v6 = vrot.slane %v5608_v55, 4  ;;  %v5616_v29 = vrot.slane %v5615_v8, 4  ;;  %v12675_v31 = vcombine.high %v12674_v61, %v12674_v61 }
 0x547   : > { %v5585_v24 = vrot.slane %v5584_v52, 1  ;;  %v5591_v30 = vmax.f32 %v5589_v11, %v5590_v1  ;;  %v5597_v48 = vrot.slane %v5596_v45, 2  ;;  %v5604_v18 = vrot.slane %v5603_v10, 2 }
 0x548   : > { %v5622_v16 = vsel %vm4732_vm3, %v12675_v31, -inf  ;;  %v5610_v7 = vmax.f32 %v5608_v55, %v5609_v6  ;;  %v5617_v23 = vmax.f32 %v5615_v8, %v5616_v29  ;;  %v5629_v4 = vsel %vm3113_vm14, %v10558_v0, -inf }
 0x549   : > { %v5623_v36 = vrot.slane %v5622_v16, 4  ;;  %v11162_v37 = vmax.f32 %v5584_v52, %v5585_v24  ;;  %v5592_v57 = vrot.slane %v5591_v30, 1  ;;  %v5598_v42 = vmax.f32 %v5596_v45, %v5597_v48 }
 0x54a   : > { %v5605_v50 = vmax.f32 %v5603_v10, %v5604_v18  ;;  %v5611_v21 = vrot.slane %v5610_v7, 2  ;;  %v5618_v43 = vrot.slane %v5617_v23, 2  ;;  %v5630_v61 = vsel %vm3113_vm14, %v10598_v41, -inf }
 0x54b   : > { %v5624_v28 = vmax.f32 %v5622_v16, %v5623_v36  ;;  %v11166_v11 = vmax.f32 %v5591_v30, %v5592_v57  ;;  %v5599_v1 = vrot.slane %v5598_v42, 1  ;;  %v11168_v8 = vmax.f32 %v5629_v4, %v5630_v61 }
 0x54c   : > { %v5606_v55 = vrot.slane %v5605_v50, 1  ;;  %v5612_v6 = vmax.f32 %v5610_v7, %v5611_v21  ;;  %v5619_v29 = vmax.f32 %v5617_v23, %v5618_v43  ;;  %v5632_v52 = vsel %vm3113_vm14, %v10560_v32, -inf  ;;  %v12676_v21 = vld [vmem:[#allocation77_spill] sm:$0xff] }
 0x54d   : > { %v5625_v0 = vrot.slane %v5624_v28, 2  ;;  %v11172_v48 = vmax.f32 %v5598_v42, %v5599_v1  ;;  %v5633_v36 = vsel %vm3113_vm14, %v10600_v60, -inf  ;;  %v5635_v41 = vsel %vm3113_vm14, %v10562_v26, -inf  ;;  %v12678_v1 = vld [vmem:[#allocation78_spill] sm:$0xff] }
 0x54e   : > { %v11174_v10 = vmax.f32 %v5605_v50, %v5606_v55  ;;  %v5613_v45 = vrot.slane %v5612_v6, 1  ;;  %v5620_v31 = vrot.slane %v5619_v29, 1  ;;  %v11180_v24 = vmax.f32 %v5632_v52, %v5633_v36  ;;  %v12679_v55 = vld [vmem:[#allocation80_spill] sm:$0xff] }
 0x54f   : > { %v5626_v16 = vmax.f32 %v5624_v28, %v5625_v0  ;;  %v5636_v23 = vsel %vm3113_vm14, %v10602_v22, -inf  ;;  %v5638_v32 = vsel %vm3113_vm14, %v10566_v19, -inf  ;;  %v5639_v7 = vsel %vm3113_vm14, %v10606_v20, -inf  ;;  %v12677_v28 = vld [vmem:[#allocation79_spill] sm:$0xff] }
 0x550   : > { %v5641_v60 = vsel %vm3113_vm14, %v10574_v53, -inf  ;;  %v11190_v30 = vmax.f32 %v5612_v6, %v5613_v45  ;;  %v11192_v26 = vmax.f32 %v5619_v29, %v5620_v31  ;;  %v11194_v4 = vmax.f32 %v5635_v41, %v5636_v23  ;;  %v12680_v23 = vld [vmem:[#allocation81_spill] sm:$0xff] }
 0x551   : > { %v5627_v18 = vrot.slane %v5626_v16, 1  ;;  %v11196_v57 = vmax.f32 %v5638_v32, %v5639_v7  ;;  %v5642_v22 = vsel %vm3113_vm14, %v10608_v34, -inf  ;;  %v5644_v19 = vsel %vm3113_vm14, %v10576_v40, -inf  ;;  %v12681_v7 = vld [vmem:[#allocation82_spill] sm:$0xff] }
 0x552   : > { %v5645_v20 = vsel %vm3113_vm14, %v10616_v51, -inf  ;;  %v11206_v53 = vmax.f32 %v5641_v60, %v5642_v22  ;;  %v5647_v43 = vsel %vm3113_vm14, %v12676_v21, -inf  ;;  %v5648_v61 = vsel %vm3113_vm14, %v12677_v28, -inf  ;;  %v12682_v60 = vld [vmem:[#allocation83_spill] sm:$0xff]  ;;  %v12683_v22 = vld [vmem:[#allocation86_spill] sm:$0xff] }
 0x553   : > { %v11204_v42 = vmax.f32 %v5626_v16, %v5627_v18  ;;  %v11208_v50 = vmax.f32 %v5644_v19, %v5645_v20  ;;  %v5650_v34 = vsel %vm3113_vm14, %v12678_v1, -inf  ;;  %v5651_v40 = vsel %vm3113_vm14, %v12679_v55, -inf  ;;  %v12684_v20 = vld [vmem:[#allocation84_spill] sm:$0xff]  ;;  %v12686_v1 = vld [vmem:[#allocation85_spill] sm:$0xff] }
 0x554   : > { %v5653_v51 = vsel %vm3113_vm14, %v10638_v58, -inf  ;;  %v11220_v6 = vmax.f32 %v5647_v43, %v5648_v61  ;;  %v11222_v29 = vmax.f32 %v5650_v34, %v5651_v40  ;;  %v5654_v0 = vsel %vm3113_vm14, %v10678_v2, -inf }
 0x555   : > { %v5656_v52 = vsel %vm3113_vm14, %v10640_v3, -inf  ;;  %v11228_v36 = vmax.f32 %v5653_v51, %v5654_v0  ;;  %v5657_v41 = vsel %vm3113_vm14, %v10680_v39, -inf  ;;  %v5659_v45 = vsel %vm3113_vm14, %v10642_v33, -inf }
 0x556   : > { %v5660_v58 = vsel %vm3113_vm14, %v10684_v15, -inf  ;;  %v11236_v31 = vmax.f32 %v5656_v52, %v5657_v41  ;;  %v5662_v2 = vsel %vm3113_vm14, %v12680_v23, -inf  ;;  %v5663_v3 = vsel %vm3113_vm14, %v10686_v59, -inf  ;;  %v12685_v59 = vld [vmem:[#allocation87_spill] sm:$0xff]  ;;  %v12687_v23 = vld [vmem:[#allocation88_spill] sm:$0xff] }
 0x557   : > { %v11238_v16 = vmax.f32 %v5659_v45, %v5660_v58  ;;  %v11244_v32 = vmax.f32 %v5662_v2, %v5663_v3  ;;  %v5665_v39 = vsel %vm3113_vm14, %v12681_v7, -inf  ;;  %v5666_v33 = vsel %vm3113_vm14, %v10692_v56, -inf  ;;  %v12688_v3 = vld [vmem:[#allocation89_spill] sm:$0xff]  ;;  %v12689_v7 = vld [vmem:[#allocation90_spill] sm:$0xff] }
 0x558   : > { %v5668_v15 = vsel %vm3113_vm14, %v12682_v60, -inf  ;;  %v11252_v18 = vmax.f32 %v5665_v39, %v5666_v33  ;;  %v5669_v19 = vsel %vm3113_vm14, %v12683_v22, -inf  ;;  %v5671_v21 = vsel %vm3113_vm14, %v12684_v20, -inf  ;;  %v12690_v33 = vld [vmem:[#allocation93_spill] sm:$0xff] }
 0x559   : > { %v5672_v43 = vsel %vm3113_vm14, %v12685_v59, -inf  ;;  %v11260_v28 = vmax.f32 %v5668_v15, %v5669_v19  ;;  %v5674_v56 = vsel %vm3113_vm14, %v12686_v1, -inf  ;;  %v5675_v34 = vsel %vm3113_vm14, %v10710_v12, -inf  ;;  %v12691_v15 = vld [vmem:[#allocation91_spill] sm:$0xff]  ;;  %v12693_v59 = vld [vmem:[#allocation92_spill] sm:$0xff] }
 0x55a   : > { %v11262_v61 = vmax.f32 %v5671_v21, %v5672_v43  ;;  %v11268_v55 = vmax.f32 %v5674_v56, %v5675_v34  ;;  %v5677_v40 = vsel %vm3113_vm14, %v10718_v5, -inf  ;;  %v5678_v51 = vsel %vm3113_vm14, %v10754_v49, -inf  ;;  %v12694_v43 = vld [vmem:[#allocation95_spill] sm:$0xff]  ;;  %v12695_v34 = vld [vmem:[#allocation96_spill] sm:$0xff] }
 0x55b   : > { %v5680_v0 = vsel %vm3113_vm14, %v10720_v13, -inf  ;;  %v11276_v52 = vmax.f32 %v5677_v40, %v5678_v51  ;;  %v5681_v41 = vsel %vm3113_vm14, %v10760_v62, -inf  ;;  %v5683_v45 = vsel %vm3113_vm14, %v10724_v35, -inf }
 0x55c   : > { %v5684_v12 = vsel %vm3113_vm14, %v10764_v38, -inf  ;;  %v11284_v58 = vmax.f32 %v5680_v0, %v5681_v41  ;;  %v5686_v49 = vsel %vm3113_vm14, %v12687_v23, -inf  ;;  %v5687_v13 = vsel %vm3113_vm14, %v10770_v54, -inf  ;;  %v12692_v54 = vld [vmem:[#allocation94_spill] sm:$0xff] }
 0x55d   : > { %v11286_v5 = vmax.f32 %v5683_v45, %v5684_v12  ;;  %v11292_v2 = vmax.f32 %v5686_v49, %v5687_v13  ;;  %v5689_v62 = vsel %vm3113_vm14, %v12688_v3, -inf  ;;  %v5690_v35 = vsel %vm3113_vm14, %v10774_v14, -inf  ;;  %v12696_v3 = vld [vmem:[#allocation101_spill] sm:$0xff] }
 0x55e   : > { %v5692_v38 = vsel %vm3113_vm14, %v12689_v7, -inf  ;;  %v11300_v39 = vmax.f32 %v5689_v62, %v5690_v35  ;;  %v5693_v60 = vsel %vm3113_vm14, %v12690_v33, -inf  ;;  %v5695_v22 = vsel %vm3113_vm14, %v12691_v15, -inf  ;;  %v12697_v35 = vld [vmem:[#allocation97_spill] sm:$0xff]  ;;  %v12698_v7 = vld [vmem:[#allocation102_spill] sm:$0xff] }
 0x55f   : > { %v5696_v19 = vsel %vm3113_vm14, %v12692_v54, -inf  ;;  %v11308_v20 = vmax.f32 %v5692_v38, %v5693_v60  ;;  %v5698_v14 = vsel %vm3113_vm14, %v12693_v59, -inf  ;;  %v5699_v1 = vsel %vm3113_vm14, %v12694_v43, -inf  ;;  %v12699_v38 = vld [vmem:[#allocation98_spill] sm:$0xff]  ;;  %v12700_v60 = vld [vmem:[#allocation103_spill] sm:$0xff]  ;;  %v12702_v54 = vld [vmem:[#allocation104_spill] sm:$0xff] }
 0x560   : > { %v11310_v21 = vmax.f32 %v5695_v22, %v5696_v19  ;;  %v11316_v56 = vmax.f32 %v5698_v14, %v5699_v1  ;;  %v5701_v40 = vsel %vm3113_vm14, %v12695_v34, -inf  ;;  %v5702_v51 = vsel %vm3113_vm14, %v10834_v25, -inf  ;;  %v12703_v43 = vld [vmem:[#allocation100_spill] sm:$0xff]  ;;  %v12704_v34 = vld [vmem:[#allocation51_spill] sm:$0xff] }
 0x561   : > { %v5704_v0 = vsel %vm3113_vm14, %v10800_v9, -inf  ;;  %v11324_v41 = vmax.f32 %v5701_v40, %v5702_v51  ;;  %v5705_v45 = vsel %vm3113_vm14, %v10840_v44, -inf  ;;  %v5707_v12 = vsel %vm3113_vm14, %v10804_v47, -inf }
 0x562   : > { %v5708_v23 = vsel %vm3113_vm14, %v10844_v46, -inf  ;;  %v11332_v49 = vmax.f32 %v5704_v0, %v5705_v45  ;;  %v5710_v25 = vsel %vm3113_vm14, %v10810_v63, -inf  ;;  %v5711_v9 = vsel %vm3113_vm14, %v12696_v3, -inf  ;;  %v12701_v63 = vld [vmem:[#allocation99_spill] sm:$0xff]  ;;  %v12705_v0 = vld [vmem:[#allocation105_spill] sm:$0xff] }
 0x563   : > { %v11334_v13 = vmax.f32 %v5707_v12, %v5708_v23  ;;  %v11340_v62 = vmax.f32 %v5710_v25, %v5711_v9  ;;  %v5713_v44 = vsel %vm3113_vm14, %v12697_v35, -inf  ;;  %v5714_v47 = vsel %vm3113_vm14, %v12698_v7, -inf  ;;  %v12706_v23 = vld [vmem:[#allocation106_spill] sm:$0xff] }
 0x564   : > { %v5716_v46 = vsel %vm3113_vm14, %v12699_v38, -inf  ;;  %v11348_v33 = vmax.f32 %v5713_v44, %v5714_v47  ;;  %v5717_v15 = vsel %vm3113_vm14, %v12700_v60, -inf  ;;  %v5719_v22 = vsel %vm3113_vm14, %v12701_v63, -inf  ;;  %v12707_v9 = vld [vmem:[#allocation54_spill] sm:$0xff]  ;;  %v12709_v47 = vld [vmem:[#allocation55_spill] sm:$0xff] }
 0x565   : > { %v5720_v19 = vsel %vm3113_vm14, %v12702_v54, -inf  ;;  %v11356_v59 = vmax.f32 %v5716_v46, %v5717_v15  ;;  %v5722_v1 = vsel %vm3113_vm14, %v12703_v43, -inf  ;;  %v5723_v40 = vsel %vm3113_vm14, %v12704_v34, -inf  ;;  %v12708_v44 = vld [vmem:[#allocation50_spill] sm:$0xff]  ;;  %v12710_v15 = vld [vmem:[#allocation107_spill] sm:$0xff] }
 0x566   : > { %v11358_v14 = vmax.f32 %v5719_v22, %v5720_v19  ;;  %v11364_v51 = vmax.f32 %v5722_v1, %v5723_v40  ;;  %v5725_v45 = vsel %vm3113_vm14, %v12705_v0, -inf  ;;  %v5726_v12 = vsel %vm3113_vm14, %v10914_v27, -inf  ;;  %v12711_v63 = vld [vmem:[#allocation110_spill] sm:$0xff]  ;;  %v12712_v19 = vld [vmem:[#allocation108_spill] sm:$0xff]  ;;  %v12713_v1 = vld [vmem:[#allocation111_spill] sm:$0xff] }
 0x567   : > { %v5728_v25 = vsel %vm3113_vm14, %v12706_v23, -inf  ;;  %v11372_v3 = vmax.f32 %v5725_v45, %v5726_v12  ;;  %v5729_v35 = vsel %vm3113_vm14, %v12707_v9, -inf  ;;  %v5731_v7 = vsel %vm3113_vm14, %v12708_v44, -inf  ;;  %v12714_v40 = vld [vmem:[#allocation52_spill] sm:$0xff] }
 0x568   : > { %v5732_v38 = vsel %vm3113_vm14, %v12709_v47, -inf  ;;  %v11380_v46 = vmax.f32 %v5728_v25, %v5729_v35  ;;  %v5734_v27 = vsel %vm3113_vm14, %v12710_v15, -inf  ;;  %v5735_v22 = vsel %vm3113_vm14, %v12711_v63, -inf  ;;  %v12715_v12 = vld [vmem:[#allocation56_spill] sm:$0xff]  ;;  %v12716_v25 = vld [vmem:[#allocation53_spill] sm:$0xff] }
 0x569   : > { %v11382_v60 = vmax.f32 %v5731_v7, %v5732_v38  ;;  %v11388_v54 = vmax.f32 %v5734_v27, %v5735_v22  ;;  %v5737_v43 = vsel %vm3113_vm14, %v12712_v19, -inf  ;;  %v5738_v34 = vsel %vm3113_vm14, %v12713_v1, -inf  ;;  %v12717_v35 = vld [vmem:[#allocation57_spill] sm:$0xff]  ;;  %v12721_v27 = vld [vmem:[#allocation112_spill] sm:$0xff]  ;;  %v12723_v19 = vld [vmem:[#allocation58_spill] sm:$0xff] }
 0x56a   : > { %v5740_v0 = vsel %vm3113_vm14, %v12714_v40, -inf  ;;  %v11396_v45 = vmax.f32 %v5737_v43, %v5738_v34  ;;  %v5741_v23 = vsel %vm3113_vm14, %v12715_v12, -inf  ;;  %v5743_v9 = vsel %vm3113_vm14, %v12716_v25, -inf  ;;  %v12720_v38 = vld [vmem:[#allocation109_spill] sm:$0xff]  ;;  %v12724_v1 = vld [vmem:[#allocation62_spill] sm:$0xff]  ;;  %v12725_v40 = vld [vmem:[#allocation59_spill] sm:$0xff] }
 0x56b   : > { %v5744_v44 = vsel %vm3113_vm14, %v12717_v35, -inf  ;;  %v11404_v7 = vmax.f32 %v5740_v0, %v5741_v23  ;;  %v5746_v15 = vsel %vm3113_vm14, %v12720_v38, -inf  ;;  %v5747_v63 = vsel %vm3113_vm14, %v12721_v27, -inf  ;;  %v12727_v23 = vld [vmem:[#allocation48_spill] sm:$0xff] }
 0x56c   : > { %v11406_v47 = vmax.f32 %v5743_v9, %v5744_v44  ;;  %v11412_v22 = vmax.f32 %v5746_v15, %v5747_v63  ;;  %v5749_v43 = vsel %vm3113_vm14, %v12723_v19, -inf  ;;  %v5750_v34 = vsel %vm3113_vm14, %v12724_v1, -inf  ;;  %v12728_v9 = vld [vmem:[#allocation113_spill] sm:$0xff]  ;;  %v12732_v63 = vld [vmem:[#allocation114_spill] sm:$0xff] }
 0x56d   : > { %12718 = vst [vmem:[#allocation76_spill] sm:$0xff] %v11404_v7  ;;  %v5752_v0 = vsel %vm3113_vm14, %v12725_v40, -inf  ;;  %v11420_v12 = vmax.f32 %v5749_v43, %v5750_v34  ;;  %v5753_v25 = vsel %vm3113_vm14, %v12727_v23, -inf  ;;  %v5755_v35 = vsel %vm3113_vm14, %v12728_v9, -inf  ;;  %v12729_v44 = vld [vmem:[#allocation117_spill] sm:$0xff]  ;;  %v12733_v1 = vld [vmem:[#allocation118_spill] sm:$0xff] }
 0x56e   : > { %12719 = vst [vmem:[#allocation77_spill] sm:$0xff] %v11406_v47  ;;  %12722 = vst [vmem:[#allocation79_spill] sm:$0xff] %v11412_v22  ;;  %v5756_v38 = vsel %vm3113_vm14, %v12729_v44, -inf  ;;  %v11428_v15 = vmax.f32 %v5752_v0, %v5753_v25  ;;  %v5758_v19 = vsel %vm3113_vm14, %v12732_v63, -inf  ;;  %v5759_v43 = vsel %vm3113_vm14, %v12733_v1, -inf  ;;  %v12735_v40 = vld [vmem:[#allocation115_spill] sm:$0xff] }
 0x56f   : > { %12726 = vst [vmem:[#allocation78_spill] sm:$0xff] %v11420_v12  ;;  %v11430_v27 = vmax.f32 %v5755_v35, %v5756_v38  ;;  %v11436_v34 = vmax.f32 %v5758_v19, %v5759_v43  ;;  %v5761_v23 = vsel %vm3113_vm14, %v12735_v40, -inf  ;;  %v12736_v12 = vld [vmem:[#allocation119_spill] sm:$0xff]  ;;  %v12737_v22 = vld [vmem:[#allocation61_spill] sm:$0xff]  ;;  %v12740_v38 = vld [vmem:[#allocation60_spill] sm:$0xff] }
 0x570   : > { %12730 = vst [vmem:[#allocation80_spill] sm:$0xff] %v11428_v15  ;;  %v5762_v9 = vsel %vm3113_vm14, %v12736_v12, -inf  ;;  %v5764_v0 = vsel %vm3113_vm14, %v12737_v22, -inf  ;;  %v12739_v35 = vld [vmem:[#allocation49_spill] sm:$0xff]  ;;  %v5767_v63 = vsel %vm3113_vm14, %v12740_v38, -inf  ;;  %v12741_v1 = vld [vmem:[#allocation63_spill] sm:$0xff] }
 0x571   : > { %12731 = vst [vmem:[#allocation81_spill] sm:$0xff] %v11430_v27  ;;  %12734 = vst [vmem:[#allocation82_spill] sm:$0xff] %v11436_v34  ;;  %v11444_v25 = vmax.f32 %v5761_v23, %v5762_v9  ;;  %v5765_v44 = vsel %vm3113_vm14, %v12739_v35, -inf  ;;  %v5768_v19 = vsel %vm3113_vm14, %v12741_v1, -inf  ;;  %v12744_v34 = vld [vmem:[#allocation116_spill] sm:$0xff]  ;;  %v12747_v9 = vld [vmem:[#allocation65_spill] sm:$0xff] }
 0x572   : > { %v11452_v43 = vmax.f32 %v5764_v0, %v5765_v44  ;;  %v11454_v40 = vmax.f32 %v5767_v63, %v5768_v19  ;;  %v5770_v12 = vsel %vm3113_vm14, %v12744_v34, -inf  ;;  %v12745_v27 = vld [vmem:[#allocation120_spill] sm:$0xff]  ;;  %v5773_v35 = vsel %vm3113_vm14, %v12747_v9, -inf  ;;  %v12751_v63 = vld [vmem:[#allocation69_spill] sm:$0xff] }
 0x573   : > { %12738 = vst [vmem:[#allocation83_spill] sm:$0xff] %v11444_v25  ;;  %v5771_v22 = vsel %vm3113_vm14, %v12745_v27, -inf  ;;  %v12748_v25 = vld [vmem:[#allocation68_spill] sm:$0xff]  ;;  %v5777_v1 = vsel %vm3113_vm14, %v12751_v63, -inf  ;;  %v12752_v34 = vld [vmem:[#allocation121_spill] sm:$0xff] }
 0x574   : > { %12742 = vst [vmem:[#allocation86_spill] sm:$0xff] %v11452_v43  ;;  %12743 = vst [vmem:[#allocation84_spill] sm:$0xff] %v11454_v40  ;;  %v11460_v23 = vmax.f32 %v5770_v12, %v5771_v22  ;;  %v5774_v38 = vsel %vm3113_vm14, %v12748_v25, -inf  ;;  %v12749_v15 = vld [vmem:[#allocation64_spill] sm:$0xff]  ;;  %v5779_v19 = vsel %vm3113_vm14, %v12752_v34, -inf  ;;  %v12753_v27 = vld [vmem:[#allocation125_spill] sm:$0xff] }
 0x575   : > { %v5776_v0 = vsel %vm3113_vm14, %v12749_v15, -inf  ;;  %v11468_v44 = vmax.f32 %v5773_v35, %v5774_v38  ;;  %v5780_v12 = vsel %vm3113_vm14, %v12753_v27, -inf  ;;  %v12756_v40 = vld [vmem:[#allocation126_spill] sm:$0xff]  ;;  %v12758_v38 = vld [vmem:[#allocation123_spill] sm:$0xff] }
 0x576   : > { %12746 = vst [vmem:[#allocation87_spill] sm:$0xff] %v11460_v23  ;;  %v11476_v22 = vmax.f32 %v5776_v0, %v5777_v1  ;;  %v11478_v9 = vmax.f32 %v5779_v19, %v5780_v12  ;;  %v12755_v23 = vld [vmem:[#allocation122_spill] sm:$0xff]  ;;  %v5783_v15 = vsel %vm3113_vm14, %v12756_v40, -inf  ;;  %v5785_v63 = vsel %vm3113_vm14, %v12758_v38, -inf  ;;  %v12762_v19 = vld [vmem:[#allocation71_spill] sm:$0xff] }
 0x577   : > { %12750 = vst [vmem:[#allocation85_spill] sm:$0xff] %v11468_v44  ;;  %v5782_v25 = vsel %vm3113_vm14, %v12755_v23, -inf  ;;  %v12759_v44 = vld [vmem:[#allocation127_spill] sm:$0xff]  ;;  %v12760_v43 = vld [vmem:[#allocation66_spill] sm:$0xff]  ;;  %v5789_v27 = vsel %vm3113_vm14, %v12762_v19, -inf }
 0x578   : > { %12754 = vst [vmem:[#allocation88_spill] sm:$0xff] %v11478_v9  ;;  %v11484_v35 = vmax.f32 %v5782_v25, %v5783_v15  ;;  %v5786_v34 = vsel %vm3113_vm14, %v12759_v44, -inf  ;;  %v5788_v0 = vsel %vm3113_vm14, %v12760_v43, -inf  ;;  %v12763_v23 = vld [vmem:[#allocation67_spill] sm:$0xff]  ;;  %v12764_v40 = vld [vmem:[#allocation70_spill] sm:$0xff]  ;;  %v12766_v9 = vld [vmem:[#allocation128_spill] sm:$0xff] }
 0x579   : > { %v11492_v1 = vmax.f32 %v5785_v63, %v5786_v34  ;;  %v5791_v12 = vsel %vm3113_vm14, %v12763_v23, -inf  ;;  %v5792_v25 = vsel %vm3113_vm14, %v12764_v40, -inf  ;;  %v11500_v15 = vmax.f32 %v5788_v0, %v5789_v27  ;;  %v12767_v34 = vld [vmem:[#allocation72_spill] sm:$0xff] }
 0x57a   : > { %12757 = vst [vmem:[#allocation89_spill] sm:$0xff] %v11484_v35  ;;  %v11502_v38 = vmax.f32 %v5791_v12, %v5792_v25  ;;  %v12765_v35 = vld [vmem:[#allocation124_spill] sm:$0xff]  ;;  %v5795_v43 = vsel %vm3113_vm14, %v12766_v9, -inf  ;;  %v5797_v19 = vsel %vm3113_vm14, %v12767_v34, -inf  ;;  %v5798_v23 = vsel %vm3113_vm14, %v11154_v17, -inf }
 0x57b   : > { %12761 = vst [vmem:[#allocation90_spill] sm:$0xff] %v11492_v1  ;;  %v5794_v44 = vsel %vm3113_vm14, %v12765_v35, -inf  ;;  %v12768_v1 = vld [vmem:[#allocation73_spill] sm:$0xff]  ;;  %v11516_v27 = vmax.f32 %v5797_v19, %v5798_v23  ;;  %v5801_v12 = vsel %vm3113_vm14, %v11162_v37, -inf  ;;  %v5804_v9 = vsel %vm3113_vm14, %v11166_v11, -inf  ;;  %v12772_v19 = vld [vmem:[#allocation131_spill] sm:$0xff] }
 0x57c   : > { %v11508_v63 = vmax.f32 %v5794_v44, %v5795_v43  ;;  %v5800_v0 = vsel %vm3113_vm14, %v12768_v1, -inf  ;;  %v12769_v35 = vld [vmem:[#allocation129_spill] sm:$0xff]  ;;  %v12771_v43 = vld [vmem:[#allocation130_spill] sm:$0xff]  ;;  %v5807_v1 = vsel %vm3113_vm14, %v11172_v48, -inf  ;;  %v5809_v37 = vsel %vm3113_vm14, %v12772_v19, -inf  ;;  %v12784_v47 = vld [vmem:[#allocation84_spill] sm:$0xff] }
 0x57d   : > { %v5803_v40 = vsel %vm3113_vm14, %v12769_v35, -inf  ;;  %v11524_v25 = vmax.f32 %v5800_v0, %v5801_v12  ;;  %v5806_v17 = vsel %vm3113_vm14, %v12771_v43, -inf  ;;  %v5810_v23 = vsel %vm3113_vm14, %v11174_v10, -inf  ;;  %v12773_v35 = vld [vmem:[#allocation74_spill] sm:$0xff] }
 0x57e   : > { %v11526_v44 = vmax.f32 %v5803_v40, %v5804_v9  ;;  %v11532_v34 = vmax.f32 %v5806_v17, %v5807_v1  ;;  %v5812_v11 = vsel %vm3113_vm14, %v12773_v35, -inf  ;;  %v11540_v0 = vmax.f32 %v5809_v37, %v5810_v23  ;;  %v12774_v40 = vld [vmem:[#allocation75_spill] sm:$0xff]  ;;  %v12776_v1 = vld [vmem:[#allocation132_spill] sm:$0xff]  ;;  %v12783_v7 = vld [vmem:[#allocation86_spill] sm:$0xff] }
 0x57f   : > { %12770 = vst [vmem:[#allocation93_spill] sm:$0xff] %v11524_v25  ;;  %v5813_v12 = vsel %vm3113_vm14, %v11190_v30, -inf  ;;  %v5815_v9 = vsel %vm3113_vm14, %v12774_v40, -inf  ;;  %v5816_v48 = vsel %vm3113_vm14, %v11192_v26, -inf  ;;  %v5818_v10 = vsel %vm3113_vm14, %v12776_v1, -inf  ;;  %v12779_v35 = vld [vmem:[#allocation80_spill] sm:$0xff] }
 0x580   : > { %v11548_v43 = vmax.f32 %v5812_v11, %v5813_v12  ;;  %v11550_v17 = vmax.f32 %v5815_v9, %v5816_v48  ;;  %v5819_v19 = vsel %vm3113_vm14, %v11204_v42, -inf  ;;  %v12785_v42 = vld [vmem:[#allocation87_spill] sm:$0xff]  ;;  %v12786_v11 = vld [vmem:[#allocation85_spill] sm:$0xff]  ;;  %v12787_v26 = vld [vmem:[#allocation88_spill] sm:$0xff]  ;;  %v12790_v9 = vpack.c.bf16 %v11168_v8, %v11168_v8 }
 0x581   : > { %v11556_v37 = vmax.f32 %v5818_v10, %v5819_v19  ;;  %v12788_v23 = vld [vmem:[#allocation89_spill] sm:$0xff]  ;;  %v12791_v1 = vpack.c.bf16 %v11180_v24, %v11180_v24  ;;  %v12792_v10 = vpack.c.bf16 %v11194_v4, %v11194_v4  ;;  %v12793_v12 = vpack.c.bf16 %v11196_v57, %v11196_v57 }
 0x582   : > { %12775 = vst [vmem:[#allocation91_spill] sm:$0xff] %v11550_v17  ;;  %v12789_v30 = vld [vmem:[#allocation90_spill] sm:$0xff]  ;;  %v11689_v25 = vunpack.c.l.b16 %v12790_v9  ;;  %v12794_v8 = vpack.c.bf16 %v11206_v53, %v11206_v53  ;;  %v12795_v24 = vpack.c.bf16 %v11208_v50, %v11208_v50  ;;  %v12796_v4 = vpack.c.bf16 %v11220_v6, %v11220_v6 }
 0x583   : > { %v11694_v48 = vunpack.c.l.b16 %v12791_v1  ;;  %v11699_v19 = vunpack.c.l.b16 %v12792_v10  ;;  %v11704_v17 = vunpack.c.l.b16 %v12793_v12  ;;  %v12797_v57 = vpack.c.bf16 %v11222_v29, %v11222_v29 }
 0x584   : > { %v11709_v9 = vunpack.c.l.b16 %v12794_v8  ;;  %v11714_v1 = vunpack.c.l.b16 %v12795_v24  ;;  %v11719_v10 = vunpack.c.l.b16 %v12796_v4  ;;  %v12799_v53 = vpack.c.bf16 %v11228_v36, %v11228_v36 }
 0x585   : > { %v11724_v12 = vunpack.c.l.b16 %v12797_v57  ;;  %v12800_v50 = vpack.c.bf16 %v11236_v31, %v11236_v31  ;;  %v12801_v6 = vpack.c.bf16 %v11238_v16, %v11238_v16  ;;  %v12802_v29 = vpack.c.bf16 %v11244_v32, %v11244_v32 }
 0x586   : > { %v11729_v8 = vunpack.c.l.b16 %v12799_v53  ;;  %v12803_v36 = vpack.c.bf16 %v11252_v18, %v11252_v18  ;;  %v12804_v31 = vpack.c.bf16 %v11260_v28, %v11260_v28  ;;  %v12805_v16 = vpack.c.bf16 %v11262_v61, %v11262_v61 }
 0x587   : > { %12798 = vst [vmem:[#allocation94_spill] sm:$0xff] %v11724_v12  ;;  %v11734_v24 = vunpack.c.l.b16 %v12800_v50  ;;  %v11739_v4 = vunpack.c.l.b16 %v12801_v6  ;;  %v11744_v57 = vunpack.c.l.b16 %v12802_v29  ;;  %v12806_v32 = vpack.c.bf16 %v11268_v55, %v11268_v55 }
 0x588   : > { %v11749_v53 = vunpack.c.l.b16 %v12803_v36  ;;  %v11754_v50 = vunpack.c.l.b16 %v12804_v31  ;;  %v11759_v6 = vunpack.c.l.b16 %v12805_v16  ;;  %v12807_v18 = vpack.c.bf16 %v11276_v52, %v11276_v52 }
 0x589   : > { %v11764_v29 = vunpack.c.l.b16 %v12806_v32  ;;  %v12808_v40 = vpack.c.bf16 %v11284_v58, %v11284_v58  ;;  %v12809_v31 = vpack.c.bf16 %v11286_v5, %v11286_v5  ;;  %v12810_v61 = vpack.c.bf16 %v11292_v2, %v11292_v2 }
 0x58a   : > { %v6093_v36 = vunpack.c.l.b16 %v12807_v18  ;;  %v12811_v55 = vpack.c.bf16 %v11300_v39, %v11300_v39  ;;  %v12812_v52 = vpack.c.bf16 %v11308_v20, %v11308_v20  ;;  %v12813_v58 = vpack.c.bf16 %v11310_v21, %v11310_v21 }
 0x58b   : > { %v6094_v28 = vunpack.c.l.b16 %v12808_v40  ;;  %v6095_v12 = vunpack.c.l.b16 %v12809_v31  ;;  %v11778_v16 = vunpack.c.l.b16 %v12810_v61  ;;  %v12814_v2 = vpack.c.bf16 %v11316_v56, %v11316_v56 }
 0x58c   : > { %v11783_v32 = vunpack.c.l.b16 %v12811_v55  ;;  %v11788_v18 = vunpack.c.l.b16 %v12812_v52  ;;  %v11793_v5 = vunpack.c.l.b16 %v12813_v58  ;;  %v12815_v39 = vpack.c.bf16 %v11324_v41, %v11324_v41 }
 0x58d   : > { %v11798_v40 = vunpack.c.l.b16 %v12814_v2  ;;  %v12816_v61 = vpack.c.bf16 %v11332_v49, %v11332_v49  ;;  %v12817_v55 = vpack.c.bf16 %v11334_v13, %v11334_v13  ;;  %v12818_v21 = vpack.c.bf16 %v11340_v62, %v11340_v62 }
 0x58e   : > { %v6101_v31 = vunpack.c.l.b16 %v12815_v39  ;;  %v12819_v56 = vpack.c.bf16 %v11348_v33, %v11348_v33  ;;  %v12820_v41 = vpack.c.bf16 %v11356_v59, %v11356_v59  ;;  %v12821_v49 = vpack.c.bf16 %v11358_v14, %v11358_v14 }
 0x58f   : > { %v6102_v20 = vunpack.c.l.b16 %v12816_v61  ;;  %v6103_v52 = vunpack.c.l.b16 %v12817_v55  ;;  %v6104_v58 = vunpack.c.l.b16 %v12818_v21  ;;  %v12822_v13 = vpack.c.bf16 %v11364_v51, %v11364_v51 }
 0x590   : > { %v11815_v2 = vunpack.c.l.b16 %v12819_v56  ;;  %v11820_v39 = vunpack.c.l.b16 %v12820_v41  ;;  %v11825_v61 = vunpack.c.l.b16 %v12821_v49  ;;  %v12824_v33 = vpack.c.bf16 %v11372_v3, %v11372_v3 }
 0x591   : > { %v11830_v62 = vunpack.c.l.b16 %v12822_v13  ;;  %v12825_v59 = vpack.c.bf16 %v11380_v46, %v11380_v46  ;;  %v12826_v14 = vpack.c.bf16 %v11382_v60, %v11382_v60  ;;  %v12828_v51 = vpack.c.bf16 %v11388_v54, %v11388_v54  ;;  %v12832_v13 = vld [vmem:[#allocation76_spill] sm:$0xff] }
 0x592   : > { %v11835_v55 = vunpack.c.l.b16 %v12824_v33  ;;  %v12830_v3 = vpack.c.bf16 %v11396_v45, %v11396_v45  ;;  %v12833_v46 = vpack.c.bf16 %v12832_v13, %v12832_v13 }
 0x593   : > { %12823 = vst [vmem:[#allocation92_spill] sm:$0xff] %v11830_v62  ;;  %v11840_v21 = vunpack.c.l.b16 %v12825_v59  ;;  %v11845_v56 = vunpack.c.l.b16 %v12826_v14  ;;  %v11850_v41 = vunpack.c.l.b16 %v12828_v51  ;;  %v12835_v59 = vld [vmem:[#allocation77_spill] sm:$0xff] }
 0x594   : > { %v11855_v49 = vunpack.c.l.b16 %v12830_v3  ;;  %v11860_v33 = vunpack.c.l.b16 %v12833_v46  ;;  %v12836_v60 = vpack.c.bf16 %v12835_v59, %v12835_v59  ;;  %v12844_v46 = vld [vmem:[#allocation81_spill] sm:$0xff]  ;;  %v12846_v59 = vld [vmem:[#allocation82_spill] sm:$0xff] }
 0x595   : > { %12827 = vst [vmem:[#allocation95_spill] sm:$0xff] %v11845_v56  ;;  %12829 = vst [vmem:[#allocation96_spill] sm:$0xff] %v11850_v41  ;;  %v12838_v56 = vld [vmem:[#allocation79_spill] sm:$0xff]  ;;  %v12841_v41 = vld [vmem:[#allocation78_spill] sm:$0xff] }
 0x596   : > { %12831 = vst [vmem:[#allocation101_spill] sm:$0xff] %v11855_v49  ;;  %12834 = vst [vmem:[#allocation97_spill] sm:$0xff] %v11860_v33  ;;  %v11865_v14 = vunpack.c.l.b16 %v12836_v60  ;;  %v12839_v54 = vpack.c.bf16 %v12838_v56, %v12838_v56  ;;  %v12842_v45 = vpack.c.bf16 %v12841_v41, %v12841_v41  ;;  %v12843_v49 = vpack.c.bf16 %v12779_v35, %v12779_v35  ;;  %v12848_v56 = vld [vmem:[#allocation83_spill] sm:$0xff] }
 0x597   : > { %v12845_v33 = vpack.c.bf16 %v12844_v46, %v12844_v46  ;;  %v12847_v60 = vpack.c.bf16 %v12846_v59, %v12846_v59  ;;  %v12850_v41 = vpack.c.bf16 %v12783_v7, %v12783_v7  ;;  %v12854_v59 = vpack.c.bf16 %v12786_v11, %v12786_v11 }
 0x598   : > { %12837 = vst [vmem:[#allocation102_spill] sm:$0xff] %v11865_v14  ;;  %v11870_v51 = vunpack.c.l.b16 %v12839_v54  ;;  %v6117_v3 = vunpack.c.l.b16 %v12842_v45  ;;  %v6118_v13 = vunpack.c.l.b16 %v12843_v49  ;;  %v12849_v54 = vpack.c.bf16 %v12848_v56, %v12848_v56 }
 0x599   : > { %v11881_v62 = vunpack.c.l.b16 %v12845_v33  ;;  %v11886_v14 = vunpack.c.l.b16 %v12847_v60  ;;  %v11896_v35 = vunpack.c.l.b16 %v12850_v41  ;;  %v12851_v49 = vpack.c.bf16 %v12784_v47, %v12784_v47 }
 0x59a   : > { %12840 = vst [vmem:[#allocation98_spill] sm:$0xff] %v11870_v51  ;;  %v11891_v51 = vunpack.c.l.b16 %v12849_v54  ;;  %v12852_v45 = vpack.c.bf16 %v12785_v42, %v12785_v42  ;;  %v6125_v60 = vunpack.c.l.b16 %v12854_v59  ;;  %v12855_v56 = vpack.c.bf16 %v11476_v22, %v11476_v22 }
 0x59b   : > { %v11901_v33 = vunpack.c.l.b16 %v12851_v49  ;;  %v12856_v54 = vpack.c.bf16 %v12787_v26, %v12787_v26  ;;  %v12857_v47 = vpack.c.bf16 %v12788_v23, %v12788_v23  ;;  %v12858_v42 = vpack.c.bf16 %v12789_v30, %v12789_v30 }
 0x59c   : > { %v11906_v46 = vunpack.c.l.b16 %v12852_v45  ;;  %v6126_v7 = vunpack.c.l.b16 %v12855_v56  ;;  %v12859_v11 = vpack.c.bf16 %v11500_v15, %v11500_v15  ;;  %v12860_v22 = vpack.c.bf16 %v11502_v38, %v11502_v38 }
 0x59d   : > { %v6127_v41 = vunpack.c.l.b16 %v12856_v54  ;;  %v6128_v49 = vunpack.c.l.b16 %v12857_v47  ;;  %v6129_v45 = vunpack.c.l.b16 %v12858_v42  ;;  %v12861_v26 = vpack.c.bf16 %v11508_v63, %v11508_v63  ;;  %v12864_v47 = vld [vmem:[#allocation93_spill] sm:$0xff] }
 0x59e   : > { %12853 = vst [vmem:[#allocation103_spill] sm:$0xff] %v11906_v46  ;;  %v11926_v59 = vunpack.c.l.b16 %v12859_v11  ;;  %v11931_v56 = vunpack.c.l.b16 %v12860_v22  ;;  %v12863_v23 = vpack.c.bf16 %v11516_v27, %v11516_v27  ;;  %v12865_v42 = vpack.c.bf16 %v12864_v47, %v12864_v47 }
 0x59f   : > { %v11936_v54 = vunpack.c.l.b16 %v12861_v26  ;;  %v12866_v11 = vpack.c.bf16 %v11526_v44, %v11526_v44  ;;  %v12867_v38 = vpack.c.bf16 %v11532_v34, %v11532_v34  ;;  %v12868_v63 = vpack.c.bf16 %v11540_v0, %v11540_v0 }
 0x5a0   : > { %v6133_v30 = vunpack.c.l.b16 %v12863_v23  ;;  %v6134_v15 = vunpack.c.l.b16 %v12865_v42  ;;  %v12869_v27 = vpack.c.bf16 %v11548_v43, %v11548_v43  ;;  %v12872_v44 = vpack.c.bf16 %v11556_v37, %v11556_v37 }
 0x5a1   : > { %12862 = vst [vmem:[#allocation99_spill] sm:$0xff] %v11936_v54  ;;  %v6135_v46 = vunpack.c.l.b16 %v12866_v11  ;;  %v6136_v22 = vunpack.c.l.b16 %v12867_v38  ;;  %v6137_v26 = vunpack.c.l.b16 %v12868_v63  ;;  %v12870_v54 = vld [vmem:[#allocation91_spill] sm:$0xff]  ;;  %v6142_v34 = vsel %vm6141_vm4, %v11694_v48, %v11689_v25 }
 0x5a2   : > { %v6138_v23 = vunpack.c.l.b16 %v12869_v27  ;;  %v12871_v47 = vpack.c.bf16 %v12870_v54, %v12870_v54  ;;  %v11964_v11 = vunpack.c.l.b16 %v12872_v44  ;;  %v6144_v0 = vsel %vm6143_vm5, %v11699_v19, %v6142_v34  ;;  %v12876_v27 = vld [vmem:[#allocation96_spill] sm:$0xff] }
 0x5a3   : > { %v6155_v43 = vsel %vm6141_vm4, %v11734_v24, %v11729_v8  ;;  %v6162_v37 = vsel %vm6141_vm4, %v6094_v28, %v6093_v36  ;;  %v6146_v54 = vsel %vm6145_vm6, %v11704_v17, %v6144_v0  ;;  %v6169_v48 = vsel %vm6141_vm4, %v6102_v20, %v6101_v31 }
 0x5a4   : > { %v11959_v42 = vunpack.c.l.b16 %v12871_v47  ;;  %v6156_v38 = vsel %vm6143_vm5, %v11739_v4, %v6155_v43  ;;  %v6163_v25 = vsel %vm6143_vm5, %v6095_v12, %v6162_v37  ;;  %v6148_v19 = vsel %vm6147_vm7, %v11709_v9, %v6146_v54  ;;  %v12880_v43 = vld [vmem:[#allocation98_spill] sm:$0xff] }
 0x5a5   : > { %v6157_v63 = vsel %vm6145_vm6, %v11744_v57, %v6156_v38  ;;  %v6164_v8 = vsel %vm6145_vm6, %v11778_v16, %v6163_v25  ;;  %v6170_v24 = vsel %vm6143_vm5, %v6103_v52, %v6169_v48  ;;  %v6150_v17 = vsel %vm6149_vm8, %v11714_v1, %v6148_v19  ;;  %v12873_v16 = vld [vmem:[#allocation94_spill] sm:$0xff]  ;;  %v12881_v54 = vld [vmem:[#allocation103_spill] sm:$0xff] }
 0x5a6   : > { %v6158_v4 = vsel %vm6147_vm7, %v11749_v53, %v6157_v63  ;;  %v6165_v12 = vsel %vm6147_vm7, %v11783_v32, %v6164_v8  ;;  %v6171_v36 = vsel %vm6145_vm6, %v6104_v58, %v6170_v24  ;;  %v6152_v9 = vsel %vm6151_vm9, %v11719_v10, %v6150_v17 }
 0x5a7   : > { %v6159_v57 = vsel %vm6149_vm8, %v11754_v50, %v6158_v4  ;;  %v6166_v28 = vsel %vm6149_vm8, %v11788_v18, %v6165_v12  ;;  %v6172_v1 = vsel %vm6147_vm7, %v11815_v2, %v6171_v36  ;;  %v6154_v53 = vsel %vm6153_vm10, %v12873_v16, %v6152_v9 }
 0x5a8   : > { %v6160_v32 = vsel %vm6151_vm9, %v11759_v6, %v6159_v57  ;;  %v6167_v31 = vsel %vm6151_vm9, %v11793_v5, %v6166_v28  ;;  %v6173_v10 = vsel %vm6149_vm8, %v11820_v39, %v6172_v1  ;;  %v6176_v52 = vsel %vm6141_vm4, %v11840_v21, %v11835_v55  ;;  %v12874_v6 = vld [vmem:[#allocation92_spill] sm:$0xff]  ;;  %v12875_v5 = vld [vmem:[#allocation95_spill] sm:$0xff]  ;;  %v12877_v21 = vld [vmem:[#allocation101_spill] sm:$0xff] }
 0x5a9   : > { %v6161_v50 = vsel %vm6153_vm10, %v11764_v29, %v6160_v32  ;;  %v6168_v18 = vsel %vm6153_vm10, %v11798_v40, %v6167_v31  ;;  %v6174_v20 = vsel %vm6151_vm9, %v11825_v61, %v6173_v10  ;;  %v6177_v2 = vsel %vm6143_vm5, %v12875_v5, %v6176_v52 }
 0x5aa   : > { %v6175_v58 = vsel %vm6153_vm10, %v12874_v6, %v6174_v20  ;;  %v6183_v39 = vsel %vm6141_vm4, %v6118_v13, %v6117_v3  ;;  %v6190_v29 = vsel %vm6141_vm4, %v6126_v7, %v6125_v60  ;;  %v6178_v40 = vsel %vm6145_vm6, %v12876_v27, %v6177_v2  ;;  %v12878_v60 = vld [vmem:[#allocation97_spill] sm:$0xff] }
 0x5ab   : > { %v6184_v61 = vsel %vm6143_vm5, %v11881_v62, %v6183_v39  ;;  %v6191_v47 = vsel %vm6143_vm5, %v6127_v41, %v6190_v29  ;;  %v6197_v55 = vsel %vm6141_vm4, %v6134_v15, %v6133_v30  ;;  %v6179_v44 = vsel %vm6147_vm7, %v12877_v21, %v6178_v40  ;;  %v12879_v15 = vld [vmem:[#allocation102_spill] sm:$0xff] }
 0x5ac   : > { %v6185_v34 = vsel %vm6145_vm6, %v11886_v14, %v6184_v61  ;;  %v6192_v3 = vsel %vm6145_vm6, %v6128_v49, %v6191_v47  ;;  %v6198_v13 = vsel %vm6143_vm5, %v6135_v46, %v6197_v55  ;;  %v6180_v7 = vsel %vm6149_vm8, %v12878_v60, %v6179_v44 }
 0x5ad   : > { %v6186_v62 = vsel %vm6147_vm7, %v11891_v51, %v6185_v34  ;;  %v6193_v41 = vsel %vm6147_vm7, %v6129_v45, %v6192_v3  ;;  %v6199_v30 = vsel %vm6145_vm6, %v6136_v22, %v6198_v13  ;;  %v6181_v0 = vsel %vm6151_vm9, %v12879_v15, %v6180_v7 }
 0x5ae   : > { %v6187_v14 = vsel %vm6149_vm8, %v11896_v35, %v6186_v62  ;;  %v6194_v49 = vsel %vm6149_vm8, %v11926_v59, %v6193_v41  ;;  %v6200_v46 = vsel %vm6147_vm7, %v6137_v26, %v6199_v30  ;;  %v6182_v37 = vsel %vm6153_vm10, %v12880_v43, %v6181_v0  ;;  %v12882_v59 = vld [vmem:[#allocation99_spill] sm:$0xff] }
 0x5af   : > { %v6188_v51 = vsel %vm6151_vm9, %v11901_v33, %v6187_v14  ;;  %v6195_v45 = vsel %vm6151_vm9, %v11931_v56, %v6194_v49  ;;  %v6201_v22 = vsel %vm6149_vm8, %v6138_v23, %v6200_v46  ;;  %v6204_v33 = vpack.c.b16 %v6154_v53, %v6154_v53 }
 0x5b0   : > { %v6189_v35 = vsel %vm6153_vm10, %v12881_v54, %v6188_v51  ;;  %v6196_v26 = vsel %vm6153_vm10, %v12882_v59, %v6195_v45  ;;  %v6202_v38 = vsel %vm6151_vm9, %v11959_v42, %v6201_v22  ;;  %v6205_v23 = vpack.c.b16 %v6161_v50, %v6161_v50 }
 0x5b1   : > { %v6203_v56 = vsel %vm6153_vm10, %v11964_v11, %v6202_v38  ;;  %v6206_v25 = vpack.c.b16 %v6168_v18, %v6168_v18  ;;  %v6207_v48 = vpack.c.b16 %v6175_v58, %v6175_v58  ;;  %v6208_v19 = vpack.c.b16 %v6182_v37, %v6182_v37  ;;  %6221 = vst.msk [vmem:[%s7272_s10] sm:$0xf] %vm6220_vm11, %v6204_v33 }
 0x5b2   : > { %v6209_v63 = vpack.c.b16 %v6189_v35, %v6189_v35  ;;  %v6210_v8 = vpack.c.b16 %v6196_v26, %v6196_v26  ;;  %v6211_v24 = vpack.c.b16 %v6203_v56, %v6203_v56  ;;  %6222 = vst.msk [vmem:[%s7272_s10 + $0x4] sm:$0xf] %vm6220_vm11, %v6205_v23 }
 0x5b3   : > { %6223 = vst.msk [vmem:[%s7272_s10 + $0x8] sm:$0xf] %vm6220_vm11, %v6206_v25  ;;  %6224 = vst.msk [vmem:[%s7272_s10 + $0xc] sm:$0xf] %vm6220_vm11, %v6207_v48 }
 0x5b4   : > { %6225 = vst.msk [vmem:[%s7272_s10 + $0x10] sm:$0xf] %vm6220_vm11, %v6208_v19  ;;  %6226 = vst.msk [vmem:[%s7272_s10 + $0x14] sm:$0xf] %vm6220_vm11, %v6209_v63 }
 0x5b5   : > { %6227 = vst.msk [vmem:[%s7272_s10 + $0x18] sm:$0xf] %vm6220_vm11, %v6210_v8  ;;  %6228 = vst.msk [vmem:[%s7272_s10 + $0x1c] sm:$0xf] %vm6220_vm11, %v6211_v24 }
 0x5b6 PF: > { %s13_s18 = sadd.s32 1, %s7182_s18   ;;  %s12883_s12 = smov %s7170_s15 }
 0x5b7   : > { %p10_p1 = scmp.ge.s32.totalorder %s13_s18, 66   ;;  %s12884_s13 = smov %s7174_s16 }
 0x5b8   : > { %s12885_s14 = smov %s7178_s17  ;;  %s12886_s15 = smov %s12890_s19 }
 0x5b9   : > { %s12887_s16 = smov %s12894_s20  ;;  %s12888_s17 = smov %s12898_s21 }
 0x5ba   :  { %12 = sbr.rel (!%p10_p1) target bundleno = 4 (0x4), region = 82 }

// kernel: gnina2017_forward.6
= control target key start
LH: loop header
LB: loop body
LE: loop exit
PB: predicated region body
PF: predicated region fallthrough
CT: control target
= control target key end

     0   :  { %s2596_s12 = smov 0   ;;  %s2598_s13 = smov 0   ;;  %s2899_s0 = inlined_call_operand.vmem [shape: bf16[2,6,6,6,64], index: 0, kind: input, shape index: {}]   ;;  %s2900_s1 = inlined_call_operand.vmem [shape: bf16[3,576,128], index: 1, kind: input, shape index: {}]   ;;  %s2901_s2 = inlined_call_operand.vmem [shape: f32[1,128], index: 2, kind: input, shape index: {}]   ;;  %s2902_s3 = inlined_call_operand.vmem [shape: bf16[2,2,4,128], index: 3, kind: output, shape index: {}]  }
   0x1   :  { %s2600_s14 = smov 0   ;;  %s2602_s15 = smov 0  }
   0x2   :  { %s2604_s16 = smov 0   ;;  %s2606_s17 = smov 0  }
   0x3   :  { %s2608_s18 = smov 0  }
   0x4 LB: > { %s25_s19 = sadd.s32 1, %s2555_s15  ;;  %s28_s20 = sadd.s32 1, %s2559_s16  ;;  %s2567_s18 = sphi %s2608_s18, %s13_s18   ;;  %s2563_s17 = sphi %s2606_s17, %s2914_s17   ;;  %s2559_s16 = sphi %s2604_s16, %s2913_s16   ;;  %s2555_s15 = sphi %s2602_s15, %s2912_s15   ;;  %s2551_s14 = sphi %s2600_s14, %s2911_s14   ;;  %s2547_s13 = sphi %s2598_s13, %s2910_s13   ;;  %s2543_s12 = sphi %s2596_s12, %s2909_s12  }
   0x5   : > { %p26_p0 = scmp.ge.s32.totalorder %s25_s19, 4  ;;  %p2090_p1 = scmp.ge.s32.totalorder %s2567_s18, 1 }
   0x6   : > { %p172_p2 = scmp.lt.s32.totalorder %s2567_s18, 17  ;;  %s32_s21 = sadd.s32 1, %s2563_s17 }
   0x7   : > { %s2916_s19 = smov (%p26_p0, %s25_s19), 0  ;;  %s2918_s20 = smov (!%p26_p0, %s28_s20), %s2559_s16 }
   0x8   : > { %p173_p3 = pnand %p2090_p1, %p172_p2  ;;  %p30_p4 = scmp.ge.s32.totalorder %s2918_s20, 2 }
   0x9   : > { %s2091_s22 = sshll.u32 (!%p173_p3), %s2547_s13, 1  ;;  %p207_p6 = scmp.lt.s32.totalorder (!%p173_p3), %s2551_s14, 1 }
   0xa   : > { %s2920_s20 = smov (%p30_p4, %s2918_s20), 0  ;;  %s2922_s21 = smov (!%p30_p4, %s32_s21), %s2563_s17 }
   0xb   : > { %p34_p5 = scmp.ge.s32.totalorder %s2922_s21, 2  ;;  %176 = sbr.rel (%p173_p3) target bundleno = 790 (0x316), region = 32 }
   0xc   : > { %s206_s23 = sadd.s32 (!%p173_p3), %s2543_s12, %s2091_s22  ;;  %p220_p7 = scmp.lt.s32.totalorder (!%p173_p3), %s2547_s13, 1 }
   0xd   : > { %s2924_s21 = smov (%p34_p5, %s2922_s21), 0  ;;  %p209_p8 = scmp.lt.s32.totalorder (!%p173_p3), %s206_s23, 5 }
   0xe   : > { %p2095_p9 = scmp.ne.s32.totalorder (!%p173_p3), %s2543_s12, 0 }
  0x12   : > { %s2926_s14 = smov (!%p207_p6, %s2551_s14), 1  ;;  %s2928_s23 = smov (!%p209_p8, %s206_s23), 5 }
  0x13   : > { %s2365_s24 = smul.u32 36, %s2926_s14  ;;  %s2093_s25 = sshll.u32 %s2926_s14, 1  ;;  %v2569_v0 = vmov (!%p2095_p9), 0.0  }
  0x14   : > { %s2930_s13 = smov (!%p220_p7, %s2547_s13), 1  ;;  %s2364_s26 = smul.u32 6, %s2928_s23  ;;  %231 = vst [vmem:[#allocation2] sm:$0xff] (!%p2095_p9), %v2569_v0  ;;  %232 = vst [vmem:[#allocation2 + $0x8] sm:$0xff] (!%p2095_p9), %v2569_v0 }
  0x15   : > { %s223_s27 = sadd.s32 %s2093_s25, %s2930_s13  ;;  %230 = sbr.rel (%p2095_p9) target bundleno = 28 (0x1c), region = 36  ;;  %233 = vst [vmem:[#allocation3] sm:$0xff] (!%p2095_p9), %v2569_v0  ;;  %234 = vst [vmem:[#allocation3 + $0x8] sm:$0xff] (!%p2095_p9), %v2569_v0 }
  0x16   : > { %s213_s28 = sadd.s32 %s2365_s24, %s2364_s26  ;;  %s2094_s29 = sshll.u32 %s223_s27, 1 }
  0x17   : > { %s2092_s30 = sshll.u32 %s213_s28, 2  ;;  %s2649_s6 = scalar_lea.vmem %s2902_s3, %s2094_s29 }
  0x18   : > { %s2654_s9 = scalar_lea.vmem %s2899_s0, %s2092_s30 }
  0x1c PF: > { %vm382_vm0 = vcmask 1040384   ;;  %vm383_vm1 = vcmask 1042434   ;;  %vm385_vm2 = vcmask 1044484   ;;  %vm387_vm3 = vcmask 1046534   ;;  %s2571_s10 = smov 64   ;;  %p2156_p10 = scmp.ge.s32.totalorder %s2543_s12, 3 }
  0x1d   : > { %vm384_vm4 = vmor %vm382_vm0, %vm383_vm1  ;;  %v2124_v1 = vld.sshfl [vmem:[%s2654_s9 + $0x4] sm:$0x12 pattern:$0x76325410]  ;;  %v728_v2 = vlaneseq  ;;  %v2570_v6 = vmov 1983009808  }
  0x1e   : > { %vm386_vm5 = vmor %vm384_vm4, %vm385_vm2  ;;  %v2125_v3 = vld.sshfl [vmem:[%s2654_s9 + $0x8] sm:$0x12 pattern:$0x76325410]  ;;  %v521_v4 = vcombine.high %v2124_v1, %v2124_v1  ;;  %v2128_v5 = vrot.slane %v2124_v1, 9  ;;  %v726_v7 = vunpack.c.l.s4 %v2570_v6  ;;  %vm892_vm14 = vcmask 523264  }
  0x1f   : > { %vm2660_vm6 = vmor %vm386_vm5, %vm387_vm3  ;;  %v2126_v9 = vld.sshfl [vmem:[%s2654_s9 + $0xc] sm:$0x12 pattern:$0x76325410]  ;;  %v529_v10 = vcombine.high %v2125_v3, %v2125_v3  ;;  %v2129_v11 = vrot.slane %v2125_v3, 9  ;;  %v729_v12 = vshrl.u32 %v728_v2, 7 }
  0x20   : > { %v2127_v13 = vld.sshfl [vmem:[%s2654_s9 + $0x10] sm:$0x12 pattern:$0x76325410]  ;;  %v537_v14 = vcombine.high %v2126_v9, %v2126_v9  ;;  %v548_v15 = vrot.slane %v521_v4, 7  ;;  %v2130_v16 = vrot.slane %v2126_v9, 9  ;;  %v727_v17 = vunpack.c.0.s8 %v726_v7 }
  0x21   : > { %v545_v18 = vcombine.high %v2127_v13, %v2127_v13  ;;  %v552_v19 = vrot.slane %v529_v10, 7  ;;  %v2131_v20 = vrot.slane %v2127_v13, 9  ;;  %v2151_v21 = vld.sshfl [vmem:[%s2654_s9 + $0x14] sm:$0x12 pattern:$0x76325410] }
  0x22   : > { %v2669_v22 = vsel %vm2660_vm6, %v2128_v5, %v548_v15  ;;  %v556_v23 = vrot.slane %v537_v14, 7  ;;  %v702_v24 = vcombine.high %v2151_v21, %v2151_v21  ;;  %v2155_v25 = vrot.slane %v2151_v21, 9  ;;  %v2096_v26 = vld.sshfl [vmem:[%s2654_s9] sm:$0x13 pattern:$0x76325410] }
  0x23   : > { %v553_v27 = vsel %vm2660_vm6, %v2129_v11, %v552_v19  ;;  %v560_v28 = vrot.slane %v545_v18, 7  ;;  %v2674_v29 = vsub.s32 %v727_v17, %v729_v12  ;;  %v2097_v30 = vld.sshfl [vmem:[%s2654_s9 + $0x4] sm:$0x13 pattern:$0x76325410]  ;;  %v254_v31 = vcombine.high %v2096_v26, %v2096_v26  ;;  %p915_p11 = scmp.lt.s32.totalorder (!%p2156_p10), %s2543_s12, 2 }
  0x24   : > { %v557_v32 = vsel %vm2660_vm6, %v2130_v16, %v556_v23  ;;  %v717_v33 = vrot.slane %v702_v24, 7  ;;  %v816_v34 = vcombine.low %v2669_v22, %v553_v27  ;;  %v2098_v35 = vld.sshfl [vmem:[%s2654_s9 + $0x8] sm:$0x13 pattern:$0x76325410]  ;;  %v262_v36 = vcombine.high %v2097_v30, %v2097_v30 }
  0x25   : > { %v561_v37 = vsel %vm2660_vm6, %v2131_v20, %v560_v28  ;;  %v875_v38 = vcombine.low %v553_v27, %v557_v32  ;;  %v2099_v39 = vld.sshfl [vmem:[%s2654_s9 + $0xc] sm:$0x13 pattern:$0x76325410]  ;;  %v270_v40 = vcombine.high %v2098_v35, %v2098_v35  ;;  %vm279_vm7 = vsmask.f32 1280 }
  0x26   : > { %v718_v41 = vsel %vm2660_vm6, %v2155_v25, %v717_v33  ;;  %v817_v42 = vcombine.low %v557_v32, %v561_v37  ;;  %v824_v43 = vrot.slane %v816_v34, %v2674_v29  ;;  %v278_v44 = vcombine.high %v2099_v39, %v2099_v39  ;;  %v2142_v3 = vld.sshfl [vmem:[%s2654_s9 + $0x10] sm:$0x13 pattern:$0x76325410] }
  0x27   : > { %v876_v45 = vcombine.low %v561_v37, %v718_v41  ;;  %v2688_v46 = vrot.slane %v875_v38, %v2674_v29  ;;  %vm280_vm8 = vsmask.f32 3336  ;;  %vm282_vm9 = vsmask.f32 5392 }
  0x28   : > { %v831_v47 = vrot.slane %v817_v42, %v2674_v29  ;;  %vm281_vm10 = vmor %vm279_vm7, %vm280_vm8  ;;  %vm284_vm11 = vsmask.f32 7448  ;;  %v287_v48 = vshrl.u32 %v2096_v26, 16  ;;  %v290_v49 = vshll.u32 %v2096_v26, 16 }
  0x29   : > { %v890_v50 = vrot.slane %v876_v45, %v2674_v29  ;;  %v296_v51 = vshll.u32 %v254_v31, 16  ;;  %v301_v52 = vshrl.u32 %v2097_v30, 16  ;;  %v304_v53 = vshll.u32 %v2097_v30, 16  ;;  %vm2692_vm12 = vmor %vm281_vm10, %vm282_vm9 }
  0x2a   : > { %v832_v54 = vcombine.low %v824_v43, %v831_v47  ;;  %v289_v56 = vrot.slane %v287_v48, 6  ;;  %v292_v57 = vrot.slane %v290_v49, 7  ;;  %v310_v58 = vshll.u32 %v262_v36, 16  ;;  %vm2704_vm13 = vmor %vm2692_vm12, %vm284_vm11 }
  0x2b   : > { %v2697_v59 = vcombine.low %v2688_v46, %v890_v50  ;;  %v298_v60 = vrot.slane %v296_v51, 7  ;;  %v303_v61 = vrot.slane %v301_v52, 6  ;;  %v306_v62 = vrot.slane %v304_v53, 7 }
  0x2c   : > { %833 = vrot.lane.b32.xlu1 %v832_v54, %s2571_s10  ;;  %v293_v63 = vor.u32 %v292_v57, %v289_v56  ;;  %v312_v0 = vrot.slane %v310_v58, 7  ;;  %v315_v1 = vshrl.u32 %v2098_v35, 16  ;;  %v318_v2 = vshll.u32 %v2098_v35, 16 }
  0x2d   : > { %v307_v5 = vor.u32 %v306_v62, %v303_v61  ;;  %v324_v6 = vshll.u32 %v270_v40, 16  ;;  %v329_v7 = vshrl.u32 %v2099_v39, 16  ;;  %v332_v9 = vshll.u32 %v2099_v39, 16 }
  0x2e   : > { %v294_v10 = vrot.slane %v293_v63, 2  ;;  %v317_v11 = vrot.slane %v315_v1, 6  ;;  %v320_v12 = vrot.slane %v318_v2, 7  ;;  %v338_v13 = vshll.u32 %v278_v44, 16 }
  0x2f   : > { %v308_v14 = vrot.slane %v307_v5, 2  ;;  %v326_v15 = vrot.slane %v324_v6, 7  ;;  %v331_v16 = vrot.slane %v329_v7, 6  ;;  %v334_v17 = vrot.slane %v332_v9, 7 }
  0x30   : > { %v299_v18 = vsel %vm2704_vm13, %v294_v10, %v298_v60  ;;  %v321_v19 = vor.u32 %v320_v12, %v317_v11  ;;  %v340_v20 = vrot.slane %v338_v13, 7  ;;  %v2143_v21 = vld.sshfl [vmem:[%s2654_s9 + $0x14] sm:$0x13 pattern:$0x76325410]  ;;  %v598_v23 = vcombine.high %v2142_v3, %v2142_v3 }
  0x31   : > { %v313_v24 = vsel %vm2704_vm13, %v308_v14, %v312_v0  ;;  %v335_v25 = vor.u32 %v334_v17, %v331_v16  ;;  %v606_v26 = vcombine.high %v2143_v21, %v2143_v21  ;;  %v636_v27 = vshrl.u32 %v2142_v3, 16  ;;  %v2507_v33 = vld.sshfl [vmem:[%s2654_s9 + $0x4] sm:$0xf pattern:$0x76325410] }
  0x32   : > { %v322_v28 = vrot.slane %v321_v19, 2  ;;  %v740_v30 = vcombine.low %v299_v18, %v313_v24  ;;  %v639_v31 = vshll.u32 %v2142_v3, 16  ;;  %v645_v32 = vshll.u32 %v598_v23, 16 }
  0x33   : > { %v2508_v34 = vld.sshfl [vmem:[%s2654_s9 + $0xc] sm:$0xf pattern:$0x76325410]  ;;  %v336_v35 = vrot.slane %v335_v25, 2  ;;  %v638_v36 = vrot.slane %v636_v27, 6 }
  0x34   : > { %v650_v37 = vshrl.u32 %v2143_v21, 16  ;;  %v653_v38 = vshll.u32 %v2143_v21, 16  ;;  %v327_v39 = vsel %vm2704_vm13, %v322_v28, %v326_v15  ;;  %v641_v40 = vrot.slane %v639_v31, 7 }
  0x35   : > { %v341_v41 = vsel %vm2704_vm13, %v336_v35, %v340_v20  ;;  %v659_v44 = vshll.u32 %v606_v26, 16  ;;  %v748_v47 = vrot.slane %v740_v30, %v2674_v29  ;;  %v647_v49 = vrot.slane %v645_v32, 7  ;;  %v2100_v53 = vld.sshfl [vmem:[%s2654_s9] sm:$0x12 pattern:$0x76325410] }
  0x36   : > { %v652_v42 = vrot.slane %v650_v37, 6  ;;  %v655_v43 = vrot.slane %v653_v38, 7  ;;  %v741_v45 = vcombine.low %v327_v39, %v341_v41  ;;  %v642_v48 = vor.u32 %v641_v40, %v638_v36  ;;  %v2509_v15 = vld.sshfl [vmem:[%s2654_s9] sm:$0xf pattern:$0x76325410] }
  0x37   : > { %v661_v51 = vrot.slane %v659_v44, 7  ;;  %v799_v52 = vcombine.low %v313_v24, %v327_v39  ;;  %v357_v61 = vcombine.high %v2100_v53, %v2100_v53  ;;  %v2104_v0 = vrot.slane %v2100_v53, 9  ;;  %v2510_v8 = vld.sshfl [vmem:[%s2654_s9 + $0x8] sm:$0xf pattern:$0x76325410] }
  0x38   : > { %v656_v50 = vor.u32 %v655_v43, %v652_v42  ;;  %v755_v54 = vrot.slane %v741_v45, %v2674_v29  ;;  %v643_v55 = vrot.slane %v642_v48, 2  ;;  %v796_v2 = vcombine.low %v2507_v33, %v2508_v34  ;;  %v2511_v16 = vld.sshfl [vmem:[%s2654_s9 + $0x8] sm:$0xf pattern:$0x76325410] }
  0x39   : > { %v807_v57 = vrot.slane %v799_v52, %v2674_v29  ;;  %v391_v3 = vrot.slane %v357_v61, 7  ;;  %v2512_v17 = vld.sshfl [vmem:[%s2654_s9 + $0x10] sm:$0xf pattern:$0x76325410]  ;;  %v739_v18 = vcombine.low %v2509_v15, %v2510_v8  ;;  %v2572_v61 = vmov (!%p2156_p10), 0.0  }
  0x3a   : > { %v657_v56 = vrot.slane %v656_v50, 2  ;;  %v756_v58 = vcombine.low %v748_v47, %v755_v54  ;;  %v648_v60 = vsel %vm2704_vm13, %v643_v55, %v647_v49  ;;  %v855_v20 = vcombine.low %v2511_v16, %v2512_v17  ;;  %v913_v16 = vld [vmem:[#allocation2] sm:$0xff] (!%p2156_p10) }
  0x3b   : > { %v800_v63 = vcombine.low %v341_v41, %v648_v60  ;;  %v392_v7 = vsel %vm2660_vm6, %v2104_v0, %v391_v3  ;;  %vm2573_vm15 = vmmov (!%p2156_p10), 0  }
  0x3c   : > { %v662_v62 = vsel %vm2704_vm13, %v657_v56, %v661_v51  ;;  %757 = vrot.lane.b32.xlu0 %v756_v58, %s2571_s10  ;;  %v759_v9 = vcombine.low %v392_v7, %v2669_v22 }
  0x3d   : > { %v857_v1 = vcombine.low %v648_v60, %v662_v62  ;;  %v814_v5 = vrot.slane %v800_v63, %v2674_v29 }
  0x3e   : > { %v767_v11 = vrot.slane %v759_v9, %v2674_v29 }
  0x3f   : > { %v871_v6 = vrot.slane %v857_v1, %v2674_v29  ;;  %v815_v4 = vcombine.low %v807_v57, %v814_v5 }
  0x40   : > { %797 = vrot.lane.b32.xlu0 %v796_v2, %s2571_s10  ;;  %v775_v12 = vcombine.low %v767_v11, %v2688_v46 }
  0x41   : > { %v872_v10 = vcombine.low %v755_v54, %v871_v6 }
  0x43   : > { %873 = vrot.lane.b32.xlu1 %v872_v10, %s2571_s10 }
  0x9e   : > { %v834_v13 = vpop.permute.xlu1 %833 }
  0x9f   : > { %v2738_v14 = vsel %vm892_vm14, %v815_v4, %v834_v13 }
  0xae   : > { %v758_v22 = vpop.permute.xlu0 %757 }
  0xaf   : > { %v2745_v19 = vsel %vm892_vm14, %v739_v18, %v758_v22 }
  0xb0   : > { %912 = sbr.rel (%p2156_p10) target bundleno = 457 (0x1c9), region = 40 }
  0xb2   : > { %v798_v21 = vpop.permute.xlu0 %797 }
  0xb3   : > { %v2748_v23 = vsel %vm892_vm14, %v775_v12, %v798_v21 }
  0xb4   : > { %1243 = vmatprep.mubr.bf16.mxu0 (!%p2156_p10), %v2748_v23 }
  0xb5   : > { %v874_v46 = vpop.permute.xlu1 %873 }
  0xb6   : > { %v2751_v24 = vsel %vm892_vm14, %v855_v20, %v874_v46  ;;  %v914_v20 = vld [vmem:[#allocation2 + $0x8] sm:$0xff] (!%p2156_p10) }
  0xb7   : > { %1284 = vmatprep.mubr.bf16.mxu1 %v2751_v24  ;;  %s916_s11 = scalar_select %p915_p11, %s2543_s12, 2 }
  0xb9   : > { %s2240_s13 = smul.u32 288, %s916_s11 }
  0xbb   : > { %s2761_s23 = scalar_lea.vmem %s2900_s1, %s2240_s13 }
  0xbc   : > { %v2435_v25 = vld [vmem:[%s2761_s23 + $0x40] sm:$0xff]   ;;  %v2439_v30 = vld [vmem:[%s2761_s23 + $0x48] sm:$0xff]   ;;  %v2443_v34 = vld [vmem:[%s2761_s23 + $0x50] sm:$0xff]  }
  0xbd   : > { %v2436_v26 = vld [vmem:[%s2761_s23 + $0xc0] sm:$0xff]   ;;  %2242 = vmatprep.subr.bf16.mxu0 %v2435_v25  ;;  %v2440_v31 = vld [vmem:[%s2761_s23 + $0xc8] sm:$0xff]   ;;  %v2444_v35 = vld [vmem:[%s2761_s23 + $0xd0] sm:$0xff]  }
  0xbe   : > { %v2437_v27 = vld [vmem:[%s2761_s23] sm:$0xff]   ;;  %2264 = vmatprep.subr.bf16.mxu1 %v2436_v26  ;;  %v2441_v32 = vld [vmem:[%s2761_s23 + $0x8] sm:$0xff]   ;;  %v2445_v36 = vld [vmem:[%s2761_s23 + $0x10] sm:$0xff]  }
  0xbf   : > { %v2438_v28 = vld [vmem:[%s2761_s23 + $0x80] sm:$0xff]   ;;  %2243 = vmatpush3.bf16.msra.mxu0 %v2437_v27  ;;  %v2442_v33 = vld [vmem:[%s2761_s23 + $0x88] sm:$0xff]   ;;  %v2446_v37 = vld [vmem:[%s2761_s23 + $0x90] sm:$0xff]  }
  0xc0   : > { %2265 = vmatpush3.bf16.msra.mxu1 %v2438_v28  ;;  %2244 = vmatprep.subr.bf16.mxu0 %v2439_v30  ;;  %v2447_v38 = vld [vmem:[%s2761_s23 + $0x58] sm:$0xff]   ;;  %v2451_v42 = vld [vmem:[%s2761_s23 + $0x60] sm:$0xff]   ;;  %v2455_v47 = vld [vmem:[%s2761_s23 + $0x68] sm:$0xff]  }
  0xc1   : > { %2266 = vmatprep.subr.bf16.mxu1 %v2440_v31  ;;  %v2448_v39 = vld [vmem:[%s2761_s23 + $0xd8] sm:$0xff]   ;;  %v2452_v43 = vld [vmem:[%s2761_s23 + $0xe0] sm:$0xff]   ;;  %v2456_v48 = vld [vmem:[%s2761_s23 + $0xe8] sm:$0xff]  }
  0xc2   : > { %v2449_v40 = vld [vmem:[%s2761_s23 + $0x18] sm:$0xff]   ;;  %v2453_v44 = vld [vmem:[%s2761_s23 + $0x20] sm:$0xff]   ;;  %v2457_v49 = vld [vmem:[%s2761_s23 + $0x28] sm:$0xff]  }
  0xc3   : > { %2245 = vmatpush3.bf16.msra.mxu0 %v2441_v32  ;;  %v2450_v41 = vld [vmem:[%s2761_s23 + $0x98] sm:$0xff]   ;;  %v2454_v45 = vld [vmem:[%s2761_s23 + $0xa0] sm:$0xff]   ;;  %v2458_v50 = vld [vmem:[%s2761_s23 + $0xa8] sm:$0xff]  }
  0xc4   : > { %2267 = vmatpush3.bf16.msra.mxu1 %v2442_v33  ;;  %2246 = vmatprep.subr.bf16.mxu0 %v2443_v34  ;;  %v2459_v51 = vld [vmem:[%s2761_s23 + $0x70] sm:$0xff]   ;;  %v2463_v55 = vld [vmem:[%s2761_s23 + $0x78] sm:$0xff]   ;;  %v2467_v60 = vld [vmem:[%s2761_s23 + $0x100] sm:$0xff]  }
  0xc5   : > { %2268 = vmatprep.subr.bf16.mxu1 %v2444_v35  ;;  %v2460_v52 = vld [vmem:[%s2761_s23 + $0xf0] sm:$0xff]   ;;  %v2464_v56 = vld [vmem:[%s2761_s23 + $0xf8] sm:$0xff]   ;;  %v2468_v62 = vld [vmem:[%s2761_s23 + $0x108] sm:$0xff]  }
  0xc6   : > { %v2461_v53 = vld [vmem:[%s2761_s23 + $0x30] sm:$0xff]   ;;  %v2465_v57 = vld [vmem:[%s2761_s23 + $0x38] sm:$0xff]  }
  0xc7   : > { %2247 = vmatpush3.bf16.msra.mxu0 %v2445_v36  ;;  %v2462_v54 = vld [vmem:[%s2761_s23 + $0xb0] sm:$0xff]   ;;  %v2466_v58 = vld [vmem:[%s2761_s23 + $0xb8] sm:$0xff]  }
  0xc8   : > { %2269 = vmatpush3.bf16.msra.mxu1 %v2446_v37  ;;  %2248 = vmatprep.subr.bf16.mxu0 %v2447_v38  ;;  %v2469_v63 = vld [vmem:[%s2761_s23 + $0x110] sm:$0xff]   ;;  %v2470_v0 = vld [vmem:[%s2761_s23 + $0x118] sm:$0xff]  }
  0xc9   : > { %2270 = vmatprep.subr.bf16.mxu1 %v2448_v39 }
  0xcb   : > { %2249 = vmatpush3.bf16.msra.mxu0 %v2449_v40 }
  0xcc   : > { %2271 = vmatpush3.bf16.msra.mxu1 %v2450_v41  ;;  %2250 = vmatprep.subr.bf16.mxu0 %v2451_v42 }
  0xcd   : > { %2272 = vmatprep.subr.bf16.mxu1 %v2452_v43 }
  0xcf   : > { %2251 = vmatpush3.bf16.msra.mxu0 %v2453_v44 }
  0xd0   : > { %2273 = vmatpush3.bf16.msra.mxu1 %v2454_v45  ;;  %2252 = vmatprep.subr.bf16.mxu0 %v2455_v47 }
  0xd1   : > { %2274 = vmatprep.subr.bf16.mxu1 %v2456_v48 }
  0xd3   : > { %2253 = vmatpush3.bf16.msra.mxu0 %v2457_v49 }
  0xd4   : > { %2275 = vmatpush3.bf16.msra.mxu1 %v2458_v50  ;;  %2254 = vmatprep.subr.bf16.mxu0 %v2459_v51 }
  0xd5   : > { %2276 = vmatprep.subr.bf16.mxu1 %v2460_v52 }
  0xd7   : > { %2255 = vmatpush3.bf16.msra.mxu0 %v2461_v53 }
  0xd8   : > { %2277 = vmatpush3.bf16.msra.mxu1 %v2462_v54  ;;  %2256 = vmatprep.subr.bf16.mxu0 %v2463_v55 }
  0xd9   : > { %2278 = vmatprep.subr.bf16.mxu1 %v2464_v56 }
  0xdb   : > { %2257 = vmatpush3.bf16.msra.mxu0 %v2465_v57 }
  0xdc   : > { %2279 = vmatpush3.bf16.msra.mxu1 %v2466_v58  ;;  %2340 = vmatprep.subr.bf16.mxu0 %v2572_v61 }
  0xde   : > { %1244 = vmatmul.mubr.bf16.vlgmr.msra.gmra.mrb[0].mxu0 %v2745_v19 }
  0xdf   : > { %1285 = vmatmul.mubr.bf16.vlgmr.msra.gmra.mrb[0].mxu1 %v2738_v14  ;;  %2341 = vmatpush3.bf16.msra.mxu0 %v2467_v60 }
  0xe0   : > { %2342 = vmatprep.subr.bf16.mxu0 %v2572_v61  ;;  %2348 = vmatprep.mubr.msk.bf16.mxu0 %vm2573_vm15, %v2572_v61 }
  0xe3   : > { %2343 = vmatpush3.bf16.msra.mxu0 %v2468_v62 }
  0xe4   : > { %2344 = vmatprep.subr.bf16.mxu0 %v2572_v61 }
  0xe7   : > { %2345 = vmatpush3.bf16.msra.mxu0 %v2469_v63 }
  0xe8   : > { %2346 = vmatprep.subr.bf16.mxu0 %v2572_v61 }
  0xeb   : > { %2347 = vmatpush3.bf16.msra.mxu0 %v2470_v0 }
  0xee   : > { %2349 = vmatmul.mubr.msk.bf16.vlgmr.msra.gmra.mrb[4].mxu0 %vm892_vm14, %v2697_v59 }
 0x1b1   : > { %v2258_v1 = vpop.f32.mrb[0].mxu0 }
 0x1b2   : > { %v2280_v2 = vpop.f32.mrb[0].mxu1  ;;  %v2259_v3 = vpop.f32.mrb[1].mxu0 }
 0x1b3   : > { %v2260_v5 = vadd.f32 %v2259_v3, %v2258_v1  ;;  %v2281_v6 = vpop.f32.mrb[1].mxu1  ;;  %v2261_v7 = vpop.f32.mrb[2].mxu0 }
 0x1b4   : > { %v2282_v4 = vadd.f32 %v2281_v6, %v2280_v2  ;;  %v2283_v9 = vpop.f32.mrb[2].mxu1  ;;  %v2262_v10 = vpop.f32.mrb[3].mxu0 }
 0x1b5   : > { %v2263_v11 = vadd.f32 %v2262_v10, %v2261_v7  ;;  %v2284_v12 = vpop.f32.mrb[3].mxu1 }
 0x1b6   : > { %v2285_v13 = vadd.f32 %v2284_v12, %v2283_v9  ;;  %v1287_v15 = vadd.f32 %v2282_v4, %v2260_v5 }
 0x1b8   : > { %v1290_v8 = vadd.f32 %v2285_v13, %v2263_v11 }
 0x1c1   : > { %v1327_v17 = vpop.f32.mrb[4].mxu0 }
 0x1c2   : > { %v1328_v18 = vadd.f32 %v1327_v17, %v1287_v15  ;;  %v2350_v22 = vpop.f32.mrb[5].mxu0 }
 0x1c3   : > { %v1330_v21 = vpop.f32.mrb[6].mxu0 }
 0x1c4   : > { %v1334_v46 = vadd.f32 %v1328_v18, %v913_v16  ;;  %v1331_v25 = vadd.f32 %v1330_v21, %v1290_v8  ;;  %v2351_v26 = vpop.f32.mrb[7].mxu0 }
 0x1c6   : > { %1336 = vst [vmem:[#allocation2] sm:$0xff] %v1334_v46  ;;  %v1335_v27 = vadd.f32 %v1331_v25, %v914_v20 }
 0x1c8   : > { %1337 = vst [vmem:[#allocation2 + $0x8] sm:$0xff] %v1335_v27 }
 0x1c9 PF: > { %p2195_p12 = scmp.le.s32.totalorder %s2543_s12, 0 }
 0x1ca   : > { %s2196_s24 = sadd.s32 (!%p2195_p12), 4294967295, %s2543_s12  ;;  %1673 = vmatprep.mubr.bf16.mxu0 (!%p2195_p12), %v2748_v23  ;;  %1714 = vmatprep.mubr.bf16.mxu1 (!%p2195_p12), %v2751_v24  ;;  %v2574_v62 = vmov (!%p2195_p12), 0.0   ;;  %vm2575_vm0 = vmmov (!%p2195_p12), 0   ;;  %v1342_v8 = vld [vmem:[#allocation3] sm:$0xff] (!%p2195_p12)  ;;  %v1343_v22 = vld [vmem:[#allocation3 + $0x8] sm:$0xff] (!%p2195_p12) }
 0x1cb   : > { %1341 = sbr.rel (%p2195_p12) target bundleno = 739 (0x2e3), region = 44  ;;  %p1345_p13 = scmp.gt.s32.totalorder (!%p2195_p12), %s2196_s24, 0 }
 0x1d2   : > { %s2932_s24 = smov (!%p1345_p13, %s2196_s24), 0 }
 0x1d3   : > { %s2241_s25 = smul.u32 288, %s2932_s24 }
 0x1d5   : > { %s2810_s28 = scalar_lea.vmem %s2900_s1, %s2241_s25 }
 0x1d6   : > { %v2471_v23 = vld [vmem:[%s2810_s28 + $0x40] sm:$0xff]   ;;  %v2475_v31 = vld [vmem:[%s2810_s28 + $0x48] sm:$0xff]   ;;  %v2479_v35 = vld [vmem:[%s2810_s28 + $0x50] sm:$0xff]  }
 0x1d7   : > { %v2472_v28 = vld [vmem:[%s2810_s28 + $0xc0] sm:$0xff]   ;;  %2291 = vmatprep.subr.bf16.mxu0 %v2471_v23  ;;  %v2476_v32 = vld [vmem:[%s2810_s28 + $0xc8] sm:$0xff]   ;;  %v2480_v36 = vld [vmem:[%s2810_s28 + $0xd0] sm:$0xff]  }
 0x1d8   : > { %v2473_v24 = vld [vmem:[%s2810_s28] sm:$0xff]   ;;  %2313 = vmatprep.subr.bf16.mxu1 %v2472_v28  ;;  %v2477_v33 = vld [vmem:[%s2810_s28 + $0x8] sm:$0xff]   ;;  %v2481_v37 = vld [vmem:[%s2810_s28 + $0x10] sm:$0xff]  }
 0x1d9   : > { %v2474_v30 = vld [vmem:[%s2810_s28 + $0x80] sm:$0xff]   ;;  %2292 = vmatpush3.bf16.msra.mxu0 %v2473_v24  ;;  %v2478_v34 = vld [vmem:[%s2810_s28 + $0x88] sm:$0xff]   ;;  %v2482_v38 = vld [vmem:[%s2810_s28 + $0x90] sm:$0xff]  }
 0x1da   : > { %2314 = vmatpush3.bf16.msra.mxu1 %v2474_v30  ;;  %2293 = vmatprep.subr.bf16.mxu0 %v2475_v31  ;;  %v2483_v39 = vld [vmem:[%s2810_s28 + $0x58] sm:$0xff]   ;;  %v2487_v43 = vld [vmem:[%s2810_s28 + $0x60] sm:$0xff]   ;;  %v2491_v48 = vld [vmem:[%s2810_s28 + $0x68] sm:$0xff]  }
 0x1db   : > { %2315 = vmatprep.subr.bf16.mxu1 %v2476_v32  ;;  %v2484_v40 = vld [vmem:[%s2810_s28 + $0xd8] sm:$0xff]   ;;  %v2488_v44 = vld [vmem:[%s2810_s28 + $0xe0] sm:$0xff]   ;;  %v2492_v49 = vld [vmem:[%s2810_s28 + $0xe8] sm:$0xff]  }
 0x1dc   : > { %v2485_v41 = vld [vmem:[%s2810_s28 + $0x18] sm:$0xff]   ;;  %v2489_v45 = vld [vmem:[%s2810_s28 + $0x20] sm:$0xff]   ;;  %v2493_v50 = vld [vmem:[%s2810_s28 + $0x28] sm:$0xff]  }
 0x1dd   : > { %2294 = vmatpush3.bf16.msra.mxu0 %v2477_v33  ;;  %v2486_v42 = vld [vmem:[%s2810_s28 + $0x98] sm:$0xff]   ;;  %v2490_v47 = vld [vmem:[%s2810_s28 + $0xa0] sm:$0xff]   ;;  %v2494_v51 = vld [vmem:[%s2810_s28 + $0xa8] sm:$0xff]  }
 0x1de   : > { %2316 = vmatpush3.bf16.msra.mxu1 %v2478_v34  ;;  %2295 = vmatprep.subr.bf16.mxu0 %v2479_v35  ;;  %v2495_v52 = vld [vmem:[%s2810_s28 + $0x70] sm:$0xff]   ;;  %v2499_v56 = vld [vmem:[%s2810_s28 + $0x78] sm:$0xff]   ;;  %v2503_v61 = vld [vmem:[%s2810_s28 + $0x100] sm:$0xff]  }
 0x1df   : > { %2317 = vmatprep.subr.bf16.mxu1 %v2480_v36  ;;  %v2496_v53 = vld [vmem:[%s2810_s28 + $0xf0] sm:$0xff]   ;;  %v2500_v57 = vld [vmem:[%s2810_s28 + $0xf8] sm:$0xff]   ;;  %v2504_v63 = vld [vmem:[%s2810_s28 + $0x108] sm:$0xff]  }
 0x1e0   : > { %v2497_v54 = vld [vmem:[%s2810_s28 + $0x30] sm:$0xff]   ;;  %v2501_v58 = vld [vmem:[%s2810_s28 + $0x38] sm:$0xff]  }
 0x1e1   : > { %2296 = vmatpush3.bf16.msra.mxu0 %v2481_v37  ;;  %v2498_v55 = vld [vmem:[%s2810_s28 + $0xb0] sm:$0xff]   ;;  %v2502_v60 = vld [vmem:[%s2810_s28 + $0xb8] sm:$0xff]  }
 0x1e2   : > { %2318 = vmatpush3.bf16.msra.mxu1 %v2482_v38  ;;  %2297 = vmatprep.subr.bf16.mxu0 %v2483_v39  ;;  %v2505_v0 = vld [vmem:[%s2810_s28 + $0x110] sm:$0xff]   ;;  %v2506_v1 = vld [vmem:[%s2810_s28 + $0x118] sm:$0xff]  }
 0x1e3   : > { %2319 = vmatprep.subr.bf16.mxu1 %v2484_v40 }
 0x1e5   : > { %2298 = vmatpush3.bf16.msra.mxu0 %v2485_v41 }
 0x1e6   : > { %2320 = vmatpush3.bf16.msra.mxu1 %v2486_v42  ;;  %2299 = vmatprep.subr.bf16.mxu0 %v2487_v43 }
 0x1e7   : > { %2321 = vmatprep.subr.bf16.mxu1 %v2488_v44 }
 0x1e9   : > { %2300 = vmatpush3.bf16.msra.mxu0 %v2489_v45 }
 0x1ea   : > { %2322 = vmatpush3.bf16.msra.mxu1 %v2490_v47  ;;  %2301 = vmatprep.subr.bf16.mxu0 %v2491_v48 }
 0x1eb   : > { %2323 = vmatprep.subr.bf16.mxu1 %v2492_v49 }
 0x1ed   : > { %2302 = vmatpush3.bf16.msra.mxu0 %v2493_v50 }
 0x1ee   : > { %2324 = vmatpush3.bf16.msra.mxu1 %v2494_v51  ;;  %2303 = vmatprep.subr.bf16.mxu0 %v2495_v52 }
 0x1ef   : > { %2325 = vmatprep.subr.bf16.mxu1 %v2496_v53 }
 0x1f1   : > { %2304 = vmatpush3.bf16.msra.mxu0 %v2497_v54 }
 0x1f2   : > { %2326 = vmatpush3.bf16.msra.mxu1 %v2498_v55  ;;  %2305 = vmatprep.subr.bf16.mxu0 %v2499_v56 }
 0x1f3   : > { %2327 = vmatprep.subr.bf16.mxu1 %v2500_v57 }
 0x1f5   : > { %2306 = vmatpush3.bf16.msra.mxu0 %v2501_v58 }
 0x1f6   : > { %2328 = vmatpush3.bf16.msra.mxu1 %v2502_v60  ;;  %2352 = vmatprep.subr.bf16.mxu0 %v2574_v62 }
 0x1f8   : > { %1674 = vmatmul.mubr.bf16.vlgmr.msra.gmra.mrb[0].mxu0 %v2745_v19 }
 0x1f9   : > { %1715 = vmatmul.mubr.bf16.vlgmr.msra.gmra.mrb[0].mxu1 %v2738_v14  ;;  %2353 = vmatpush3.bf16.msra.mxu0 %v2503_v61 }
 0x1fa   : > { %2354 = vmatprep.subr.bf16.mxu0 %v2574_v62  ;;  %2360 = vmatprep.mubr.msk.bf16.mxu0 %vm2575_vm0, %v2574_v62 }
 0x1fd   : > { %2355 = vmatpush3.bf16.msra.mxu0 %v2504_v63 }
 0x1fe   : > { %2356 = vmatprep.subr.bf16.mxu0 %v2574_v62 }
 0x201   : > { %2357 = vmatpush3.bf16.msra.mxu0 %v2505_v0 }
 0x202   : > { %2358 = vmatprep.subr.bf16.mxu0 %v2574_v62 }
 0x205   : > { %2359 = vmatpush3.bf16.msra.mxu0 %v2506_v1 }
 0x208   : > { %2361 = vmatmul.mubr.msk.bf16.vlgmr.msra.gmra.mrb[4].mxu0 %vm892_vm14, %v2697_v59 }
 0x2cb   : > { %v2307_v2 = vpop.f32.mrb[0].mxu0 }
 0x2cc   : > { %v2329_v3 = vpop.f32.mrb[0].mxu1  ;;  %v2308_v19 = vpop.f32.mrb[1].mxu0 }
 0x2cd   : > { %v2309_v5 = vadd.f32 %v2308_v19, %v2307_v2  ;;  %v2330_v14 = vpop.f32.mrb[1].mxu1  ;;  %v2310_v6 = vpop.f32.mrb[2].mxu0 }
 0x2ce   : > { %v2331_v7 = vadd.f32 %v2330_v14, %v2329_v3  ;;  %v2332_v4 = vpop.f32.mrb[2].mxu1  ;;  %v2311_v9 = vpop.f32.mrb[3].mxu0 }
 0x2cf   : > { %v2312_v10 = vadd.f32 %v2311_v9, %v2310_v6  ;;  %v2333_v11 = vpop.f32.mrb[3].mxu1 }
 0x2d0   : > { %v2334_v12 = vadd.f32 %v2333_v11, %v2332_v4  ;;  %v1717_v13 = vadd.f32 %v2331_v7, %v2309_v5 }
 0x2d2   : > { %v1720_v15 = vadd.f32 %v2334_v12, %v2312_v10 }
 0x2db   : > { %v1757_v16 = vpop.f32.mrb[4].mxu0 }
 0x2dc   : > { %v1758_v17 = vadd.f32 %v1757_v16, %v1717_v13  ;;  %v2362_v18 = vpop.f32.mrb[5].mxu0 }
 0x2dd   : > { %v1760_v59 = vpop.f32.mrb[6].mxu0 }
 0x2de   : > { %v1764_v20 = vadd.f32 %v1758_v17, %v1342_v8  ;;  %v1761_v21 = vadd.f32 %v1760_v59, %v1720_v15  ;;  %v2363_v46 = vpop.f32.mrb[7].mxu0 }
 0x2e0   : > { %1766 = vst [vmem:[#allocation3] sm:$0xff] %v1764_v20  ;;  %v1765_v25 = vadd.f32 %v1761_v21, %v1343_v22 }
 0x2e2   : > { %1767 = vst [vmem:[#allocation3 + $0x8] sm:$0xff] %v1765_v25 }
 0x2e3 PF: > { %p2235_p0 = scmp.ne.s32.totalorder %s2543_s12, 3 }
 0x2e4   : > { %v2236_v26 = vld [vmem:[%s2901_s2] ss:$0 sm:$0xff] (!%p2235_p0)  ;;  %v1774_v23 = vld [vmem:[#allocation2 + $0x8] sm:$0xff] (!%p2235_p0)  ;;  %vm1837_vm2 = vcmask (!%p2235_p0), 1041408   ;;  %vm1967_vm3 = vcmask (!%p2235_p0), 1041409   ;;  %vm1973_vm4 = vcmask (!%p2235_p0), 1043459  }
 0x2e5   : > { %1771 = sbr.rel (%p2235_p0) target bundleno = 790 (0x316), region = 48  ;;  %v1773_v27 = vld [vmem:[#allocation2] sm:$0xff] (!%p2235_p0)  ;;  %v1782_v24 = vadd.f32 (!%p2235_p0), %v2236_v26, %v1774_v23 }
 0x2e6   : > { %v1781_v28 = vadd.f32 (!%p2235_p0), %v2236_v26, %v1773_v27 }
 0x2e7   : > { %v1785_v30 = vld [vmem:[#allocation3] sm:$0xff] (!%p2235_p0)  ;;  %v1784_v35 = vmax.f32 (!%p2235_p0), %v1782_v24, 0.0 }
 0x2e8   : > { %v1787_v32 = vadd.f32 (!%p2235_p0), %v2236_v26, %v1785_v30  ;;  %v1783_v34 = vmax.f32 (!%p2235_p0), %v1781_v28, 0.0 }
 0x2e9   : > { %v1786_v31 = vld [vmem:[#allocation3 + $0x8] sm:$0xff] (!%p2235_p0) }
 0x2ea   : > { %v1788_v33 = vadd.f32 (!%p2235_p0), %v2236_v26, %v1786_v31  ;;  %v1789_v36 = vmax.f32 (!%p2235_p0), %v1787_v32, 0.0 }
 0x2ec   : > { %v1790_v37 = vmax.f32 %v1788_v33, 0.0  ;;  %v1791_v38 = vmax.f32 %v1783_v34, %v1789_v36 }
 0x2ee   : > { %v1792_v39 = vmax.f32 %v1784_v35, %v1790_v37  ;;  %v1795_v40 = vcombine.high %v1791_v38, %v1791_v38  ;;  %v1802_v41 = vrot.slane %v1791_v38, %v2674_v29 }
 0x2f0   : > { %v1812_v42 = vcombine.high %v1792_v39, %v1792_v39  ;;  %v1819_v43 = vrot.slane %v1792_v39, %v2674_v29  ;;  %v1809_v44 = vrot.slane %v1795_v40, %v2674_v29  ;;  %v1810_v45 = vcombine.high %v1802_v41, %v1802_v41 }
 0x2f1   : > { %v1838_v49 = vsel %vm1837_vm2, %v1802_v41, -inf }
 0x2f2   : > { %v1826_v47 = vrot.slane %v1812_v42, %v2674_v29  ;;  %v1827_v48 = vcombine.high %v1819_v43, %v1819_v43  ;;  %v1866_v50 = vsel %vm1837_vm2, %v1819_v43, -inf  ;;  %v1811_v51 = vcombine.high %v1809_v44, %v1809_v44 }
 0x2f3   : > { %v1839_v53 = vrot.slane %v1838_v49, 4  ;;  %v1845_v54 = vsel %vm1837_vm2, %v1810_v45, -inf  ;;  %v1852_v56 = vsel %vm1837_vm2, %v1809_v44, -inf  ;;  %v1867_v57 = vrot.slane %v1866_v50, 4 }
 0x2f4   : > { %v1828_v52 = vcombine.high %v1826_v47, %v1826_v47  ;;  %v1846_v55 = vrot.slane %v1845_v54, 4  ;;  %v1873_v58 = vsel %vm1837_vm2, %v1827_v48, -inf  ;;  %v1853_v61 = vrot.slane %v1852_v56, 4 }
 0x2f5   : > { %v1840_v60 = vmax.f32 %v1838_v49, %v1839_v53  ;;  %v1859_v62 = vsel %vm1837_vm2, %v1811_v51, -inf  ;;  %v1874_v63 = vrot.slane %v1873_v58, 4  ;;  %v1868_v2 = vmax.f32 %v1866_v50, %v1867_v57 }
 0x2f6   : > { %v1847_v0 = vmax.f32 %v1845_v54, %v1846_v55  ;;  %v1860_v1 = vrot.slane %v1859_v62, 4  ;;  %v1880_v3 = vsel %vm1837_vm2, %v1826_v47, -inf  ;;  %v1854_v5 = vmax.f32 %v1852_v56, %v1853_v61 }
 0x2f7   : > { %v1841_v19 = vrot.slane %v1840_v60, 2  ;;  %v1875_v14 = vmax.f32 %v1873_v58, %v1874_v63  ;;  %v1881_v6 = vrot.slane %v1880_v3, 4  ;;  %v1869_v9 = vrot.slane %v1868_v2, 2 }
 0x2f8   : > { %v1848_v7 = vrot.slane %v1847_v0, 2  ;;  %v1861_v4 = vmax.f32 %v1859_v62, %v1860_v1  ;;  %v1887_v10 = vsel %vm1837_vm2, %v1828_v52, -inf  ;;  %v1855_v12 = vrot.slane %v1854_v5, 2 }
 0x2f9   : > { %v1842_v11 = vmax.f32 %v1840_v60, %v1841_v19  ;;  %v1876_v13 = vrot.slane %v1875_v14, 2  ;;  %v1882_v15 = vmax.f32 %v1880_v3, %v1881_v6  ;;  %v1870_v17 = vmax.f32 %v1868_v2, %v1869_v9 }
 0x2fa   : > { %v1849_v8 = vmax.f32 %v1847_v0, %v1848_v7  ;;  %v1862_v16 = vrot.slane %v1861_v4, 2  ;;  %v1888_v18 = vrot.slane %v1887_v10, 4  ;;  %v1856_v59 = vmax.f32 %v1854_v5, %v1855_v12 }
 0x2fb   : > { %v1843_v22 = vrot.slane %v1842_v11, 1  ;;  %v1877_v20 = vmax.f32 %v1875_v14, %v1876_v13  ;;  %v1883_v21 = vrot.slane %v1882_v15, 2  ;;  %v1871_v26 = vrot.slane %v1870_v17, 1 }
 0x2fc   : > { %v1850_v46 = vrot.slane %v1849_v8, 1  ;;  %v1863_v25 = vmax.f32 %v1861_v4, %v1862_v16  ;;  %v1889_v27 = vmax.f32 %v1887_v10, %v1888_v18  ;;  %v1857_v28 = vrot.slane %v1856_v59, 1 }
 0x2fd   : > { %v1844_v23 = vmax.f32 %v1842_v11, %v1843_v22  ;;  %v1884_v24 = vmax.f32 %v1882_v15, %v1883_v21  ;;  %v1878_v32 = vrot.slane %v1877_v20, 1  ;;  %v1872_v35 = vmax.f32 %v1870_v17, %v1871_v26 }
 0x2fe   : > { %v1851_v30 = vmax.f32 %v1849_v8, %v1850_v46  ;;  %v1864_v31 = vrot.slane %v1863_v25, 1  ;;  %v1890_v33 = vrot.slane %v1889_v27, 2  ;;  %v1858_v34 = vmax.f32 %v1856_v59, %v1857_v28 }
 0x2ff   : > { %v1885_v36 = vrot.slane %v1884_v24, 1  ;;  %v1879_v41 = vmax.f32 %v1877_v20, %v1878_v32 }
 0x300   : > { %v1865_v37 = vmax.f32 %v1863_v25, %v1864_v31  ;;  %v1891_v38 = vmax.f32 %v1889_v27, %v1890_v33  ;;  %v1894_v40 = vmax.f32 %v1844_v23, %v1858_v34 }
 0x301   : > { %v1886_v39 = vmax.f32 %v1884_v24, %v1885_v36 }
 0x302   : > { %v1892_v42 = vrot.slane %v1891_v38, 1  ;;  %v1895_v43 = vmax.f32 %v1851_v30, %v1865_v37  ;;  %v1898_v45 = vpack.c.bf16 %v1894_v40, %v1894_v40 }
 0x303   : > { %v1896_v44 = vmax.f32 %v1872_v35, %v1886_v39 }
 0x304   : > { %v1893_v47 = vmax.f32 %v1891_v38, %v1892_v42  ;;  %v1899_v48 = vpack.c.bf16 %v1895_v43, %v1895_v43  ;;  %v1912_v50 = vrot.slane %v1898_v45, %v2674_v29 }
 0x305   : > { %v1900_v49 = vpack.c.bf16 %v1896_v44, %v1896_v44 }
 0x306   : > { %v1897_v51 = vmax.f32 %v1879_v41, %v1893_v47  ;;  %v1919_v52 = vrot.slane %v1899_v48, %v2674_v29  ;;  %v1940_v54 = vrot.slane %v1912_v50, %v2674_v29 }
 0x307   : > { %v1926_v53 = vrot.slane %v1900_v49, %v2674_v29 }
 0x308   : > { %v1901_v55 = vpack.c.bf16 %v1897_v51, %v1897_v51  ;;  %v1947_v56 = vrot.slane %v1919_v52, %v2674_v29  ;;  %v1962_v60 = vunpack.c.l.b16 %v1940_v54 }
 0x309   : > { %v1954_v57 = vrot.slane %v1926_v53, %v2674_v29 }
 0x30a   : > { %v1933_v58 = vrot.slane %v1901_v55, %v2674_v29  ;;  %v1963_v61 = vunpack.c.l.b16 %v1947_v56 }
 0x30b   : > { %v1964_v62 = vunpack.c.l.b16 %v1954_v57 }
 0x30c   : > { %v1961_v63 = vrot.slane %v1933_v58, %v2674_v29  ;;  %v1966_v0 = vrot.slane %v1963_v61, 7 }
 0x30d   : > { %v1969_v1 = vrot.slane %v1964_v62, 6 }
 0x30e   : > { %v1965_v2 = vunpack.c.l.b16 %v1961_v63  ;;  %v1968_v3 = vsel %vm1967_vm3, %v1966_v0, %v1962_v60 }
 0x30f   : > { %v1971_v19 = vsel %vm383_vm1, %v1969_v1, %v1968_v3 }
 0x310   : > { %v1972_v5 = vrot.slane %v1965_v2, 5 }
 0x312   : > { %v1974_v14 = vsel %vm1973_vm4, %v1972_v5, %v1971_v19 }
 0x313   : > { %v1975_v6 = vpack.c.b16 %v1974_v14, %v1974_v14 }
 0x315   : > { %2237 = vst.sshfl [vmem:[%s2649_s6] sm:$0x3 pattern:$0x76325410] %v1975_v6 }
 0x316 PF: > { %s13_s18 = sadd.s32 1, %s2567_s18   ;;  %s2909_s12 = smov %s2555_s15 }
 0x317   : > { %p10_p1 = scmp.ge.s32.totalorder %s13_s18, 18   ;;  %s2910_s13 = smov %s2559_s16 }
 0x318   : > { %s2911_s14 = smov %s2563_s17  ;;  %s2912_s15 = smov %s2916_s19 }
 0x319   : > { %s2913_s16 = smov %s2920_s20  ;;  %s2914_s17 = smov %s2924_s21 }
 0x31a   :  { %12 = sbr.rel (!%p10_p1) target bundleno = 4 (0x4), region = 82 }

// kernel: gnina2017_forward.7
= control target key start
LH: loop header
LB: loop body
LE: loop exit
PB: predicated region body
PF: predicated region fallthrough
CT: control target
= control target key end

     0   :  { %8 = vsyncpa [#allocation4], 0  ;;  %s825_s12 = smov 0   ;;  %s916_s0 = inlined_call_operand.vmem [shape: bf16[2,1024], index: 0, kind: input, shape index: {}]   ;;  %s917_s1 = inlined_call_operand.vmem [shape: bf16[1024,2], index: 1, kind: input, shape index: {}]   ;;  %s918_s2 = inlined_call_operand.vmem [shape: f32[1,2], index: 2, kind: input, shape index: {}]   ;;  %s919_s3 = inlined_call_operand.hbm [shape: f32[2,2], index: 3, kind: output, shape index: {}]  }
   0x1 LB: > { %s831_s13 = sadd.s32 4294967295, %s800_s12   ;;  %p627_p0 = scmp.ge.s32.totalorder %s800_s12, 1  ;;  %s800_s12 = sphi %s825_s12, %s14_s12  }
   0x2   : > { %p144_p1 = scmp.lt.s32.totalorder %s800_s12, 3 }
   0x4   : > { %p145_p2 = pnand %p627_p0, %p144_p1 }
   0x5   : > { %s628_s14 = sshll.u32 (!%p145_p2), %s831_s13, 2  ;;  %s629_s15 = sshll.u32 (!%p145_p2), %s831_s13, 6 }
   0x6   : > { %148 = sbr.rel (%p145_p2) target bundleno = 312 (0x138), region = 32  ;;  %p168_p3 = scmp.lt.s32.totalorder (!%p145_p2), %s628_s14, 7 }
   0x7   : > { %p173_p4 = scmp.lt.s32.totalorder (!%p145_p2), %s629_s15, 127  ;;  %p631_p5 = scmp.ne.s32.totalorder (!%p145_p2), %s831_s13, 0 }
   0xd   : > { %s921_s14 = smov (!%p168_p3, %s628_s14), 7  ;;  %s923_s15 = smov (!%p173_p4, %s629_s15), 127 }
   0xe   : > { %s170_s18 = scalar_lea.vmem %s916_s0, %s921_s14  ;;  %s630_s19 = sshll.u32 %s923_s15, 2  ;;  %vm183_vm0 = vcmask (!%p631_p5), 9216   ;;  %v802_v0 = vmov (!%p631_p5), 0.0  }
   0xf   : > { %s846_s22 = scalar_lea.vmem %s917_s1, %s630_s19  ;;  %182 = sbr.rel (%p631_p5) target bundleno = 22 (0x16), region = 36  ;;  %184 = vst.msk [vmem:[#allocation2] sm:$0x3] (!%p631_p5), %vm183_vm0, %v802_v0 }
  0x16 PF: > { %v732_v1 = vld [vmem:[%s846_s22 + $0x40] sm:$0xff]   ;;  %v736_v5 = vld [vmem:[%s846_s22 + $0x48] sm:$0xff]   ;;  %v740_v9 = vld [vmem:[%s846_s22 + $0x50] sm:$0xff]   ;;  %v263_v31 = vlaneseq  ;;  %v803_v35 = vmov 1966171168   ;;  %vm553_vm1 = vcmask 9216  }
  0x17   : > { %v733_v2 = vld [vmem:[%s846_s22 + $0xc0] sm:$0xff]   ;;  %671 = vmatprep.subr.bf16.mxu0 %v732_v1  ;;  %v737_v6 = vld [vmem:[%s846_s22 + $0xc8] sm:$0xff]   ;;  %v741_v10 = vld [vmem:[%s846_s22 + $0xd0] sm:$0xff]   ;;  %v261_v36 = vunpack.c.l.s4 %v803_v35  ;;  %p665_p6 = scmp.ne.s32.totalorder %s831_s13, 1 }
  0x18   : > { %v734_v3 = vld [vmem:[%s846_s22] sm:$0xff]   ;;  %693 = vmatprep.subr.bf16.mxu1 %v733_v2  ;;  %v738_v7 = vld [vmem:[%s846_s22 + $0x8] sm:$0xff]   ;;  %v742_v11 = vld [vmem:[%s846_s22 + $0x10] sm:$0xff]   ;;  %v264_v37 = vshrl.u32 %v263_v31, 7 }
  0x19   : > { %v735_v4 = vld [vmem:[%s846_s22 + $0x80] sm:$0xff]   ;;  %672 = vmatpush3.bf16.msra.mxu0 %v734_v3  ;;  %v739_v8 = vld [vmem:[%s846_s22 + $0x88] sm:$0xff]   ;;  %v743_v12 = vld [vmem:[%s846_s22 + $0x90] sm:$0xff]   ;;  %v262_v39 = vunpack.c.0.s8 %v261_v36 }
  0x1a   : > { %694 = vmatpush3.bf16.msra.mxu1 %v735_v4  ;;  %673 = vmatprep.subr.bf16.mxu0 %v736_v5  ;;  %v744_v13 = vld [vmem:[%s846_s22 + $0x58] sm:$0xff]   ;;  %v748_v17 = vld [vmem:[%s846_s22 + $0x60] sm:$0xff]   ;;  %v752_v21 = vld [vmem:[%s846_s22 + $0x68] sm:$0xff]  }
  0x1b   : > { %695 = vmatprep.subr.bf16.mxu1 %v737_v6  ;;  %v745_v14 = vld [vmem:[%s846_s22 + $0xd8] sm:$0xff]   ;;  %v749_v18 = vld [vmem:[%s846_s22 + $0xe0] sm:$0xff]   ;;  %v753_v22 = vld [vmem:[%s846_s22 + $0xe8] sm:$0xff]   ;;  %v265_v40 = vsub.s32 %v262_v39, %v264_v37 }
  0x1c   : > { %v746_v15 = vld [vmem:[%s846_s22 + $0x18] sm:$0xff]   ;;  %v750_v19 = vld [vmem:[%s846_s22 + $0x20] sm:$0xff]   ;;  %v754_v23 = vld [vmem:[%s846_s22 + $0x28] sm:$0xff]  }
  0x1d   : > { %674 = vmatpush3.bf16.msra.mxu0 %v738_v7  ;;  %v747_v16 = vld [vmem:[%s846_s22 + $0x98] sm:$0xff]   ;;  %v751_v20 = vld [vmem:[%s846_s22 + $0xa0] sm:$0xff]   ;;  %v755_v24 = vld [vmem:[%s846_s22 + $0xa8] sm:$0xff]  }
  0x1e   : > { %696 = vmatpush3.bf16.msra.mxu1 %v739_v8  ;;  %675 = vmatprep.subr.bf16.mxu0 %v740_v9  ;;  %v756_v25 = vld [vmem:[%s846_s22 + $0x70] sm:$0xff]   ;;  %v760_v29 = vld [vmem:[%s846_s22 + $0x78] sm:$0xff]   ;;  %v632_v34 = vld.sshfl [vmem:[%s170_s18] sm:$0x33 pattern:$0x75316420] }
  0x1f   : > { %697 = vmatprep.subr.bf16.mxu1 %v741_v10  ;;  %v757_v26 = vld [vmem:[%s846_s22 + $0xf0] sm:$0xff]   ;;  %v761_v30 = vld [vmem:[%s846_s22 + $0xf8] sm:$0xff]   ;;  %v259_v38 = vcombine.high %v632_v34, %v632_v34  ;;  %v266_v42 = vrot.slane %v632_v34, %v265_v40  ;;  %v185_v54 = vld [vmem:[#allocation2] sm:$0x3] }
  0x20   : > { %v758_v27 = vld [vmem:[%s846_s22 + $0x30] sm:$0xff]   ;;  %v762_v32 = vld [vmem:[%s846_s22 + $0x38] sm:$0xff]   ;;  %v666_v59 = vld [vmem:[%s918_s2] ss:$0 sm:$0xff] (!%p665_p6) }
  0x21   : > { %676 = vmatpush3.bf16.msra.mxu0 %v742_v11  ;;  %v759_v28 = vld [vmem:[%s846_s22 + $0xb0] sm:$0xff]   ;;  %v763_v33 = vld [vmem:[%s846_s22 + $0xb8] sm:$0xff]   ;;  %v273_v41 = vrot.slane %v259_v38, %v265_v40  ;;  %v274_v44 = vcombine.high %v266_v42, %v266_v42 }
  0x22   : > { %698 = vmatpush3.bf16.msra.mxu1 %v743_v12  ;;  %677 = vmatprep.subr.bf16.mxu0 %v744_v13 }
  0x23   : > { %699 = vmatprep.subr.bf16.mxu1 %v745_v14  ;;  %504 = vmatprep.mubr.bf16.mxu0 %v273_v41  ;;  %v275_v43 = vcombine.high %v273_v41, %v273_v41 }
  0x25   : > { %678 = vmatpush3.bf16.msra.mxu0 %v746_v15  ;;  %544 = vmatprep.mubr.bf16.mxu1 %v275_v43 }
  0x26   : > { %700 = vmatpush3.bf16.msra.mxu1 %v747_v16  ;;  %679 = vmatprep.subr.bf16.mxu0 %v748_v17 }
  0x27   : > { %701 = vmatprep.subr.bf16.mxu1 %v749_v18 }
  0x29   : > { %680 = vmatpush3.bf16.msra.mxu0 %v750_v19 }
  0x2a   : > { %702 = vmatpush3.bf16.msra.mxu1 %v751_v20  ;;  %681 = vmatprep.subr.bf16.mxu0 %v752_v21 }
  0x2b   : > { %703 = vmatprep.subr.bf16.mxu1 %v753_v22 }
  0x2d   : > { %682 = vmatpush3.bf16.msra.mxu0 %v754_v23 }
  0x2e   : > { %704 = vmatpush3.bf16.msra.mxu1 %v755_v24  ;;  %683 = vmatprep.subr.bf16.mxu0 %v756_v25 }
  0x2f   : > { %705 = vmatprep.subr.bf16.mxu1 %v757_v26 }
  0x31   : > { %684 = vmatpush3.bf16.msra.mxu0 %v758_v27 }
  0x32   : > { %706 = vmatpush3.bf16.msra.mxu1 %v759_v28  ;;  %685 = vmatprep.subr.bf16.mxu0 %v760_v29 }
  0x33   : > { %707 = vmatprep.subr.bf16.mxu1 %v761_v30 }
  0x35   : > { %686 = vmatpush3.bf16.msra.mxu0 %v762_v32 }
  0x36   : > { %708 = vmatpush3.bf16.msra.mxu1 %v763_v33 }
  0x38   : > { %505 = vmatmul.mubr.bf16.vlgmr.msra.gmra.mrb[0].mxu0 %v266_v42 }
  0x39   : > { %545 = vmatmul.mubr.bf16.vlgmr.msra.gmra.mrb[0].mxu1 %v274_v44 }
 0x10b   : > { %v687_v45 = vpop.f32.mrb[0].mxu0 }
 0x10c   : > { %v688_v46 = vpop.f32.mrb[1].mxu0  ;;  %v709_v47 = vpop.f32.mrb[0].mxu1 }
 0x10d   : > { %v689_v48 = vadd.f32 %v688_v46, %v687_v45  ;;  %v690_v49 = vpop.f32.mrb[2].mxu0  ;;  %v710_v50 = vpop.f32.mrb[1].mxu1 }
 0x10e   : > { %v691_v51 = vpop.f32.mrb[3].mxu0  ;;  %v711_v52 = vadd.f32 %v710_v50, %v709_v47  ;;  %v712_v53 = vpop.f32.mrb[2].mxu1  ;;  %558 = sbr.rel (%p665_p6) target bundleno = 287 (0x11f), region = 40 }
 0x10f   : > { %v713_v55 = vpop.f32.mrb[3].mxu1 }
 0x110   : > { %v547_v56 = vadd.f32 %v711_v52, %v689_v48 }
 0x112   : > { %v552_v57 = vadd.f32 %v547_v56, %v185_v54 }
 0x114   : > { %554 = vst.msk [vmem:[#allocation2] sm:$0x3] %vm553_vm1, %v552_v57 }
 0x11b   : > { %v559_v58 = vld [vmem:[#allocation2] sm:$0x3] }
 0x11c   : > { %v567_v60 = vadd.f32 %v666_v59, %v559_v58 }
 0x11e   : > { %568 = vst.msk [vmem:[#allocation3] sm:$0x3] %vm553_vm1, %v567_v60 }
 0x11f PF: > { %p719_p7 = scmp.eq.s32.totalorder %s831_s13, 1  ;;  %s804_s27 = smov [#allocation3]  }
 0x120   : > { %s576_s28 = sshll.u32 %s804_s27, 4  ;;  %s577_s28 = int_to_ptr.vmem [resolvable:$true] %s576_s28 }
 0x121   : > { %s764_s29 = scalar_lea.vmem %s577_s28, 32  ;;  %p771_p11 = scmp.lt.s32.totalorder %s577_s28, %s577_s28 }
 0x122   : > { %p765_p8 = scmp.ne.s32.totalorder %s577_s28, %s764_s29  ;;  %p772_p12 = scmp.lt.s32.totalorder %s764_s29, %s764_s29 }
 0x124   : > { %p766_p9 = pnand %p765_p8, %p719_p7  ;;  %p773_p13 = por %p772_p12, %p771_p11 }
 0x126   : > { %p767_p10 = pneg %p766_p9 }
 0x128   : > { %p774_p0 = pnand %p773_p13, %p767_p10 }
 0x12a   : > { %777 = shalt.err (!%p774_p0)
}
 0x12b   : > { %s778_s5 = scalar_lea.hbm %s919_s3, 32 }
 0x12c   : > { %p779_p1 = scmp.ne.s32.totalorder %s919_s3, %s778_s5  ;;  %p784_p4 = scmp.lt.u32.totalorder %s778_s5, %s919_s3 }
 0x12e   : > { %p780_p2 = pnand %p779_p1, %p719_p7 }
 0x130   : > { %p781_p3 = pneg %p780_p2 }
 0x132   : > { %p786_p5 = pnand %p784_p4, %p781_p3 }
 0x134   : > { %789 = shalt.err (!%p786_p5)
}
 0x135   : > { %716 = dma.vmem_to_hbm [thread:$0]  (%p719_p7), %s577_s28, 32, %s919_s3, [#allocation4]  }
 0x136   : > { %795 = dma.done.wait (%p719_p7), [#allocation4], 32  }
 0x137   : > { %797 = vsyncadd (%p719_p7), [#allocation4], 4294967264 }
 0x138 PF: > { %s14_s12 = sadd.s32 1, %s800_s12  }
 0x139   : > { %p11_p6 = scmp.ge.s32.totalorder %s14_s12, 4  }
 0x13b   :  { %13 = sbr.rel (!%p11_p6) target bundleno = 1 (0x1), region = 70 }
 0x142   :  { %589 = vsyncpa [#allocation4], 1 }
 0x143   :  { %591 = vsyncpa [#allocation4 + $0x1], 1 }

</bundles_post_ra>
